<compile_context>
chip_gen: v7x
topology: tpu7x:2x2x1
jax: 0.10.0
libtpu: 0.0.40
codegen_flags: <defaults>
</compile_context>

<pallas_src>
import numpy as np
import jax
import jax.numpy as jnp
from jax import lax
from jax.experimental import pallas as pl
from jax.experimental.pallas import tpu as pltpu

# ---- hyperparameters (match the PyTorch module) ----
D_MODEL = 512
D_K = D_V = 64
N_HEADS = 8
D_FF = 2048
N_LAYER = 6
LN_EPS = 1e-5                      # nn.LayerNorm default
SRC_VOCAB_SIZE = 32                # synthetic vocab (replaces cn_seqcount.json)


# --------------------------------------------------------------------------------------
# Fused encoder kernel: one grid step = (batch element b, layer l)
# --------------------------------------------------------------------------------------
def encoder_layer_kernel(x_ref, bias_ref, wq_ref, wk_ref, wv_ref, wo_ref,
                         w1_ref, w2_ref, out_ref, attn_ref, ctx_scratch):
    layer = pl.program_id(1)

    # Layer 0 consumes the embedded + positionally-encoded input; later layers consume
    # the activation carried in the (resident) output block.
    @pl.when(layer == 0)
    def _():
        out_ref[...] = x_ref[...]

    x = out_ref[...]                                   # [S, D] f32, resident across layers
    xb = x.astype(jnp.bfloat16)

    # ---- QKV projections: full-width [S,512] x [512,512] bf16 matmuls, f32 accumulation
    q = jnp.dot(xb, wq_ref[...], preferred_element_type=jnp.float32)   # [S, H*dk]
    k = jnp.dot(xb, wk_ref[...], preferred_element_type=jnp.float32)   # [S, H*dk]
    v = jnp.dot(xb, wv_ref[...], preferred_element_type=jnp.float32)   # [S, H*dv]
    q = q * (1.0 / float(np.sqrt(D_K)))                # fold 1/sqrt(d_k) into Q once

    # ---- batched (over heads) scaled-dot-product attention ----
    qh = jnp.stack([q[:, h * D_K:(h + 1) * D_K] for h in range(N_HEADS)], axis=0)  # [H,S,dk]
    kh = jnp.stack([k[:, h * D_K:(h + 1) * D_K] for h in range(N_HEADS)], axis=0)  # [H,S,dk]
    vh = jnp.stack([v[:, h * D_V:(h + 1) * D_V] for h in range(N_HEADS)], axis=0)  # [H,S,dv]

    scores = jnp.einsum('hqd,hkd->hqk', qh, kh,
                        preferred_element_type=jnp.float32)            # [H, S, S]
    scores = scores + bias_ref[...][None, :, :]        # -1e9 on PAD keys (masked_fill)

    m = jnp.max(scores, axis=-1, keepdims=True)
    e = jnp.exp(scores - m)
    attn = e / jnp.sum(e, axis=-1, keepdims=True)      # softmax(dim=-1), f32
    attn_ref[...] = attn                               # single store of all heads

    ctx = jnp.einsum('hqk,hkd->hqd', attn, vh,
                     preferred_element_type=jnp.float32)               # [H, S, dv]

    # merge heads into [S, H*dv] in VMEM scratch (on-chip only, no HBM traffic)
    for h in range(N_HEADS):
        ctx_scratch[:, h * D_V:(h + 1) * D_V] = ctx[h]

    # ---- output projection: ONE [S,512] x [512,512] matmul (K = 512 contraction) ----
    attn_out = jnp.dot(ctx_scratch[...].astype(jnp.bfloat16), wo_ref[...],
                       preferred_element_type=jnp.float32)             # [S, D]

    # residual + LayerNorm (fresh nn.LayerNorm each forward -> weight=1, bias=0)
    y = attn_out + x
    mean = jnp.mean(y, axis=-1, keepdims=True)
    yc = y - mean
    var = jnp.mean(yc * yc, axis=-1, keepdims=True)
    y = yc * lax.rsqrt(var + LN_EPS)

    # ---- position-wise feed-forward + residual + LayerNorm ----
    h1 = jnp.dot(y.astype(jnp.bfloat16), w1_ref[...],
                 preferred_element_type=jnp.float32)                   # [S, d_ff]
    h1 = jnp.maximum(h1, 0.0)
    y2 = jnp.dot(h1.astype(jnp.bfloat16), w2_ref[...],
                 preferred_element_type=jnp.float32) + y
    mean2 = jnp.mean(y2, axis=-1, keepdims=True)
    yc2 = y2 - mean2
    var2 = jnp.mean(yc2 * yc2, axis=-1, keepdims=True)
    out_ref[...] = yc2 * lax.rsqrt(var2 + LN_EPS)      # carried to the next layer / HBM


# --------------------------------------------------------------------------------------
# Wrapper: single pallas_call for the whole 6-layer encoder stack
# --------------------------------------------------------------------------------------
def encoder_pallas(x, pad_bias, wq, wk, wv, wo, w1, w2):
    B, S, D = x.shape
    L = wq.shape[0]
    return pl.pallas_call(
        encoder_layer_kernel,
        out_shape=(
            jax.ShapeDtypeStruct((B, S, D), jnp.float32),
            jax.ShapeDtypeStruct((B, L, N_HEADS, S, S), jnp.float32),
        ),
        grid=(B, L),
        in_specs=[
            pl.BlockSpec((None, S, D), lambda b, l: (b, 0, 0)),            # x (resident per b)
            pl.BlockSpec((None, 1, S), lambda b, l: (b, 0, 0)),            # pad bias [1, S]
            pl.BlockSpec((None, D, N_HEADS * D_K), lambda b, l: (l, 0, 0)),  # W_Q (per layer)
            pl.BlockSpec((None, D, N_HEADS * D_K), lambda b, l: (l, 0, 0)),  # W_K
            pl.BlockSpec((None, D, N_HEADS * D_V), lambda b, l: (l, 0, 0)),  # W_V
            pl.BlockSpec((None, N_HEADS * D_V, D), lambda b, l: (l, 0, 0)),  # W_O
            pl.BlockSpec((None, D, D_FF), lambda b, l: (l, 0, 0)),           # FFN W1
            pl.BlockSpec((None, D_FF, D), lambda b, l: (l, 0, 0)),           # FFN W2
        ],
        out_specs=(
            pl.BlockSpec((None, S, D), lambda b, l: (b, 0, 0)),              # activation carry
            pl.BlockSpec((None, None, N_HEADS, S, S), lambda b, l: (b, l, 0, 0, 0)),
        ),
        scratch_shapes=[pltpu.VMEM((S, N_HEADS * D_V), jnp.float32)],
        compiler_params=pltpu.CompilerParams(
            dimension_semantics=("parallel", "arbitrary"),   # batch across cores, layers serial
            vmem_limit_bytes=32 << 20,                       # fits v7x's 64 MiB physical VMEM
        ),
    )(x, pad_bias, wq, wk, wv, wo, w1, w2)


def positional_encoding(seq_len, d_model):
    pos = np.arange(seq_len, dtype=np.float32)[:, None]
    div = np.exp(np.arange(0, d_model, 2, dtype=np.float32) * (-np.log(10000.0) / d_model))
    pe = np.zeros((seq_len, d_model), np.float32)
    pe[:, 0::2] = np.sin(pos * div)
    pe[:, 1::2] = np.cos(pos * div)
    return jnp.asarray(pe)


def encoder_forward(enc_inputs, emb_table, params):
    """enc_inputs: int32 [B, S] -> (enc_outputs [B, S, D], list of attn [B, H, S, S])"""
    B, S = enc_inputs.shape
    x = jnp.take(emb_table, enc_inputs, axis=0)             # embedding lookup (glue)
    x = x + positional_encoding(S, D_MODEL)[None, :, :]      # positional encoding add
    # TODO(synk): nn.Dropout(p=0.1) in PositionalEncoding treated as identity (eval mode).

    # get_attn_pad_mask as an additive bias: -1e9 where key token is PAD(0), else 0.
    pad_bias = jnp.where(enc_inputs == 0, -1e9, 0.0).astype(jnp.float32)[:, None, :]  # [B,1,S]

    enc_out, attn_all = encoder_pallas(
        x, pad_bias,
        params["wq"], params["wk"], params["wv"], params["wo"],
        params["w1"], params["w2"])
    attns = [attn_all[:, l] for l in range(N_LAYER)]
    return enc_out, attns


encoder_forward_jit = jax.jit(encoder_forward)


def init_params(key):
    keys = jax.random.split(key, 7)
    emb = jax.random.normal(keys[0], (SRC_VOCAB_SIZE, D_MODEL), jnp.float32)

    def nrm(k, shape, fan_in):
        w = jax.random.normal(k, shape, jnp.float32) / float(np.sqrt(fan_in))
        return w.astype(jnp.bfloat16)   # bf16 weight storage (halves HBM weight traffic)

    params = dict(
        wq=nrm(keys[1], (N_LAYER, D_MODEL, N_HEADS * D_K), D_MODEL),
        wk=nrm(keys[2], (N_LAYER, D_MODEL, N_HEADS * D_K), D_MODEL),
        wv=nrm(keys[3], (N_LAYER, D_MODEL, N_HEADS * D_V), D_MODEL),
        wo=nrm(keys[4], (N_LAYER, N_HEADS * D_V, D_MODEL), N_HEADS * D_V),
        w1=nrm(keys[5], (N_LAYER, D_MODEL, D_FF), D_MODEL),
        w2=nrm(keys[6], (N_LAYER, D_FF, D_MODEL), D_FF),
    )
    return emb, params


if __name__ == "__main__":
    key = jax.random.PRNGKey(0)
    k_tok, k_param = jax.random.split(key)

    B, S = 2, 8
    tokens = jax.random.randint(k_tok, (B, S), 1, SRC_VOCAB_SIZE, dtype=jnp.int32)
    tokens = tokens.at[:, -2:].set(0)       # pad positions so the mask is exercised

    emb_table, params = init_params(k_param)

    enc_outputs, enc_self_attns = encoder_forward_jit(tokens, emb_table, params)
    enc_outputs = jax.block_until_ready(enc_outputs)
    for a in enc_self_attns:
        jax.block_until_ready(a)

    assert enc_outputs.shape == (B, S, D_MODEL)
    assert len(enc_self_attns) == N_LAYER
    assert enc_self_attns[0].shape == (B, N_HEADS, S, S)
    assert bool(jnp.all(jnp.isfinite(enc_outputs)))
    # attention rows are probability distributions
    row_sums = jnp.sum(enc_self_attns[0], axis=-1)
    assert bool(jnp.all(jnp.abs(row_sums - 1.0) < 1e-3))
    print("KERNEL_OK")
</pallas_src>

<mosaic_0001>
module attributes {stable_mosaic.version = 11 : i64} {
  func.func @encoder_layer_kernel(%arg0: i32, %arg1: i32, %arg2: memref<1x8x512xf32, #tpu.memory_space<vmem>>, %arg3: memref<1x1x8xf32, #tpu.memory_space<vmem>>, %arg4: memref<1x512x512xbf16, #tpu.memory_space<vmem>>, %arg5: memref<1x512x512xbf16, #tpu.memory_space<vmem>>, %arg6: memref<1x512x512xbf16, #tpu.memory_space<vmem>>, %arg7: memref<1x512x512xbf16, #tpu.memory_space<vmem>>, %arg8: memref<1x512x2048xbf16, #tpu.memory_space<vmem>>, %arg9: memref<1x2048x512xbf16, #tpu.memory_space<vmem>>, %arg10: memref<1x8x512xf32, #tpu.memory_space<vmem>>, %arg11: memref<1x1x8x8x8xf32, #tpu.memory_space<vmem>>, %arg12: memref<8x512xf32, #tpu.memory_space<vmem>>) attributes {dimension_semantics = [#tpu.dimension_semantics<parallel>, #tpu.dimension_semantics<arbitrary>], iteration_bounds = array<i64: 2, 6>, scalar_prefetch = 0 : i64, scratch_operands = 1 : i64, tpu.core_type = #tpu.core_type<tc>, window_params = [{transform_indices = @transform_0, window_bounds = array<i64: 1, 8, 512>}, {transform_indices = @transform_1, window_bounds = array<i64: 1, 1, 8>}, {transform_indices = @transform_2, window_bounds = array<i64: 1, 512, 512>}, {transform_indices = @transform_3, window_bounds = array<i64: 1, 512, 512>}, {transform_indices = @transform_4, window_bounds = array<i64: 1, 512, 512>}, {transform_indices = @transform_5, window_bounds = array<i64: 1, 512, 512>}, {transform_indices = @transform_6, window_bounds = array<i64: 1, 512, 2048>}, {transform_indices = @transform_7, window_bounds = array<i64: 1, 2048, 512>}, {transform_indices = @transform_8, window_bounds = array<i64: 1, 8, 512>}, {transform_indices = @transform_9, window_bounds = array<i64: 1, 1, 8, 8, 8>}]} {
    %c0_i32 = arith.constant 0 : i32
    %0 = arith.cmpi eq, %arg1, %c0_i32 : i32
    %1 = arith.extui %0 : i1 to i32
    %c0_i32_0 = arith.constant 0 : i32
    %2 = arith.cmpi ne, %1, %c0_i32_0 : i32
    scf.if %2 {
      %c0_64 = arith.constant 0 : index
      %c0_65 = arith.constant 0 : index
      %c0_66 = arith.constant 0 : index
      %163 = vector.load %arg2[%c0_64, %c0_65, %c0_66] : memref<1x8x512xf32, #tpu.memory_space<vmem>>, vector<1x8x512xf32>
      %164 = vector.shape_cast %163 : vector<1x8x512xf32> to vector<8x512xf32>
      %c0_67 = arith.constant 0 : index
      %c0_68 = arith.constant 0 : index
      %c0_69 = arith.constant 0 : index
      %165 = vector.load %arg10[%c0_67, %c0_68, %c0_69] : memref<1x8x512xf32, #tpu.memory_space<vmem>>, vector<1x8x512xf32>
      %166 = vector.shape_cast %165 : vector<1x8x512xf32> to vector<8x512xf32>
      %167 = vector.shape_cast %164 : vector<8x512xf32> to vector<1x8x512xf32>
      tpu.vector_store %arg10[%c0_67, %c0_68, %c0_69], %167 {strides = array<i32>} : memref<1x8x512xf32, #tpu.memory_space<vmem>>, vector<1x8x512xf32>,
    } else {
    }
    %c0 = arith.constant 0 : index
    %c0_1 = arith.constant 0 : index
    %c0_2 = arith.constant 0 : index
    %3 = vector.load %arg10[%c0, %c0_1, %c0_2] : memref<1x8x512xf32, #tpu.memory_space<vmem>>, vector<1x8x512xf32>
    %4 = vector.shape_cast %3 : vector<1x8x512xf32> to vector<8x512xf32>
    %5 = arith.truncf %4 : vector<8x512xf32> to vector<8x512xbf16>
    %c0_3 = arith.constant 0 : index
    %c0_4 = arith.constant 0 : index
    %c0_5 = arith.constant 0 : index
    %6 = vector.load %arg4[%c0_3, %c0_4, %c0_5] : memref<1x512x512xbf16, #tpu.memory_space<vmem>>, vector<1x512x512xbf16>
    %7 = vector.shape_cast %6 : vector<1x512x512xbf16> to vector<512x512xbf16>
    %cst = arith.constant dense<0.000000e+00> : vector<8x512xf32>
    %8 = tpu.matmul %5, %7, %cst {dimension_numbers = #tpu.dot_dimension_numbers<[1], [0], [0], [1], [0, 0, 1, 1], [], []>} : vector<8x512xbf16>, vector<512x512xbf16>, vector<8x512xf32> -> vector<8x512xf32>
    %c0_6 = arith.constant 0 : index
    %c0_7 = arith.constant 0 : index
    %c0_8 = arith.constant 0 : index
    %9 = vector.load %arg5[%c0_6, %c0_7, %c0_8] : memref<1x512x512xbf16, #tpu.memory_space<vmem>>, vector<1x512x512xbf16>
    %10 = vector.shape_cast %9 : vector<1x512x512xbf16> to vector<512x512xbf16>
    %cst_9 = arith.constant dense<0.000000e+00> : vector<8x512xf32>
    %11 = tpu.matmul %5, %10, %cst_9 {dimension_numbers = #tpu.dot_dimension_numbers<[1], [0], [0], [1], [0, 0, 1, 1], [], []>} : vector<8x512xbf16>, vector<512x512xbf16>, vector<8x512xf32> -> vector<8x512xf32>
    %c0_10 = arith.constant 0 : index
    %c0_11 = arith.constant 0 : index
    %c0_12 = arith.constant 0 : index
    %12 = vector.load %arg6[%c0_10, %c0_11, %c0_12] : memref<1x512x512xbf16, #tpu.memory_space<vmem>>, vector<1x512x512xbf16>
    %13 = vector.shape_cast %12 : vector<1x512x512xbf16> to vector<512x512xbf16>
    %cst_13 = arith.constant dense<0.000000e+00> : vector<8x512xf32>
    %14 = tpu.matmul %5, %13, %cst_13 {dimension_numbers = #tpu.dot_dimension_numbers<[1], [0], [0], [1], [0, 0, 1, 1], [], []>} : vector<8x512xbf16>, vector<512x512xbf16>, vector<8x512xf32> -> vector<8x512xf32>
    %cst_14 = arith.constant 1.250000e-01 : f32
    %15 = vector.broadcast %cst_14 : f32 to vector<8x512xf32>
    %16 = arith.mulf %8, %15 : vector<8x512xf32>
    %17 = vector.extract_strided_slice %16 {offsets = [0, 0], sizes = [8, 64], strides = [1, 1]} : vector<8x512xf32> to vector<8x64xf32>
    %18 = vector.extract_strided_slice %16 {offsets = [0, 64], sizes = [8, 64], strides = [1, 1]} : vector<8x512xf32> to vector<8x64xf32>
    %19 = vector.extract_strided_slice %16 {offsets = [0, 128], sizes = [8, 64], strides = [1, 1]} : vector<8x512xf32> to vector<8x64xf32>
    %20 = vector.extract_strided_slice %16 {offsets = [0, 192], sizes = [8, 64], strides = [1, 1]} : vector<8x512xf32> to vector<8x64xf32>
    %21 = vector.extract_strided_slice %16 {offsets = [0, 256], sizes = [8, 64], strides = [1, 1]} : vector<8x512xf32> to vector<8x64xf32>
    %22 = vector.extract_strided_slice %16 {offsets = [0, 320], sizes = [8, 64], strides = [1, 1]} : vector<8x512xf32> to vector<8x64xf32>
    %23 = vector.extract_strided_slice %16 {offsets = [0, 384], sizes = [8, 64], strides = [1, 1]} : vector<8x512xf32> to vector<8x64xf32>
    %24 = vector.extract_strided_slice %16 {offsets = [0, 448], sizes = [8, 64], strides = [1, 1]} : vector<8x512xf32> to vector<8x64xf32>
    %25 = vector.shape_cast %17 : vector<8x64xf32> to vector<1x8x64xf32>
    %26 = vector.shape_cast %18 : vector<8x64xf32> to vector<1x8x64xf32>
    %27 = vector.shape_cast %19 : vector<8x64xf32> to vector<1x8x64xf32>
    %28 = vector.shape_cast %20 : vector<8x64xf32> to vector<1x8x64xf32>
    %29 = vector.shape_cast %21 : vector<8x64xf32> to vector<1x8x64xf32>
    %30 = vector.shape_cast %22 : vector<8x64xf32> to vector<1x8x64xf32>
    %31 = vector.shape_cast %23 : vector<8x64xf32> to vector<1x8x64xf32>
    %32 = vector.shape_cast %24 : vector<8x64xf32> to vector<1x8x64xf32>
    %33 = tpu.concatenate %25, %26, %27, %28, %29, %30, %31, %32 in 0 : vector<1x8x64xf32>, vector<1x8x64xf32>, vector<1x8x64xf32>, vector<1x8x64xf32>, vector<1x8x64xf32>, vector<1x8x64xf32>, vector<1x8x64xf32>, vector<1x8x64xf32> -> vector<8x8x64xf32>
    %34 = vector.extract_strided_slice %11 {offsets = [0, 0], sizes = [8, 64], strides = [1, 1]} : vector<8x512xf32> to vector<8x64xf32>
    %35 = vector.extract_strided_slice %11 {offsets = [0, 64], sizes = [8, 64], strides = [1, 1]} : vector<8x512xf32> to vector<8x64xf32>
    %36 = vector.extract_strided_slice %11 {offsets = [0, 128], sizes = [8, 64], strides = [1, 1]} : vector<8x512xf32> to vector<8x64xf32>
    %37 = vector.extract_strided_slice %11 {offsets = [0, 192], sizes = [8, 64], strides = [1, 1]} : vector<8x512xf32> to vector<8x64xf32>
    %38 = vector.extract_strided_slice %11 {offsets = [0, 256], sizes = [8, 64], strides = [1, 1]} : vector<8x512xf32> to vector<8x64xf32>
    %39 = vector.extract_strided_slice %11 {offsets = [0, 320], sizes = [8, 64], strides = [1, 1]} : vector<8x512xf32> to vector<8x64xf32>
    %40 = vector.extract_strided_slice %11 {offsets = [0, 384], sizes = [8, 64], strides = [1, 1]} : vector<8x512xf32> to vector<8x64xf32>
    %41 = vector.extract_strided_slice %11 {offsets = [0, 448], sizes = [8, 64], strides = [1, 1]} : vector<8x512xf32> to vector<8x64xf32>
    %42 = vector.shape_cast %34 : vector<8x64xf32> to vector<1x8x64xf32>
    %43 = vector.shape_cast %35 : vector<8x64xf32> to vector<1x8x64xf32>
    %44 = vector.shape_cast %36 : vector<8x64xf32> to vector<1x8x64xf32>
    %45 = vector.shape_cast %37 : vector<8x64xf32> to vector<1x8x64xf32>
    %46 = vector.shape_cast %38 : vector<8x64xf32> to vector<1x8x64xf32>
    %47 = vector.shape_cast %39 : vector<8x64xf32> to vector<1x8x64xf32>
    %48 = vector.shape_cast %40 : vector<8x64xf32> to vector<1x8x64xf32>
    %49 = vector.shape_cast %41 : vector<8x64xf32> to vector<1x8x64xf32>
    %50 = tpu.concatenate %42, %43, %44, %45, %46, %47, %48, %49 in 0 : vector<1x8x64xf32>, vector<1x8x64xf32>, vector<1x8x64xf32>, vector<1x8x64xf32>, vector<1x8x64xf32>, vector<1x8x64xf32>, vector<1x8x64xf32>, vector<1x8x64xf32> -> vector<8x8x64xf32>
    %51 = vector.extract_strided_slice %14 {offsets = [0, 0], sizes = [8, 64], strides = [1, 1]} : vector<8x512xf32> to vector<8x64xf32>
    %52 = vector.extract_strided_slice %14 {offsets = [0, 64], sizes = [8, 64], strides = [1, 1]} : vector<8x512xf32> to vector<8x64xf32>
    %53 = vector.extract_strided_slice %14 {offsets = [0, 128], sizes = [8, 64], strides = [1, 1]} : vector<8x512xf32> to vector<8x64xf32>
    %54 = vector.extract_strided_slice %14 {offsets = [0, 192], sizes = [8, 64], strides = [1, 1]} : vector<8x512xf32> to vector<8x64xf32>
    %55 = vector.extract_strided_slice %14 {offsets = [0, 256], sizes = [8, 64], strides = [1, 1]} : vector<8x512xf32> to vector<8x64xf32>
    %56 = vector.extract_strided_slice %14 {offsets = [0, 320], sizes = [8, 64], strides = [1, 1]} : vector<8x512xf32> to vector<8x64xf32>
    %57 = vector.extract_strided_slice %14 {offsets = [0, 384], sizes = [8, 64], strides = [1, 1]} : vector<8x512xf32> to vector<8x64xf32>
    %58 = vector.extract_strided_slice %14 {offsets = [0, 448], sizes = [8, 64], strides = [1, 1]} : vector<8x512xf32> to vector<8x64xf32>
    %59 = vector.shape_cast %51 : vector<8x64xf32> to vector<1x8x64xf32>
    %60 = vector.shape_cast %52 : vector<8x64xf32> to vector<1x8x64xf32>
    %61 = vector.shape_cast %53 : vector<8x64xf32> to vector<1x8x64xf32>
    %62 = vector.shape_cast %54 : vector<8x64xf32> to vector<1x8x64xf32>
    %63 = vector.shape_cast %55 : vector<8x64xf32> to vector<1x8x64xf32>
    %64 = vector.shape_cast %56 : vector<8x64xf32> to vector<1x8x64xf32>
    %65 = vector.shape_cast %57 : vector<8x64xf32> to vector<1x8x64xf32>
    %66 = vector.shape_cast %58 : vector<8x64xf32> to vector<1x8x64xf32>
    %67 = tpu.concatenate %59, %60, %61, %62, %63, %64, %65, %66 in 0 : vector<1x8x64xf32>, vector<1x8x64xf32>, vector<1x8x64xf32>, vector<1x8x64xf32>, vector<1x8x64xf32>, vector<1x8x64xf32>, vector<1x8x64xf32>, vector<1x8x64xf32> -> vector<8x8x64xf32>
    "tpu.trace_start"() <{level = 10 : i32, message = "hqd,hkd->hqk"}> : () -> ()
    %cst_15 = arith.constant dense<0.000000e+00> : vector<8x8x8xf32>
    %68 = tpu.matmul %33, %50, %cst_15 {dimension_numbers = #tpu.dot_dimension_numbers<[2], [2], [1], [1], [0, 0, 0, 1, 1, 1], [0], [0]>} : vector<8x8x64xf32>, vector<8x8x64xf32>, vector<8x8x8xf32> -> vector<8x8x8xf32>
    "tpu.trace_stop"() : () -> ()
    %c0_16 = arith.constant 0 : index
    %c0_17 = arith.constant 0 : index
    %c0_18 = arith.constant 0 : index
    %69 = vector.load %arg3[%c0_16, %c0_17, %c0_18] : memref<1x1x8xf32, #tpu.memory_space<vmem>>, vector<1x1x8xf32>
    %70 = vector.shape_cast %69 : vector<1x1x8xf32> to vector<1x8xf32>
    %71 = vector.shape_cast %70 : vector<1x8xf32> to vector<1x1x8xf32>
    %72 = vector.broadcast %71 : vector<1x1x8xf32> to vector<8x8x8xf32>
    %73 = arith.addf %68, %72 : vector<8x8x8xf32>
    %cst_19 = arith.constant dense<0xFF800000> : vector<8x8xf32>
    %74 = vector.multi_reduction <maximumf>, %73, %cst_19 [2] : vector<8x8x8xf32> to vector<8x8xf32>
    %75 = vector.shape_cast %74 : vector<8x8xf32> to vector<8x8x1xf32>
    %76 = vector.broadcast %75 : vector<8x8x1xf32> to vector<8x8x8xf32>
    %77 = arith.subf %73, %76 : vector<8x8x8xf32>
    %78 = math.exp %77 : vector<8x8x8xf32>
    %cst_20 = arith.constant dense<0.000000e+00> : vector<8x8xf32>
    %79 = vector.multi_reduction <add>, %78, %cst_20 [2] : vector<8x8x8xf32> to vector<8x8xf32>
    %80 = vector.shape_cast %79 : vector<8x8xf32> to vector<8x8x1xf32>
    %81 = vector.broadcast %80 : vector<8x8x1xf32> to vector<8x8x8xf32>
    %82 = arith.divf %78, %81 : vector<8x8x8xf32>
    %c0_21 = arith.constant 0 : index
    %c0_22 = arith.constant 0 : index
    %c0_23 = arith.constant 0 : index
    %c0_24 = arith.constant 0 : index
    %c0_25 = arith.constant 0 : index
    %83 = vector.load %arg11[%c0_21, %c0_22, %c0_23, %c0_24, %c0_25] : memref<1x1x8x8x8xf32, #tpu.memory_space<vmem>>, vector<1x1x8x8x8xf32>
    %84 = vector.shape_cast %83 : vector<1x1x8x8x8xf32> to vector<8x8x8xf32>
    %85 = vector.shape_cast %82 : vector<8x8x8xf32> to vector<1x1x8x8x8xf32>
    tpu.vector_store %arg11[%c0_21, %c0_22, %c0_23, %c0_24, %c0_25], %85 {strides = array<i32>} : memref<1x1x8x8x8xf32, #tpu.memory_space<vmem>>, vector<1x1x8x8x8xf32>,
    "tpu.trace_start"() <{level = 10 : i32, message = "hqk,hkd->hqd"}> : () -> ()
    %cst_26 = arith.constant dense<0.000000e+00> : vector<8x8x64xf32>
    %86 = tpu.matmul %82, %67, %cst_26 {dimension_numbers = #tpu.dot_dimension_numbers<[2], [1], [1], [2], [0, 0, 0, 1, 1, 2], [0], [0]>} : vector<8x8x8xf32>, vector<8x8x64xf32>, vector<8x8x64xf32> -> vector<8x8x64xf32>
    "tpu.trace_stop"() : () -> ()
    %87 = vector.extract_strided_slice %86 {offsets = [0, 0, 0], sizes = [1, 8, 64], strides = [1, 1, 1]} : vector<8x8x64xf32> to vector<1x8x64xf32>
    %88 = vector.shape_cast %87 : vector<1x8x64xf32> to vector<8x64xf32>
    %c0_27 = arith.constant 0 : index
    %c0_28 = arith.constant 0 : index
    %89 = vector.load %arg12[%c0_27, %c0_28] : memref<8x512xf32, #tpu.memory_space<vmem>>, vector<8x64xf32>
    tpu.vector_store %arg12[%c0_27, %c0_28], %88 {strides = array<i32>} : memref<8x512xf32, #tpu.memory_space<vmem>>, vector<8x64xf32>,
    %90 = vector.extract_strided_slice %86 {offsets = [1, 0, 0], sizes = [1, 8, 64], strides = [1, 1, 1]} : vector<8x8x64xf32> to vector<1x8x64xf32>
    %91 = vector.shape_cast %90 : vector<1x8x64xf32> to vector<8x64xf32>
    %c0_29 = arith.constant 0 : index
    %c64 = arith.constant 64 : index
    %92 = vector.load %arg12[%c0_29, %c64] : memref<8x512xf32, #tpu.memory_space<vmem>>, vector<8x64xf32>
    tpu.vector_store %arg12[%c0_29, %c64], %91 {strides = array<i32>} : memref<8x512xf32, #tpu.memory_space<vmem>>, vector<8x64xf32>,
    %93 = vector.extract_strided_slice %86 {offsets = [2, 0, 0], sizes = [1, 8, 64], strides = [1, 1, 1]} : vector<8x8x64xf32> to vector<1x8x64xf32>
    %94 = vector.shape_cast %93 : vector<1x8x64xf32> to vector<8x64xf32>
    %c0_30 = arith.constant 0 : index
    %c128 = arith.constant 128 : index
    %95 = vector.load %arg12[%c0_30, %c128] : memref<8x512xf32, #tpu.memory_space<vmem>>, vector<8x64xf32>
    tpu.vector_store %arg12[%c0_30, %c128], %94 {strides = array<i32>} : memref<8x512xf32, #tpu.memory_space<vmem>>, vector<8x64xf32>,
    %96 = vector.extract_strided_slice %86 {offsets = [3, 0, 0], sizes = [1, 8, 64], strides = [1, 1, 1]} : vector<8x8x64xf32> to vector<1x8x64xf32>
    %97 = vector.shape_cast %96 : vector<1x8x64xf32> to vector<8x64xf32>
    %c0_31 = arith.constant 0 : index
    %c192 = arith.constant 192 : index
    %98 = vector.load %arg12[%c0_31, %c192] : memref<8x512xf32, #tpu.memory_space<vmem>>, vector<8x64xf32>
    tpu.vector_store %arg12[%c0_31, %c192], %97 {strides = array<i32>} : memref<8x512xf32, #tpu.memory_space<vmem>>, vector<8x64xf32>,
    %99 = vector.extract_strided_slice %86 {offsets = [4, 0, 0], sizes = [1, 8, 64], strides = [1, 1, 1]} : vector<8x8x64xf32> to vector<1x8x64xf32>
    %100 = vector.shape_cast %99 : vector<1x8x64xf32> to vector<8x64xf32>
    %c0_32 = arith.constant 0 : index
    %c256 = arith.constant 256 : index
    %101 = vector.load %arg12[%c0_32, %c256] : memref<8x512xf32, #tpu.memory_space<vmem>>, vector<8x64xf32>
    tpu.vector_store %arg12[%c0_32, %c256], %100 {strides = array<i32>} : memref<8x512xf32, #tpu.memory_space<vmem>>, vector<8x64xf32>,
    %102 = vector.extract_strided_slice %86 {offsets = [5, 0, 0], sizes = [1, 8, 64], strides = [1, 1, 1]} : vector<8x8x64xf32> to vector<1x8x64xf32>
    %103 = vector.shape_cast %102 : vector<1x8x64xf32> to vector<8x64xf32>
    %c0_33 = arith.constant 0 : index
    %c320 = arith.constant 320 : index
    %104 = vector.load %arg12[%c0_33, %c320] : memref<8x512xf32, #tpu.memory_space<vmem>>, vector<8x64xf32>
    tpu.vector_store %arg12[%c0_33, %c320], %103 {strides = array<i32>} : memref<8x512xf32, #tpu.memory_space<vmem>>, vector<8x64xf32>,
    %105 = vector.extract_strided_slice %86 {offsets = [6, 0, 0], sizes = [1, 8, 64], strides = [1, 1, 1]} : vector<8x8x64xf32> to vector<1x8x64xf32>
    %106 = vector.shape_cast %105 : vector<1x8x64xf32> to vector<8x64xf32>
    %c0_34 = arith.constant 0 : index
    %c384 = arith.constant 384 : index
    %107 = vector.load %arg12[%c0_34, %c384] : memref<8x512xf32, #tpu.memory_space<vmem>>, vector<8x64xf32>
    tpu.vector_store %arg12[%c0_34, %c384], %106 {strides = array<i32>} : memref<8x512xf32, #tpu.memory_space<vmem>>, vector<8x64xf32>,
    %108 = vector.extract_strided_slice %86 {offsets = [7, 0, 0], sizes = [1, 8, 64], strides = [1, 1, 1]} : vector<8x8x64xf32> to vector<1x8x64xf32>
    %109 = vector.shape_cast %108 : vector<1x8x64xf32> to vector<8x64xf32>
    %c0_35 = arith.constant 0 : index
    %c448 = arith.constant 448 : index
    %110 = vector.load %arg12[%c0_35, %c448] : memref<8x512xf32, #tpu.memory_space<vmem>>, vector<8x64xf32>
    tpu.vector_store %arg12[%c0_35, %c448], %109 {strides = array<i32>} : memref<8x512xf32, #tpu.memory_space<vmem>>, vector<8x64xf32>,
    %c0_36 = arith.constant 0 : index
    %c0_37 = arith.constant 0 : index
    %111 = vector.load %arg12[%c0_36, %c0_37] : memref<8x512xf32, #tpu.memory_space<vmem>>, vector<8x512xf32>
    %112 = arith.truncf %111 : vector<8x512xf32> to vector<8x512xbf16>
    %c0_38 = arith.constant 0 : index
    %c0_39 = arith.constant 0 : index
    %c0_40 = arith.constant 0 : index
    %113 = vector.load %arg7[%c0_38, %c0_39, %c0_40] : memref<1x512x512xbf16, #tpu.memory_space<vmem>>, vector<1x512x512xbf16>
    %114 = vector.shape_cast %113 : vector<1x512x512xbf16> to vector<512x512xbf16>
    %cst_41 = arith.constant dense<0.000000e+00> : vector<8x512xf32>
    %115 = tpu.matmul %112, %114, %cst_41 {dimension_numbers = #tpu.dot_dimension_numbers<[1], [0], [0], [1], [0, 0, 1, 1], [], []>} : vector<8x512xbf16>, vector<512x512xbf16>, vector<8x512xf32> -> vector<8x512xf32>
    %116 = arith.addf %115, %4 : vector<8x512xf32>
    %cst_42 = arith.constant dense<0.000000e+00> : vector<8xf32>
    %117 = vector.multi_reduction <add>, %116, %cst_42 [1] : vector<8x512xf32> to vector<8xf32>
    %118 = vector.shape_cast %117 : vector<8xf32> to vector<8x1xf32>
    %cst_43 = arith.constant 5.120000e+02 : f32
    %119 = vector.broadcast %cst_43 : f32 to vector<8x1xf32>
    %120 = arith.divf %118, %119 : vector<8x1xf32>
    %121 = vector.broadcast %120 : vector<8x1xf32> to vector<8x512xf32>
    %122 = arith.subf %116, %121 : vector<8x512xf32>
    %123 = arith.mulf %122, %122 : vector<8x512xf32>
    %cst_44 = arith.constant dense<0.000000e+00> : vector<8xf32>
    %124 = vector.multi_reduction <add>, %123, %cst_44 [1] : vector<8x512xf32> to vector<8xf32>
    %125 = vector.shape_cast %124 : vector<8xf32> to vector<8x1xf32>
    %cst_45 = arith.constant 5.120000e+02 : f32
    %126 = vector.broadcast %cst_45 : f32 to vector<8x1xf32>
    %127 = arith.divf %125, %126 : vector<8x1xf32>
    %cst_46 = arith.constant 9.99999974E-6 : f32
    %128 = vector.broadcast %cst_46 : f32 to vector<8x1xf32>
    %129 = arith.addf %127, %128 : vector<8x1xf32>
    %130 = math.rsqrt %129 : vector<8x1xf32>
    %131 = vector.broadcast %130 : vector<8x1xf32> to vector<8x512xf32>
    %132 = arith.mulf %122, %131 : vector<8x512xf32>
    %133 = arith.truncf %132 : vector<8x512xf32> to vector<8x512xbf16>
    %c0_47 = arith.constant 0 : index
    %c0_48 = arith.constant 0 : index
    %c0_49 = arith.constant 0 : index
    %134 = vector.load %arg8[%c0_47, %c0_48, %c0_49] : memref<1x512x2048xbf16, #tpu.memory_space<vmem>>, vector<1x512x2048xbf16>
    %135 = vector.shape_cast %134 : vector<1x512x2048xbf16> to vector<512x2048xbf16>
    %cst_50 = arith.constant dense<0.000000e+00> : vector<8x2048xf32>
    %136 = tpu.matmul %133, %135, %cst_50 {dimension_numbers = #tpu.dot_dimension_numbers<[1], [0], [0], [1], [0, 0, 1, 1], [], []>} : vector<8x512xbf16>, vector<512x2048xbf16>, vector<8x2048xf32> -> vector<8x2048xf32>
    %cst_51 = arith.constant 0.000000e+00 : f32
    %137 = vector.broadcast %cst_51 : f32 to vector<8x2048xf32>
    %138 = arith.maximumf %136, %137 : vector<8x2048xf32>
    %139 = arith.truncf %138 : vector<8x2048xf32> to vector<8x2048xbf16>
    %c0_52 = arith.constant 0 : index
    %c0_53 = arith.constant 0 : index
    %c0_54 = arith.constant 0 : index
    %140 = vector.load %arg9[%c0_52, %c0_53, %c0_54] : memref<1x2048x512xbf16, #tpu.memory_space<vmem>>, vector<1x2048x512xbf16>
    %141 = vector.shape_cast %140 : vector<1x2048x512xbf16> to vector<2048x512xbf16>
    %cst_55 = arith.constant dense<0.000000e+00> : vector<8x512xf32>
    %142 = tpu.matmul %139, %141, %cst_55 {dimension_numbers = #tpu.dot_dimension_numbers<[1], [0], [0], [1], [0, 0, 1, 1], [], []>} : vector<8x2048xbf16>, vector<2048x512xbf16>, vector<8x512xf32> -> vector<8x512xf32>
    %143 = arith.addf %142, %132 : vector<8x512xf32>
    %cst_56 = arith.constant dense<0.000000e+00> : vector<8xf32>
    %144 = vector.multi_reduction <add>, %143, %cst_56 [1] : vector<8x512xf32> to vector<8xf32>
    %145 = vector.shape_cast %144 : vector<8xf32> to vector<8x1xf32>
    %cst_57 = arith.constant 5.120000e+02 : f32
    %146 = vector.broadcast %cst_57 : f32 to vector<8x1xf32>
    %147 = arith.divf %145, %146 : vector<8x1xf32>
    %148 = vector.broadcast %147 : vector<8x1xf32> to vector<8x512xf32>
    %149 = arith.subf %143, %148 : vector<8x512xf32>
    %150 = arith.mulf %149, %149 : vector<8x512xf32>
    %cst_58 = arith.constant dense<0.000000e+00> : vector<8xf32>
    %151 = vector.multi_reduction <add>, %150, %cst_58 [1] : vector<8x512xf32> to vector<8xf32>
    %152 = vector.shape_cast %151 : vector<8xf32> to vector<8x1xf32>
    %cst_59 = arith.constant 5.120000e+02 : f32
    %153 = vector.broadcast %cst_59 : f32 to vector<8x1xf32>
    %154 = arith.divf %152, %153 : vector<8x1xf32>
    %cst_60 = arith.constant 9.99999974E-6 : f32
    %155 = vector.broadcast %cst_60 : f32 to vector<8x1xf32>
    %156 = arith.addf %154, %155 : vector<8x1xf32>
    %157 = math.rsqrt %156 : vector<8x1xf32>
    %158 = vector.broadcast %157 : vector<8x1xf32> to vector<8x512xf32>
    %159 = arith.mulf %149, %158 : vector<8x512xf32>
    %c0_61 = arith.constant 0 : index
    %c0_62 = arith.constant 0 : index
    %c0_63 = arith.constant 0 : index
    %160 = vector.load %arg10[%c0_61, %c0_62, %c0_63] : memref<1x8x512xf32, #tpu.memory_space<vmem>>, vector<1x8x512xf32>
    %161 = vector.shape_cast %160 : vector<1x8x512xf32> to vector<8x512xf32>
    %162 = vector.shape_cast %159 : vector<8x512xf32> to vector<1x8x512xf32>
    tpu.vector_store %arg10[%c0_61, %c0_62, %c0_63], %162 {strides = array<i32>} : memref<1x8x512xf32, #tpu.memory_space<vmem>>, vector<1x8x512xf32>,
    return
  }
  func.func @transform_0(%arg0: i32, %arg1: i32) -> (i32, i32, i32) {
    %c0_i32 = arith.constant 0 : i32
    %c0_i32_0 = arith.constant 0 : i32
    %c0_i32_1 = arith.constant 0 : i32
    return %arg0, %c0_i32, %c0_i32_0 : i32, i32, i32
  }
  func.func @transform_1(%arg0: i32, %arg1: i32) -> (i32, i32, i32) {
    %c0_i32 = arith.constant 0 : i32
    %c0_i32_0 = arith.constant 0 : i32
    %c0_i32_1 = arith.constant 0 : i32
    return %arg0, %c0_i32, %c0_i32_0 : i32, i32, i32
  }
  func.func @transform_2(%arg0: i32, %arg1: i32) -> (i32, i32, i32) {
    %c0_i32 = arith.constant 0 : i32
    %c0_i32_0 = arith.constant 0 : i32
    %c0_i32_1 = arith.constant 0 : i32
    return %arg1, %c0_i32, %c0_i32_0 : i32, i32, i32
  }
  func.func @transform_3(%arg0: i32, %arg1: i32) -> (i32, i32, i32) {
    %c0_i32 = arith.constant 0 : i32
    %c0_i32_0 = arith.constant 0 : i32
    %c0_i32_1 = arith.constant 0 : i32
    return %arg1, %c0_i32, %c0_i32_0 : i32, i32, i32
  }
  func.func @transform_4(%arg0: i32, %arg1: i32) -> (i32, i32, i32) {
    %c0_i32 = arith.constant 0 : i32
    %c0_i32_0 = arith.constant 0 : i32
    %c0_i32_1 = arith.constant 0 : i32
    return %arg1, %c0_i32, %c0_i32_0 : i32, i32, i32
  }
  func.func @transform_5(%arg0: i32, %arg1: i32) -> (i32, i32, i32) {
    %c0_i32 = arith.constant 0 : i32
    %c0_i32_0 = arith.constant 0 : i32
    %c0_i32_1 = arith.constant 0 : i32
    return %arg1, %c0_i32, %c0_i32_0 : i32, i32, i32
  }
  func.func @transform_6(%arg0: i32, %arg1: i32) -> (i32, i32, i32) {
    %c0_i32 = arith.constant 0 : i32
    %c0_i32_0 = arith.constant 0 : i32
    %c0_i32_1 = arith.constant 0 : i32
    return %arg1, %c0_i32, %c0_i32_0 : i32, i32, i32
  }
  func.func @transform_7(%arg0: i32, %arg1: i32) -> (i32, i32, i32) {
    %c0_i32 = arith.constant 0 : i32
    %c0_i32_0 = arith.constant 0 : i32
    %c0_i32_1 = arith.constant 0 : i32
    return %arg1, %c0_i32, %c0_i32_0 : i32, i32, i32
  }
  func.func @transform_8(%arg0: i32, %arg1: i32) -> (i32, i32, i32) {
    %c0_i32 = arith.constant 0 : i32
    %c0_i32_0 = arith.constant 0 : i32
    %c0_i32_1 = arith.constant 0 : i32
    return %arg0, %c0_i32, %c0_i32_0 : i32, i32, i32
  }
  func.func @transform_9(%arg0: i32, %arg1: i32) -> (i32, i32, i32, i32, i32) {
    %c0_i32 = arith.constant 0 : i32
    %c0_i32_0 = arith.constant 0 : i32
    %c0_i32_1 = arith.constant 0 : i32
    %c0_i32_2 = arith.constant 0 : i32
    return %arg0, %arg1, %c0_i32, %c0_i32_0, %c0_i32_1 : i32, i32, i32, i32, i32
  }
}

</mosaic_0001>

<bundles_post_ra>
// kernel: encoder_forward.1
= control target key start
LH: loop header
LB: loop body
LE: loop exit
PB: predicated region body
PF: predicated region fallthrough
CT: control target
= control target key end

     0   :  { %s19888_s0 = inlined_call_operand.vmem [shape: f32[2,8,512], index: 0, kind: input, shape index: {}]   ;;  %s19889_s1 = inlined_call_operand.vmem [shape: f32[2,1,8], index: 1, kind: input, shape index: {}]   ;;  %s19890_s2 = inlined_call_operand.hbm [shape: bf16[6,512,512], index: 2, kind: input, shape index: {}]   ;;  %s19891_s3 = inlined_call_operand.hbm [shape: bf16[6,512,512], index: 3, kind: input, shape index: {}]   ;;  %s19892_s4 = inlined_call_operand.hbm [shape: bf16[6,512,512], index: 4, kind: input, shape index: {}]   ;;  %s19893_s5 = inlined_call_operand.hbm [shape: bf16[6,512,512], index: 5, kind: input, shape index: {}]   ;;  %s19894_s6 = inlined_call_operand.hbm [shape: bf16[6,512,2048], index: 6, kind: input, shape index: {}]   ;;  %s19895_s7 = inlined_call_operand.hbm [shape: bf16[6,2048,512], index: 7, kind: input, shape index: {}]   ;;  %s19896_s8 = inlined_call_operand.hbm [shape: f32[2,8,512], index: 8, kind: output, shape index: {0}]   ;;  %s19897_s9 = inlined_call_operand.vmem [shape: f32[2,6,8,8,8], index: 9, kind: output, shape index: {1}]  }
   0x1   :  { %19922 = sst [smem:[#allocation34_spill]] %s19888_s0 }
   0x2   :  { %19923 = sst [smem:[#allocation35_spill]] %s19889_s1 }
   0x3   :  { %19924 = sst [smem:[#allocation36_spill]] %s19890_s2 }
   0x4   :  { %19925 = sst [smem:[#allocation37_spill]] %s19891_s3 }
   0x5   :  { %19926 = sst [smem:[#allocation38_spill]] %s19892_s4 }
   0x6   :  { %19927 = sst [smem:[#allocation39_spill]] %s19893_s5 }
   0x7   :  { %19928 = sst [smem:[#allocation40_spill]] %s19894_s6 }
   0x8   :  { %19929 = sst [smem:[#allocation41_spill]] %s19896_s8 }
   0x9   :  { %19930 = sst [smem:[#allocation42_spill]] %s19897_s9 }
   0xa   :  { %15 = vsyncpa [#allocation4], 0 }
   0xb   :  { %17 = vsyncpa [#allocation4 + $0x1], 0 }
   0xc   :  { %18 = vsyncpa [#allocation7], 0 }
   0xd   :  { %20 = vsyncpa [#allocation7 + $0x1], 0 }
   0xe   :  { %21 = vsyncpa [#allocation10], 0 }
   0xf   :  { %23 = vsyncpa [#allocation10 + $0x1], 0 }
  0x10   :  { %24 = vsyncpa [#allocation13], 0 }
  0x11   :  { %26 = vsyncpa [#allocation13 + $0x1], 0 }
  0x12   :  { %27 = vsyncpa [#allocation5], 0 }
  0x13   :  { %29 = vsyncpa [#allocation5 + $0x1], 0  ;;  %s17488_s30 = smov 0   ;;  %s17490_s10 = smov 0  }
  0x14   :  { %s17492_s11 = smov 0   ;;  %s17494_s12 = smov 0  }
  0x15   :  { %s17496_s13 = smov 0   ;;  %s17498_s14 = smov 0  }
  0x16   :  { %s17500_s15 = smov 0   ;;  %s17502_s16 = smov 0  }
  0x17   :  { %s17504_s17 = smov 0   ;;  %s17506_s18 = smov 0  }
  0x18   :  { %s17508_s19 = smov 0  }
  0x19 LB: > { %19931 = sst [smem:[#allocation20_spill]] %s17382_s30  ;;  %s17542_s20 = sadd.s32 4294967295, %s17422_s19   ;;  %s17422_s19 = sphi %s17508_s19, %s35_s19   ;;  %s17418_s18 = sphi %s17506_s18, %s19987_s18   ;;  %s17414_s17 = sphi %s17504_s17, %s19991_s17   ;;  %s17410_s16 = sphi %s17502_s16, %s19985_s16   ;;  %s17406_s15 = sphi %s17500_s15, %s19990_s15   ;;  %s17402_s14 = sphi %s17498_s14, %s19984_s14   ;;  %s17398_s13 = sphi %s17496_s13, %s19989_s13   ;;  %s17394_s12 = sphi %s17494_s12, %s19988_s12   ;;  %s17390_s11 = sphi %s17492_s11, %s19982_s11   ;;  %s17386_s10 = sphi %s17490_s10, %s19981_s10   ;;  %s17382_s30 = sphi %s17488_s30, %s19980_s30  }
  0x1a   : > { %19932 = sst [smem:[#allocation21_spill]] %s17386_s10  ;;  %s13549_s21 = sadd.s32 4294967294, %s17422_s19  }
  0x1b   : > { %19933 = sst [smem:[#allocation22_spill]] %s17390_s11  ;;  %s44_s22 = sadd.s32 1, %s17414_s17 }
  0x1c   : > { %19934 = sst [smem:[#allocation23_spill]] %s17402_s14  ;;  %s47_s23 = sadd.s32 1, %s17418_s18 }
  0x1d   : > { %19935 = sst [smem:[#allocation24_spill]] %s17406_s15  ;;  %p45_p0 = scmp.ge.s32.totalorder %s44_s22, 6 }
  0x1e   : > { %19936 = sst [smem:[#allocation25_spill]] %s17410_s16  ;;  %s106_s24 = sadd.s32 1, %s17402_s14 }
  0x1f   : > { %19937 = sst [smem:[#allocation26_spill]] %s17418_s18  ;;  %p113_p1 = scmp.ne.s32.totalorder %s17402_s14, %s17398_s13 }
  0x20   : > { %19938 = sst [smem:[#allocation27_spill]] %s17422_s19  ;;  %p114_p2 = scmp.eq.s32.totalorder %s17422_s19, 0 }
  0x21   : > { %s19993_s22 = smov (%p45_p0, %s44_s22), 0  ;;  %s19995_s23 = smov (!%p45_p0, %s47_s23), %s17418_s18 }
  0x22   : > { %19939 = sst [smem:[#allocation28_spill]] %s19993_s22  ;;  %s103_s25 = ssub.s32 %s17414_s17, %s19993_s22 }
  0x23   : > { %p17556_p3 = por %p114_p2, %p113_p1  ;;  %p49_p4 = scmp.ge.s32.totalorder %s19995_s23, 2 }
  0x24   : > { %p104_p5 = scmp.eq.s32.totalorder %s103_s25, 0  ;;  %p119_p6 = scmp.ne.s32.totalorder %s17398_s13, %s17394_s12 }
  0x25   : > { %p120_p7 = scmp.eq.s32.totalorder %s17542_s20, 0  ;;  %s19997_s23 = smov (%p49_p4, %s19995_s23), 0 }
  0x26   : > { %19941 = sst [smem:[#allocation29_spill]] %s19997_s23  ;;  %s259_s29 = ssub.s32 %s17418_s18, %s19997_s23 }
  0x27   : > { %s17565_s27 = scalar_select %p104_p5, %s17402_s14, %s106_s24  }
  0x28   : > { %p17567_p8 = por %p120_p7, %p119_p6  ;;  %p260_p9 = scmp.eq.s32.totalorder %s259_s29, 0 }
  0x29   : > { %19942 = sst [smem:[#allocation30_spill]] %s17565_s27  ;;  %s262_s22 = sadd.s32 1, %s17390_s11 }
  0x2a   : > { %s19943_s28 = scalar_select %p17567_p8, 1, 0 }
  0x2b   : > { %p272_p10 = scmp.ne.s32.totalorder %s17390_s11, %s17386_s10  ;;  %p273_p11 = scmp.eq.s32.totalorder %s17542_s20, 11 }
  0x2c   : > { %s17578_s12 = scalar_select %p260_p9, %s17390_s11, %s262_s22  }
  0x2d   : > { %p17580_p12 = por %p273_p11, %p272_p10  ;;  %p278_p13 = scmp.ne.s32.totalorder %s17386_s10, %s17382_s30 }
  0x2e   : > { %19944 = sst [smem:[#allocation31_spill]] %s17578_s12  ;;  %p279_p0 = scmp.eq.s32.totalorder %s13549_s21, 11 }
  0x2f   : > { %s19945_s25 = scalar_select %p17580_p12, 1, 0 }
  0x30   : > { %p15435_p1 = scmp.lt.s32.totalorder %s17422_s19, 12  ;;  %s17588_s24 = sand.u32 1, %s17402_s14  }
  0x31   : > { %19946 = sst [smem:[#allocation32_spill]] %s19945_s25  ;;  %p17590_p2 = por %p279_p0, %p278_p13 }
  0x32   : > { %s17595_s29 = sshll.u32 %s17588_s24, 10  ;;  %s17598_s22 = sshll.u32 %s17414_s17, 14 }
  0x33   : > { %s19947_s23 = scalar_select %p17590_p2, 1, 0 }
  0x34   : > { %p17602_p4 = pnand %p15435_p1, %p17556_p3  ;;  %s19908_s21 = sand.u32 1, %s17422_s19  }
  0x35   : > { %19948 = sst [smem:[#allocation33_spill]] %s19947_s23  ;;  %s19950_s3 = sld [smem:[#allocation37_spill]] }
  0x36   : > { %s366_s11 = scalar_lea.vmem [#allocation6], %s17595_s29  ;;  %s17619_s26 = scalar_lea.sflag [#allocation7], %s19908_s21 }
  0x37   : > { %s373_s23 = sshll.u32 %s366_s11, 4  ;;  %p17625_p6 = pneg %p17602_p4  ;;  %s17614_s23 = int_to_ptr.vmem [resolvable:$true] %s373_s23 }
  0x3b   : > { %s17611_s12 = scalar_lea.hbm %s19950_s3, %s17598_s22  ;;  %s17113_s11 = scalar_lea.hbm %s19950_s3, 98304 }
  0x3c   : > { %s17108_s30 = scalar_lea.hbm %s17611_s12, 16384  ;;  %p17114_p10 = scmp.lt.u32.totalorder %s17611_s12, %s19950_s3 }
  0x3d   : > { %p17109_p3 = scmp.ne.s32.totalorder %s17611_s12, %s17108_s30  ;;  %p17115_p11 = scmp.lt.u32.totalorder %s17113_s11, %s17108_s30 }
  0x3e   : > { %p17117_p0 = scmp.lt.u32.totalorder %s17108_s30, %s17611_s12 }
  0x3f   : > { %p17111_p7 = pnand %p17625_p6, %p17109_p3  ;;  %p17116_p13 = por %p17115_p11, %p17114_p10 }
  0x41   : > { %p17112_p9 = pneg %p17111_p7  ;;  %p17118_p1 = por %p17117_p0, %p17116_p13 }
  0x43   : > { %p17119_p5 = pnand %p17118_p1, %p17112_p9 }
  0x45   : > { %17122 = shalt.err (!%p17119_p5)
}
  0x46   : > { %s17123_s21 = scalar_lea.vmem %s17614_s23, 16384  ;;  %s17424_s14 = smov [#allocation6]  }
  0x47   : > { %p17124_p3 = scmp.ne.s32.totalorder %s17614_s23, %s17123_s21  ;;  %s17128_s27 = sshll.u32 %s17424_s14, 4  ;;  %s17129_s27 = int_to_ptr.vmem [resolvable:$false] %s17128_s27 }
  0x48   : > { %s17130_s9 = scalar_lea.vmem %s17129_s27, 32768  ;;  %p17131_p12 = scmp.lt.s32.totalorder %s17614_s23, %s17129_s27 }
  0x49   : > { %p17126_p7 = pnand %p17124_p3, %p17625_p6  ;;  %p17132_p8 = scmp.lt.s32.totalorder %s17130_s9, %s17123_s21 }
  0x4b   : > { %p17127_p2 = pneg %p17126_p7  ;;  %p17133_p10 = por %p17132_p8, %p17131_p12 }
  0x4d   : > { %p17134_p11 = pnand %p17133_p10, %p17127_p2 }
  0x4f   : > { %17137 = shalt.err (!%p17134_p11)
}
  0x50   : > { %s19911_s30 = smov 256   ;;  %s19913_s25 = smov 16  }
  0x51   : > { %15418 = dma.hbm_to_vmem [thread:$0]  (!%p17602_p4), %s17611_s12, 16384, %s17614_s23, %s17619_s26, %s19911_s30, %s19911_s30, %s19913_s25  }
  0x52   : > { %p465_p8 = scmp.lt.s32.totalorder %s17422_s19, 13  ;;  %s19952_s5 = sld [smem:[#allocation39_spill]] }
  0x53   : > { %p19953_p12 = scmp.ge.s32.totalorder %s17422_s19, 1  ;;  %s408_s9 = scalar_lea.vmem [#allocation9], %s17595_s29 }
  0x54   : > { %s415_s3 = sshll.u32 %s408_s9, 4  ;;  %s19955_s23 = sand.u32 1, %s17422_s19   ;;  %s17666_s3 = int_to_ptr.vmem [resolvable:$true] %s415_s3 }
  0x55   : > { %p17661_p2 = pnand %p19953_p12, %p465_p8  ;;  %s17670_s12 = scalar_lea.sflag [#allocation10], %s19955_s23 }
  0x57   : > { %s19954_s27 = scalar_select %p17661_p2, 1, 0 }
  0x58   : > { %s17657_s14 = scalar_lea.hbm %s19952_s5, %s17598_s22  ;;  %s17143_s25 = scalar_lea.hbm %s19952_s5, 98304 }
  0x59   : > { %s17138_s30 = scalar_lea.hbm %s17657_s14, 16384  ;;  %p17144_p0 = scmp.lt.u32.totalorder %s17657_s14, %s19952_s5 }
  0x5a   : > { %p17139_p5 = scmp.ne.s32.totalorder %s17657_s14, %s17138_s30  ;;  %p17145_p1 = scmp.lt.u32.totalorder %s17143_s25, %s17138_s30 }
  0x5b   : > { %p17147_p7 = scmp.lt.u32.totalorder %s17138_s30, %s17657_s14 }
  0x5c   : > { %p17141_p9 = pnand %p17139_p5, %p17625_p6  ;;  %p17146_p3 = por %p17145_p1, %p17144_p0 }
  0x5e   : > { %p17142_p13 = pneg %p17141_p9  ;;  %p17148_p10 = por %p17147_p7, %p17146_p3 }
  0x60   : > { %p17149_p11 = pnand %p17148_p10, %p17142_p13 }
  0x62   : > { %17152 = shalt.err (!%p17149_p11)
}
  0x63   : > { %s17153_s9 = scalar_lea.vmem %s17666_s3, 16384  ;;  %s17427_s23 = smov [#allocation9]  }
  0x64   : > { %p17154_p8 = scmp.ne.s32.totalorder %s17666_s3, %s17153_s9  ;;  %s17158_s21 = sshll.u32 %s17427_s23, 4  ;;  %s17159_s21 = int_to_ptr.vmem [resolvable:$false] %s17158_s21 }
  0x65   : > { %s17160_s0 = scalar_lea.vmem %s17159_s21, 32768  ;;  %p17161_p9 = scmp.lt.s32.totalorder %s17666_s3, %s17159_s21 }
  0x66   : > { %p17156_p12 = pnand %p17154_p8, %p17625_p6  ;;  %p17162_p2 = scmp.lt.s32.totalorder %s17160_s0, %s17153_s9 }
  0x68   : > { %p17157_p5 = pneg %p17156_p12  ;;  %p17163_p0 = por %p17162_p2, %p17161_p9 }
  0x6a   : > { %p17164_p1 = pnand %p17163_p0, %p17157_p5 }
  0x6c   : > { %17167 = shalt.err (!%p17164_p1)
}
  0x6d   : > { %s19956_s1 = smov 16   ;;  %s19957_s30 = smov 256  }
  0x6e   : > { %15424 = dma.hbm_to_vmem [thread:$0]  (!%p17602_p4), %s17657_s14, 16384, %s17666_s3, %s17670_s12, %s19957_s30, %s19957_s30, %s19956_s1  }
  0x6f   : > { %s19958_s2 = sld [smem:[#allocation36_spill]]  ;;  %s345_s23 = scalar_lea.vmem [#allocation3], %s17595_s29 }
  0x70   : > { %s352_s21 = sshll.u32 %s345_s23, 4  ;;  %s19959_s4 = sld [smem:[#allocation38_spill]]  ;;  %s17704_s21 = int_to_ptr.vmem [resolvable:$true] %s352_s21 }
  0x71   : > { %s342_s15 = scalar_lea.sflag [#allocation4], %s17588_s24 }
  0x75   : > { %s17701_s9 = scalar_lea.hbm %s19958_s2, %s17598_s22  ;;  %s17173_s11 = scalar_lea.hbm %s19958_s2, 98304 }
  0x76   : > { %s17710_s19 = scalar_lea.hbm %s19959_s4, %s17598_s22  ;;  %s17168_s3 = scalar_lea.hbm %s17701_s9, 16384 }
  0x77   : > { %p17169_p2 = scmp.ne.s32.totalorder %s17701_s9, %s17168_s3  ;;  %p17174_p7 = scmp.lt.u32.totalorder %s17701_s9, %s19958_s2 }
  0x78   : > { %p17175_p10 = scmp.lt.u32.totalorder %s17173_s11, %s17168_s3  ;;  %p17177_p8 = scmp.lt.u32.totalorder %s17168_s3, %s17701_s9 }
  0x79   : > { %p17171_p13 = pnand %p17169_p2, %p17625_p6 }
  0x7a   : > { %p17176_p11 = por %p17175_p10, %p17174_p7 }
  0x7b   : > { %p17172_p3 = pneg %p17171_p13 }
  0x7c   : > { %p17178_p12 = por %p17177_p8, %p17176_p11 }
  0x7e   : > { %p17179_p5 = pnand %p17178_p12, %p17172_p3 }
  0x80   : > { %17182 = shalt.err (!%p17179_p5)
}
  0x81   : > { %s17183_s5 = scalar_lea.vmem %s17704_s21, 16384  ;;  %s17428_s22 = smov [#allocation3]  }
  0x82   : > { %p17184_p9 = scmp.ne.s32.totalorder %s17704_s21, %s17183_s5  ;;  %s17188_s23 = sshll.u32 %s17428_s22, 4  ;;  %s17189_s23 = int_to_ptr.vmem [resolvable:$false] %s17188_s23 }
  0x83   : > { %s17190_s10 = scalar_lea.vmem %s17189_s23, 32768  ;;  %p17191_p2 = scmp.lt.s32.totalorder %s17704_s21, %s17189_s23 }
  0x84   : > { %p17186_p0 = pnand %p17184_p9, %p17625_p6  ;;  %p17192_p13 = scmp.lt.s32.totalorder %s17190_s10, %s17183_s5 }
  0x86   : > { %p17187_p1 = pneg %p17186_p0  ;;  %p17193_p7 = por %p17192_p13, %p17191_p2 }
  0x88   : > { %p17194_p10 = pnand %p17193_p7, %p17187_p1 }
  0x8a   : > { %17197 = shalt.err (!%p17194_p10)
}
  0x8b   : > { %15415 = dma.hbm_to_vmem [thread:$0]  (!%p17602_p4), %s17701_s9, 16384, %s17704_s21, %s342_s15, %s19957_s30, %s19957_s30, %s19956_s1  }
  0x8c   : > { %s387_s16 = scalar_lea.vmem [#allocation8], %s17595_s29  ;;  %s13564_s3 = sshll.u32 %s17588_s24, 12 }
  0x8d   : > { %s394_s0 = sshll.u32 %s387_s16, 4  ;;  %s17198_s14 = scalar_lea.hbm %s17710_s19, 16384  ;;  %s17741_s0 = int_to_ptr.vmem [resolvable:$true] %s394_s0 }
  0x8e   : > { %p17199_p3 = scmp.ne.s32.totalorder %s17710_s19, %s17198_s14  ;;  %s17203_s5 = scalar_lea.hbm %s19959_s4, 98304 }
  0x8f   : > { %p17204_p12 = scmp.lt.u32.totalorder %s17710_s19, %s19959_s4  ;;  %p17205_p5 = scmp.lt.u32.totalorder %s17203_s5, %s17198_s14 }
  0x90   : > { %p17201_p11 = pnand %p17199_p3, %p17625_p6  ;;  %p17207_p0 = scmp.lt.u32.totalorder %s17198_s14, %s17710_s19 }
  0x91   : > { %p17206_p9 = por %p17205_p5, %p17204_p12 }
  0x92   : > { %p17202_p8 = pneg %p17201_p11 }
  0x93   : > { %p17208_p1 = por %p17207_p0, %p17206_p9 }
  0x95   : > { %p17209_p2 = pnand %p17208_p1, %p17202_p8 }
  0x97   : > { %17212 = shalt.err (!%p17209_p2)
}
  0x98   : > { %s17213_s15 = scalar_lea.vmem %s17741_s0, 16384  ;;  %s17429_s29 = smov [#allocation8]  }
  0x99   : > { %p17214_p13 = scmp.ne.s32.totalorder %s17741_s0, %s17213_s15  ;;  %s17218_s9 = sshll.u32 %s17429_s29, 4  ;;  %s17219_s9 = int_to_ptr.vmem [resolvable:$false] %s17218_s9 }
  0x9a   : > { %s17220_s21 = scalar_lea.vmem %s17219_s9, 32768  ;;  %p17221_p3 = scmp.lt.s32.totalorder %s17741_s0, %s17219_s9 }
  0x9b   : > { %p17216_p7 = pnand %p17214_p13, %p17625_p6  ;;  %p17222_p11 = scmp.lt.s32.totalorder %s17220_s21, %s17213_s15 }
  0x9d   : > { %p17217_p10 = pneg %p17216_p7  ;;  %p17223_p12 = por %p17222_p11, %p17221_p3 }
  0x9f   : > { %p17224_p5 = pnand %p17223_p12, %p17217_p10 }
  0xa1   : > { %17227 = shalt.err (!%p17224_p5)
}
  0xa2   : > { %15421 = dma.hbm_to_vmem [thread:$0]  (!%p17602_p4), %s17710_s19, 16384, %s17741_s0, %s17619_s26, %s19957_s30, %s19957_s30, %s19956_s1  }
  0xa3   : > { %s15153_s10 = sshll.u32 %s17414_s17, 16  ;;  %s429_s16 = scalar_lea.vmem [#allocation11], %s13564_s3 }
  0xa4   : > { %s436_s14 = sshll.u32 %s429_s16, 4  ;;  %s19960_s6 = sld [smem:[#allocation40_spill]]  ;;  %s17778_s14 = int_to_ptr.vmem [resolvable:$true] %s436_s14 }
  0xaa   : > { %s17776_s5 = scalar_lea.hbm %s19960_s6, %s15153_s10  ;;  %s17233_s0 = scalar_lea.hbm %s19960_s6, 393216 }
  0xab   : > { %s17228_s22 = scalar_lea.hbm %s17776_s5, 65536  ;;  %p17234_p1 = scmp.lt.u32.totalorder %s17776_s5, %s19960_s6 }
  0xac   : > { %p17229_p8 = scmp.ne.s32.totalorder %s17776_s5, %s17228_s22  ;;  %p17235_p2 = scmp.lt.u32.totalorder %s17233_s0, %s17228_s22 }
  0xad   : > { %p17237_p7 = scmp.lt.u32.totalorder %s17228_s22, %s17776_s5 }
  0xae   : > { %p17231_p9 = pnand %p17229_p8, %p17625_p6  ;;  %p17236_p13 = por %p17235_p2, %p17234_p1 }
  0xb0   : > { %p17232_p0 = pneg %p17231_p9  ;;  %p17238_p10 = por %p17237_p7, %p17236_p13 }
  0xb2   : > { %p17239_p3 = pnand %p17238_p10, %p17232_p0 }
  0xb4   : > { %17242 = shalt.err (!%p17239_p3)
}
  0xb5   : > { %s17243_s29 = scalar_lea.vmem %s17778_s14, 65536  ;;  %s17430_s9 = smov [#allocation11]  }
  0xb6   : > { %p17244_p11 = scmp.ne.s32.totalorder %s17778_s14, %s17243_s29  ;;  %s17248_s21 = sshll.u32 %s17430_s9, 4  ;;  %s17249_s21 = int_to_ptr.vmem [resolvable:$false] %s17248_s21 }
  0xb7   : > { %s17250_s16 = scalar_lea.vmem %s17249_s21, 131072  ;;  %p17251_p8 = scmp.lt.s32.totalorder %s17778_s14, %s17249_s21 }
  0xb8   : > { %p17246_p12 = pnand %p17244_p11, %p17625_p6  ;;  %p17252_p9 = scmp.lt.s32.totalorder %s17250_s16, %s17243_s29 }
  0xba   : > { %p17247_p5 = pneg %p17246_p12  ;;  %p17253_p1 = por %p17252_p9, %p17251_p8 }
  0xbc   : > { %p17254_p2 = pnand %p17253_p1, %p17247_p5 }
  0xbe   : > { %17257 = shalt.err (!%p17254_p2)
}
  0xbf   : > { %s17431_s25 = smov 1024   ;;  %s17432_s11 = smov 64  }
  0xc0   : > { %15427 = dma.hbm_to_vmem [thread:$0]  (!%p17602_p4), %s17776_s5, 65536, %s17778_s14, %s17670_s12, %s17431_s25, %s17431_s25, %s17432_s11  }
  0xc1   : > { %s17807_s26 = scalar_lea.hbm %s19895_s7, %s15153_s10  ;;  %s450_s0 = scalar_lea.vmem [#allocation12], %s13564_s3 }
  0xc2   : > { %s457_s23 = sshll.u32 %s450_s0, 4  ;;  %s447_s15 = scalar_lea.sflag [#allocation13], %s17588_s24  ;;  %s17811_s23 = int_to_ptr.vmem [resolvable:$true] %s457_s23 }
  0xc3   : > { %s17258_s29 = scalar_lea.hbm %s17807_s26, 65536  ;;  %s17263_s10 = scalar_lea.hbm %s19895_s7, 393216 }
  0xc4   : > { %p17259_p0 = scmp.ne.s32.totalorder %s17807_s26, %s17258_s29  ;;  %p17264_p10 = scmp.lt.u32.totalorder %s17807_s26, %s19895_s7 }
  0xc5   : > { %p17265_p3 = scmp.lt.u32.totalorder %s17263_s10, %s17258_s29  ;;  %p17267_p12 = scmp.lt.u32.totalorder %s17258_s29, %s17807_s26 }
  0xc6   : > { %p17261_p13 = pnand %p17259_p0, %p17625_p6 }
  0xc7   : > { %p17266_p11 = por %p17265_p3, %p17264_p10 }
  0xc8   : > { %p17262_p7 = pneg %p17261_p13 }
  0xc9   : > { %p17268_p5 = por %p17267_p12, %p17266_p11 }
  0xcb   : > { %p17269_p8 = pnand %p17268_p5, %p17262_p7 }
  0xcd   : > { %17272 = shalt.err (!%p17269_p8)
}
  0xce   : > { %s17273_s3 = scalar_lea.vmem %s17811_s23, 65536  ;;  %s17433_s21 = smov [#allocation12]  }
  0xcf   : > { %p17274_p9 = scmp.ne.s32.totalorder %s17811_s23, %s17273_s3  ;;  %s17278_s16 = sshll.u32 %s17433_s21, 4  ;;  %s17279_s16 = int_to_ptr.vmem [resolvable:$false] %s17278_s16 }
  0xd0   : > { %s17280_s25 = scalar_lea.vmem %s17279_s16, 131072  ;;  %p17281_p0 = scmp.lt.s32.totalorder %s17811_s23, %s17279_s16 }
  0xd1   : > { %p17276_p1 = pnand %p17274_p9, %p17625_p6  ;;  %p17282_p13 = scmp.lt.s32.totalorder %s17280_s25, %s17273_s3 }
  0xd3   : > { %p17277_p2 = pneg %p17276_p1  ;;  %p17283_p10 = por %p17282_p13, %p17281_p0 }
  0xd5   : > { %p17284_p3 = pnand %p17283_p10, %p17277_p2 }
  0xd7   : > { %17287 = shalt.err (!%p17284_p3)
}
  0xd8   : > { %15430 = dma.hbm_to_vmem [thread:$0]  (!%p17602_p4), %s17807_s26, 65536, %s17811_s23, %s447_s15, %s19957_s30, %s19957_s30, %s19956_s1  }
  0xd9   : > { %p19961_p6 = scmp.ne.s32.totalorder %s19954_s27, 0 }
  0xda   : > { %s471_s8 = sand.u32 (!%p19961_p6), 1, %s17398_s13   ;;  %p19962_p7 = scmp.ne.s32.totalorder (!%p19961_p6), %s19943_s28, 0 }
  0xdb   : > { %469 = sbr.rel (%p19961_p6) target bundleno = 3858 (0xf12), region = 52  ;;  %s13571_s11 = sshll.u32 (!%p19961_p6), %s471_s8, 10 }
  0xdc   : > { %s472_s22 = scalar_lea.sflag (!%p19961_p6), [#allocation4], %s471_s8  ;;  %s17843_s19 = scalar_lea.vmem (!%p19961_p6), [#allocation3], %s13571_s11 }
  0xe2   : > { %17361 = dma.done.wait (%p19962_p7), %s472_s22, 16384  }
  0xe3   : > { %17363 = vsyncadd (%p19962_p7), %s472_s22, 4294950912  ;;  %s480_s18 = sand.u32 1, %s17542_s20   ;;  %s17850_s1 = scalar_lea.vmem [#allocation6], %s13571_s11 }
  0xe4   : > { %s481_s24 = scalar_lea.sflag [#allocation7], %s480_s18 }
  0xe5   : > { %17365 = dma.done.wait (%p19962_p7), %s481_s24, 32768  }
  0xe6   : > { %17367 = vsyncadd (%p19962_p7), %s481_s24, 4294934528  ;;  %s17856_s27 = scalar_lea.vmem [#allocation8], %s13571_s11  ;;  %s499_s30 = scalar_lea.sflag [#allocation10], %s480_s18 }
  0xe7   : > { %s17858_s26 = scalar_lea.vmem [#allocation9], %s13571_s11 }
  0xe8   : > { %17369 = dma.done.wait (%p19962_p7), %s499_s30, 81920  }
  0xe9   : > { %17371 = vsyncadd (%p19962_p7), %s499_s30, 4294885376  ;;  %s13575_s20 = sshll.u32 %s471_s8, 12  ;;  %s517_s23 = scalar_lea.sflag [#allocation13], %s471_s8 }
  0xea   : > { %s17864_s0 = scalar_lea.vmem [#allocation11], %s13575_s20  ;;  %s17866_s15 = scalar_lea.vmem [#allocation12], %s13575_s20 }
  0xeb   : > { %17373 = dma.done.wait (%p19962_p7), %s517_s23, 65536  }
  0xec   : > { %17375 = vsyncadd (%p19962_p7), %s517_s23, 4294901760  ;;  %s19963_s29 = sld [smem:[#allocation21_spill]]  ;;  %s19964_s12 = sld [smem:[#allocation25_spill]] }
  0xed   : > { %s19965_s14 = sld [smem:[#allocation24_spill]]  ;;  %s19966_s16 = sld [smem:[#allocation35_spill]] }
  0xee   : > { %s19967_s22 = sld [smem:[#allocation34_spill]] }
  0xef   : > { %s19968_s2 = sld [smem:[#allocation42_spill]] }
  0xf2   : > { %s19921_s10 = sand.u32 1, %s19963_s29   ;;  %p597_p4 = scmp.lt.s32.totalorder %s19964_s12, 1 }
  0xf3   : > { %s13577_s5 = sshll.u32 %s19921_s10, 5  ;;  %p607_p11 = scmp.lt.s32.totalorder %s19965_s14, 5 }
  0xf4   : > { %s19999_s12 = smov (!%p597_p4, %s19964_s12), 1  ;;  %s17895_s6 = scalar_lea.vmem [#allocation14], %s13577_s5 }
  0xf5   : > { %s608_s9 = scalar_select %p607_p11, %s19965_s14, 5 }
  0xf6   : > { %s15155_s3 = sshll.u32 %s19999_s12, 5  ;;  %s604_s25 = scalar_lea.vmem %s19966_s16, %s19999_s12 }
  0xf7   : > { %s601_s18 = scalar_lea.vmem %s19967_s22, %s15155_s3  ;;  %s13580_s24 = sshll.u32 %s608_s9, 3 }
  0xf8   : > { %s15397_s30 = smul.u32 48, %s19999_s12  ;;  %p13582_p12 = scmp.ne.s32.totalorder %s19965_s14, 0 }
  0xf9   : > { %v618_v0 = vld [vmem:[%s601_s18] sm:$0xff] (!%p13582_p12)  ;;  %v619_v1 = vld [vmem:[%s601_s18 + $0x8] sm:$0xff] (!%p13582_p12)  ;;  %v620_v2 = vld [vmem:[%s601_s18 + $0x10] sm:$0xff] (!%p13582_p12) }
  0xfa   : > { %s611_s20 = sadd.s32 %s15397_s30, %s13580_s24  ;;  %617 = sbr.rel (%p13582_p12) target bundleno = 257 (0x101), region = 80  ;;  %622 = vst [vmem:[%s17895_s6] sm:$0xff] (!%p13582_p12), %v618_v0  ;;  %623 = vst [vmem:[%s17895_s6 + $0x8] sm:$0xff] (!%p13582_p12), %v619_v1  ;;  %v621_v3 = vld [vmem:[%s601_s18 + $0x18] sm:$0xff] (!%p13582_p12) }
  0xfb   : > { %s13581_s23 = sshll.u32 %s611_s20, 3  ;;  %624 = vst [vmem:[%s17895_s6 + $0x10] sm:$0xff] (!%p13582_p12), %v620_v2  ;;  %625 = vst [vmem:[%s17895_s6 + $0x18] sm:$0xff] (!%p13582_p12), %v621_v3 }
  0xfc   : > { %s17893_s4 = scalar_lea.vmem %s19968_s2, %s13581_s23 }
 0x101 PF: > { %v15532_v4 = vld [vmem:[%s17843_s19 + $0x4] ss:$16 sps:$4 sm:$0xff]   ;;  %v15534_v5 = vld [vmem:[%s17843_s19] ss:$16 sps:$4 sm:$0xff]   ;;  %v15540_v9 = vld [vmem:[%s17843_s19 + $0xc] ss:$16 sps:$4 sm:$0xff]  }
 0x102   : > { %1402 = vmatprep.subr.bf16.mxu0 %v15532_v4  ;;  %v15535_v6 = vld [vmem:[%s17843_s19 + $0x24] ss:$16 sps:$4 sm:$0xff]   ;;  %v15537_v7 = vld [vmem:[%s17843_s19 + $0x20] ss:$16 sps:$4 sm:$0xff]   ;;  %v15543_v10 = vld [vmem:[%s17843_s19 + $0x8] ss:$16 sps:$4 sm:$0xff]   ;;  %1484 = vmatprep.subr.bf16.mxu1 %v15540_v9 }
 0x103   : > { %1403 = vmatpush1.bf16.msra.mxu0 %v15534_v5  ;;  %v15538_v8 = vld [vmem:[%s17843_s19 + $0x44] ss:$16 sps:$4 sm:$0xff]   ;;  %v15542_v11 = vld [vmem:[%s17843_s19 + $0x40] ss:$16 sps:$4 sm:$0xff]   ;;  %1485 = vmatpush1.bf16.msra.mxu1 %v15543_v10  ;;  %v15546_v12 = vld [vmem:[%s17843_s19 + $0x2c] ss:$16 sps:$4 sm:$0xff]  }
 0x104   : > { %1404 = vmatprep.subr.bf16.mxu0 %v15535_v6  ;;  %v15549_v13 = vld [vmem:[%s17843_s19 + $0x28] ss:$16 sps:$4 sm:$0xff]   ;;  %v15544_v14 = vld [vmem:[%s17843_s19 + $0x64] ss:$16 sps:$4 sm:$0xff]   ;;  %1486 = vmatprep.subr.bf16.mxu1 %v15546_v12  ;;  %v15552_v15 = vld [vmem:[%s17843_s19 + $0x4c] ss:$16 sps:$4 sm:$0xff]  }
 0x105   : > { %v15548_v16 = vld [vmem:[%s17843_s19 + $0x60] ss:$16 sps:$4 sm:$0xff]   ;;  %v15555_v17 = vld [vmem:[%s17843_s19 + $0x48] ss:$16 sps:$4 sm:$0xff]   ;;  %v15550_v18 = vld [vmem:[%s17843_s19 + $0x84] ss:$16 sps:$4 sm:$0xff]  }
 0x106   : > { %v15558_v19 = vld [vmem:[%s17843_s19 + $0x6c] ss:$16 sps:$4 sm:$0xff]   ;;  %v15554_v20 = vld [vmem:[%s17843_s19 + $0x80] ss:$16 sps:$4 sm:$0xff]   ;;  %v15556_v21 = vld [vmem:[%s17843_s19 + $0xa4] ss:$16 sps:$4 sm:$0xff]  }
 0x107   : > { %1405 = vmatpush1.bf16.msra.mxu0 %v15537_v7  ;;  %1487 = vmatpush1.bf16.msra.mxu1 %v15549_v13  ;;  %v15561_v22 = vld [vmem:[%s17843_s19 + $0x68] ss:$16 sps:$4 sm:$0xff]   ;;  %v15564_v23 = vld [vmem:[%s17843_s19 + $0x8c] ss:$16 sps:$4 sm:$0xff]   ;;  %v15560_v24 = vld [vmem:[%s17843_s19 + $0xa0] ss:$16 sps:$4 sm:$0xff]  }
 0x108   : > { %1406 = vmatprep.subr.bf16.mxu0 %v15538_v8  ;;  %1488 = vmatprep.subr.bf16.mxu1 %v15552_v15  ;;  %v15567_v25 = vld [vmem:[%s17843_s19 + $0x88] ss:$16 sps:$4 sm:$0xff]   ;;  %v15562_v26 = vld [vmem:[%s17843_s19 + $0xc4] ss:$16 sps:$4 sm:$0xff]   ;;  %v15570_v27 = vld [vmem:[%s17843_s19 + $0xac] ss:$16 sps:$4 sm:$0xff]  }
 0x109   : > { %v15566_v28 = vld [vmem:[%s17843_s19 + $0xc0] ss:$16 sps:$4 sm:$0xff]   ;;  %v15568_v29 = vld [vmem:[%s17843_s19 + $0xe4] ss:$16 sps:$4 sm:$0xff]   ;;  %v15573_v30 = vld [vmem:[%s17843_s19 + $0xa8] ss:$16 sps:$4 sm:$0xff]  }
 0x10a   : > { %v15576_v31 = vld [vmem:[%s17843_s19 + $0xcc] ss:$16 sps:$4 sm:$0xff]   ;;  %v15572_v32 = vld [vmem:[%s17843_s19 + $0xe0] ss:$16 sps:$4 sm:$0xff]   ;;  %v15579_v33 = vld [vmem:[%s17843_s19 + $0xc8] ss:$16 sps:$4 sm:$0xff]  }
 0x10b   : > { %1407 = vmatpush1.bf16.msra.mxu0 %v15542_v11  ;;  %1489 = vmatpush1.bf16.msra.mxu1 %v15555_v17  ;;  %v15574_v34 = vld [vmem:[%s17843_s19 + $0x104] ss:$16 sps:$4 sm:$0xff]   ;;  %v15582_v35 = vld [vmem:[%s17843_s19 + $0xec] ss:$16 sps:$4 sm:$0xff]   ;;  %v15578_v36 = vld [vmem:[%s17843_s19 + $0x100] ss:$16 sps:$4 sm:$0xff]  }
 0x10c   : > { %1408 = vmatprep.subr.bf16.mxu0 %v15544_v14  ;;  %1490 = vmatprep.subr.bf16.mxu1 %v15558_v19  ;;  %v15580_v37 = vld [vmem:[%s17843_s19 + $0x124] ss:$16 sps:$4 sm:$0xff]   ;;  %v15585_v38 = vld [vmem:[%s17843_s19 + $0xe8] ss:$16 sps:$4 sm:$0xff]   ;;  %v15588_v39 = vld [vmem:[%s17843_s19 + $0x10c] ss:$16 sps:$4 sm:$0xff]  }
 0x10d   : > { %v15584_v40 = vld [vmem:[%s17843_s19 + $0x120] ss:$16 sps:$4 sm:$0xff]   ;;  %v15591_v41 = vld [vmem:[%s17843_s19 + $0x108] ss:$16 sps:$4 sm:$0xff]   ;;  %v15586_v42 = vld [vmem:[%s17843_s19 + $0x144] ss:$16 sps:$4 sm:$0xff]  }
 0x10e   : > { %v15594_v43 = vld [vmem:[%s17843_s19 + $0x12c] ss:$16 sps:$4 sm:$0xff]   ;;  %v15590_v44 = vld [vmem:[%s17843_s19 + $0x140] ss:$16 sps:$4 sm:$0xff]   ;;  %v15592_v45 = vld [vmem:[%s17843_s19 + $0x164] ss:$16 sps:$4 sm:$0xff]  }
 0x10f   : > { %1409 = vmatpush1.bf16.msra.mxu0 %v15548_v16  ;;  %1491 = vmatpush1.bf16.msra.mxu1 %v15561_v22  ;;  %v15597_v46 = vld [vmem:[%s17843_s19 + $0x128] ss:$16 sps:$4 sm:$0xff]   ;;  %v15600_v47 = vld [vmem:[%s17843_s19 + $0x14c] ss:$16 sps:$4 sm:$0xff]   ;;  %v15596_v50 = vld [vmem:[%s17843_s19 + $0x160] ss:$16 sps:$4 sm:$0xff]  }
 0x110   : > { %1410 = vmatprep.subr.bf16.mxu0 %v15550_v18  ;;  %1492 = vmatprep.subr.bf16.mxu1 %v15564_v23  ;;  %v627_v48 = vld [vmem:[%s17895_s6 + $0x8] sm:$0xff]  ;;  %v15598_v52 = vld [vmem:[%s17843_s19 + $0x184] ss:$16 sps:$4 sm:$0xff]   ;;  %v15602_v54 = vld [vmem:[%s17843_s19 + $0x180] ss:$16 sps:$4 sm:$0xff]   ;;  %vm17435_vm0 = vmmov 0  }
 0x111   : > { %v17947_v49 = vpack.c.bf16 %v627_v48, %v627_v48  ;;  %v15603_v51 = vld [vmem:[%s17843_s19 + $0x148] ss:$16 sps:$4 sm:$0xff]   ;;  %v15606_v53 = vld [vmem:[%s17843_s19 + $0x16c] ss:$16 sps:$4 sm:$0xff]   ;;  %v15604_v56 = vld [vmem:[%s17843_s19 + $0x1a4] ss:$16 sps:$4 sm:$0xff]  }
 0x112   : > { %v15609_v55 = vld [vmem:[%s17843_s19 + $0x168] ss:$16 sps:$4 sm:$0xff]   ;;  %v15612_v57 = vld [vmem:[%s17843_s19 + $0x18c] ss:$16 sps:$4 sm:$0xff]   ;;  %v15608_v58 = vld [vmem:[%s17843_s19 + $0x1a0] ss:$16 sps:$4 sm:$0xff]  }
 0x113   : > { %1411 = vmatpush1.bf16.msra.mxu0 %v15554_v20  ;;  %1493 = vmatpush1.bf16.msra.mxu1 %v15567_v25  ;;  %v15615_v59 = vld [vmem:[%s17843_s19 + $0x188] ss:$16 sps:$4 sm:$0xff]   ;;  %v15610_v60 = vld [vmem:[%s17843_s19 + $0x1c4] ss:$16 sps:$4 sm:$0xff]   ;;  %v15618_v61 = vld [vmem:[%s17843_s19 + $0x1ac] ss:$16 sps:$4 sm:$0xff]  }
 0x114   : > { %1412 = vmatprep.subr.bf16.mxu0 %v15556_v21  ;;  %1494 = vmatprep.subr.bf16.mxu1 %v15570_v27  ;;  %v15614_v62 = vld [vmem:[%s17843_s19 + $0x1c0] ss:$16 sps:$4 sm:$0xff]   ;;  %v15621_v63 = vld [vmem:[%s17843_s19 + $0x1a8] ss:$16 sps:$4 sm:$0xff]   ;;  %v15616_v0 = vld [vmem:[%s17843_s19 + $0x1e4] ss:$16 sps:$4 sm:$0xff]  }
 0x115   : > { %1434 = vmatprep.mubr.bf16.mxu0 %v17947_v49  ;;  %1516 = vmatprep.mubr.bf16.mxu1 %v17947_v49  ;;  %v15625_v1 = vld [vmem:[%s17843_s19 + $0x1cc] ss:$16 sps:$4 sm:$0xff]   ;;  %v15620_v2 = vld [vmem:[%s17843_s19 + $0x1e0] ss:$16 sps:$4 sm:$0xff]   ;;  %v15627_v4 = vld [vmem:[%s17843_s19 + $0x1c8] ss:$16 sps:$4 sm:$0xff]  }
 0x116   : > { %v626_v3 = vld [vmem:[%s17895_s6] sm:$0xff]  ;;  %v15631_v6 = vld [vmem:[%s17843_s19 + $0x1ec] ss:$16 sps:$4 sm:$0xff]   ;;  %v15633_v9 = vld [vmem:[%s17843_s19 + $0x1e8] ss:$16 sps:$4 sm:$0xff]   ;;  %vm3481_vm1 = vcmask 523264  }
 0x117   : > { %1413 = vmatpush1.bf16.msra.mxu0 %v15560_v24  ;;  %1495 = vmatpush1.bf16.msra.mxu1 %v15573_v30  ;;  %v15624_v5 = vld [vmem:[%s17843_s19 + $0x204] ss:$16 sps:$4 sm:$0xff]   ;;  %v15622_v7 = vld [vmem:[%s17843_s19 + $0x200] ss:$16 sps:$4 sm:$0xff]   ;;  %v17973_v8 = vpack.c.bf16 %v626_v3, %v626_v3  ;;  %v15639_v11 = vld [vmem:[%s17843_s19 + $0x20c] ss:$16 sps:$4 sm:$0xff]  }
 0x118   : > { %1414 = vmatprep.subr.bf16.mxu0 %v15562_v26  ;;  %1496 = vmatprep.subr.bf16.mxu1 %v15576_v31  ;;  %v15630_v10 = vld [vmem:[%s17843_s19 + $0x224] ss:$16 sps:$4 sm:$0xff]   ;;  %v15628_v12 = vld [vmem:[%s17843_s19 + $0x220] ss:$16 sps:$4 sm:$0xff]   ;;  %v15637_v13 = vld [vmem:[%s17843_s19 + $0x208] ss:$16 sps:$4 sm:$0xff]  }
 0x119   : > { %v15636_v14 = vld [vmem:[%s17843_s19 + $0x244] ss:$16 sps:$4 sm:$0xff]   ;;  %v15645_v15 = vld [vmem:[%s17843_s19 + $0x22c] ss:$16 sps:$4 sm:$0xff]   ;;  %v15634_v16 = vld [vmem:[%s17843_s19 + $0x240] ss:$16 sps:$4 sm:$0xff]  }
 0x11a   : > { %v15643_v17 = vld [vmem:[%s17843_s19 + $0x228] ss:$16 sps:$4 sm:$0xff]   ;;  %v15642_v18 = vld [vmem:[%s17843_s19 + $0x264] ss:$16 sps:$4 sm:$0xff]   ;;  %v15651_v19 = vld [vmem:[%s17843_s19 + $0x24c] ss:$16 sps:$4 sm:$0xff]  }
 0x11b   : > { %1415 = vmatpush1.bf16.msra.mxu0 %v15566_v28  ;;  %1497 = vmatpush1.bf16.msra.mxu1 %v15579_v33  ;;  %v15640_v20 = vld [vmem:[%s17843_s19 + $0x260] ss:$16 sps:$4 sm:$0xff]   ;;  %v15649_v21 = vld [vmem:[%s17843_s19 + $0x248] ss:$16 sps:$4 sm:$0xff]   ;;  %v15648_v22 = vld [vmem:[%s17843_s19 + $0x284] ss:$16 sps:$4 sm:$0xff]  }
 0x11c   : > { %1416 = vmatprep.subr.bf16.mxu0 %v15568_v29  ;;  %1498 = vmatprep.subr.bf16.mxu1 %v15582_v35  ;;  %v15657_v23 = vld [vmem:[%s17843_s19 + $0x26c] ss:$16 sps:$4 sm:$0xff]   ;;  %v15646_v24 = vld [vmem:[%s17843_s19 + $0x280] ss:$16 sps:$4 sm:$0xff]   ;;  %v15655_v25 = vld [vmem:[%s17843_s19 + $0x268] ss:$16 sps:$4 sm:$0xff]  }
 0x11d   : > { %v15654_v26 = vld [vmem:[%s17843_s19 + $0x2a4] ss:$16 sps:$4 sm:$0xff]   ;;  %v15663_v27 = vld [vmem:[%s17843_s19 + $0x28c] ss:$16 sps:$4 sm:$0xff]   ;;  %v15652_v28 = vld [vmem:[%s17843_s19 + $0x2a0] ss:$16 sps:$4 sm:$0xff]  }
 0x11e   : > { %v15660_v29 = vld [vmem:[%s17843_s19 + $0x2c4] ss:$16 sps:$4 sm:$0xff]   ;;  %v15661_v30 = vld [vmem:[%s17843_s19 + $0x288] ss:$16 sps:$4 sm:$0xff]   ;;  %v15706_v3 = vld [vmem:[%s17843_s19 + $0x3c0] ss:$16 sps:$4 sm:$0xff]  }
 0x11f   : > { %1417 = vmatpush1.bf16.msra.mxu0 %v15572_v32  ;;  %1499 = vmatpush1.bf16.msra.mxu1 %v15585_v38  ;;  %v629_v31 = vld [vmem:[%s17895_s6 + $0x18] sm:$0xff]  ;;  %v15666_v35 = vld [vmem:[%s17843_s19 + $0x2e4] ss:$16 sps:$4 sm:$0xff]   ;;  %v15664_v38 = vld [vmem:[%s17843_s19 + $0x2e0] ss:$16 sps:$4 sm:$0xff]   ;;  %s17436_s2 = smov 64  }
 0x120   : > { %1418 = vmatprep.subr.bf16.mxu0 %v15574_v34  ;;  %1500 = vmatprep.subr.bf16.mxu1 %v15588_v39  ;;  %v15669_v32 = vld [vmem:[%s17843_s19 + $0x2ac] ss:$16 sps:$4 sm:$0xff]   ;;  %v18001_v33 = vpack.c.bf16 %v629_v31, %v629_v31  ;;  %v15658_v34 = vld [vmem:[%s17843_s19 + $0x2c0] ss:$16 sps:$4 sm:$0xff]   ;;  %v15672_v39 = vld [vmem:[%s17843_s19 + $0x304] ss:$16 sps:$4 sm:$0xff]  }
 0x121   : > { %v15685_v48 = vld [vmem:[%s17843_s19 + $0x308] ss:$16 sps:$4 sm:$0xff]   ;;  %v15750_v31 = vld [vmem:[%s17850_s1 + $0xa4] ss:$16 sps:$4 sm:$0xff]   ;;  %vm4074_vm2 = vcmask 64512   ;;  %vm4760_vm3 = vcmask 1048064  }
 0x122   : > { %s13293_s12 = sshll.u32 %s17895_s6, 4  ;;  %s19973_s5 = sld [smem:[#allocation41_spill]]  ;;  %s19822_s12 = int_to_ptr.vmem [resolvable:$true] %s13293_s12 }
 0x123   : > { %1419 = vmatpush1.bf16.msra.mxu0 %v15578_v36  ;;  %1501 = vmatpush1.bf16.msra.mxu1 %v15591_v41  ;;  %v15667_v36 = vld [vmem:[%s17843_s19 + $0x2a8] ss:$16 sps:$4 sm:$0xff]   ;;  %v15681_v41 = vld [vmem:[%s17843_s19 + $0x2ec] ss:$16 sps:$4 sm:$0xff]   ;;  %s17288_s21 = scalar_lea.vmem %s19822_s12, 512  ;;  %s17437_s16 = smov [#allocation14]  }
 0x124   : > { %1420 = vmatprep.subr.bf16.mxu0 %v15580_v37  ;;  %1502 = vmatprep.subr.bf16.mxu1 %v15594_v43  ;;  %v15675_v37 = vld [vmem:[%s17843_s19 + $0x2cc] ss:$16 sps:$4 sm:$0xff]   ;;  %v15678_v43 = vld [vmem:[%s17843_s19 + $0x324] ss:$16 sps:$4 sm:$0xff]   ;;  %p17289_p5 = scmp.ne.s32.totalorder %s19822_s12, %s17288_s21 }
 0x127   : > { %1421 = vmatpush1.bf16.msra.mxu0 %v15584_v40  ;;  %1503 = vmatpush1.bf16.msra.mxu1 %v15597_v46  ;;  %v15673_v40 = vld [vmem:[%s17843_s19 + $0x2c8] ss:$16 sps:$4 sm:$0xff]   ;;  %v15676_v46 = vld [vmem:[%s17843_s19 + $0x320] ss:$16 sps:$4 sm:$0xff]  }
 0x128   : > { %1422 = vmatprep.subr.bf16.mxu0 %v15586_v42  ;;  %1504 = vmatprep.subr.bf16.mxu1 %v15600_v47  ;;  %v15670_v42 = vld [vmem:[%s17843_s19 + $0x300] ss:$16 sps:$4 sm:$0xff]   ;;  %v15684_v47 = vld [vmem:[%s17843_s19 + $0x344] ss:$16 sps:$4 sm:$0xff]  }
 0x12b   : > { %1423 = vmatpush1.bf16.msra.mxu0 %v15590_v44  ;;  %1505 = vmatpush1.bf16.msra.mxu1 %v15603_v51  ;;  %v15679_v44 = vld [vmem:[%s17843_s19 + $0x2e8] ss:$16 sps:$4 sm:$0xff]   ;;  %v15682_v51 = vld [vmem:[%s17843_s19 + $0x340] ss:$16 sps:$4 sm:$0xff]  }
 0x12c   : > { %1424 = vmatprep.subr.bf16.mxu0 %v15592_v45  ;;  %1506 = vmatprep.subr.bf16.mxu1 %v15606_v53  ;;  %v15687_v45 = vld [vmem:[%s17843_s19 + $0x30c] ss:$16 sps:$4 sm:$0xff]   ;;  %v15691_v53 = vld [vmem:[%s17843_s19 + $0x328] ss:$16 sps:$4 sm:$0xff]  }
 0x12f   : > { %1425 = vmatpush1.bf16.msra.mxu0 %v15596_v50  ;;  %1507 = vmatpush1.bf16.msra.mxu1 %v15609_v55  ;;  %v15693_v50 = vld [vmem:[%s17843_s19 + $0x32c] ss:$16 sps:$4 sm:$0xff]   ;;  %v15688_v55 = vld [vmem:[%s17843_s19 + $0x360] ss:$16 sps:$4 sm:$0xff]  }
 0x130   : > { %1426 = vmatprep.subr.bf16.mxu0 %v15598_v52  ;;  %1508 = vmatprep.subr.bf16.mxu1 %v15612_v57  ;;  %v15690_v52 = vld [vmem:[%s17843_s19 + $0x364] ss:$16 sps:$4 sm:$0xff]   ;;  %v15697_v57 = vld [vmem:[%s17843_s19 + $0x348] ss:$16 sps:$4 sm:$0xff]  }
 0x133   : > { %1427 = vmatpush1.bf16.msra.mxu0 %v15602_v54  ;;  %1509 = vmatpush1.bf16.msra.mxu1 %v15615_v59  ;;  %v15699_v54 = vld [vmem:[%s17843_s19 + $0x34c] ss:$16 sps:$4 sm:$0xff]   ;;  %v15694_v59 = vld [vmem:[%s17843_s19 + $0x380] ss:$16 sps:$4 sm:$0xff]  }
 0x134   : > { %1428 = vmatprep.subr.bf16.mxu0 %v15604_v56  ;;  %1510 = vmatprep.subr.bf16.mxu1 %v15618_v61  ;;  %v15696_v56 = vld [vmem:[%s17843_s19 + $0x384] ss:$16 sps:$4 sm:$0xff]   ;;  %v15703_v61 = vld [vmem:[%s17843_s19 + $0x368] ss:$16 sps:$4 sm:$0xff]  }
 0x137   : > { %1429 = vmatpush1.bf16.msra.mxu0 %v15608_v58  ;;  %1511 = vmatpush1.bf16.msra.mxu1 %v15621_v63  ;;  %v15705_v58 = vld [vmem:[%s17843_s19 + $0x36c] ss:$16 sps:$4 sm:$0xff]   ;;  %v15700_v63 = vld [vmem:[%s17843_s19 + $0x3a0] ss:$16 sps:$4 sm:$0xff]  }
 0x138   : > { %1430 = vmatprep.subr.bf16.mxu0 %v15610_v60  ;;  %1512 = vmatprep.subr.bf16.mxu1 %v15625_v1  ;;  %v15702_v60 = vld [vmem:[%s17843_s19 + $0x3a4] ss:$16 sps:$4 sm:$0xff]   ;;  %v15709_v1 = vld [vmem:[%s17843_s19 + $0x388] ss:$16 sps:$4 sm:$0xff]  }
 0x13b   : > { %1431 = vmatpush1.bf16.msra.mxu0 %v15614_v62  ;;  %1513 = vmatpush1.bf16.msra.mxu1 %v15627_v4  ;;  %v15711_v62 = vld [vmem:[%s17843_s19 + $0x38c] ss:$16 sps:$4 sm:$0xff]   ;;  %v15714_v4 = vld [vmem:[%s17843_s19 + $0x3e4] ss:$16 sps:$4 sm:$0xff]  }
 0x13c   : > { %1432 = vmatprep.subr.bf16.mxu0 %v15616_v0  ;;  %1514 = vmatprep.subr.bf16.mxu1 %v15631_v6  ;;  %v15708_v0 = vld [vmem:[%s17843_s19 + $0x3c4] ss:$16 sps:$4 sm:$0xff]   ;;  %v15720_v6 = vld [vmem:[%s17843_s19 + $0x3cc] ss:$16 sps:$4 sm:$0xff]  }
 0x13f   : > { %1433 = vmatpush1.bf16.msra.mxu0 %v15620_v2  ;;  %1515 = vmatpush1.bf16.msra.mxu1 %v15633_v9  ;;  %v15717_v2 = vld [vmem:[%s17843_s19 + $0x3ac] ss:$16 sps:$4 sm:$0xff]   ;;  %v628_v9 = vld [vmem:[%s17895_s6 + $0x10] sm:$0xff] }
 0x140   : > { %1443 = vmatprep.subr.bf16.mxu0 %v15624_v5  ;;  %1525 = vmatprep.subr.bf16.mxu1 %v15639_v11  ;;  %v15715_v5 = vld [vmem:[%s17843_s19 + $0x3a8] ss:$16 sps:$4 sm:$0xff]   ;;  %v15723_v11 = vld [vmem:[%s17850_s1 + $0x4] ss:$16 sps:$4 sm:$0xff]  }
 0x142   : > { %1435 = vmatmul.mubr.bf16.vlgmr.msra.gmra.mrb[0].mxu0 %v17973_v8  ;;  %1517 = vmatmul.mubr.bf16.vlgmr.msra.gmra.mrb[0].mxu1 %v17973_v8 }
 0x143   : > { %1444 = vmatpush1.bf16.msra.mxu0 %v15622_v7  ;;  %1526 = vmatpush1.bf16.msra.mxu1 %v15637_v13  ;;  %v15712_v7 = vld [vmem:[%s17843_s19 + $0x3e0] ss:$16 sps:$4 sm:$0xff]   ;;  %v18046_v13 = vpack.c.bf16 %v628_v9, %v628_v9 }
 0x144   : > { %1445 = vmatprep.subr.bf16.mxu0 %v15630_v10  ;;  %1527 = vmatprep.subr.bf16.mxu1 %v15645_v15  ;;  %v15718_v10 = vld [vmem:[%s17843_s19 + $0x3c8] ss:$16 sps:$4 sm:$0xff]   ;;  %v15802_v9 = vld [vmem:[%s17850_s1 + $0x1c0] ss:$16 sps:$4 sm:$0xff]  }
 0x145   : > { %1475 = vmatprep.mubr.bf16.mxu0 %v18001_v33  ;;  %1557 = vmatprep.mubr.bf16.mxu1 %v18001_v33  ;;  %v15724_v15 = vld [vmem:[%s17843_s19 + $0x3e8] ss:$16 sps:$4 sm:$0xff]  }
 0x147   : > { %1446 = vmatpush1.bf16.msra.mxu0 %v15628_v12  ;;  %1528 = vmatpush1.bf16.msra.mxu1 %v15643_v17  ;;  %v15726_v12 = vld [vmem:[%s17843_s19 + $0x3ec] ss:$16 sps:$4 sm:$0xff]  }
 0x148   : > { %1447 = vmatprep.subr.bf16.mxu0 %v15636_v14  ;;  %1529 = vmatprep.subr.bf16.mxu1 %v15651_v19  ;;  %v15721_v14 = vld [vmem:[%s17850_s1] ss:$16 sps:$4 sm:$0xff]   ;;  %v15735_v17 = vld [vmem:[%s17850_s1 + $0xc] ss:$16 sps:$4 sm:$0xff]   ;;  %v15732_v19 = vld [vmem:[%s17850_s1 + $0x44] ss:$16 sps:$4 sm:$0xff]  }
 0x14b   : > { %1448 = vmatpush1.bf16.msra.mxu0 %v15634_v16  ;;  %1530 = vmatpush1.bf16.msra.mxu1 %v15649_v21  ;;  %v15729_v16 = vld [vmem:[%s17850_s1 + $0x24] ss:$16 sps:$4 sm:$0xff]   ;;  %v15741_v21 = vld [vmem:[%s17850_s1 + $0x2c] ss:$16 sps:$4 sm:$0xff]  }
 0x14c   : > { %1449 = vmatprep.subr.bf16.mxu0 %v15642_v18  ;;  %1531 = vmatprep.subr.bf16.mxu1 %v15657_v23  ;;  %v15727_v18 = vld [vmem:[%s17850_s1 + $0x20] ss:$16 sps:$4 sm:$0xff]   ;;  %v15738_v23 = vld [vmem:[%s17850_s1 + $0x64] ss:$16 sps:$4 sm:$0xff]  }
 0x14f   : > { %1450 = vmatpush1.bf16.msra.mxu0 %v15640_v20  ;;  %1532 = vmatpush1.bf16.msra.mxu1 %v15655_v25  ;;  %v15733_v20 = vld [vmem:[%s17850_s1 + $0x8] ss:$16 sps:$4 sm:$0xff]   ;;  %v15747_v25 = vld [vmem:[%s17850_s1 + $0x4c] ss:$16 sps:$4 sm:$0xff]  }
 0x150   : > { %1451 = vmatprep.subr.bf16.mxu0 %v15648_v22  ;;  %1533 = vmatprep.subr.bf16.mxu1 %v15663_v27  ;;  %v15730_v22 = vld [vmem:[%s17850_s1 + $0x40] ss:$16 sps:$4 sm:$0xff]   ;;  %v15744_v27 = vld [vmem:[%s17850_s1 + $0x84] ss:$16 sps:$4 sm:$0xff]  }
 0x153   : > { %1452 = vmatpush1.bf16.msra.mxu0 %v15646_v24  ;;  %1534 = vmatpush1.bf16.msra.mxu1 %v15661_v30  ;;  %v15739_v24 = vld [vmem:[%s17850_s1 + $0x28] ss:$16 sps:$4 sm:$0xff]   ;;  %v15742_v30 = vld [vmem:[%s17850_s1 + $0x80] ss:$16 sps:$4 sm:$0xff]  }
 0x154   : > { %1453 = vmatprep.subr.bf16.mxu0 %v15654_v26  ;;  %1535 = vmatprep.subr.bf16.mxu1 %v15669_v32  ;;  %v15736_v26 = vld [vmem:[%s17850_s1 + $0x60] ss:$16 sps:$4 sm:$0xff]   ;;  %v15751_v32 = vld [vmem:[%s17850_s1 + $0x68] ss:$16 sps:$4 sm:$0xff]  }
 0x157   : > { %1454 = vmatpush1.bf16.msra.mxu0 %v15652_v28  ;;  %1536 = vmatpush1.bf16.msra.mxu1 %v15667_v36  ;;  %v15745_v28 = vld [vmem:[%s17850_s1 + $0x48] ss:$16 sps:$4 sm:$0xff]   ;;  %v15756_v36 = vld [vmem:[%s17850_s1 + $0xc4] ss:$16 sps:$4 sm:$0xff]  }
 0x158   : > { %1455 = vmatprep.subr.bf16.mxu0 %v15660_v29  ;;  %1537 = vmatprep.subr.bf16.mxu1 %v15675_v37  ;;  %v15753_v29 = vld [vmem:[%s17850_s1 + $0x6c] ss:$16 sps:$4 sm:$0xff]   ;;  %v15757_v37 = vld [vmem:[%s17850_s1 + $0x88] ss:$16 sps:$4 sm:$0xff]  }
 0x15b   : > { %1456 = vmatpush1.bf16.msra.mxu0 %v15658_v34  ;;  %1538 = vmatpush1.bf16.msra.mxu1 %v15673_v40  ;;  %v15759_v34 = vld [vmem:[%s17850_s1 + $0x8c] ss:$16 sps:$4 sm:$0xff]   ;;  %v15762_v40 = vld [vmem:[%s17850_s1 + $0xe4] ss:$16 sps:$4 sm:$0xff]  }
 0x15c   : > { %1457 = vmatprep.subr.bf16.mxu0 %v15666_v35  ;;  %1539 = vmatprep.subr.bf16.mxu1 %v15681_v41  ;;  %v15748_v35 = vld [vmem:[%s17850_s1 + $0xa0] ss:$16 sps:$4 sm:$0xff]   ;;  %v15763_v41 = vld [vmem:[%s17850_s1 + $0xa8] ss:$16 sps:$4 sm:$0xff]  }
 0x15f   : > { %1458 = vmatpush1.bf16.msra.mxu0 %v15664_v38  ;;  %1540 = vmatpush1.bf16.msra.mxu1 %v15679_v44  ;;  %v15765_v38 = vld [vmem:[%s17850_s1 + $0xac] ss:$16 sps:$4 sm:$0xff]   ;;  %v15768_v44 = vld [vmem:[%s17850_s1 + $0x104] ss:$16 sps:$4 sm:$0xff]  }
 0x160   : > { %1459 = vmatprep.subr.bf16.mxu0 %v15672_v39  ;;  %1541 = vmatprep.subr.bf16.mxu1 %v15687_v45  ;;  %v15754_v39 = vld [vmem:[%s17850_s1 + $0xc0] ss:$16 sps:$4 sm:$0xff]   ;;  %v15769_v45 = vld [vmem:[%s17850_s1 + $0xc8] ss:$16 sps:$4 sm:$0xff]  }
 0x163   : > { %1460 = vmatpush1.bf16.msra.mxu0 %v15670_v42  ;;  %1542 = vmatpush1.bf16.msra.mxu1 %v15685_v48  ;;  %v15771_v42 = vld [vmem:[%s17850_s1 + $0xcc] ss:$16 sps:$4 sm:$0xff]   ;;  %v15774_v48 = vld [vmem:[%s17850_s1 + $0x124] ss:$16 sps:$4 sm:$0xff]  }
 0x164   : > { %1461 = vmatprep.subr.bf16.mxu0 %v15678_v43  ;;  %1543 = vmatprep.subr.bf16.mxu1 %v15693_v50  ;;  %v15760_v43 = vld [vmem:[%s17850_s1 + $0xe0] ss:$16 sps:$4 sm:$0xff]   ;;  %v15775_v50 = vld [vmem:[%s17850_s1 + $0xe8] ss:$16 sps:$4 sm:$0xff]  }
 0x167   : > { %1462 = vmatpush1.bf16.msra.mxu0 %v15676_v46  ;;  %1544 = vmatpush1.bf16.msra.mxu1 %v15691_v53  ;;  %v15777_v46 = vld [vmem:[%s17850_s1 + $0xec] ss:$16 sps:$4 sm:$0xff]   ;;  %v15780_v53 = vld [vmem:[%s17850_s1 + $0x144] ss:$16 sps:$4 sm:$0xff]  }
 0x168   : > { %1463 = vmatprep.subr.bf16.mxu0 %v15684_v47  ;;  %1545 = vmatprep.subr.bf16.mxu1 %v15699_v54  ;;  %v15766_v47 = vld [vmem:[%s17850_s1 + $0x100] ss:$16 sps:$4 sm:$0xff]   ;;  %v15781_v54 = vld [vmem:[%s17850_s1 + $0x108] ss:$16 sps:$4 sm:$0xff]  }
 0x16b   : > { %1464 = vmatpush1.bf16.msra.mxu0 %v15682_v51  ;;  %1546 = vmatpush1.bf16.msra.mxu1 %v15697_v57  ;;  %v15783_v51 = vld [vmem:[%s17850_s1 + $0x10c] ss:$16 sps:$4 sm:$0xff]   ;;  %v15786_v57 = vld [vmem:[%s17850_s1 + $0x164] ss:$16 sps:$4 sm:$0xff]  }
 0x16c   : > { %1465 = vmatprep.subr.bf16.mxu0 %v15690_v52  ;;  %1547 = vmatprep.subr.bf16.mxu1 %v15705_v58  ;;  %v15772_v52 = vld [vmem:[%s17850_s1 + $0x120] ss:$16 sps:$4 sm:$0xff]   ;;  %v15787_v58 = vld [vmem:[%s17850_s1 + $0x128] ss:$16 sps:$4 sm:$0xff]  }
 0x16f   : > { %1466 = vmatpush1.bf16.msra.mxu0 %v15688_v55  ;;  %1548 = vmatpush1.bf16.msra.mxu1 %v15703_v61  ;;  %v15789_v55 = vld [vmem:[%s17850_s1 + $0x12c] ss:$16 sps:$4 sm:$0xff]   ;;  %v15792_v61 = vld [vmem:[%s17850_s1 + $0x184] ss:$16 sps:$4 sm:$0xff]  }
 0x170   : > { %1467 = vmatprep.subr.bf16.mxu0 %v15696_v56  ;;  %1549 = vmatprep.subr.bf16.mxu1 %v15711_v62  ;;  %v15778_v56 = vld [vmem:[%s17850_s1 + $0x140] ss:$16 sps:$4 sm:$0xff]   ;;  %v15793_v62 = vld [vmem:[%s17850_s1 + $0x148] ss:$16 sps:$4 sm:$0xff]  }
 0x173   : > { %1468 = vmatpush1.bf16.msra.mxu0 %v15694_v59  ;;  %1550 = vmatpush1.bf16.msra.mxu1 %v15709_v1  ;;  %v15795_v59 = vld [vmem:[%s17850_s1 + $0x14c] ss:$16 sps:$4 sm:$0xff]   ;;  %v15798_v1 = vld [vmem:[%s17850_s1 + $0x1a4] ss:$16 sps:$4 sm:$0xff]  }
 0x174   : > { %1469 = vmatprep.subr.bf16.mxu0 %v15702_v60  ;;  %1551 = vmatprep.subr.bf16.mxu1 %v15717_v2  ;;  %v15784_v60 = vld [vmem:[%s17850_s1 + $0x160] ss:$16 sps:$4 sm:$0xff]   ;;  %v15799_v2 = vld [vmem:[%s17850_s1 + $0x168] ss:$16 sps:$4 sm:$0xff]  }
 0x177   : > { %1470 = vmatpush1.bf16.msra.mxu0 %v15700_v63  ;;  %1552 = vmatpush1.bf16.msra.mxu1 %v15715_v5  ;;  %v15801_v63 = vld [vmem:[%s17850_s1 + $0x16c] ss:$16 sps:$4 sm:$0xff]   ;;  %v15805_v5 = vld [vmem:[%s17850_s1 + $0x188] ss:$16 sps:$4 sm:$0xff]  }
 0x178   : > { %1471 = vmatprep.subr.bf16.mxu0 %v15708_v0  ;;  %1553 = vmatprep.subr.bf16.mxu1 %v15720_v6  ;;  %v15790_v0 = vld [vmem:[%s17850_s1 + $0x180] ss:$16 sps:$4 sm:$0xff]   ;;  %v15804_v6 = vld [vmem:[%s17850_s1 + $0x1c4] ss:$16 sps:$4 sm:$0xff]  }
 0x17b   : > { %1472 = vmatpush1.bf16.msra.mxu0 %v15706_v3  ;;  %1554 = vmatpush1.bf16.msra.mxu1 %v15718_v10  ;;  %v15807_v3 = vld [vmem:[%s17850_s1 + $0x18c] ss:$16 sps:$4 sm:$0xff]   ;;  %v15811_v10 = vld [vmem:[%s17850_s1 + $0x1a8] ss:$16 sps:$4 sm:$0xff]  }
 0x17c   : > { %1473 = vmatprep.subr.bf16.mxu0 %v15714_v4  ;;  %1555 = vmatprep.subr.bf16.mxu1 %v15726_v12  ;;  %v15796_v4 = vld [vmem:[%s17850_s1 + $0x1a0] ss:$16 sps:$4 sm:$0xff]   ;;  %v15819_v12 = vld [vmem:[%s17850_s1 + $0x1cc] ss:$16 sps:$4 sm:$0xff]  }
 0x17f   : > { %1474 = vmatpush1.bf16.msra.mxu0 %v15712_v7  ;;  %1556 = vmatpush1.bf16.msra.mxu1 %v15724_v15  ;;  %v15813_v7 = vld [vmem:[%s17850_s1 + $0x1ac] ss:$16 sps:$4 sm:$0xff]   ;;  %v15817_v15 = vld [vmem:[%s17850_s1 + $0x1c8] ss:$16 sps:$4 sm:$0xff]  }
 0x180   : > { %2334 = vmatprep.subr.bf16.mxu0 %v15723_v11  ;;  %2416 = vmatprep.subr.bf16.mxu1 %v15735_v17  ;;  %v15810_v11 = vld [vmem:[%s17850_s1 + $0x1e4] ss:$16 sps:$4 sm:$0xff]   ;;  %v15825_v17 = vld [vmem:[%s17850_s1 + $0x1ec] ss:$16 sps:$4 sm:$0xff]  }
 0x182   : > { %1476 = vmatmul.mubr.bf16.vlgmr.msra.gmra.mrb[0].mxu0 %v18046_v13  ;;  %1558 = vmatmul.mubr.bf16.vlgmr.msra.gmra.mrb[0].mxu1 %v18046_v13 }
 0x183   : > { %2335 = vmatpush1.bf16.msra.mxu0 %v15721_v14  ;;  %2366 = vmatprep.mubr.bf16.mxu0 %v17947_v49  ;;  %v15808_v14 = vld [vmem:[%s17850_s1 + $0x1e0] ss:$16 sps:$4 sm:$0xff]  }
 0x184   : > { %2336 = vmatprep.subr.bf16.mxu0 %v15729_v16  ;;  %2417 = vmatpush1.bf16.msra.mxu1 %v15733_v20  ;;  %v15816_v16 = vld [vmem:[%s17850_s1 + $0x204] ss:$16 sps:$4 sm:$0xff]  }
 0x185   : > { %2418 = vmatprep.subr.bf16.mxu1 %v15741_v21  ;;  %2448 = vmatprep.mubr.bf16.mxu1 %v17947_v49  ;;  %v15822_v20 = vld [vmem:[%s17850_s1 + $0x224] ss:$16 sps:$4 sm:$0xff]   ;;  %v15831_v21 = vld [vmem:[%s17850_s1 + $0x20c] ss:$16 sps:$4 sm:$0xff]  }
 0x187   : > { %2337 = vmatpush1.bf16.msra.mxu0 %v15727_v18  ;;  %v15814_v18 = vld [vmem:[%s17850_s1 + $0x200] ss:$16 sps:$4 sm:$0xff]  }
 0x188   : > { %2338 = vmatprep.subr.bf16.mxu0 %v15732_v19  ;;  %2419 = vmatpush1.bf16.msra.mxu1 %v15739_v24  ;;  %v15823_v19 = vld [vmem:[%s17850_s1 + $0x1e8] ss:$16 sps:$4 sm:$0xff]   ;;  %v15828_v24 = vld [vmem:[%s17850_s1 + $0x244] ss:$16 sps:$4 sm:$0xff]  }
 0x189   : > { %2420 = vmatprep.subr.bf16.mxu1 %v15747_v25  ;;  %v15837_v25 = vld [vmem:[%s17850_s1 + $0x22c] ss:$16 sps:$4 sm:$0xff]  }
 0x18b   : > { %2339 = vmatpush1.bf16.msra.mxu0 %v15730_v22  ;;  %v15820_v22 = vld [vmem:[%s17850_s1 + $0x220] ss:$16 sps:$4 sm:$0xff]  }
 0x18c   : > { %2340 = vmatprep.subr.bf16.mxu0 %v15738_v23  ;;  %2421 = vmatpush1.bf16.msra.mxu1 %v15745_v28  ;;  %v15829_v23 = vld [vmem:[%s17850_s1 + $0x208] ss:$16 sps:$4 sm:$0xff]   ;;  %v15834_v28 = vld [vmem:[%s17850_s1 + $0x264] ss:$16 sps:$4 sm:$0xff]  }
 0x18d   : > { %2422 = vmatprep.subr.bf16.mxu1 %v15753_v29  ;;  %v15843_v29 = vld [vmem:[%s17850_s1 + $0x24c] ss:$16 sps:$4 sm:$0xff]  }
 0x18f   : > { %2341 = vmatpush1.bf16.msra.mxu0 %v15736_v26  ;;  %v15826_v26 = vld [vmem:[%s17850_s1 + $0x240] ss:$16 sps:$4 sm:$0xff]  }
 0x190   : > { %2342 = vmatprep.subr.bf16.mxu0 %v15744_v27  ;;  %2423 = vmatpush1.bf16.msra.mxu1 %v15751_v32  ;;  %v15835_v27 = vld [vmem:[%s17850_s1 + $0x228] ss:$16 sps:$4 sm:$0xff]   ;;  %v15840_v32 = vld [vmem:[%s17850_s1 + $0x284] ss:$16 sps:$4 sm:$0xff]  }
 0x191   : > { %2424 = vmatprep.subr.bf16.mxu1 %v15759_v34  ;;  %v15849_v34 = vld [vmem:[%s17850_s1 + $0x26c] ss:$16 sps:$4 sm:$0xff]  }
 0x193   : > { %2343 = vmatpush1.bf16.msra.mxu0 %v15742_v30  ;;  %v15832_v30 = vld [vmem:[%s17850_s1 + $0x260] ss:$16 sps:$4 sm:$0xff]  }
 0x194   : > { %2344 = vmatprep.subr.bf16.mxu0 %v15750_v31  ;;  %2425 = vmatpush1.bf16.msra.mxu1 %v15757_v37  ;;  %v15841_v31 = vld [vmem:[%s17850_s1 + $0x248] ss:$16 sps:$4 sm:$0xff]   ;;  %v15846_v37 = vld [vmem:[%s17850_s1 + $0x2a4] ss:$16 sps:$4 sm:$0xff]  }
 0x195   : > { %2426 = vmatprep.subr.bf16.mxu1 %v15765_v38  ;;  %v15855_v38 = vld [vmem:[%s17850_s1 + $0x28c] ss:$16 sps:$4 sm:$0xff]  }
 0x197   : > { %2345 = vmatpush1.bf16.msra.mxu0 %v15748_v35  ;;  %v15838_v35 = vld [vmem:[%s17850_s1 + $0x280] ss:$16 sps:$4 sm:$0xff]  }
 0x198   : > { %2346 = vmatprep.subr.bf16.mxu0 %v15756_v36  ;;  %2427 = vmatpush1.bf16.msra.mxu1 %v15763_v41  ;;  %v15847_v36 = vld [vmem:[%s17850_s1 + $0x268] ss:$16 sps:$4 sm:$0xff]   ;;  %v15852_v41 = vld [vmem:[%s17850_s1 + $0x2c4] ss:$16 sps:$4 sm:$0xff]  }
 0x199   : > { %2428 = vmatprep.subr.bf16.mxu1 %v15771_v42  ;;  %v15861_v42 = vld [vmem:[%s17850_s1 + $0x2ac] ss:$16 sps:$4 sm:$0xff]  }
 0x19b   : > { %2347 = vmatpush1.bf16.msra.mxu0 %v15754_v39  ;;  %v15844_v39 = vld [vmem:[%s17850_s1 + $0x2a0] ss:$16 sps:$4 sm:$0xff]  }
 0x19c   : > { %2348 = vmatprep.subr.bf16.mxu0 %v15762_v40  ;;  %2429 = vmatpush1.bf16.msra.mxu1 %v15769_v45  ;;  %v15853_v40 = vld [vmem:[%s17850_s1 + $0x288] ss:$16 sps:$4 sm:$0xff]   ;;  %v15858_v45 = vld [vmem:[%s17850_s1 + $0x2e4] ss:$16 sps:$4 sm:$0xff]  }
 0x19d   : > { %2430 = vmatprep.subr.bf16.mxu1 %v15777_v46  ;;  %v15867_v46 = vld [vmem:[%s17850_s1 + $0x2cc] ss:$16 sps:$4 sm:$0xff]  }
 0x19f   : > { %2349 = vmatpush1.bf16.msra.mxu0 %v15760_v43  ;;  %v15850_v43 = vld [vmem:[%s17850_s1 + $0x2c0] ss:$16 sps:$4 sm:$0xff]  }
 0x1a0   : > { %2350 = vmatprep.subr.bf16.mxu0 %v15768_v44  ;;  %2431 = vmatpush1.bf16.msra.mxu1 %v15775_v50  ;;  %v15859_v44 = vld [vmem:[%s17850_s1 + $0x2a8] ss:$16 sps:$4 sm:$0xff]   ;;  %v15864_v50 = vld [vmem:[%s17850_s1 + $0x304] ss:$16 sps:$4 sm:$0xff]  }
 0x1a1   : > { %2432 = vmatprep.subr.bf16.mxu1 %v15783_v51  ;;  %v15873_v51 = vld [vmem:[%s17850_s1 + $0x2ec] ss:$16 sps:$4 sm:$0xff]  }
 0x1a3   : > { %2351 = vmatpush1.bf16.msra.mxu0 %v15766_v47  ;;  %v15856_v47 = vld [vmem:[%s17850_s1 + $0x2e0] ss:$16 sps:$4 sm:$0xff]  }
 0x1a4   : > { %2352 = vmatprep.subr.bf16.mxu0 %v15774_v48  ;;  %2433 = vmatpush1.bf16.msra.mxu1 %v15781_v54  ;;  %v15865_v48 = vld [vmem:[%s17850_s1 + $0x2c8] ss:$16 sps:$4 sm:$0xff]   ;;  %v15870_v54 = vld [vmem:[%s17850_s1 + $0x324] ss:$16 sps:$4 sm:$0xff]  }
 0x1a5   : > { %2434 = vmatprep.subr.bf16.mxu1 %v15789_v55  ;;  %v15879_v55 = vld [vmem:[%s17850_s1 + $0x30c] ss:$16 sps:$4 sm:$0xff]  }
 0x1a7   : > { %2353 = vmatpush1.bf16.msra.mxu0 %v15772_v52  ;;  %v15862_v52 = vld [vmem:[%s17850_s1 + $0x300] ss:$16 sps:$4 sm:$0xff]  }
 0x1a8   : > { %2354 = vmatprep.subr.bf16.mxu0 %v15780_v53  ;;  %2435 = vmatpush1.bf16.msra.mxu1 %v15787_v58  ;;  %v15871_v53 = vld [vmem:[%s17850_s1 + $0x2e8] ss:$16 sps:$4 sm:$0xff]   ;;  %v15876_v58 = vld [vmem:[%s17850_s1 + $0x344] ss:$16 sps:$4 sm:$0xff]  }
 0x1a9   : > { %2436 = vmatprep.subr.bf16.mxu1 %v15795_v59  ;;  %v15885_v59 = vld [vmem:[%s17850_s1 + $0x32c] ss:$16 sps:$4 sm:$0xff]  }
 0x1ab   : > { %2355 = vmatpush1.bf16.msra.mxu0 %v15778_v56  ;;  %v15868_v56 = vld [vmem:[%s17850_s1 + $0x320] ss:$16 sps:$4 sm:$0xff]  }
 0x1ac   : > { %2356 = vmatprep.subr.bf16.mxu0 %v15786_v57  ;;  %2437 = vmatpush1.bf16.msra.mxu1 %v15793_v62  ;;  %v15877_v57 = vld [vmem:[%s17850_s1 + $0x308] ss:$16 sps:$4 sm:$0xff]   ;;  %v15882_v62 = vld [vmem:[%s17850_s1 + $0x364] ss:$16 sps:$4 sm:$0xff]  }
 0x1ad   : > { %2438 = vmatprep.subr.bf16.mxu1 %v15801_v63  ;;  %v15891_v63 = vld [vmem:[%s17850_s1 + $0x34c] ss:$16 sps:$4 sm:$0xff]  }
 0x1af   : > { %2357 = vmatpush1.bf16.msra.mxu0 %v15784_v60  ;;  %v15874_v60 = vld [vmem:[%s17850_s1 + $0x340] ss:$16 sps:$4 sm:$0xff]  }
 0x1b0   : > { %2358 = vmatprep.subr.bf16.mxu0 %v15792_v61  ;;  %2439 = vmatpush1.bf16.msra.mxu1 %v15799_v2  ;;  %v15883_v61 = vld [vmem:[%s17850_s1 + $0x328] ss:$16 sps:$4 sm:$0xff]   ;;  %v15888_v2 = vld [vmem:[%s17850_s1 + $0x384] ss:$16 sps:$4 sm:$0xff]  }
 0x1b1   : > { %2440 = vmatprep.subr.bf16.mxu1 %v15807_v3  ;;  %v15897_v3 = vld [vmem:[%s17850_s1 + $0x36c] ss:$16 sps:$4 sm:$0xff]  }
 0x1b3   : > { %2359 = vmatpush1.bf16.msra.mxu0 %v15790_v0  ;;  %v15880_v0 = vld [vmem:[%s17850_s1 + $0x360] ss:$16 sps:$4 sm:$0xff]  }
 0x1b4   : > { %2360 = vmatprep.subr.bf16.mxu0 %v15798_v1  ;;  %2441 = vmatpush1.bf16.msra.mxu1 %v15805_v5  ;;  %v15889_v1 = vld [vmem:[%s17850_s1 + $0x348] ss:$16 sps:$4 sm:$0xff]  }
 0x1b5   : > { %2442 = vmatprep.subr.bf16.mxu1 %v15813_v7  ;;  %v15895_v5 = vld [vmem:[%s17850_s1 + $0x368] ss:$16 sps:$4 sm:$0xff]   ;;  %v15903_v7 = vld [vmem:[%s17850_s1 + $0x38c] ss:$16 sps:$4 sm:$0xff]  }
 0x1b7   : > { %2361 = vmatpush1.bf16.msra.mxu0 %v15796_v4  ;;  %v15886_v4 = vld [vmem:[%s17850_s1 + $0x380] ss:$16 sps:$4 sm:$0xff]  }
 0x1b8   : > { %2362 = vmatprep.subr.bf16.mxu0 %v15804_v6  ;;  %2443 = vmatpush1.bf16.msra.mxu1 %v15811_v10  ;;  %v15894_v6 = vld [vmem:[%s17850_s1 + $0x3a4] ss:$16 sps:$4 sm:$0xff]   ;;  %v15901_v10 = vld [vmem:[%s17850_s1 + $0x388] ss:$16 sps:$4 sm:$0xff]  }
 0x1b9   : > { %2444 = vmatprep.subr.bf16.mxu1 %v15819_v12  ;;  %v15909_v12 = vld [vmem:[%s17850_s1 + $0x3ac] ss:$16 sps:$4 sm:$0xff]  }
 0x1bb   : > { %2363 = vmatpush1.bf16.msra.mxu0 %v15802_v9  ;;  %v15892_v9 = vld [vmem:[%s17850_s1 + $0x3a0] ss:$16 sps:$4 sm:$0xff]  }
 0x1bc   : > { %2364 = vmatprep.subr.bf16.mxu0 %v15810_v11  ;;  %2445 = vmatpush1.bf16.msra.mxu1 %v15817_v15  ;;  %v15900_v11 = vld [vmem:[%s17850_s1 + $0x3c4] ss:$16 sps:$4 sm:$0xff]  }
 0x1bd   : > { %2446 = vmatprep.subr.bf16.mxu1 %v15825_v17  ;;  %v15906_v15 = vld [vmem:[%s17850_s1 + $0x3e4] ss:$16 sps:$4 sm:$0xff]   ;;  %v15912_v17 = vld [vmem:[%s17850_s1 + $0x3cc] ss:$16 sps:$4 sm:$0xff]  }
 0x1bf   : > { %2365 = vmatpush1.bf16.msra.mxu0 %v15808_v14  ;;  %v15898_v14 = vld [vmem:[%s17850_s1 + $0x3c0] ss:$16 sps:$4 sm:$0xff]  }
 0x1c0   : > { %2375 = vmatprep.subr.bf16.mxu0 %v15816_v16  ;;  %2447 = vmatpush1.bf16.msra.mxu1 %v15823_v19  ;;  %v15907_v16 = vld [vmem:[%s17850_s1 + $0x3a8] ss:$16 sps:$4 sm:$0xff]  }
 0x1c1   : > { %2457 = vmatprep.subr.bf16.mxu1 %v15831_v21  ;;  %v15910_v19 = vld [vmem:[%s17850_s1 + $0x3c8] ss:$16 sps:$4 sm:$0xff]   ;;  %v15918_v21 = vld [vmem:[%s17856_s27 + $0x4] ss:$16 sps:$4 sm:$0xff]  }
 0x1c2   : > { %2367 = vmatmul.mubr.bf16.vlgmr.msra.gmra.mrb[4].mxu0 %v17973_v8 }
 0x1c3   : > { %2376 = vmatpush1.bf16.msra.mxu0 %v15814_v18  ;;  %2407 = vmatprep.mubr.bf16.mxu0 %v18001_v33  ;;  %v15904_v18 = vld [vmem:[%s17850_s1 + $0x3e0] ss:$16 sps:$4 sm:$0xff]  }
 0x1c4   : > { %2377 = vmatprep.subr.bf16.mxu0 %v15822_v20  ;;  %2449 = vmatmul.mubr.bf16.vlgmr.msra.gmra.mrb[4].mxu1 %v17973_v8  ;;  %v15915_v20 = vld [vmem:[%s17850_s1 + $0x3ec] ss:$16 sps:$4 sm:$0xff]  }
 0x1c5   : > { %2458 = vmatpush1.bf16.msra.mxu1 %v15829_v23  ;;  %2489 = vmatprep.mubr.bf16.mxu1 %v18001_v33  ;;  %v15916_v23 = vld [vmem:[%s17856_s27] ss:$16 sps:$4 sm:$0xff]  }
 0x1c6   : > { %2459 = vmatprep.subr.bf16.mxu1 %v15837_v25  ;;  %v15957_v25 = vld [vmem:[%s17856_s27 + $0xc] ss:$16 sps:$4 sm:$0xff]  }
 0x1c7   : > { %2378 = vmatpush1.bf16.msra.mxu0 %v15820_v22  ;;  %v15913_v22 = vld [vmem:[%s17850_s1 + $0x3e8] ss:$16 sps:$4 sm:$0xff]  }
 0x1c8   : > { %2379 = vmatprep.subr.bf16.mxu0 %v15828_v24  ;;  %v15921_v24 = vld [vmem:[%s17856_s27 + $0x24] ss:$16 sps:$4 sm:$0xff]  }
 0x1c9   : > { %2460 = vmatpush1.bf16.msra.mxu1 %v15835_v27  ;;  %v15924_v27 = vld [vmem:[%s17856_s27 + $0x44] ss:$16 sps:$4 sm:$0xff]  }
 0x1ca   : > { %2461 = vmatprep.subr.bf16.mxu1 %v15843_v29  ;;  %v15963_v29 = vld [vmem:[%s17856_s27 + $0x2c] ss:$16 sps:$4 sm:$0xff]  }
 0x1cb   : > { %2380 = vmatpush1.bf16.msra.mxu0 %v15826_v26  ;;  %v15919_v26 = vld [vmem:[%s17856_s27 + $0x20] ss:$16 sps:$4 sm:$0xff]  }
 0x1cc   : > { %2381 = vmatprep.subr.bf16.mxu0 %v15834_v28  ;;  %v15955_v28 = vld [vmem:[%s17856_s27 + $0x8] ss:$16 sps:$4 sm:$0xff]  }
 0x1cd   : > { %2462 = vmatpush1.bf16.msra.mxu1 %v15841_v31  ;;  %v15961_v31 = vld [vmem:[%s17856_s27 + $0x28] ss:$16 sps:$4 sm:$0xff]  }
 0x1ce   : > { %2463 = vmatprep.subr.bf16.mxu1 %v15849_v34  ;;  %v15969_v34 = vld [vmem:[%s17856_s27 + $0x4c] ss:$16 sps:$4 sm:$0xff]  }
 0x1cf   : > { %2382 = vmatpush1.bf16.msra.mxu0 %v15832_v30  ;;  %v15922_v30 = vld [vmem:[%s17856_s27 + $0x40] ss:$16 sps:$4 sm:$0xff]  }
 0x1d0   : > { %2383 = vmatprep.subr.bf16.mxu0 %v15840_v32  ;;  %v15927_v32 = vld [vmem:[%s17856_s27 + $0x64] ss:$16 sps:$4 sm:$0xff]  }
 0x1d1   : > { %2464 = vmatpush1.bf16.msra.mxu1 %v15847_v36  ;;  %v15967_v36 = vld [vmem:[%s17856_s27 + $0x48] ss:$16 sps:$4 sm:$0xff]  }
 0x1d2   : > { %2465 = vmatprep.subr.bf16.mxu1 %v15855_v38  ;;  %v15975_v38 = vld [vmem:[%s17856_s27 + $0x6c] ss:$16 sps:$4 sm:$0xff]  }
 0x1d3   : > { %2384 = vmatpush1.bf16.msra.mxu0 %v15838_v35  ;;  %v15925_v35 = vld [vmem:[%s17856_s27 + $0x60] ss:$16 sps:$4 sm:$0xff]  }
 0x1d4   : > { %2385 = vmatprep.subr.bf16.mxu0 %v15846_v37  ;;  %v15930_v37 = vld [vmem:[%s17856_s27 + $0x84] ss:$16 sps:$4 sm:$0xff]  }
 0x1d5   : > { %2466 = vmatpush1.bf16.msra.mxu1 %v15853_v40  ;;  %v15973_v40 = vld [vmem:[%s17856_s27 + $0x68] ss:$16 sps:$4 sm:$0xff]  }
 0x1d6   : > { %2467 = vmatprep.subr.bf16.mxu1 %v15861_v42  ;;  %v15981_v42 = vld [vmem:[%s17856_s27 + $0x8c] ss:$16 sps:$4 sm:$0xff]  }
 0x1d7   : > { %2386 = vmatpush1.bf16.msra.mxu0 %v15844_v39  ;;  %v15928_v39 = vld [vmem:[%s17856_s27 + $0x80] ss:$16 sps:$4 sm:$0xff]  }
 0x1d8   : > { %2387 = vmatprep.subr.bf16.mxu0 %v15852_v41  ;;  %v15933_v41 = vld [vmem:[%s17856_s27 + $0xa4] ss:$16 sps:$4 sm:$0xff]  }
 0x1d9   : > { %2468 = vmatpush1.bf16.msra.mxu1 %v15859_v44  ;;  %v15936_v44 = vld [vmem:[%s17856_s27 + $0xc4] ss:$16 sps:$4 sm:$0xff]  }
 0x1da   : > { %2469 = vmatprep.subr.bf16.mxu1 %v15867_v46  ;;  %v15934_v46 = vld [vmem:[%s17856_s27 + $0xc0] ss:$16 sps:$4 sm:$0xff]  }
 0x1db   : > { %2388 = vmatpush1.bf16.msra.mxu0 %v15850_v43  ;;  %v15979_v43 = vld [vmem:[%s17856_s27 + $0x88] ss:$16 sps:$4 sm:$0xff]  }
 0x1dc   : > { %2389 = vmatprep.subr.bf16.mxu0 %v15858_v45  ;;  %v15987_v45 = vld [vmem:[%s17856_s27 + $0xac] ss:$16 sps:$4 sm:$0xff]  }
 0x1dd   : > { %2470 = vmatpush1.bf16.msra.mxu1 %v15865_v48  ;;  %v15939_v48 = vld [vmem:[%s17856_s27 + $0xe4] ss:$16 sps:$4 sm:$0xff]  }
 0x1de   : > { %2471 = vmatprep.subr.bf16.mxu1 %v15873_v51  ;;  %v15937_v51 = vld [vmem:[%s17856_s27 + $0xe0] ss:$16 sps:$4 sm:$0xff]  }
 0x1df   : > { %2390 = vmatpush1.bf16.msra.mxu0 %v15856_v47  ;;  %v15985_v47 = vld [vmem:[%s17856_s27 + $0xa8] ss:$16 sps:$4 sm:$0xff]  }
 0x1e0   : > { %2391 = vmatprep.subr.bf16.mxu0 %v15864_v50  ;;  %v15993_v50 = vld [vmem:[%s17856_s27 + $0xcc] ss:$16 sps:$4 sm:$0xff]  }
 0x1e1   : > { %2472 = vmatpush1.bf16.msra.mxu1 %v15871_v53  ;;  %v15942_v53 = vld [vmem:[%s17856_s27 + $0x104] ss:$16 sps:$4 sm:$0xff]  }
 0x1e2   : > { %2473 = vmatprep.subr.bf16.mxu1 %v15879_v55  ;;  %v15940_v55 = vld [vmem:[%s17856_s27 + $0x100] ss:$16 sps:$4 sm:$0xff]  }
 0x1e3   : > { %2392 = vmatpush1.bf16.msra.mxu0 %v15862_v52  ;;  %v15991_v52 = vld [vmem:[%s17856_s27 + $0xc8] ss:$16 sps:$4 sm:$0xff]  }
 0x1e4   : > { %2393 = vmatprep.subr.bf16.mxu0 %v15870_v54  ;;  %v15999_v54 = vld [vmem:[%s17856_s27 + $0xec] ss:$16 sps:$4 sm:$0xff]  }
 0x1e5   : > { %2474 = vmatpush1.bf16.msra.mxu1 %v15877_v57  ;;  %v15945_v57 = vld [vmem:[%s17856_s27 + $0x124] ss:$16 sps:$4 sm:$0xff]  }
 0x1e6   : > { %2475 = vmatprep.subr.bf16.mxu1 %v15885_v59  ;;  %v15943_v59 = vld [vmem:[%s17856_s27 + $0x120] ss:$16 sps:$4 sm:$0xff]  }
 0x1e7   : > { %2394 = vmatpush1.bf16.msra.mxu0 %v15868_v56  ;;  %v15997_v56 = vld [vmem:[%s17856_s27 + $0xe8] ss:$16 sps:$4 sm:$0xff]  }
 0x1e8   : > { %2395 = vmatprep.subr.bf16.mxu0 %v15876_v58  ;;  %v16005_v58 = vld [vmem:[%s17856_s27 + $0x10c] ss:$16 sps:$4 sm:$0xff]  }
 0x1e9   : > { %2476 = vmatpush1.bf16.msra.mxu1 %v15883_v61  ;;  %v15948_v61 = vld [vmem:[%s17856_s27 + $0x144] ss:$16 sps:$4 sm:$0xff]  }
 0x1ea   : > { %2477 = vmatprep.subr.bf16.mxu1 %v15891_v63  ;;  %v15946_v63 = vld [vmem:[%s17856_s27 + $0x140] ss:$16 sps:$4 sm:$0xff]  }
 0x1eb   : > { %2396 = vmatpush1.bf16.msra.mxu0 %v15874_v60  ;;  %v16003_v60 = vld [vmem:[%s17856_s27 + $0x108] ss:$16 sps:$4 sm:$0xff]  }
 0x1ec   : > { %2397 = vmatprep.subr.bf16.mxu0 %v15882_v62  ;;  %v16011_v62 = vld [vmem:[%s17856_s27 + $0x12c] ss:$16 sps:$4 sm:$0xff]  }
 0x1ed   : > { %2478 = vmatpush1.bf16.msra.mxu1 %v15889_v1  ;;  %v15951_v1 = vld [vmem:[%s17856_s27 + $0x164] ss:$16 sps:$4 sm:$0xff]  }
 0x1ee   : > { %2479 = vmatprep.subr.bf16.mxu1 %v15897_v3  ;;  %v15949_v3 = vld [vmem:[%s17856_s27 + $0x160] ss:$16 sps:$4 sm:$0xff]  }
 0x1ef   : > { %2398 = vmatpush1.bf16.msra.mxu0 %v15880_v0  ;;  %v16009_v0 = vld [vmem:[%s17856_s27 + $0x128] ss:$16 sps:$4 sm:$0xff]  }
 0x1f0   : > { %2399 = vmatprep.subr.bf16.mxu0 %v15888_v2  ;;  %v16017_v2 = vld [vmem:[%s17856_s27 + $0x14c] ss:$16 sps:$4 sm:$0xff]  }
 0x1f1   : > { %2480 = vmatpush1.bf16.msra.mxu1 %v15895_v5  ;;  %v15954_v5 = vld [vmem:[%s17856_s27 + $0x184] ss:$16 sps:$4 sm:$0xff]  }
 0x1f2   : > { %2481 = vmatprep.subr.bf16.mxu1 %v15903_v7  ;;  %v15952_v7 = vld [vmem:[%s17856_s27 + $0x180] ss:$16 sps:$4 sm:$0xff]  }
 0x1f3   : > { %2400 = vmatpush1.bf16.msra.mxu0 %v15886_v4  ;;  %v16015_v4 = vld [vmem:[%s17856_s27 + $0x148] ss:$16 sps:$4 sm:$0xff]  }
 0x1f4   : > { %2401 = vmatprep.subr.bf16.mxu0 %v15894_v6  ;;  %v16023_v6 = vld [vmem:[%s17856_s27 + $0x16c] ss:$16 sps:$4 sm:$0xff]  }
 0x1f5   : > { %2482 = vmatpush1.bf16.msra.mxu1 %v15901_v10  ;;  %v15960_v10 = vld [vmem:[%s17856_s27 + $0x1a4] ss:$16 sps:$4 sm:$0xff]  }
 0x1f6   : > { %2483 = vmatprep.subr.bf16.mxu1 %v15909_v12  ;;  %v15958_v12 = vld [vmem:[%s17856_s27 + $0x1a0] ss:$16 sps:$4 sm:$0xff]  }
 0x1f7   : > { %2402 = vmatpush1.bf16.msra.mxu0 %v15892_v9  ;;  %v16021_v9 = vld [vmem:[%s17856_s27 + $0x168] ss:$16 sps:$4 sm:$0xff]  }
 0x1f8   : > { %2403 = vmatprep.subr.bf16.mxu0 %v15900_v11  ;;  %v16029_v11 = vld [vmem:[%s17856_s27 + $0x18c] ss:$16 sps:$4 sm:$0xff]  }
 0x1f9   : > { %2484 = vmatpush1.bf16.msra.mxu1 %v15907_v16  ;;  %v16035_v16 = vld [vmem:[%s17856_s27 + $0x1ac] ss:$16 sps:$4 sm:$0xff]  }
 0x1fa   : > { %2485 = vmatprep.subr.bf16.mxu1 %v15912_v17  ;;  %v15964_v17 = vld [vmem:[%s17856_s27 + $0x1c0] ss:$16 sps:$4 sm:$0xff]  }
 0x1fb   : > { %2404 = vmatpush1.bf16.msra.mxu0 %v15898_v14  ;;  %v16027_v14 = vld [vmem:[%s17856_s27 + $0x188] ss:$16 sps:$4 sm:$0xff]  }
 0x1fc   : > { %2405 = vmatprep.subr.bf16.mxu0 %v15906_v15  ;;  %v15966_v15 = vld [vmem:[%s17856_s27 + $0x1c4] ss:$16 sps:$4 sm:$0xff]  }
 0x1fd   : > { %2486 = vmatpush1.bf16.msra.mxu1 %v15910_v19  ;;  %v15972_v19 = vld [vmem:[%s17856_s27 + $0x1e4] ss:$16 sps:$4 sm:$0xff]  }
 0x1fe   : > { %2487 = vmatprep.subr.bf16.mxu1 %v15915_v20  ;;  %v16041_v20 = vld [vmem:[%s17856_s27 + $0x1cc] ss:$16 sps:$4 sm:$0xff]  }
 0x1ff   : > { %2406 = vmatpush1.bf16.msra.mxu0 %v15904_v18  ;;  %v16033_v18 = vld [vmem:[%s17856_s27 + $0x1a8] ss:$16 sps:$4 sm:$0xff]  }
 0x200   : > { %3266 = vmatprep.subr.bf16.mxu0 %v15918_v21  ;;  %v15970_v21 = vld [vmem:[%s17856_s27 + $0x1e0] ss:$16 sps:$4 sm:$0xff]  }
 0x201   : > { %2488 = vmatpush1.bf16.msra.mxu1 %v15913_v22  ;;  %v16039_v22 = vld [vmem:[%s17856_s27 + $0x1c8] ss:$16 sps:$4 sm:$0xff]  }
 0x202   : > { %2408 = vmatmul.mubr.bf16.vlgmr.msra.gmra.mrb[4].mxu0 %v18046_v13  ;;  %3348 = vmatprep.subr.bf16.mxu1 %v15957_v25  ;;  %v15976_v25 = vld [vmem:[%s17856_s27 + $0x200] ss:$16 sps:$4 sm:$0xff]  }
 0x203   : > { %3267 = vmatpush1.bf16.msra.mxu0 %v15916_v23  ;;  %3298 = vmatprep.mubr.bf16.mxu0 %v17947_v49  ;;  %v15978_v23 = vld [vmem:[%s17856_s27 + $0x204] ss:$16 sps:$4 sm:$0xff]  }
 0x204   : > { %3268 = vmatprep.subr.bf16.mxu0 %v15921_v24  ;;  %2490 = vmatmul.mubr.bf16.vlgmr.msra.gmra.mrb[4].mxu1 %v18046_v13  ;;  %v16047_v24 = vld [vmem:[%s17856_s27 + $0x1ec] ss:$16 sps:$4 sm:$0xff]  }
 0x205   : > { %3349 = vmatpush1.bf16.msra.mxu1 %v15955_v28  ;;  %3380 = vmatprep.mubr.bf16.mxu1 %v17947_v49  ;;  %v15931_v49 = vld [vmem:[%s17856_s27 + $0xa0] ss:$16 sps:$4 sm:$0xff]   ;;  %v16053_v28 = vld [vmem:[%s17856_s27 + $0x20c] ss:$16 sps:$4 sm:$0xff]  }
 0x206   : > { %3350 = vmatprep.subr.bf16.mxu1 %v15963_v29  ;;  %v15982_v29 = vld [vmem:[%s17856_s27 + $0x220] ss:$16 sps:$4 sm:$0xff]  }
 0x207   : > { %3269 = vmatpush1.bf16.msra.mxu0 %v15919_v26  ;;  %v16045_v26 = vld [vmem:[%s17856_s27 + $0x1e8] ss:$16 sps:$4 sm:$0xff]  }
 0x208   : > { %3270 = vmatprep.subr.bf16.mxu0 %v15924_v27  ;;  %v15984_v27 = vld [vmem:[%s17856_s27 + $0x224] ss:$16 sps:$4 sm:$0xff]  }
 0x209   : > { %3351 = vmatpush1.bf16.msra.mxu1 %v15961_v31  ;;  %v15990_v31 = vld [vmem:[%s17856_s27 + $0x244] ss:$16 sps:$4 sm:$0xff]  }
 0x20a   : > { %3352 = vmatprep.subr.bf16.mxu1 %v15969_v34  ;;  %v15988_v34 = vld [vmem:[%s17856_s27 + $0x240] ss:$16 sps:$4 sm:$0xff]  }
 0x20b   : > { %3271 = vmatpush1.bf16.msra.mxu0 %v15922_v30  ;;  %v16051_v30 = vld [vmem:[%s17856_s27 + $0x208] ss:$16 sps:$4 sm:$0xff]  }
 0x20c   : > { %3272 = vmatprep.subr.bf16.mxu0 %v15927_v32  ;;  %v16059_v32 = vld [vmem:[%s17856_s27 + $0x22c] ss:$16 sps:$4 sm:$0xff]  }
 0x20d   : > { %3353 = vmatpush1.bf16.msra.mxu1 %v15967_v36  ;;  %v15996_v36 = vld [vmem:[%s17856_s27 + $0x264] ss:$16 sps:$4 sm:$0xff]  }
 0x20e   : > { %3354 = vmatprep.subr.bf16.mxu1 %v15975_v38  ;;  %v15994_v38 = vld [vmem:[%s17856_s27 + $0x260] ss:$16 sps:$4 sm:$0xff]  }
 0x20f   : > { %3273 = vmatpush1.bf16.msra.mxu0 %v15925_v35  ;;  %v16057_v35 = vld [vmem:[%s17856_s27 + $0x228] ss:$16 sps:$4 sm:$0xff]  }
 0x210   : > { %3274 = vmatprep.subr.bf16.mxu0 %v15930_v37  ;;  %v16065_v37 = vld [vmem:[%s17856_s27 + $0x24c] ss:$16 sps:$4 sm:$0xff]  }
 0x211   : > { %3355 = vmatpush1.bf16.msra.mxu1 %v15973_v40  ;;  %v16002_v40 = vld [vmem:[%s17856_s27 + $0x284] ss:$16 sps:$4 sm:$0xff]  }
 0x212   : > { %3356 = vmatprep.subr.bf16.mxu1 %v15981_v42  ;;  %v16069_v42 = vld [vmem:[%s17856_s27 + $0x268] ss:$16 sps:$4 sm:$0xff]  }
 0x213   : > { %3275 = vmatpush1.bf16.msra.mxu0 %v15928_v39  ;;  %v16063_v39 = vld [vmem:[%s17856_s27 + $0x248] ss:$16 sps:$4 sm:$0xff]  }
 0x214   : > { %3276 = vmatprep.subr.bf16.mxu0 %v15933_v41  ;;  %v16071_v41 = vld [vmem:[%s17856_s27 + $0x26c] ss:$16 sps:$4 sm:$0xff]  }
 0x215   : > { %3357 = vmatpush1.bf16.msra.mxu1 %v15979_v43  ;;  %v16074_v43 = vld [vmem:[%s17856_s27 + $0x28c] ss:$16 sps:$4 sm:$0xff]  }
 0x216   : > { %3358 = vmatprep.subr.bf16.mxu1 %v15987_v45  ;;  %v16014_v45 = vld [vmem:[%s17856_s27 + $0x2c4] ss:$16 sps:$4 sm:$0xff]  }
 0x217   : > { %3277 = vmatpush1.bf16.msra.mxu0 %v15931_v49  ;;  %v16008_v49 = vld [vmem:[%s17856_s27 + $0x2a4] ss:$16 sps:$4 sm:$0xff]  }
 0x218   : > { %3278 = vmatprep.subr.bf16.mxu0 %v15936_v44  ;;  %v16072_v44 = vld [vmem:[%s17856_s27 + $0x288] ss:$16 sps:$4 sm:$0xff]  }
 0x219   : > { %3359 = vmatpush1.bf16.msra.mxu1 %v15985_v47 }
 0x21a   : > { %3360 = vmatprep.subr.bf16.mxu1 %v15993_v50  ;;  %v16075_v50 = vld [vmem:[%s17856_s27 + $0x2a8] ss:$16 sps:$4 sm:$0xff]  }
 0x21b   : > { %3279 = vmatpush1.bf16.msra.mxu0 %v15934_v46  ;;  %v16077_v46 = vld [vmem:[%s17856_s27 + $0x2ac] ss:$16 sps:$4 sm:$0xff]  }
 0x21c   : > { %3280 = vmatprep.subr.bf16.mxu0 %v15939_v48  ;;  %v16012_v48 = vld [vmem:[%s17856_s27 + $0x2c0] ss:$16 sps:$4 sm:$0xff]  }
 0x21d   : > { %3361 = vmatpush1.bf16.msra.mxu1 %v15991_v52 }
 0x21e   : > { %3362 = vmatprep.subr.bf16.mxu1 %v15999_v54  ;;  %v16020_v54 = vld [vmem:[%s17856_s27 + $0x2e4] ss:$16 sps:$4 sm:$0xff]  }
 0x21f   : > { %3281 = vmatpush1.bf16.msra.mxu0 %v15937_v51 }
 0x220   : > { %3282 = vmatprep.subr.bf16.mxu0 %v15942_v53 }
 0x221   : > { %3363 = vmatpush1.bf16.msra.mxu1 %v15997_v56 }
 0x222   : > { %3364 = vmatprep.subr.bf16.mxu1 %v16005_v58 }
 0x223   : > { %3283 = vmatpush1.bf16.msra.mxu0 %v15940_v55  ;;  %v16080_v55 = vld [vmem:[%s17856_s27 + $0x2cc] ss:$16 sps:$4 sm:$0xff]  }
 0x224   : > { %3284 = vmatprep.subr.bf16.mxu0 %v15945_v57  ;;  %v16018_v57 = vld [vmem:[%s17856_s27 + $0x2e0] ss:$16 sps:$4 sm:$0xff]  }
 0x225   : > { %3365 = vmatpush1.bf16.msra.mxu1 %v16003_v60 }
 0x226   : > { %3366 = vmatprep.subr.bf16.mxu1 %v16011_v62  ;;  %v16083_v62 = vld [vmem:[%s17856_s27 + $0x2ec] ss:$16 sps:$4 sm:$0xff]  }
 0x227   : > { %3285 = vmatpush1.bf16.msra.mxu0 %v15943_v59  ;;  %v16026_v59 = vld [vmem:[%s17856_s27 + $0x304] ss:$16 sps:$4 sm:$0xff]  }
 0x228   : > { %3286 = vmatprep.subr.bf16.mxu0 %v15948_v61  ;;  %v16078_v61 = vld [vmem:[%s17856_s27 + $0x2c8] ss:$16 sps:$4 sm:$0xff]  }
 0x229   : > { %3367 = vmatpush1.bf16.msra.mxu1 %v16009_v0  ;;  %v16024_v0 = vld [vmem:[%s17856_s27 + $0x300] ss:$16 sps:$4 sm:$0xff]  }
 0x22a   : > { %3368 = vmatprep.subr.bf16.mxu1 %v16017_v2  ;;  %v16081_v2 = vld [vmem:[%s17856_s27 + $0x2e8] ss:$16 sps:$4 sm:$0xff]  }
 0x22b   : > { %3287 = vmatpush1.bf16.msra.mxu0 %v15946_v63 }
 0x22c   : > { %3288 = vmatprep.subr.bf16.mxu0 %v15951_v1  ;;  %v16032_v1 = vld [vmem:[%s17856_s27 + $0x324] ss:$16 sps:$4 sm:$0xff]  }
 0x22d   : > { %3369 = vmatpush1.bf16.msra.mxu1 %v16015_v4  ;;  %v16030_v4 = vld [vmem:[%s17856_s27 + $0x320] ss:$16 sps:$4 sm:$0xff]  }
 0x22e   : > { %3370 = vmatprep.subr.bf16.mxu1 %v16023_v6  ;;  %v16084_v6 = vld [vmem:[%s17856_s27 + $0x308] ss:$16 sps:$4 sm:$0xff]  }
 0x22f   : > { %3289 = vmatpush1.bf16.msra.mxu0 %v15949_v3  ;;  %v16086_v3 = vld [vmem:[%s17856_s27 + $0x30c] ss:$16 sps:$4 sm:$0xff]  }
 0x230   : > { %3290 = vmatprep.subr.bf16.mxu0 %v15954_v5  ;;  %v16038_v5 = vld [vmem:[%s17856_s27 + $0x344] ss:$16 sps:$4 sm:$0xff]  }
 0x231   : > { %3371 = vmatpush1.bf16.msra.mxu1 %v16021_v9  ;;  %v16036_v9 = vld [vmem:[%s17856_s27 + $0x340] ss:$16 sps:$4 sm:$0xff]  }
 0x232   : > { %3372 = vmatprep.subr.bf16.mxu1 %v16029_v11  ;;  %v16044_v11 = vld [vmem:[%s17856_s27 + $0x364] ss:$16 sps:$4 sm:$0xff]  }
 0x233   : > { %3291 = vmatpush1.bf16.msra.mxu0 %v15952_v7  ;;  %v16089_v7 = vld [vmem:[%s17856_s27 + $0x32c] ss:$16 sps:$4 sm:$0xff]  }
 0x234   : > { %3292 = vmatprep.subr.bf16.mxu0 %v15960_v10  ;;  %v16087_v10 = vld [vmem:[%s17856_s27 + $0x328] ss:$16 sps:$4 sm:$0xff]  }
 0x235   : > { %3373 = vmatpush1.bf16.msra.mxu1 %v16027_v14  ;;  %v16042_v14 = vld [vmem:[%s17856_s27 + $0x360] ss:$16 sps:$4 sm:$0xff]  }
 0x236   : > { %3374 = vmatprep.subr.bf16.mxu1 %v16035_v16  ;;  %v16050_v16 = vld [vmem:[%s17856_s27 + $0x384] ss:$16 sps:$4 sm:$0xff]  }
 0x237   : > { %3293 = vmatpush1.bf16.msra.mxu0 %v15958_v12  ;;  %v16092_v12 = vld [vmem:[%s17856_s27 + $0x34c] ss:$16 sps:$4 sm:$0xff]  }
 0x238   : > { %3294 = vmatprep.subr.bf16.mxu0 %v15966_v15  ;;  %v16090_v15 = vld [vmem:[%s17856_s27 + $0x348] ss:$16 sps:$4 sm:$0xff]  }
 0x239   : > { %3375 = vmatpush1.bf16.msra.mxu1 %v16033_v18  ;;  %v16048_v18 = vld [vmem:[%s17856_s27 + $0x380] ss:$16 sps:$4 sm:$0xff]  }
 0x23a   : > { %3376 = vmatprep.subr.bf16.mxu1 %v16041_v20  ;;  %v16056_v20 = vld [vmem:[%s17856_s27 + $0x3a4] ss:$16 sps:$4 sm:$0xff]  }
 0x23b   : > { %3295 = vmatpush1.bf16.msra.mxu0 %v15964_v17  ;;  %v16095_v17 = vld [vmem:[%s17856_s27 + $0x36c] ss:$16 sps:$4 sm:$0xff]  }
 0x23c   : > { %3296 = vmatprep.subr.bf16.mxu0 %v15972_v19  ;;  %v16093_v19 = vld [vmem:[%s17856_s27 + $0x368] ss:$16 sps:$4 sm:$0xff]  }
 0x23d   : > { %3377 = vmatpush1.bf16.msra.mxu1 %v16039_v22  ;;  %v16054_v22 = vld [vmem:[%s17856_s27 + $0x3a0] ss:$16 sps:$4 sm:$0xff]  }
 0x23e   : > { %3378 = vmatprep.subr.bf16.mxu1 %v16047_v24  ;;  %v16062_v24 = vld [vmem:[%s17856_s27 + $0x3c4] ss:$16 sps:$4 sm:$0xff]  }
 0x23f   : > { %3297 = vmatpush1.bf16.msra.mxu0 %v15970_v21  ;;  %v16098_v21 = vld [vmem:[%s17856_s27 + $0x38c] ss:$16 sps:$4 sm:$0xff]  }
 0x240   : > { %3307 = vmatprep.subr.bf16.mxu0 %v15978_v23  ;;  %v16096_v23 = vld [vmem:[%s17856_s27 + $0x388] ss:$16 sps:$4 sm:$0xff]  }
 0x241   : > { %3379 = vmatpush1.bf16.msra.mxu1 %v16045_v26  ;;  %v16060_v26 = vld [vmem:[%s17856_s27 + $0x3c0] ss:$16 sps:$4 sm:$0xff]  }
 0x242   : > { %3299 = vmatmul.mubr.bf16.vlgmr.msra.gmra.mrb[8].mxu0 %v17973_v8  ;;  %3389 = vmatprep.subr.bf16.mxu1 %v16053_v28  ;;  %v16068_v28 = vld [vmem:[%s17856_s27 + $0x3e4] ss:$16 sps:$4 sm:$0xff]  }
 0x243   : > { %3308 = vmatpush1.bf16.msra.mxu0 %v15976_v25  ;;  %3339 = vmatprep.mubr.bf16.mxu0 %v18001_v33  ;;  %v16101_v25 = vld [vmem:[%s17856_s27 + $0x3ac] ss:$16 sps:$4 sm:$0xff]  }
 0x244   : > { %3309 = vmatprep.subr.bf16.mxu0 %v15984_v27  ;;  %3381 = vmatmul.mubr.bf16.vlgmr.msra.gmra.mrb[8].mxu1 %v17973_v8  ;;  %v16000_v8 = vld [vmem:[%s17856_s27 + $0x280] ss:$16 sps:$4 sm:$0xff]   ;;  %v16099_v27 = vld [vmem:[%s17856_s27 + $0x3a8] ss:$16 sps:$4 sm:$0xff]  }
 0x245   : > { %3390 = vmatpush1.bf16.msra.mxu1 %v16051_v30  ;;  %3421 = vmatprep.mubr.bf16.mxu1 %v18001_v33  ;;  %v16006_v33 = vld [vmem:[%s17856_s27 + $0x2a0] ss:$16 sps:$4 sm:$0xff]  }
 0x246   : > { %3391 = vmatprep.subr.bf16.mxu1 %v16059_v32  ;;  %v16066_v30 = vld [vmem:[%s17856_s27 + $0x3e0] ss:$16 sps:$4 sm:$0xff]   ;;  %v16107_v32 = vld [vmem:[%s17856_s27 + $0x3ec] ss:$16 sps:$4 sm:$0xff]  }
 0x247   : > { %3310 = vmatpush1.bf16.msra.mxu0 %v15982_v29  ;;  %v16104_v29 = vld [vmem:[%s17856_s27 + $0x3cc] ss:$16 sps:$4 sm:$0xff]  }
 0x248   : > { %3311 = vmatprep.subr.bf16.mxu0 %v15990_v31  ;;  %v16102_v31 = vld [vmem:[%s17856_s27 + $0x3c8] ss:$16 sps:$4 sm:$0xff]  }
 0x249   : > { %3392 = vmatpush1.bf16.msra.mxu1 %v16057_v35  ;;  %v17434_v35 = vmov 0.0  }
 0x24a   : > { %3393 = vmatprep.subr.bf16.mxu1 %v16065_v37 }
 0x24b   : > { %3312 = vmatpush1.bf16.msra.mxu0 %v15988_v34  ;;  %v16105_v34 = vld [vmem:[%s17856_s27 + $0x3e8] ss:$16 sps:$4 sm:$0xff]  }
 0x24c   : > { %3313 = vmatprep.subr.bf16.mxu0 %v15996_v36 }
 0x24d   : > { %3394 = vmatpush1.bf16.msra.mxu1 %v16063_v39 }
 0x24e   : > { %3395 = vmatprep.subr.bf16.mxu1 %v16071_v41 }
 0x24f   : > { %3314 = vmatpush1.bf16.msra.mxu0 %v15994_v38 }
 0x250   : > { %3315 = vmatprep.subr.bf16.mxu0 %v16002_v40 }
 0x251   : > { %3396 = vmatpush1.bf16.msra.mxu1 %v16069_v42 }
 0x252   : > { %3397 = vmatprep.subr.bf16.mxu1 %v16074_v43 }
 0x253   : > { %3316 = vmatpush1.bf16.msra.mxu0 %v16000_v8 }
 0x254   : > { %3317 = vmatprep.subr.bf16.mxu0 %v16008_v49 }
 0x255   : > { %v18280_v47 = vpop.f32.mrb[0].mxu0  ;;  %3398 = vmatpush1.bf16.msra.mxu1 %v16072_v44  ;;  %v18288_v56 = vpop.f32.mrb[0].mxu1 }
 0x256   : > { %v18284_v51 = vpop.f32.mrb[1].mxu0  ;;  %3399 = vmatprep.subr.bf16.mxu1 %v16077_v46  ;;  %v18291_v58 = vpop.f32.mrb[1].mxu1  ;;  %v3430_v38 = vmul.f32 0.125, %v18280_v47  ;;  %v3432_v43 = vmul.f32 0.125, %v18288_v56 }
 0x257   : > { %v1481_v52 = vpop.f32.mrb[2].mxu0  ;;  %3318 = vmatpush1.bf16.msra.mxu0 %v16006_v33  ;;  %v1563_v60 = vpop.f32.mrb[2].mxu1  ;;  %v3433_v33 = vmul.f32 0.125, %v18291_v58 }
 0x258   : > { %v1482_v53 = vpop.f32.mrb[3].mxu0  ;;  %3319 = vmatprep.subr.bf16.mxu0 %v16014_v45  ;;  %v1564_v63 = vpop.f32.mrb[3].mxu1 }
 0x259   : > { %3400 = vmatpush1.bf16.msra.mxu1 %v16075_v50 }
 0x25a   : > { %3401 = vmatprep.subr.bf16.mxu1 %v16080_v55 }
 0x25b   : > { %3320 = vmatpush1.bf16.msra.mxu0 %v16012_v48 }
 0x25c   : > { %3321 = vmatprep.subr.bf16.mxu0 %v16020_v54 }
 0x25d   : > { %3402 = vmatpush1.bf16.msra.mxu1 %v16078_v61 }
 0x25e   : > { %3403 = vmatprep.subr.bf16.mxu1 %v16083_v62 }
 0x25f   : > { %3322 = vmatpush1.bf16.msra.mxu0 %v16018_v57 }
 0x260   : > { %3323 = vmatprep.subr.bf16.mxu0 %v16026_v59 }
 0x261   : > { %3404 = vmatpush1.bf16.msra.mxu1 %v16081_v2 }
 0x262   : > { %3405 = vmatprep.subr.bf16.mxu1 %v16086_v3 }
 0x263   : > { %3324 = vmatpush1.bf16.msra.mxu0 %v16024_v0 }
 0x264   : > { %3325 = vmatprep.subr.bf16.mxu0 %v16032_v1 }
 0x265   : > { %3406 = vmatpush1.bf16.msra.mxu1 %v16084_v6 }
 0x266   : > { %3407 = vmatprep.subr.bf16.mxu1 %v16089_v7 }
 0x267   : > { %3326 = vmatpush1.bf16.msra.mxu0 %v16030_v4 }
 0x268   : > { %3327 = vmatprep.subr.bf16.mxu0 %v16038_v5  ;;  %v13967_v5 = vld [vmem:[%s604_s25] ss:$0 sm:$0xff]  ;;  %s17292_s25 = sshll.u32 %s17437_s16, 4  ;;  %s17293_s25 = int_to_ptr.vmem [resolvable:$false] %s17292_s25 }
 0x269   : > { %3408 = vmatpush1.bf16.msra.mxu1 %v16087_v10  ;;  %s17294_s8 = scalar_lea.vmem %s17293_s25, 1024  ;;  %p17295_p2 = scmp.lt.s32.totalorder %s19822_s12, %s17293_s25 }
 0x26a   : > { %3409 = vmatprep.subr.bf16.mxu1 %v16092_v12  ;;  %p17296_p0 = scmp.lt.s32.totalorder %s17294_s8, %s17288_s21 }
 0x26b   : > { %3328 = vmatpush1.bf16.msra.mxu0 %v16036_v9 }
 0x26c   : > { %3329 = vmatprep.subr.bf16.mxu0 %v16044_v11  ;;  %p17297_p13 = por %p17296_p0, %p17295_p2 }
 0x26d   : > { %3410 = vmatpush1.bf16.msra.mxu1 %v16090_v15 }
 0x26e   : > { %3411 = vmatprep.subr.bf16.mxu1 %v16095_v17 }
 0x26f   : > { %3330 = vmatpush1.bf16.msra.mxu0 %v16042_v14 }
 0x270   : > { %3331 = vmatprep.subr.bf16.mxu0 %v16050_v16 }
 0x271   : > { %3412 = vmatpush1.bf16.msra.mxu1 %v16093_v19 }
 0x272   : > { %3413 = vmatprep.subr.bf16.mxu1 %v16098_v21 }
 0x273   : > { %3332 = vmatpush1.bf16.msra.mxu0 %v16048_v18 }
 0x274   : > { %3333 = vmatprep.subr.bf16.mxu0 %v16056_v20 }
 0x275   : > { %3414 = vmatpush1.bf16.msra.mxu1 %v16096_v23 }
 0x276   : > { %3415 = vmatprep.subr.bf16.mxu1 %v16101_v25 }
 0x277   : > { %3334 = vmatpush1.bf16.msra.mxu0 %v16054_v22 }
 0x278   : > { %3335 = vmatprep.subr.bf16.mxu0 %v16062_v24 }
 0x279   : > { %3416 = vmatpush1.bf16.msra.mxu1 %v16099_v27 }
 0x27a   : > { %3417 = vmatprep.subr.bf16.mxu1 %v16104_v29 }
 0x27b   : > { %3336 = vmatpush1.bf16.msra.mxu0 %v16060_v26 }
 0x27c   : > { %3337 = vmatprep.subr.bf16.mxu0 %v16068_v28 }
 0x27d   : > { %3418 = vmatpush1.bf16.msra.mxu1 %v16102_v31 }
 0x27e   : > { %3419 = vmatprep.subr.bf16.mxu1 %v16107_v32 }
 0x27f   : > { %3338 = vmatpush1.bf16.msra.mxu0 %v16066_v30 }
 0x280   : > { %15189 = vmatprep.subr.mxu0 %v17434_v35 }
 0x281   : > { %3420 = vmatpush1.bf16.msra.mxu1 %v16105_v34 }
 0x282   : > { %3340 = vmatmul.mubr.bf16.vlgmr.msra.gmra.mrb[8].mxu0 %v18046_v13  ;;  %15194 = vmatprep.subr.mxu1 %v17434_v35 }
 0x283   : > { %15191 = vmatprep.mubr.msk.f32.mxu0 %vm17435_vm0, %v17434_v35 }
 0x284   : > { %3422 = vmatmul.mubr.bf16.vlgmr.msra.gmra.mrb[8].mxu1 %v18046_v13  ;;  %v3431_v13 = vmul.f32 0.125, %v18284_v51 }
 0x285   : > { %15196 = vmatprep.mubr.msk.f32.mxu1 %vm17435_vm0, %v17434_v35 }
 0x2d5   : > { %v2409_v36 = vpop.f32.mrb[4].mxu0 }
 0x2d6   : > { %3447 = vrot.lane.b32.xlu0 %v2409_v36, %s17436_s2  ;;  %v2411_v37 = vpop.f32.mrb[5].mxu0  ;;  %15190 = vmatpush3.xpose.msk.msra.mxu0 %vm3481_vm1, %v2409_v36 }
 0x2d7   : > { %3450 = vrot.lane.b32.xlu1 %v2411_v37, %s17436_s2  ;;  %v2413_v39 = vpop.f32.mrb[6].mxu0  ;;  %15199 = vmatprep.subr.mxu0 %v17434_v35  ;;  %v2491_v41 = vpop.f32.mrb[4].mxu1 }
 0x2d8   : > { %v2414_v40 = vpop.f32.mrb[7].mxu0  ;;  %v2493_v8 = vpop.f32.mrb[5].mxu1 }
 0x2d9   : > { %15192 = vmatmul.mubr.msk.f32.vlgmr.msra.gmra.mrb[12].mxu0 %vm3481_vm1, %v3430_v38  ;;  %v2495_v42 = vpop.f32.mrb[6].mxu1 }
 0x2da   : > { %3435 = vrot.lane.b32.xlu0 %v3430_v38, %s17436_s2  ;;  %15200 = vmatpush3.xpose.msk.msra.mxu0 %vm3481_vm1, %v2411_v37  ;;  %v2496_v49 = vpop.f32.mrb[7].mxu1 }
 0x2db   : > { %3438 = vrot.lane.b32.xlu1 %v3431_v13, %s17436_s2  ;;  %15201 = vmatprep.mubr.msk.f32.mxu0 %vm17435_vm0, %v17434_v35 }
 0x2dc   : > { %15209 = vmatprep.subr.mxu0 %v17434_v35 }
 0x2dd   : > { %15202 = vmatmul.mubr.msk.f32.vlgmr.msra.gmra.mrb[14].mxu0 %vm3481_vm1, %v3431_v13 }
 0x2de   : > { %15210 = vmatpush3.xpose.msk.msra.mxu0 %vm3481_vm1, %v2491_v41  ;;  %3453 = vrot.lane.b32.xlu0 %v2491_v41, %s17436_s2 }
 0x2df   : > { %3441 = vrot.lane.b32.xlu1 %v3432_v43, %s17436_s2  ;;  %15211 = vmatprep.mubr.msk.f32.mxu0 %vm17435_vm0, %v17434_v35 }
 0x2e0   : > { %15219 = vmatprep.subr.mxu0 %v17434_v35 }
 0x2e1   : > { %15212 = vmatmul.mubr.msk.f32.vlgmr.msra.gmra.mrb[16].mxu0 %vm3481_vm1, %v3432_v43 }
 0x2e2   : > { %15220 = vmatpush3.xpose.msk.msra.mxu0 %vm3481_vm1, %v2493_v8  ;;  %3456 = vrot.lane.b32.xlu0 %v2493_v8, %s17436_s2 }
 0x2e3   : > { %3444 = vrot.lane.b32.xlu1 %v3433_v33, %s17436_s2  ;;  %15221 = vmatprep.mubr.msk.f32.mxu0 %vm17435_vm0, %v17434_v35 }
 0x2e4   : > { %15229 = vmatprep.subr.mxu0 %v17434_v35 }
 0x2e5   : > { %15222 = vmatmul.mubr.msk.f32.vlgmr.msra.gmra.mrb[18].mxu0 %vm3481_vm1, %v3433_v33 }
 0x2e6   : > { %15231 = vmatprep.mubr.msk.f32.mxu0 %vm17435_vm0, %v17434_v35 }
 0x348   : > { %v3448_v44 = vpop.permute.xlu0 %3447 }
 0x349   : > { %15195 = vmatpush3.xpose.msk.msra.mxu1 %vm3481_vm1, %v3448_v44  ;;  %v3451_v45 = vpop.permute.xlu1 %3450 }
 0x34a   : > { %15204 = vmatprep.subr.mxu1 %v17434_v35 }
 0x34c   : > { %v3436_v46 = vpop.permute.xlu0 %3435 }
 0x34d   : > { %15197 = vmatmul.mubr.msk.f32.vlgmr.msra.gmra.mrb[12].mxu1 %vm3481_vm1, %v3436_v46  ;;  %v3439_v47 = vpop.permute.xlu1 %3438 }
 0x34e   : > { %15205 = vmatpush3.xpose.msk.msra.mxu1 %vm3481_vm1, %v3451_v45  ;;  %15206 = vmatprep.mubr.msk.f32.mxu1 %vm17435_vm0, %v17434_v35 }
 0x34f   : > { %15214 = vmatprep.subr.mxu1 %v17434_v35 }
 0x350   : > { %v3454_v48 = vpop.permute.xlu0 %3453 }
 0x351   : > { %15207 = vmatmul.mubr.msk.f32.vlgmr.msra.gmra.mrb[14].mxu1 %vm3481_vm1, %v3439_v47  ;;  %v3442_v50 = vpop.permute.xlu1 %3441 }
 0x352   : > { %15215 = vmatpush3.xpose.msk.msra.mxu1 %vm3481_vm1, %v3454_v48  ;;  %15216 = vmatprep.mubr.msk.f32.mxu1 %vm17435_vm0, %v17434_v35 }
 0x353   : > { %15224 = vmatprep.subr.mxu1 %v17434_v35 }
 0x354   : > { %v3457_v51 = vpop.permute.xlu0 %3456 }
 0x355   : > { %15217 = vmatmul.mubr.msk.f32.vlgmr.msra.gmra.mrb[16].mxu1 %vm3481_vm1, %v3442_v50  ;;  %v18381_v52 = vpop.f32.mrb[8].mxu0  ;;  %v3445_v55 = vpop.permute.xlu1 %3444 }
 0x356   : > { %15225 = vmatpush3.xpose.msk.msra.mxu1 %vm3481_vm1, %v3457_v51  ;;  %15226 = vmatprep.mubr.msk.f32.mxu1 %vm17435_vm0, %v17434_v35  ;;  %v18386_v53 = vpop.f32.mrb[9].mxu0 }
 0x357   : > { %v3345_v54 = vpop.f32.mrb[10].mxu0  ;;  %15230 = vmatpush3.msra.mxu0 %v18381_v52  ;;  %15234 = vmatprep.subr.mxu1 %v17434_v35  ;;  %v18392_v57 = vpop.f32.mrb[8].mxu1 }
 0x358   : > { %v3346_v56 = vpop.f32.mrb[11].mxu0  ;;  %15239 = vmatprep.subr.mxu0 %v17434_v35  ;;  %v18394_v58 = vpop.f32.mrb[9].mxu1 }
 0x359   : > { %15227 = vmatmul.mubr.msk.f32.vlgmr.msra.gmra.mrb[18].mxu1 %vm3481_vm1, %v3445_v55  ;;  %v3427_v59 = vpop.f32.mrb[10].mxu1 }
 0x35a   : > { %15236 = vmatprep.mubr.msk.f32.mxu1 %vm17435_vm0, %v17434_v35  ;;  %v3428_v60 = vpop.f32.mrb[11].mxu1 }
 0x3ac   : > { %v3552_v61 = vpop.f32.mrb[12].mxu0 }
 0x3ad   : > { %v15193_v62 = vpop.f32.mrb[13].mxu0  ;;  %v3553_v10 = vadd.f32 %v13967_v5, %v3552_v61 }
 0x3af   : > { %v4075_v18 = vsel %vm4074_vm2, %v3553_v10, -inf }
 0x3b0   : > { %v3700_v63 = vpop.f32.mrb[14].mxu0 }
 0x3b1   : > { %v15203_v0 = vpop.f32.mrb[15].mxu0  ;;  %v3701_v16 = vadd.f32 %v13967_v5, %v3700_v63 }
 0x3b3   : > { %v4081_v23 = vsel %vm4074_vm2, %v3701_v16, -inf }
 0x3b4   : > { %v18398_v1 = vpop.f32.mrb[16].mxu0 }
 0x3b5   : > { %v15213_v2 = vpop.f32.mrb[17].mxu0  ;;  %v3849_v48 = vadd.f32 %v13967_v5, %v18398_v1 }
 0x3b7   : > { %v4087_v51 = vsel %vm4074_vm2, %v3849_v48, -inf }
 0x3b8   : > { %v18400_v3 = vpop.f32.mrb[18].mxu0 }
 0x3b9   : > { %v15223_v4 = vpop.f32.mrb[19].mxu0  ;;  %v3997_v50 = vadd.f32 %v13967_v5, %v18400_v3 }
 0x3bb   : > { %v4093_v56 = vsel %vm4074_vm2, %v3997_v50, -inf }
 0x420   : > { %v3626_v6 = vpop.f32.mrb[12].mxu1 }
 0x421   : > { %v3627_v7 = vadd.f32 %v13967_v5, %v3626_v6  ;;  %v15198_v9 = vpop.f32.mrb[13].mxu1 }
 0x423   : > { %v4078_v11 = vsel %vm4074_vm2, %v3627_v7, -inf }
 0x424   : > { %4079 = vmax.xlane.f32.xlu0 %v4078_v11  ;;  %v3774_v12 = vpop.f32.mrb[14].mxu1 }
 0x425   : > { %v3775_v14 = vadd.f32 %v13967_v5, %v3774_v12  ;;  %v15208_v15 = vpop.f32.mrb[15].mxu1 }
 0x427   : > { %v4084_v17 = vsel %vm4074_vm2, %v3775_v14, -inf }
 0x428   : > { %4085 = vmax.xlane.f32.xlu1 %v4084_v17  ;;  %v3922_v19 = vpop.f32.mrb[16].mxu1  ;;  %4076 = vmax.xlane.f32.xlu0 %v4075_v18 }
 0x429   : > { %v3923_v20 = vadd.f32 %v13967_v5, %v3922_v19  ;;  %v15218_v21 = vpop.f32.mrb[17].mxu1 }
 0x42b   : > { %v4090_v22 = vsel %vm4074_vm2, %v3923_v20, -inf }
 0x42c   : > { %4091 = vmax.xlane.f32.xlu1 %v4090_v22  ;;  %v4070_v24 = vpop.f32.mrb[18].mxu1  ;;  %4082 = vmax.xlane.f32.xlu0 %v4081_v23 }
 0x42d   : > { %v4071_v25 = vadd.f32 %v13967_v5, %v4070_v24  ;;  %v15228_v26 = vpop.f32.mrb[19].mxu1 }
 0x42f   : > { %v4096_v27 = vsel %vm4074_vm2, %v4071_v25, -inf }
 0x430   : > { %4097 = vmax.xlane.f32.xlu0 %v4096_v27 }
 0x4b1   : > { %v4080_v28 = vpop.xlane.xlu0 %4079 }
 0x4b2   : > { %v4100_v29 = vsub.f32 %v3627_v7, %v4080_v28 }
 0x4b4   : > { %v4109_v30 = vmul.f32 1.442695, %v4100_v29 }
 0x4b5   : > { %v4086_v31 = vpop.xlane.xlu1 %4085  ;;  %v4077_v40 = vpop.xlane.xlu0 %4076 }
 0x4b6   : > { %17068 = vpow2.f32 %v4109_v30  ;;  %v4102_v32 = vsub.f32 %v3775_v14, %v4086_v31  ;;  %v4099_v41 = vsub.f32 %v3553_v10, %v4077_v40  ;;  %v16131_v40 = vld [vmem:[%s17858_s26 + $0x6c] ss:$16 sps:$4 sm:$0xff]  }
 0x4b8   : > { %v4113_v34 = vmul.f32 1.442695, %v4102_v32  ;;  %v4107_v49 = vmul.f32 1.442695, %v4099_v41  ;;  %v16137_v41 = vld [vmem:[%s17858_s26 + $0x8c] ss:$16 sps:$4 sm:$0xff]  }
 0x4b9   : > { %v4083_v13 = vpop.xlane.xlu0 %4082  ;;  %v4092_v8 = vpop.xlane.xlu1 %4091 }
 0x4ba   : > { %17070 = vpow2.f32 %v4113_v34  ;;  %v4104_v42 = vsub.f32 %v3923_v20, %v4092_v8  ;;  %v4101_v43 = vsub.f32 %v3701_v16, %v4083_v13  ;;  %v16111_v34 = vld [vmem:[%s17858_s26 + $0x8] ss:$16 sps:$4 sm:$0xff]  }
 0x4bb   : > { %17072 = vpow2.f32 %v4107_v49  ;;  %v16129_v13 = vld [vmem:[%s17858_s26 + $0x68] ss:$16 sps:$4 sm:$0xff]  }
 0x4bc   : > { %v4117_v44 = vmul.f32 1.442695, %v4104_v42  ;;  %v4111_v45 = vmul.f32 1.442695, %v4101_v43  ;;  %v16135_v8 = vld [vmem:[%s17858_s26 + $0x88] ss:$16 sps:$4 sm:$0xff]  }
 0x4bd   : > { %v4098_v33 = vpop.xlane.xlu0 %4097  ;;  %v16143_v42 = vld [vmem:[%s17858_s26 + $0xac] ss:$16 sps:$4 sm:$0xff]   ;;  %v16141_v49 = vld [vmem:[%s17858_s26 + $0xa8] ss:$16 sps:$4 sm:$0xff]  }
 0x4be   : > { %v4106_v46 = vsub.f32 %v4071_v25, %v4098_v33  ;;  %17074 = vpow2.f32 %v4117_v44  ;;  %v16149_v43 = vld [vmem:[%s17858_s26 + $0xcc] ss:$16 sps:$4 sm:$0xff]   ;;  %v16147_v33 = vld [vmem:[%s17858_s26 + $0xc8] ss:$16 sps:$4 sm:$0xff]  }
 0x4bf   : > { %17076 = vpow2.f32 %v4111_v45  ;;  %v16155_v44 = vld [vmem:[%s17858_s26 + $0xec] ss:$16 sps:$4 sm:$0xff]   ;;  %v16153_v45 = vld [vmem:[%s17858_s26 + $0xe8] ss:$16 sps:$4 sm:$0xff]  }
 0x4c0   : > { %v17069_v36 = vpop.eup %17068  ;;  %v4121_v47 = vmul.f32 1.442695, %v4106_v46  ;;  %v16161_v46 = vld [vmem:[%s17858_s26 + $0x10c] ss:$16 sps:$4 sm:$0xff]  }
 0x4c1   : > { %v4126_v37 = vsel %vm4074_vm2, %v17069_v36, 0.0 }
 0x4c2   : > { %4127 = vadd.xlane.f32.xlu1 %v4126_v37  ;;  %17078 = vpow2.f32 %v4121_v47  ;;  %v16119_v37 = vld [vmem:[%s17858_s26 + $0x2c] ss:$16 sps:$4 sm:$0xff]   ;;  %v16159_v47 = vld [vmem:[%s17858_s26 + $0x108] ss:$16 sps:$4 sm:$0xff]  }
 0x4c4   : > { %v17071_v38 = vpop.eup %17070 }
 0x4c5   : > { %v4132_v39 = vsel %vm4074_vm2, %v17071_v38, 0.0 }
 0x4c6   : > { %4133 = vadd.xlane.f32.xlu0 %v4132_v39  ;;  %v16123_v39 = vld [vmem:[%s17858_s26 + $0x48] ss:$16 sps:$4 sm:$0xff]  }
 0x4d3   : > { %3459 = vrot.lane.b32.xlu1 %v18381_v52, %s17436_s2  ;;  %v17073_v52 = vpop.eup %17072 }
 0x4d4   : > { %v18422_v54 = vpop.eup %17074  ;;  %v4123_v55 = vsel %vm4074_vm2, %v17073_v52, 0.0 }
 0x4d5   : > { %v18426_v59 = vpop.eup %17076  ;;  %v4138_v60 = vsel %vm4074_vm2, %v18422_v54, 0.0 }
 0x4d6   : > { %v4129_v61 = vsel %vm4074_vm2, %v18426_v59, 0.0  ;;  %v18432_v62 = vpop.eup %17078 }
 0x4d7   : > { %v4144_v63 = vsel %vm4074_vm2, %v18432_v62, 0.0 }
 0x4dc   : > { %3463 = vrot.lane.b32.xlu0 %v18386_v53, %s17436_s2 }
 0x4f7   : > { %4088 = vmax.xlane.f32.xlu1 %v4087_v51  ;;  %v16173_v51 = vld [vmem:[%s17858_s26 + $0x14c] ss:$16 sps:$4 sm:$0xff]  }
 0x4fb   : > { %4124 = vadd.xlane.f32.xlu1 %v4123_v55  ;;  %4094 = vmax.xlane.f32.xlu0 %v4093_v56  ;;  %v16177_v55 = vld [vmem:[%s17858_s26 + $0x168] ss:$16 sps:$4 sm:$0xff]   ;;  %v16185_v56 = vld [vmem:[%s17858_s26 + $0x18c] ss:$16 sps:$4 sm:$0xff]  }
 0x4ff   : > { %4139 = vadd.xlane.f32.xlu1 %v4138_v60  ;;  %4130 = vadd.xlane.f32.xlu0 %v4129_v61  ;;  %v16183_v60 = vld [vmem:[%s17858_s26 + $0x188] ss:$16 sps:$4 sm:$0xff]  }
 0x503   : > { %4145 = vadd.xlane.f32.xlu0 %v4144_v63  ;;  %v16191_v63 = vld [vmem:[%s17858_s26 + $0x1ac] ss:$16 sps:$4 sm:$0xff]  }
 0x510   : > { %3467 = vrot.lane.b32.xlu1 %v18392_v57, %s17436_s2 }
 0x519   : > { %3471 = vrot.lane.b32.xlu0 %v18394_v58, %s17436_s2 }
 0x54f   : > { %v4128_v0 = vpop.xlane.xlu1 %4127 }
 0x550   : > { %17080 = vrcp.f32 %v4128_v0  ;;  %v16197_v0 = vld [vmem:[%s17858_s26 + $0x1cc] ss:$16 sps:$4 sm:$0xff]  }
 0x553   : > { %v3460_v1 = vpop.permute.xlu1 %3459  ;;  %v4134_v2 = vpop.xlane.xlu0 %4133 }
 0x554   : > { %17082 = vrcp.f32 %v4134_v2  ;;  %15235 = vmatpush3.msra.mxu1 %v3460_v1  ;;  %v16195_v1 = vld [vmem:[%s17858_s26 + $0x1c8] ss:$16 sps:$4 sm:$0xff]  }
 0x555   : > { %15244 = vmatprep.subr.mxu1 %v17434_v35 }
 0x557   : > { %v3464_v5 = vpop.permute.xlu0 %3463 }
 0x55a   : > { %v17081_v3 = vpop.eup %17080 }
 0x55b   : > { %v4150_v4 = vmul.f32 %v17081_v3, %v17069_v36  ;;  %v16113_v36 = vld [vmem:[%s17858_s26 + $0xc] ss:$16 sps:$4 sm:$0xff]  }
 0x55d   : > { %4164 = vst.msk [vmem:[%s17893_s4 + $0x8] sm:$0xff] %vm4074_vm2, %v4150_v4  ;;  %15237 = vmatmul.mubr.msk.f32.vlgmr.msra.gmra.mrb[20].mxu1 %vm4074_vm2, %v4150_v4  ;;  %v16110_v4 = vld [vmem:[%s17858_s26 + $0x4] ss:$16 sps:$4 sm:$0xff]  }
 0x55e   : > { %v17083_v6 = vpop.eup %17082  ;;  %15245 = vmatpush3.msra.mxu1 %v3464_v5  ;;  %15246 = vmatprep.mubr.msk.f32.mxu1 %vm17435_vm0, %v17434_v35  ;;  %v16203_v5 = vld [vmem:[%s17858_s26 + $0x1ec] ss:$16 sps:$4 sm:$0xff]  }
 0x55f   : > { %v4154_v7 = vmul.f32 %v17083_v6, %v17071_v38  ;;  %15254 = vmatprep.subr.mxu1 %v17434_v35  ;;  %v16125_v38 = vld [vmem:[%s17858_s26 + $0x4c] ss:$16 sps:$4 sm:$0xff]  }
 0x561   : > { %4166 = vst.msk [vmem:[%s17893_s4 + $0x18] sm:$0xff] %vm4074_vm2, %v4154_v7  ;;  %15247 = vmatmul.mubr.msk.f32.vlgmr.msra.gmra.mrb[22].mxu1 %vm4074_vm2, %v4154_v7  ;;  %v16201_v7 = vld [vmem:[%s17858_s26 + $0x1e8] ss:$16 sps:$4 sm:$0xff]  }
 0x562   : > { %15256 = vmatprep.mubr.msk.f32.mxu1 %vm17435_vm0, %v17434_v35 }
 0x584   : > { %v4089_v9 = vpop.xlane.xlu1 %4088 }
 0x585   : > { %v4103_v10 = vsub.f32 %v3849_v48, %v4089_v9  ;;  %v16167_v48 = vld [vmem:[%s17858_s26 + $0x12c] ss:$16 sps:$4 sm:$0xff]  }
 0x587   : > { %v4115_v11 = vmul.f32 1.442695, %v4103_v10 }
 0x588   : > { %v4125_v12 = vpop.xlane.xlu1 %4124  ;;  %v4095_v14 = vpop.xlane.xlu0 %4094 }
 0x589   : > { %17084 = vpow2.f32 %v4115_v11  ;;  %v4105_v15 = vsub.f32 %v3997_v50, %v4095_v14  ;;  %v16165_v50 = vld [vmem:[%s17858_s26 + $0x128] ss:$16 sps:$4 sm:$0xff]   ;;  %v16108_v11 = vld [vmem:[%s17858_s26] ss:$16 sps:$4 sm:$0xff]   ;;  %v16116_v14 = vld [vmem:[%s17858_s26 + $0x24] ss:$16 sps:$4 sm:$0xff]  }
 0x58a   : > { %17086 = vrcp.f32 %v4125_v12 }
 0x58b   : > { %v4119_v16 = vmul.f32 1.442695, %v4105_v15 }
 0x58c   : > { %v4140_v17 = vpop.xlane.xlu1 %4139  ;;  %v4131_v18 = vpop.xlane.xlu0 %4130 }
 0x58d   : > { %17088 = vpow2.f32 %v4119_v16 }
 0x58e   : > { %17090 = vrcp.f32 %v4140_v17  ;;  %v16122_v17 = vld [vmem:[%s17858_s26 + $0x44] ss:$16 sps:$4 sm:$0xff]  }
 0x58f   : > { %17092 = vrcp.f32 %v4131_v18  ;;  %v16120_v18 = vld [vmem:[%s17858_s26 + $0x40] ss:$16 sps:$4 sm:$0xff]  }
 0x590   : > { %v3468_v19 = vpop.permute.xlu1 %3467  ;;  %v4146_v20 = vpop.xlane.xlu0 %4145 }
 0x591   : > { %17094 = vrcp.f32 %v4146_v20  ;;  %15255 = vmatpush3.msra.mxu1 %v3468_v19  ;;  %v16128_v19 = vld [vmem:[%s17858_s26 + $0x64] ss:$16 sps:$4 sm:$0xff]   ;;  %v16126_v20 = vld [vmem:[%s17858_s26 + $0x60] ss:$16 sps:$4 sm:$0xff]  }
 0x592   : > { %15264 = vmatprep.subr.mxu1 %v17434_v35 }
 0x593   : > { %v18453_v21 = vpop.eup %17084 }
 0x594   : > { %v17087_v22 = vpop.eup %17086  ;;  %v4135_v23 = vsel %vm4074_vm2, %v18453_v21, 0.0 }
 0x595   : > { %v4148_v24 = vmul.f32 %v17087_v22, %v17073_v52  ;;  %4136 = vadd.xlane.f32.xlu1 %v4135_v23  ;;  %v16171_v52 = vld [vmem:[%s17858_s26 + $0x148] ss:$16 sps:$4 sm:$0xff]   ;;  %v16132_v22 = vld [vmem:[%s17858_s26 + $0x80] ss:$16 sps:$4 sm:$0xff]   ;;  %v16140_v23 = vld [vmem:[%s17858_s26 + $0xa4] ss:$16 sps:$4 sm:$0xff]  }
 0x597   : > { %v18457_v25 = vpop.eup %17088  ;;  %4163 = vst.msk [vmem:[%s17893_s4] sm:$0xff] %vm4074_vm2, %v4148_v24  ;;  %15232 = vmatmul.mubr.msk.f32.vlgmr.msra.gmra.mrb[20].mxu0 %vm4074_vm2, %v4148_v24  ;;  %v16138_v24 = vld [vmem:[%s17858_s26 + $0xa0] ss:$16 sps:$4 sm:$0xff]  }
 0x598   : > { %v17091_v26 = vpop.eup %17090  ;;  %15240 = vmatpush3.msra.mxu0 %v18386_v53  ;;  %15241 = vmatprep.mubr.msk.f32.mxu0 %vm17435_vm0, %v17434_v35  ;;  %v4141_v27 = vsel %vm4074_vm2, %v18457_v25, 0.0  ;;  %v3472_v53 = vpop.permute.xlu0 %3471 }
 0x599   : > { %v17093_v28 = vpop.eup %17092  ;;  %v4158_v29 = vmul.f32 %v17091_v26, %v18422_v54  ;;  %15249 = vmatprep.subr.mxu0 %v17434_v35  ;;  %4142 = vadd.xlane.f32.xlu0 %v4141_v27  ;;  %v16179_v54 = vld [vmem:[%s17858_s26 + $0x16c] ss:$16 sps:$4 sm:$0xff]   ;;  %v16144_v26 = vld [vmem:[%s17858_s26 + $0xc0] ss:$16 sps:$4 sm:$0xff]   ;;  %v16152_v27 = vld [vmem:[%s17858_s26 + $0xe4] ss:$16 sps:$4 sm:$0xff]  }
 0x59a   : > { %v4152_v30 = vmul.f32 %v17093_v28, %v18426_v59  ;;  %v16150_v28 = vld [vmem:[%s17858_s26 + $0xe0] ss:$16 sps:$4 sm:$0xff]  }
 0x59b   : > { %v17095_v31 = vpop.eup %17094  ;;  %4168 = vst.msk [vmem:[%s17893_s4 + $0x28] sm:$0xff] %vm4074_vm2, %v4158_v29  ;;  %15257 = vmatmul.mubr.msk.f32.vlgmr.msra.gmra.mrb[24].mxu1 %vm4074_vm2, %v4158_v29  ;;  %v16158_v29 = vld [vmem:[%s17858_s26 + $0x104] ss:$16 sps:$4 sm:$0xff]  }
 0x59c   : > { %4165 = vst.msk [vmem:[%s17893_s4 + $0x10] sm:$0xff] %vm4074_vm2, %v4152_v30  ;;  %v4162_v32 = vmul.f32 %v17095_v31, %v18432_v62  ;;  %15242 = vmatmul.mubr.msk.f32.vlgmr.msra.gmra.mrb[22].mxu0 %vm4074_vm2, %v4152_v30  ;;  %15265 = vmatpush3.msra.mxu1 %v3472_v53  ;;  %v16189_v62 = vld [vmem:[%s17858_s26 + $0x1a8] ss:$16 sps:$4 sm:$0xff]   ;;  %v16156_v30 = vld [vmem:[%s17858_s26 + $0x100] ss:$16 sps:$4 sm:$0xff]  }
 0x59d   : > { %15250 = vmatpush3.msra.mxu0 %v18392_v57  ;;  %15266 = vmatprep.mubr.msk.f32.mxu1 %vm17435_vm0, %v17434_v35  ;;  %v16117_v57 = vld [vmem:[%s17858_s26 + $0x28] ss:$16 sps:$4 sm:$0xff]   ;;  %v16164_v31 = vld [vmem:[%s17858_s26 + $0x124] ss:$16 sps:$4 sm:$0xff]   ;;  %v16162_v53 = vld [vmem:[%s17858_s26 + $0x120] ss:$16 sps:$4 sm:$0xff]  }
 0x59e   : > { %4170 = vst.msk [vmem:[%s17893_s4 + $0x38] sm:$0xff] %vm4074_vm2, %v4162_v32  ;;  %15251 = vmatprep.mubr.msk.f32.mxu0 %vm17435_vm0, %v17434_v35  ;;  %15259 = vmatprep.subr.mxu0 %v17434_v35 }
 0x59f   : > { %15267 = vmatmul.mubr.msk.f32.vlgmr.msra.gmra.mrb[26].mxu1 %vm4074_vm2, %v4162_v32  ;;  %5638 = vmatprep.subr.bf16.mxu1 %v16113_v36  ;;  %v16170_v32 = vld [vmem:[%s17858_s26 + $0x144] ss:$16 sps:$4 sm:$0xff]  }
 0x5a0   : > { %5639 = vmatpush1.bf16.msra.mxu1 %v16111_v34  ;;  %v16168_v34 = vld [vmem:[%s17858_s26 + $0x140] ss:$16 sps:$4 sm:$0xff]   ;;  %v16176_v36 = vld [vmem:[%s17858_s26 + $0x164] ss:$16 sps:$4 sm:$0xff]  }
 0x5a1   : > { %5640 = vmatprep.subr.bf16.mxu1 %v16119_v37  ;;  %v16182_v37 = vld [vmem:[%s17858_s26 + $0x184] ss:$16 sps:$4 sm:$0xff]  }
 0x5a4   : > { %5641 = vmatpush1.bf16.msra.mxu1 %v16117_v57  ;;  %v16174_v57 = vld [vmem:[%s17858_s26 + $0x160] ss:$16 sps:$4 sm:$0xff]  }
 0x5a5   : > { %5642 = vmatprep.subr.bf16.mxu1 %v16125_v38  ;;  %v16180_v38 = vld [vmem:[%s17858_s26 + $0x180] ss:$16 sps:$4 sm:$0xff]  }
 0x5a8   : > { %5643 = vmatpush1.bf16.msra.mxu1 %v16123_v39  ;;  %v16188_v39 = vld [vmem:[%s17858_s26 + $0x1a4] ss:$16 sps:$4 sm:$0xff]  }
 0x5a9   : > { %5644 = vmatprep.subr.bf16.mxu1 %v16131_v40  ;;  %v16186_v40 = vld [vmem:[%s17858_s26 + $0x1a0] ss:$16 sps:$4 sm:$0xff]  }
 0x5ac   : > { %5645 = vmatpush1.bf16.msra.mxu1 %v16129_v13  ;;  %v16194_v13 = vld [vmem:[%s17858_s26 + $0x1c4] ss:$16 sps:$4 sm:$0xff]  }
 0x5ad   : > { %5646 = vmatprep.subr.bf16.mxu1 %v16137_v41  ;;  %v16192_v41 = vld [vmem:[%s17858_s26 + $0x1c0] ss:$16 sps:$4 sm:$0xff]  }
 0x5b0   : > { %5647 = vmatpush1.bf16.msra.mxu1 %v16135_v8 }
 0x5b1   : > { %5648 = vmatprep.subr.bf16.mxu1 %v16143_v42  ;;  %v16200_v42 = vld [vmem:[%s17858_s26 + $0x1e4] ss:$16 sps:$4 sm:$0xff]  }
 0x5b4   : > { %5649 = vmatpush1.bf16.msra.mxu1 %v16141_v49 }
 0x5b5   : > { %5650 = vmatprep.subr.bf16.mxu1 %v16149_v43  ;;  %v16198_v43 = vld [vmem:[%s17858_s26 + $0x1e0] ss:$16 sps:$4 sm:$0xff]  }
 0x5b8   : > { %5651 = vmatpush1.bf16.msra.mxu1 %v16147_v33 }
 0x5b9   : > { %5652 = vmatprep.subr.bf16.mxu1 %v16155_v44  ;;  %v16206_v44 = vld [vmem:[%s17858_s26 + $0x204] ss:$16 sps:$4 sm:$0xff]  }
 0x5bc   : > { %5653 = vmatpush1.bf16.msra.mxu1 %v16153_v45 }
 0x5bd   : > { %5654 = vmatprep.subr.bf16.mxu1 %v16161_v46 }
 0x5c0   : > { %5655 = vmatpush1.bf16.msra.mxu1 %v16159_v47 }
 0x5c1   : > { %5656 = vmatprep.subr.bf16.mxu1 %v16167_v48 }
 0x5c4   : > { %5657 = vmatpush1.bf16.msra.mxu1 %v16165_v50 }
 0x5c5   : > { %5658 = vmatprep.subr.bf16.mxu1 %v16173_v51 }
 0x5c8   : > { %5659 = vmatpush1.bf16.msra.mxu1 %v16171_v52 }
 0x5c9   : > { %5660 = vmatprep.subr.bf16.mxu1 %v16179_v54 }
 0x5cc   : > { %5661 = vmatpush1.bf16.msra.mxu1 %v16177_v55 }
 0x5cd   : > { %5662 = vmatprep.subr.bf16.mxu1 %v16185_v56 }
 0x5d0   : > { %5663 = vmatpush1.bf16.msra.mxu1 %v16183_v60  ;;  %v16207_v60 = vld [vmem:[%s17858_s26 + $0x208] ss:$16 sps:$4 sm:$0xff]  }
 0x5d1   : > { %5664 = vmatprep.subr.bf16.mxu1 %v16191_v63  ;;  %v16215_v63 = vld [vmem:[%s17858_s26 + $0x22c] ss:$16 sps:$4 sm:$0xff]  }
 0x5d4   : > { %5665 = vmatpush1.bf16.msra.mxu1 %v16189_v62  ;;  %v16212_v62 = vld [vmem:[%s17858_s26 + $0x224] ss:$16 sps:$4 sm:$0xff]  }
 0x5d5   : > { %5666 = vmatprep.subr.bf16.mxu1 %v16197_v0  ;;  %v16210_v0 = vld [vmem:[%s17858_s26 + $0x220] ss:$16 sps:$4 sm:$0xff]  }
 0x5d8   : > { %5667 = vmatpush1.bf16.msra.mxu1 %v16195_v1  ;;  %v16213_v1 = vld [vmem:[%s17858_s26 + $0x228] ss:$16 sps:$4 sm:$0xff]  }
 0x5d9   : > { %5668 = vmatprep.subr.bf16.mxu1 %v16203_v5  ;;  %v16219_v5 = vld [vmem:[%s17858_s26 + $0x248] ss:$16 sps:$4 sm:$0xff]  }
 0x5dc   : > { %5669 = vmatpush1.bf16.msra.mxu1 %v16201_v7  ;;  %v16227_v7 = vld [vmem:[%s17858_s26 + $0x26c] ss:$16 sps:$4 sm:$0xff]  }
 0x622   : > { %v4137_v59 = vpop.xlane.xlu1 %4136 }
 0x623   : > { %17096 = vrcp.f32 %v4137_v59  ;;  %v16204_v59 = vld [vmem:[%s17858_s26 + $0x200] ss:$16 sps:$4 sm:$0xff]  }
 0x626   : > { %v4143_v61 = vpop.xlane.xlu0 %4142 }
 0x627   : > { %17098 = vrcp.f32 %v4143_v61 }
 0x62d   : > { %v17097_v2 = vpop.eup %17096 }
 0x62e   : > { %v4156_v3 = vmul.f32 %v17097_v2, %v18453_v21  ;;  %v16134_v21 = vld [vmem:[%s17858_s26 + $0x84] ss:$16 sps:$4 sm:$0xff]  }
 0x62f   : > { %v16218_v2 = vld [vmem:[%s17858_s26 + $0x244] ss:$16 sps:$4 sm:$0xff]  }
 0x630   : > { %4167 = vst.msk [vmem:[%s17893_s4 + $0x20] sm:$0xff] %vm4074_vm2, %v4156_v3  ;;  %v4313_v6 = vpop.f32.mrb[20].mxu1  ;;  %15252 = vmatmul.mubr.msk.f32.vlgmr.msra.gmra.mrb[24].mxu0 %vm4074_vm2, %v4156_v3  ;;  %v16221_v3 = vld [vmem:[%s17858_s26 + $0x24c] ss:$16 sps:$4 sm:$0xff]  }
 0x631   : > { %v17099_v9 = vpop.eup %17098  ;;  %15260 = vmatpush3.msra.mxu0 %v18394_v58  ;;  %v15238_v10 = vpop.f32.mrb[21].mxu1  ;;  %4757 = vrot.lane.b32.xlu0 %v4313_v6, %s17436_s2  ;;  %v16209_v58 = vld [vmem:[%s17858_s26 + $0x20c] ss:$16 sps:$4 sm:$0xff]   ;;  %v16224_v6 = vld [vmem:[%s17858_s26 + $0x264] ss:$16 sps:$4 sm:$0xff]  }
 0x632   : > { %v4160_v12 = vmul.f32 %v17099_v9, %v18457_v25  ;;  %15261 = vmatprep.mubr.msk.f32.mxu0 %vm17435_vm0, %v17434_v35  ;;  %5556 = vmatprep.subr.bf16.mxu0 %v16110_v4  ;;  %v16114_v35 = vld [vmem:[%s17858_s26 + $0x20] ss:$16 sps:$4 sm:$0xff]   ;;  %v16146_v25 = vld [vmem:[%s17858_s26 + $0xc4] ss:$16 sps:$4 sm:$0xff]   ;;  %v16225_v10 = vld [vmem:[%s17858_s26 + $0x268] ss:$16 sps:$4 sm:$0xff]  }
 0x633   : > { %5679 = vmatprep.subr.bf16.mxu1 %v16209_v58  ;;  %v16216_v4 = vld [vmem:[%s17858_s26 + $0x240] ss:$16 sps:$4 sm:$0xff]   ;;  %v16236_v58 = vld [vmem:[%s17858_s26 + $0x2a4] ss:$16 sps:$4 sm:$0xff]  }
 0x634   : > { %4169 = vst.msk [vmem:[%s17893_s4 + $0x30] sm:$0xff] %vm4074_vm2, %v4160_v12  ;;  %v4459_v15 = vpop.f32.mrb[22].mxu1  ;;  %15262 = vmatmul.mubr.msk.f32.vlgmr.msra.gmra.mrb[26].mxu0 %vm4074_vm2, %v4160_v12  ;;  %v16222_v9 = vld [vmem:[%s17858_s26 + $0x260] ss:$16 sps:$4 sm:$0xff]   ;;  %v16233_v12 = vld [vmem:[%s17858_s26 + $0x28c] ss:$16 sps:$4 sm:$0xff]  }
 0x635   : > { %v15248_v16 = vpop.f32.mrb[23].mxu1  ;;  %4764 = vrot.lane.b32.xlu1 %v4459_v15, %s17436_s2  ;;  %5557 = vmatpush1.bf16.msra.mxu0 %v16108_v11  ;;  %v16230_v11 = vld [vmem:[%s17858_s26 + $0x284] ss:$16 sps:$4 sm:$0xff]   ;;  %v16231_v15 = vld [vmem:[%s17858_s26 + $0x288] ss:$16 sps:$4 sm:$0xff]   ;;  %s19970_s4 = sld [smem:[#allocation25_spill]] }
 0x636   : > { %5558 = vmatprep.subr.bf16.mxu0 %v16116_v14  ;;  %v16228_v14 = vld [vmem:[%s17858_s26 + $0x280] ss:$16 sps:$4 sm:$0xff]   ;;  %v16239_v16 = vld [vmem:[%s17858_s26 + $0x2ac] ss:$16 sps:$4 sm:$0xff]  }
 0x639   : > { %5559 = vmatpush1.bf16.msra.mxu0 %v16114_v35  ;;  %v16234_v35 = vld [vmem:[%s17858_s26 + $0x2a0] ss:$16 sps:$4 sm:$0xff]  }
 0x63a   : > { %5560 = vmatprep.subr.bf16.mxu0 %v16122_v17  ;;  %v16237_v17 = vld [vmem:[%s17858_s26 + $0x2a8] ss:$16 sps:$4 sm:$0xff]  }
 0x63d   : > { %5561 = vmatpush1.bf16.msra.mxu0 %v16120_v18  ;;  %v16242_v18 = vld [vmem:[%s17858_s26 + $0x2c4] ss:$16 sps:$4 sm:$0xff]  }
 0x63e   : > { %5562 = vmatprep.subr.bf16.mxu0 %v16128_v19  ;;  %v16245_v19 = vld [vmem:[%s17858_s26 + $0x2cc] ss:$16 sps:$4 sm:$0xff]  }
 0x641   : > { %5563 = vmatpush1.bf16.msra.mxu0 %v16126_v20  ;;  %v16240_v20 = vld [vmem:[%s17858_s26 + $0x2c0] ss:$16 sps:$4 sm:$0xff]  }
 0x642   : > { %5564 = vmatprep.subr.bf16.mxu0 %v16134_v21  ;;  %v16243_v21 = vld [vmem:[%s17858_s26 + $0x2c8] ss:$16 sps:$4 sm:$0xff]  }
 0x645   : > { %5565 = vmatpush1.bf16.msra.mxu0 %v16132_v22  ;;  %v16248_v22 = vld [vmem:[%s17858_s26 + $0x2e4] ss:$16 sps:$4 sm:$0xff]  }
 0x646   : > { %5566 = vmatprep.subr.bf16.mxu0 %v16140_v23  ;;  %v16251_v23 = vld [vmem:[%s17858_s26 + $0x2ec] ss:$16 sps:$4 sm:$0xff]  }
 0x649   : > { %5567 = vmatpush1.bf16.msra.mxu0 %v16138_v24  ;;  %v16246_v24 = vld [vmem:[%s17858_s26 + $0x2e0] ss:$16 sps:$4 sm:$0xff]  }
 0x64a   : > { %5568 = vmatprep.subr.bf16.mxu0 %v16146_v25  ;;  %v16249_v25 = vld [vmem:[%s17858_s26 + $0x2e8] ss:$16 sps:$4 sm:$0xff]  }
 0x64d   : > { %5569 = vmatpush1.bf16.msra.mxu0 %v16144_v26  ;;  %v16254_v26 = vld [vmem:[%s17858_s26 + $0x304] ss:$16 sps:$4 sm:$0xff]  }
 0x64e   : > { %5570 = vmatprep.subr.bf16.mxu0 %v16152_v27  ;;  %v16257_v27 = vld [vmem:[%s17858_s26 + $0x30c] ss:$16 sps:$4 sm:$0xff]  }
 0x651   : > { %5571 = vmatpush1.bf16.msra.mxu0 %v16150_v28  ;;  %v16252_v28 = vld [vmem:[%s17858_s26 + $0x300] ss:$16 sps:$4 sm:$0xff]  }
 0x652   : > { %5572 = vmatprep.subr.bf16.mxu0 %v16158_v29  ;;  %v16255_v29 = vld [vmem:[%s17858_s26 + $0x308] ss:$16 sps:$4 sm:$0xff]  }
 0x655   : > { %5573 = vmatpush1.bf16.msra.mxu0 %v16156_v30  ;;  %v16260_v30 = vld [vmem:[%s17858_s26 + $0x324] ss:$16 sps:$4 sm:$0xff]  }
 0x656   : > { %5574 = vmatprep.subr.bf16.mxu0 %v16164_v31  ;;  %v16263_v31 = vld [vmem:[%s17858_s26 + $0x32c] ss:$16 sps:$4 sm:$0xff]  }
 0x659   : > { %5575 = vmatpush1.bf16.msra.mxu0 %v16162_v53  ;;  %v16258_v53 = vld [vmem:[%s17858_s26 + $0x320] ss:$16 sps:$4 sm:$0xff]  }
 0x65a   : > { %5576 = vmatprep.subr.bf16.mxu0 %v16170_v32  ;;  %v16261_v32 = vld [vmem:[%s17858_s26 + $0x328] ss:$16 sps:$4 sm:$0xff]  }
 0x65d   : > { %5577 = vmatpush1.bf16.msra.mxu0 %v16168_v34  ;;  %v16266_v34 = vld [vmem:[%s17858_s26 + $0x344] ss:$16 sps:$4 sm:$0xff]  }
 0x65e   : > { %5578 = vmatprep.subr.bf16.mxu0 %v16176_v36  ;;  %v16269_v36 = vld [vmem:[%s17858_s26 + $0x34c] ss:$16 sps:$4 sm:$0xff]  }
 0x661   : > { %5579 = vmatpush1.bf16.msra.mxu0 %v16174_v57  ;;  %v16264_v57 = vld [vmem:[%s17858_s26 + $0x340] ss:$16 sps:$4 sm:$0xff]  }
 0x662   : > { %5580 = vmatprep.subr.bf16.mxu0 %v16182_v37  ;;  %v16267_v37 = vld [vmem:[%s17858_s26 + $0x348] ss:$16 sps:$4 sm:$0xff]  }
 0x665   : > { %5581 = vmatpush1.bf16.msra.mxu0 %v16180_v38  ;;  %v16272_v38 = vld [vmem:[%s17858_s26 + $0x364] ss:$16 sps:$4 sm:$0xff]  }
 0x666   : > { %5582 = vmatprep.subr.bf16.mxu0 %v16188_v39  ;;  %v16275_v39 = vld [vmem:[%s17858_s26 + $0x36c] ss:$16 sps:$4 sm:$0xff]  }
 0x669   : > { %5583 = vmatpush1.bf16.msra.mxu0 %v16186_v40  ;;  %v16270_v40 = vld [vmem:[%s17858_s26 + $0x360] ss:$16 sps:$4 sm:$0xff]  }
 0x66a   : > { %v4240_v8 = vpop.f32.mrb[20].mxu0  ;;  %5584 = vmatprep.subr.bf16.mxu0 %v16194_v13  ;;  %v16273_v13 = vld [vmem:[%s17858_s26 + $0x368] ss:$16 sps:$4 sm:$0xff]  }
 0x66b   : > { %4755 = vst.msk [vmem:[#allocation2] sm:$0xff] %vm3481_vm1, %v4240_v8  ;;  %v15233_v49 = vpop.f32.mrb[21].mxu0  ;;  %v16281_v8 = vld [vmem:[%s17858_s26 + $0x38c] ss:$16 sps:$4 sm:$0xff]  }
 0x66c   : > { %v16279_v49 = vld [vmem:[%s17858_s26 + $0x388] ss:$16 sps:$4 sm:$0xff]  }
 0x66d   : > { %5585 = vmatpush1.bf16.msra.mxu0 %v16192_v41  ;;  %v16278_v41 = vld [vmem:[%s17858_s26 + $0x384] ss:$16 sps:$4 sm:$0xff]  }
 0x66e   : > { %v4605_v33 = vpop.f32.mrb[24].mxu1  ;;  %5586 = vmatprep.subr.bf16.mxu0 %v16200_v42  ;;  %v16276_v42 = vld [vmem:[%s17858_s26 + $0x380] ss:$16 sps:$4 sm:$0xff]  }
 0x66f   : > { %v4386_v45 = vpop.f32.mrb[22].mxu0  ;;  %v15258_v46 = vpop.f32.mrb[25].mxu1 }
 0x670   : > { %4762 = vst.msk [vmem:[#allocation2 + $0x8] sm:$0xff] %vm3481_vm1, %v4386_v45  ;;  %v15243_v47 = vpop.f32.mrb[23].mxu0  ;;  %v16285_v45 = vld [vmem:[%s17858_s26 + $0x3a8] ss:$16 sps:$4 sm:$0xff]   ;;  %v16290_v46 = vld [vmem:[%s17858_s26 + $0x3c4] ss:$16 sps:$4 sm:$0xff]  }
 0x671   : > { %5587 = vmatpush1.bf16.msra.mxu0 %v16198_v43  ;;  %v16284_v43 = vld [vmem:[%s17858_s26 + $0x3a4] ss:$16 sps:$4 sm:$0xff]   ;;  %v16293_v47 = vld [vmem:[%s17858_s26 + $0x3cc] ss:$16 sps:$4 sm:$0xff]  }
 0x672   : > { %v4751_v48 = vpop.f32.mrb[26].mxu1  ;;  %5597 = vmatprep.subr.bf16.mxu0 %v16206_v44  ;;  %v16282_v44 = vld [vmem:[%s17858_s26 + $0x3a0] ss:$16 sps:$4 sm:$0xff]  }
 0x673   : > { %4776 = vrot.lane.b32.xlu1 %v4751_v48, %s17436_s2  ;;  %v15268_v50 = vpop.f32.mrb[27].mxu1  ;;  %v16288_v48 = vld [vmem:[%s17858_s26 + $0x3c0] ss:$16 sps:$4 sm:$0xff]  }
 0x674   : > { %v16291_v50 = vld [vmem:[%s17858_s26 + $0x3c8] ss:$16 sps:$4 sm:$0xff]  }
 0x677   : > { %4770 = vrot.lane.b32.xlu1 %v4605_v33, %s17436_s2  ;;  %v16287_v33 = vld [vmem:[%s17858_s26 + $0x3ac] ss:$16 sps:$4 sm:$0xff]  }
 0x6a3   : > { %v4758_v51 = vpop.permute.xlu0 %4757 }
 0x6a4   : > { %4761 = vst.msk [vmem:[#allocation2] sm:$0xff] %vm4760_vm3, %v4758_v51  ;;  %v16296_v51 = vld [vmem:[%s17858_s26 + $0x3e4] ss:$16 sps:$4 sm:$0xff]  }
 0x6a7   : > { %v4765_v52 = vpop.permute.xlu1 %4764 }
 0x6a8   : > { %4767 = vst.msk [vmem:[#allocation2 + $0x8] sm:$0xff] %vm4760_vm3, %v4765_v52  ;;  %v16299_v52 = vld [vmem:[%s17858_s26 + $0x3ec] ss:$16 sps:$4 sm:$0xff]  }
 0x6ab   : > { %v4780_v54 = vld [vmem:[#allocation2] sm:$0xff] }
 0x6ac   : > { %v4784_v61 = vpack.c.bf16 %v4780_v54, %v4780_v54  ;;  %v16294_v54 = vld [vmem:[%s17858_s26 + $0x3e0] ss:$16 sps:$4 sm:$0xff]  }
 0x6af   : > { %v4781_v55 = vld [vmem:[#allocation2 + $0x8] sm:$0xff] }
 0x6b0   : > { %v4785_v56 = vpack.c.bf16 %v4781_v55, %v4781_v55  ;;  %v16297_v55 = vld [vmem:[%s17858_s26 + $0x3e8] ss:$16 sps:$4 sm:$0xff]   ;;  %s19971_s26 = sld [smem:[#allocation21_spill]] }
 0x6b2   : > { %5588 = vmatprep.mubr.bf16.mxu0 %v4785_v56  ;;  %5670 = vmatprep.mubr.bf16.mxu1 %v4785_v56 }
 0x6b3   : > { %5589 = vmatmul.mubr.bf16.vlgmr.msra.gmra.mrb[28].mxu0 %v4784_v61  ;;  %5671 = vmatmul.mubr.bf16.vlgmr.msra.gmra.mrb[28].mxu1 %v4784_v61 }
 0x6b4   : > { %5598 = vmatpush1.bf16.msra.mxu0 %v16204_v59  ;;  %5680 = vmatpush1.bf16.msra.mxu1 %v16207_v60 }
 0x6b5   : > { %5599 = vmatprep.subr.bf16.mxu0 %v16212_v62  ;;  %5681 = vmatprep.subr.bf16.mxu1 %v16215_v63 }
 0x6b6   : > { %s19974_s3 = sand.u32 1, %s19971_s26  }
 0x6b7   : > { %s13270_s28 = scalar_lea.sflag [#allocation5], %s19974_s3 }
 0x6b8   : > { %5600 = vmatpush1.bf16.msra.mxu0 %v16210_v0  ;;  %5682 = vmatpush1.bf16.msra.mxu1 %v16213_v1 }
 0x6b9   : > { %5601 = vmatprep.subr.bf16.mxu0 %v16218_v2  ;;  %5683 = vmatprep.subr.bf16.mxu1 %v16221_v3 }
 0x6bc   : > { %5602 = vmatpush1.bf16.msra.mxu0 %v16216_v4  ;;  %5684 = vmatpush1.bf16.msra.mxu1 %v16219_v5 }
 0x6bd   : > { %5603 = vmatprep.subr.bf16.mxu0 %v16224_v6  ;;  %5685 = vmatprep.subr.bf16.mxu1 %v16227_v7  ;;  %v17104_v6 = vld [vmem:[%s17895_s6] sm:$0xff] }
 0x6c0   : > { %5604 = vmatpush1.bf16.msra.mxu0 %v16222_v9  ;;  %5686 = vmatpush1.bf16.msra.mxu1 %v16225_v10 }
 0x6c1   : > { %5605 = vmatprep.subr.bf16.mxu0 %v16230_v11  ;;  %5687 = vmatprep.subr.bf16.mxu1 %v16233_v12  ;;  %v17105_v11 = vld [vmem:[%s17895_s6 + $0x8] sm:$0xff] }
 0x6c4   : > { %5606 = vmatpush1.bf16.msra.mxu0 %v16228_v14  ;;  %5688 = vmatpush1.bf16.msra.mxu1 %v16231_v15 }
 0x6c5   : > { %5607 = vmatprep.subr.bf16.mxu0 %v16236_v58  ;;  %5689 = vmatprep.subr.bf16.mxu1 %v16239_v16 }
 0x6c8   : > { %5608 = vmatpush1.bf16.msra.mxu0 %v16234_v35  ;;  %5690 = vmatpush1.bf16.msra.mxu1 %v16237_v17  ;;  %v17106_v35 = vld [vmem:[%s17895_s6 + $0x10] sm:$0xff] }
 0x6c9   : > { %5609 = vmatprep.subr.bf16.mxu0 %v16242_v18  ;;  %5691 = vmatprep.subr.bf16.mxu1 %v16245_v19  ;;  %v17107_v19 = vld [vmem:[%s17895_s6 + $0x18] sm:$0xff] }
 0x6cc   : > { %5610 = vmatpush1.bf16.msra.mxu0 %v16240_v20  ;;  %5692 = vmatpush1.bf16.msra.mxu1 %v16243_v21 }
 0x6cd   : > { %5611 = vmatprep.subr.bf16.mxu0 %v16248_v22  ;;  %5693 = vmatprep.subr.bf16.mxu1 %v16251_v23  ;;  %v5751_v23 = vld [vmem:[%s17864_s0] sm:$0xff] }
 0x6d0   : > { %5612 = vmatpush1.bf16.msra.mxu0 %v16246_v24  ;;  %5694 = vmatpush1.bf16.msra.mxu1 %v16249_v25  ;;  %v5759_v24 = vld [vmem:[%s17864_s0 + $0x40] sm:$0xff]  ;;  %v5752_v25 = vld [vmem:[%s17864_s0 + $0x8] sm:$0xff] }
 0x6d1   : > { %5613 = vmatprep.subr.bf16.mxu0 %v16254_v26  ;;  %5695 = vmatprep.subr.bf16.mxu1 %v16257_v27  ;;  %v14120_v26 = vcombine.low %v5751_v23, %v5759_v24  ;;  %v14121_v27 = vcombine.high %v5751_v23, %v5759_v24 }
 0x6d4   : > { %5614 = vmatpush1.bf16.msra.mxu0 %v16252_v28  ;;  %5696 = vmatpush1.bf16.msra.mxu1 %v16255_v29  ;;  %v5760_v28 = vld [vmem:[%s17864_s0 + $0x48] sm:$0xff]  ;;  %v5767_v29 = vld [vmem:[%s17864_s0 + $0x80] sm:$0xff] }
 0x6d5   : > { %5615 = vmatprep.subr.bf16.mxu0 %v16260_v30  ;;  %5697 = vmatprep.subr.bf16.mxu1 %v16263_v31  ;;  %v5775_v30 = vld [vmem:[%s17864_s0 + $0xc0] sm:$0xff]  ;;  %v14122_v31 = vcombine.low %v5752_v25, %v5760_v28 }
 0x6d8   : > { %5616 = vmatpush1.bf16.msra.mxu0 %v16258_v53  ;;  %5698 = vmatpush1.bf16.msra.mxu1 %v16261_v32  ;;  %v14123_v53 = vcombine.high %v5752_v25, %v5760_v28  ;;  %v14137_v32 = vcombine.high %v5767_v29, %v5775_v30  ;;  %v5879_v25 = vld [vmem:[%s17864_s0 + $0x400] sm:$0xff]  ;;  %v5888_v28 = vld [vmem:[%s17864_s0 + $0x448] sm:$0xff] }
 0x6d9   : > { %5617 = vmatprep.subr.bf16.mxu0 %v16266_v34  ;;  %5699 = vmatprep.subr.bf16.mxu1 %v16269_v36  ;;  %v5768_v34 = vld [vmem:[%s17864_s0 + $0x88] sm:$0xff] }
 0x6da   : > { %v5776_v36 = vld [vmem:[%s17864_s0 + $0xc8] sm:$0xff] }
 0x6dc   : > { %5618 = vmatpush1.bf16.msra.mxu0 %v16264_v57  ;;  %5700 = vmatpush1.bf16.msra.mxu1 %v16267_v37  ;;  %v5783_v57 = vld [vmem:[%s17864_s0 + $0x100] sm:$0xff]  ;;  %v14139_v37 = vcombine.high %v5768_v34, %v5776_v36 }
 0x6dd   : > { %5619 = vmatprep.subr.bf16.mxu0 %v16272_v38  ;;  %5701 = vmatprep.subr.bf16.mxu1 %v16275_v39  ;;  %v5791_v38 = vld [vmem:[%s17864_s0 + $0x140] sm:$0xff]  ;;  %v5784_v39 = vld [vmem:[%s17864_s0 + $0x108] sm:$0xff] }
 0x6e0   : > { %5620 = vmatpush1.bf16.msra.mxu0 %v16270_v40  ;;  %5702 = vmatpush1.bf16.msra.mxu1 %v16273_v13  ;;  %v5792_v40 = vld [vmem:[%s17864_s0 + $0x148] sm:$0xff]  ;;  %v14136_v13 = vcombine.low %v5767_v29, %v5775_v30 }
 0x6e1   : > { %5621 = vmatprep.subr.bf16.mxu0 %v16278_v41  ;;  %5703 = vmatprep.subr.bf16.mxu1 %v16281_v8  ;;  %v14138_v41 = vcombine.low %v5768_v34, %v5776_v36  ;;  %v14153_v8 = vcombine.high %v5783_v57, %v5791_v38  ;;  %v5903_v34 = vld [vmem:[%s17864_s0 + $0x4c0] sm:$0xff]  ;;  %v5896_v36 = vld [vmem:[%s17864_s0 + $0x488] sm:$0xff] }
 0x6e4   : > { %5622 = vmatpush1.bf16.msra.mxu0 %v16276_v42  ;;  %5704 = vmatpush1.bf16.msra.mxu1 %v16279_v49  ;;  %v14155_v42 = vcombine.high %v5784_v39, %v5792_v40  ;;  %v5799_v49 = vld [vmem:[%s17864_s0 + $0x180] sm:$0xff] }
 0x6e5   : > { %5623 = vmatprep.subr.bf16.mxu0 %v16284_v43  ;;  %5705 = vmatprep.subr.bf16.mxu1 %v16287_v33  ;;  %v4777_v56 = vpop.permute.xlu1 %4776  ;;  %v5807_v43 = vld [vmem:[%s17864_s0 + $0x1c0] sm:$0xff]  ;;  %v5800_v33 = vld [vmem:[%s17864_s0 + $0x188] sm:$0xff] }
 0x6e8   : > { %5624 = vmatpush1.bf16.msra.mxu0 %v16282_v44  ;;  %5706 = vmatpush1.bf16.msra.mxu1 %v16285_v45  ;;  %v5808_v44 = vld [vmem:[%s17864_s0 + $0x1c8] sm:$0xff]  ;;  %v14152_v45 = vcombine.low %v5783_v57, %v5791_v38 }
 0x6e9   : > { %5625 = vmatprep.subr.bf16.mxu0 %v16290_v46  ;;  %5707 = vmatprep.subr.bf16.mxu1 %v16293_v47  ;;  %v4771_v60 = vpop.permute.xlu1 %4770  ;;  %v14154_v46 = vcombine.low %v5784_v39, %v5792_v40  ;;  %v14169_v47 = vcombine.high %v5799_v49, %v5807_v43  ;;  %v5904_v57 = vld [vmem:[%s17864_s0 + $0x4c8] sm:$0xff] }
 0x6ea   : > { %v14267_v40 = vcombine.high %v5896_v36, %v5904_v57 }
 0x6ec   : > { %5626 = vmatpush1.bf16.msra.mxu0 %v16288_v48  ;;  %5708 = vmatpush1.bf16.msra.mxu1 %v16291_v50  ;;  %v14171_v48 = vcombine.high %v5800_v33, %v5808_v44  ;;  %v5815_v50 = vld [vmem:[%s17864_s0 + $0x200] sm:$0xff] }
 0x6ed   : > { %5627 = vmatprep.subr.bf16.mxu0 %v16296_v51  ;;  %5709 = vmatprep.subr.bf16.mxu1 %v16299_v52  ;;  %v5823_v51 = vld [vmem:[%s17864_s0 + $0x240] sm:$0xff]  ;;  %v5816_v52 = vld [vmem:[%s17864_s0 + $0x208] sm:$0xff] }
 0x6f0   : > { %5628 = vmatpush1.bf16.msra.mxu0 %v16294_v54  ;;  %5710 = vmatpush1.bf16.msra.mxu1 %v16297_v55  ;;  %v5824_v54 = vld [vmem:[%s17864_s0 + $0x248] sm:$0xff]  ;;  %v14168_v55 = vcombine.low %v5799_v49, %v5807_v43  ;;  %v14266_v43 = vcombine.low %v5896_v36, %v5904_v57 }
 0x6f1   : > { %8823 = vmatprep.subr.bf16.mxu0 %v14121_v27  ;;  %8905 = vmatprep.subr.bf16.mxu1 %v14123_v53  ;;  %v5880_v27 = vld [vmem:[%s17864_s0 + $0x408] sm:$0xff] }
 0x6f2   : > { %v14251_v53 = vcombine.high %v5880_v27, %v5888_v28  ;;  %v14250_v38 = vcombine.low %v5880_v27, %v5888_v28 }
 0x703   : > { %v4532_v59 = vpop.f32.mrb[24].mxu0 }
 0x704   : > { %4768 = vst.msk [vmem:[#allocation2 + $0x10] sm:$0xff] %vm3481_vm1, %v4532_v59  ;;  %v15253_v61 = vpop.f32.mrb[25].mxu0  ;;  %v14185_v59 = vcombine.high %v5815_v50, %v5823_v51 }
 0x705   : > { %4773 = vst.msk [vmem:[#allocation2 + $0x10] sm:$0xff] %vm4760_vm3, %v4771_v60  ;;  %v14187_v60 = vcombine.high %v5816_v52, %v5824_v54  ;;  %v5831_v61 = vld [vmem:[%s17864_s0 + $0x280] sm:$0xff] }
 0x707   : > { %v4678_v62 = vpop.f32.mrb[26].mxu0 }
 0x708   : > { %4774 = vst.msk [vmem:[#allocation2 + $0x18] sm:$0xff] %vm3481_vm1, %v4678_v62  ;;  %v15263_v63 = vpop.f32.mrb[27].mxu0  ;;  %v5839_v62 = vld [vmem:[%s17864_s0 + $0x2c0] sm:$0xff] }
 0x709   : > { %4779 = vst.msk [vmem:[#allocation2 + $0x18] sm:$0xff] %vm4760_vm3, %v4777_v56  ;;  %v14170_v56 = vcombine.low %v5800_v33, %v5808_v44  ;;  %v5832_v63 = vld [vmem:[%s17864_s0 + $0x288] sm:$0xff] }
 0x70c   : > { %v4782_v0 = vld [vmem:[#allocation2 + $0x10] sm:$0xff] }
 0x70d   : > { %v4786_v3 = vpack.c.bf16 %v4782_v0, %v4782_v0  ;;  %v5840_v0 = vld [vmem:[%s17864_s0 + $0x2c8] sm:$0xff] }
 0x710   : > { %v4783_v1 = vld [vmem:[#allocation2 + $0x18] sm:$0xff] }
 0x711   : > { %v4787_v2 = vpack.c.bf16 %v4783_v1, %v4783_v1  ;;  %v14184_v1 = vcombine.low %v5815_v50, %v5823_v51 }
 0x713   : > { %5629 = vmatprep.mubr.bf16.mxu0 %v4787_v2  ;;  %5711 = vmatprep.mubr.bf16.mxu1 %v4787_v2  ;;  %v14186_v2 = vcombine.low %v5816_v52, %v5824_v54 }
 0x714   : > { %5630 = vmatmul.mubr.bf16.vlgmr.msra.gmra.mrb[28].mxu0 %v4786_v3  ;;  %5712 = vmatmul.mubr.bf16.vlgmr.msra.gmra.mrb[28].mxu1 %v4786_v3  ;;  %v14201_v3 = vcombine.high %v5831_v61, %v5839_v62 }
 0x715   : > { %8824 = vmatpush1.bf16.msra.mxu0 %v14120_v26  ;;  %8906 = vmatpush1.bf16.msra.mxu1 %v14122_v31  ;;  %v5887_v26 = vld [vmem:[%s17864_s0 + $0x440] sm:$0xff] }
 0x716   : > { %8825 = vmatprep.subr.bf16.mxu0 %v14137_v32  ;;  %8907 = vmatprep.subr.bf16.mxu1 %v14139_v37  ;;  %v14249_v31 = vcombine.high %v5879_v25, %v5887_v26  ;;  %v5895_v32 = vld [vmem:[%s17864_s0 + $0x480] sm:$0xff]  ;;  %v14248_v37 = vcombine.low %v5879_v25, %v5887_v26  ;;  %v5984_v25 = vld [vmem:[%s17864_s0 + $0x748] sm:$0xff] }
 0x717   : > { %v14265_v39 = vcombine.high %v5895_v32, %v5903_v34  ;;  %v14264_v49 = vcombine.low %v5895_v32, %v5903_v34  ;;  %v6000_v32 = vld [vmem:[%s17864_s0 + $0x7c8] sm:$0xff] }
 0x719   : > { %8826 = vmatpush1.bf16.msra.mxu0 %v14136_v13  ;;  %8908 = vmatpush1.bf16.msra.mxu1 %v14138_v41  ;;  %v5911_v13 = vld [vmem:[%s17864_s0 + $0x500] sm:$0xff] }
 0x71a   : > { %8827 = vmatprep.subr.bf16.mxu0 %v14153_v8  ;;  %8909 = vmatprep.subr.bf16.mxu1 %v14155_v42  ;;  %v5919_v41 = vld [vmem:[%s17864_s0 + $0x540] sm:$0xff]  ;;  %v5912_v8 = vld [vmem:[%s17864_s0 + $0x508] sm:$0xff] }
 0x71b   : > { %v5920_v42 = vld [vmem:[%s17864_s0 + $0x548] sm:$0xff]  ;;  %v14281_v33 = vcombine.high %v5911_v13, %v5919_v41  ;;  %v14280_v50 = vcombine.low %v5911_v13, %v5919_v41  ;;  %v6015_v13 = vld [vmem:[%s17864_s0 + $0x840] sm:$0xff] }
 0x71c   : > { %v14283_v44 = vcombine.high %v5912_v8, %v5920_v42  ;;  %v14282_v51 = vcombine.low %v5912_v8, %v5920_v42  ;;  %v6008_v41 = vld [vmem:[%s17864_s0 + $0x808] sm:$0xff] }
 0x71d   : > { %8828 = vmatpush1.bf16.msra.mxu0 %v14152_v45  ;;  %8910 = vmatpush1.bf16.msra.mxu1 %v14154_v46  ;;  %v5927_v45 = vld [vmem:[%s17864_s0 + $0x580] sm:$0xff] }
 0x71e   : > { %8829 = vmatprep.subr.bf16.mxu0 %v14169_v47  ;;  %8911 = vmatprep.subr.bf16.mxu1 %v14171_v48  ;;  %v5935_v46 = vld [vmem:[%s17864_s0 + $0x5c0] sm:$0xff]  ;;  %v5928_v47 = vld [vmem:[%s17864_s0 + $0x588] sm:$0xff] }
 0x71f   : > { %v5936_v48 = vld [vmem:[%s17864_s0 + $0x5c8] sm:$0xff]  ;;  %v14297_v52 = vcombine.high %v5927_v45, %v5935_v46 }
 0x720   : > { %v14299_v54 = vcombine.high %v5928_v47, %v5936_v48 }
 0x721   : > { %8830 = vmatpush1.bf16.msra.mxu0 %v14168_v55  ;;  %8912 = vmatpush1.bf16.msra.mxu1 %v14170_v56  ;;  %v14296_v55 = vcombine.low %v5927_v45, %v5935_v46  ;;  %v14298_v56 = vcombine.low %v5928_v47, %v5936_v48 }
 0x722   : > { %8831 = vmatprep.subr.bf16.mxu0 %v14185_v59  ;;  %8913 = vmatprep.subr.bf16.mxu1 %v14187_v60 }
 0x725   : > { %8832 = vmatpush1.bf16.msra.mxu0 %v14184_v1  ;;  %8914 = vmatpush1.bf16.msra.mxu1 %v14186_v2 }
 0x726   : > { %8833 = vmatprep.subr.bf16.mxu0 %v14201_v3 }
 0x7e7   : > { %v5631_v4 = vpop.f32.mrb[28].mxu0  ;;  %v5713_v5 = vpop.f32.mrb[28].mxu1 }
 0x7e8   : > { %v18638_v7 = vadd.f32 %v17104_v6, %v5631_v4  ;;  %v5633_v9 = vpop.f32.mrb[29].mxu0  ;;  %v5715_v10 = vpop.f32.mrb[29].mxu1  ;;  %v18644_v17 = vadd.f32 %v17106_v35, %v5713_v5  ;;  %v14203_v4 = vcombine.high %v5832_v63, %v5840_v0  ;;  %v5847_v5 = vld [vmem:[%s17864_s0 + $0x300] sm:$0xff] }
 0x7e9   : > { %v18641_v12 = vadd.f32 %v17105_v11, %v5633_v9  ;;  %v5635_v14 = vpop.f32.mrb[30].mxu0  ;;  %v5717_v15 = vpop.f32.mrb[30].mxu1  ;;  %v18649_v20 = vadd.f32 %v17107_v19, %v5715_v10  ;;  %v5855_v6 = vld [vmem:[%s17864_s0 + $0x340] sm:$0xff]  ;;  %v5848_v9 = vld [vmem:[%s17864_s0 + $0x308] sm:$0xff]  ;;  %v14200_v11 = vcombine.low %v5831_v61, %v5839_v62 }
 0x7ea   : > { %v5636_v58 = vpop.f32.mrb[31].mxu0  ;;  %v5718_v16 = vpop.f32.mrb[31].mxu1  ;;  %v5856_v10 = vld [vmem:[%s17864_s0 + $0x348] sm:$0xff]  ;;  %v14202_v14 = vcombine.low %v5832_v63, %v5840_v0  ;;  %v14217_v15 = vcombine.high %v5847_v5, %v5855_v6  ;;  %8915 = vmatprep.subr.bf16.mxu1 %v14203_v4  ;;  %v5871_v35 = vld [vmem:[%s17864_s0 + $0x3c0] sm:$0xff] }
 0x7eb   : > { %v5720_v18 = vadd.f32 %v18641_v12, %v18638_v7  ;;  %v14219_v58 = vcombine.high %v5848_v9, %v5856_v10  ;;  %v5863_v16 = vld [vmem:[%s17864_s0 + $0x380] sm:$0xff]  ;;  %v5872_v19 = vld [vmem:[%s17864_s0 + $0x3c8] sm:$0xff]  ;;  %8834 = vmatpush1.bf16.msra.mxu0 %v14200_v11 }
 0x7ec   : > { %8916 = vmatpush1.bf16.msra.mxu1 %v14202_v14  ;;  %8835 = vmatprep.subr.bf16.mxu0 %v14217_v15  ;;  %v14233_v23 = vcombine.high %v5863_v16, %v5871_v35  ;;  %v14232_v29 = vcombine.low %v5863_v16, %v5871_v35  ;;  %v5943_v4 = vld [vmem:[%s17864_s0 + $0x600] sm:$0xff]  ;;  %v5952_v11 = vld [vmem:[%s17864_s0 + $0x648] sm:$0xff] }
 0x7ed   : > { %v5721_v21 = vadd.f32 %v18644_v17, %v5720_v18  ;;  %v5864_v18 = vld [vmem:[%s17864_s0 + $0x388] sm:$0xff]  ;;  %8917 = vmatprep.subr.bf16.mxu1 %v14219_v58  ;;  %v5959_v14 = vld [vmem:[%s17864_s0 + $0x680] sm:$0xff] }
 0x7ee   : > { %v14235_v24 = vcombine.high %v5864_v18, %v5872_v19  ;;  %v14234_v30 = vcombine.low %v5864_v18, %v5872_v19  ;;  %v5967_v15 = vld [vmem:[%s17864_s0 + $0x6c0] sm:$0xff]  ;;  %v5960_v18 = vld [vmem:[%s17864_s0 + $0x688] sm:$0xff] }
 0x7ef   : > { %v5722_v22 = vadd.f32 %v18649_v20, %v5721_v21  ;;  %v14216_v21 = vcombine.low %v5847_v5, %v5855_v6  ;;  %v5951_v5 = vld [vmem:[%s17864_s0 + $0x640] sm:$0xff]  ;;  %v5944_v6 = vld [vmem:[%s17864_s0 + $0x608] sm:$0xff]  ;;  %v14329_v35 = vcombine.high %v5959_v14, %v5967_v15  ;;  %v14328_v26 = vcombine.low %v5959_v14, %v5967_v15 }
 0x7f0   : > { %v14314_v58 = vcombine.low %v5944_v6, %v5952_v11  ;;  %v14315_v16 = vcombine.high %v5944_v6, %v5952_v11  ;;  %v5968_v19 = vld [vmem:[%s17864_s0 + $0x6c8] sm:$0xff]  ;;  %v6063_v6 = vld [vmem:[%s17864_s0 + $0x9c0] sm:$0xff] }
 0x7f1   : > { %5723 = vadd.xlane.f32.xlu0 %v5722_v22  ;;  %v14218_v22 = vcombine.low %v5848_v9, %v5856_v10  ;;  %8836 = vmatpush1.bf16.msra.mxu0 %v14216_v21  ;;  %v14312_v9 = vcombine.low %v5943_v4, %v5951_v5  ;;  %v14313_v10 = vcombine.high %v5943_v4, %v5951_v5  ;;  %v5975_v21 = vld [vmem:[%s17864_s0 + $0x700] sm:$0xff] }
 0x7f2   : > { %8837 = vmatprep.subr.bf16.mxu0 %v14233_v23  ;;  %v5983_v23 = vld [vmem:[%s17864_s0 + $0x740] sm:$0xff]  ;;  %v14330_v27 = vcombine.low %v5960_v18, %v5968_v19 }
 0x7f3   : > { %8918 = vmatpush1.bf16.msra.mxu1 %v14218_v22  ;;  %v14331_v22 = vcombine.high %v5960_v18, %v5968_v19  ;;  %v14345_v28 = vcombine.high %v5975_v21, %v5983_v23  ;;  %v14344_v34 = vcombine.low %v5975_v21, %v5983_v23  ;;  %v6055_v5 = vld [vmem:[%s17864_s0 + $0x980] sm:$0xff]  ;;  %v6072_v18 = vld [vmem:[%s17864_s0 + $0xa08] sm:$0xff] }
 0x7f4   : > { %8919 = vmatprep.subr.bf16.mxu1 %v14235_v24  ;;  %v5976_v24 = vld [vmem:[%s17864_s0 + $0x708] sm:$0xff]  ;;  %v14425_v15 = vcombine.high %v6055_v5, %v6063_v6  ;;  %v14424_v21 = vcombine.low %v6055_v5, %v6063_v6  ;;  %v6167_v5 = vld [vmem:[%s17864_s0 + $0xd00] sm:$0xff] }
 0x7f5   : > { %8838 = vmatpush1.bf16.msra.mxu0 %v14232_v29  ;;  %v14347_v29 = vcombine.high %v5976_v24, %v5984_v25  ;;  %v14346_v36 = vcombine.low %v5976_v24, %v5984_v25  ;;  %v6080_v19 = vld [vmem:[%s17864_s0 + $0xa48] sm:$0xff]  ;;  %v6087_v25 = vld [vmem:[%s17864_s0 + $0xa80] sm:$0xff] }
 0x7f6   : > { %8839 = vmatprep.subr.bf16.mxu0 %v14249_v31  ;;  %v5999_v31 = vld [vmem:[%s17864_s0 + $0x7c0] sm:$0xff]  ;;  %v14443_v24 = vcombine.high %v6072_v18, %v6080_v19 }
 0x7f7   : > { %8920 = vmatpush1.bf16.msra.mxu1 %v14234_v30  ;;  %v5991_v30 = vld [vmem:[%s17864_s0 + $0x780] sm:$0xff] }
 0x7f8   : > { %8921 = vmatprep.subr.bf16.mxu1 %v14251_v53  ;;  %v5992_v53 = vld [vmem:[%s17864_s0 + $0x788] sm:$0xff]  ;;  %v14361_v57 = vcombine.high %v5991_v30, %v5999_v31  ;;  %v6175_v6 = vld [vmem:[%s17864_s0 + $0xd40] sm:$0xff] }
 0x7f9   : > { %8840 = vmatpush1.bf16.msra.mxu0 %v14248_v37  ;;  %v14363_v37 = vcombine.high %v5992_v53, %v6000_v32 }
 0x7fa   : > { %8841 = vmatprep.subr.bf16.mxu0 %v14265_v39  ;;  %v14362_v39 = vcombine.low %v5992_v53, %v6000_v32  ;;  %v6103_v32 = vld [vmem:[%s17864_s0 + $0xb00] sm:$0xff] }
 0x7fb   : > { %8922 = vmatpush1.bf16.msra.mxu1 %v14250_v38  ;;  %v14360_v38 = vcombine.low %v5991_v30, %v5999_v31  ;;  %v14442_v30 = vcombine.low %v6072_v18, %v6080_v19  ;;  %v6184_v18 = vld [vmem:[%s17864_s0 + $0xd88] sm:$0xff] }
 0x7fc   : > { %8923 = vmatprep.subr.bf16.mxu1 %v14267_v40  ;;  %v6007_v40 = vld [vmem:[%s17864_s0 + $0x800] sm:$0xff]  ;;  %v6192_v19 = vld [vmem:[%s17864_s0 + $0xdc8] sm:$0xff] }
 0x7fd   : > { %8842 = vmatpush1.bf16.msra.mxu0 %v14264_v49  ;;  %v14376_v8 = vcombine.low %v6007_v40, %v6015_v13  ;;  %v14377_v42 = vcombine.high %v6007_v40, %v6015_v13  ;;  %v6016_v49 = vld [vmem:[%s17864_s0 + $0x848] sm:$0xff]  ;;  %v6119_v13 = vld [vmem:[%s17864_s0 + $0xb80] sm:$0xff] }
 0x7fe   : > { %8843 = vmatprep.subr.bf16.mxu0 %v14281_v33  ;;  %v14379_v33 = vcombine.high %v6008_v41, %v6016_v49 }
 0x7ff   : > { %8924 = vmatpush1.bf16.msra.mxu1 %v14266_v43  ;;  %v14378_v43 = vcombine.low %v6008_v41, %v6016_v49  ;;  %v6127_v41 = vld [vmem:[%s17864_s0 + $0xbc0] sm:$0xff] }
 0x800   : > { %8925 = vmatprep.subr.bf16.mxu1 %v14283_v44 }
 0x801   : > { %8844 = vmatpush1.bf16.msra.mxu0 %v14280_v50 }
 0x802   : > { %8845 = vmatprep.subr.bf16.mxu0 %v14297_v52 }
 0x803   : > { %8926 = vmatpush1.bf16.msra.mxu1 %v14282_v51  ;;  %v6023_v51 = vld [vmem:[%s17864_s0 + $0x880] sm:$0xff] }
 0x804   : > { %8927 = vmatprep.subr.bf16.mxu1 %v14299_v54  ;;  %v6031_v54 = vld [vmem:[%s17864_s0 + $0x8c0] sm:$0xff] }
 0x805   : > { %8846 = vmatpush1.bf16.msra.mxu0 %v14296_v55  ;;  %v6024_v55 = vld [vmem:[%s17864_s0 + $0x888] sm:$0xff] }
 0x806   : > { %8847 = vmatprep.subr.bf16.mxu0 %v14313_v10  ;;  %v6064_v10 = vld [vmem:[%s17864_s0 + $0x9c8] sm:$0xff] }
 0x807   : > { %8928 = vmatpush1.bf16.msra.mxu1 %v14298_v56  ;;  %v6032_v56 = vld [vmem:[%s17864_s0 + $0x8c8] sm:$0xff] }
 0x808   : > { %8929 = vmatprep.subr.bf16.mxu1 %v14315_v16  ;;  %v6071_v16 = vld [vmem:[%s17864_s0 + $0xa00] sm:$0xff] }
 0x809   : > { %8848 = vmatpush1.bf16.msra.mxu0 %v14312_v9  ;;  %v6056_v9 = vld [vmem:[%s17864_s0 + $0x988] sm:$0xff] }
 0x80a   : > { %8849 = vmatprep.subr.bf16.mxu0 %v14329_v35  ;;  %v6079_v35 = vld [vmem:[%s17864_s0 + $0xa40] sm:$0xff] }
 0x80b   : > { %8930 = vmatpush1.bf16.msra.mxu1 %v14314_v58  ;;  %v14427_v58 = vcombine.high %v6056_v9, %v6064_v10  ;;  %v14441_v23 = vcombine.high %v6071_v16, %v6079_v35 }
 0x80c   : > { %8931 = vmatprep.subr.bf16.mxu1 %v14331_v22  ;;  %v14426_v22 = vcombine.low %v6056_v9, %v6064_v10  ;;  %v6168_v9 = vld [vmem:[%s17864_s0 + $0xd08] sm:$0xff] }
 0x80d   : > { %8850 = vmatpush1.bf16.msra.mxu0 %v14328_v26  ;;  %v6095_v26 = vld [vmem:[%s17864_s0 + $0xac0] sm:$0xff]  ;;  %v6176_v10 = vld [vmem:[%s17864_s0 + $0xd48] sm:$0xff] }
 0x80e   : > { %8851 = vmatprep.subr.bf16.mxu0 %v14345_v28  ;;  %v6096_v28 = vld [vmem:[%s17864_s0 + $0xac8] sm:$0xff]  ;;  %v14457_v31 = vcombine.high %v6087_v25, %v6095_v26 }
 0x80f   : > { %8932 = vmatpush1.bf16.msra.mxu1 %v14330_v27  ;;  %v6088_v27 = vld [vmem:[%s17864_s0 + $0xa88] sm:$0xff] }
 0x810   : > { %8933 = vmatprep.subr.bf16.mxu1 %v14347_v29  ;;  %v14440_v29 = vcombine.low %v6071_v16, %v6079_v35  ;;  %v14459_v53 = vcombine.high %v6088_v27, %v6096_v28  ;;  %v6183_v16 = vld [vmem:[%s17864_s0 + $0xd80] sm:$0xff] }
 0x811   : > { %8852 = vmatpush1.bf16.msra.mxu0 %v14344_v34  ;;  %v6111_v34 = vld [vmem:[%s17864_s0 + $0xb40] sm:$0xff] }
 0x812   : > { %8853 = vmatprep.subr.bf16.mxu0 %v14361_v57  ;;  %v6112_v57 = vld [vmem:[%s17864_s0 + $0xb48] sm:$0xff]  ;;  %v14472_v49 = vcombine.low %v6103_v32, %v6111_v34  ;;  %v6191_v35 = vld [vmem:[%s17864_s0 + $0xdc0] sm:$0xff] }
 0x813   : > { %8934 = vmatpush1.bf16.msra.mxu1 %v14346_v36  ;;  %v6104_v36 = vld [vmem:[%s17864_s0 + $0xb08] sm:$0xff] }
 0x814   : > { %8935 = vmatprep.subr.bf16.mxu1 %v14363_v37  ;;  %v14456_v37 = vcombine.low %v6087_v25, %v6095_v26  ;;  %v14475_v40 = vcombine.high %v6104_v36, %v6112_v57  ;;  %v6199_v25 = vld [vmem:[%s17864_s0 + $0xe00] sm:$0xff] }
 0x815   : > { %8854 = vmatpush1.bf16.msra.mxu0 %v14360_v38  ;;  %v14458_v38 = vcombine.low %v6088_v27, %v6096_v28  ;;  %v6207_v26 = vld [vmem:[%s17864_s0 + $0xe40] sm:$0xff]  ;;  %v6200_v27 = vld [vmem:[%s17864_s0 + $0xe08] sm:$0xff] }
 0x816   : > { %8864 = vmatprep.subr.bf16.mxu0 %v14377_v42  ;;  %v6128_v42 = vld [vmem:[%s17864_s0 + $0xbc8] sm:$0xff] }
 0x817   : > { %8936 = vmatpush1.bf16.msra.mxu1 %v14362_v39  ;;  %v14473_v39 = vcombine.high %v6103_v32, %v6111_v34  ;;  %v6208_v28 = vld [vmem:[%s17864_s0 + $0xe48] sm:$0xff]  ;;  %v6215_v32 = vld [vmem:[%s17864_s0 + $0xe80] sm:$0xff] }
 0x818   : > { %8946 = vmatprep.subr.bf16.mxu1 %v14379_v33  ;;  %v14489_v33 = vcombine.high %v6119_v13, %v6127_v41  ;;  %v6223_v34 = vld [vmem:[%s17864_s0 + $0xec0] sm:$0xff] }
 0x87e   : > { %v5724_v59 = vpop.xlane.xlu0 %5723 }
 0x87f   : > { %v5726_v60 = vmul.f32 0.001953125, %v5724_v59 }
 0x881   : > { %v18702_v61 = vsub.f32 %v18638_v7, %v5726_v60  ;;  %v18705_v62 = vsub.f32 %v18641_v12, %v5726_v60  ;;  %v18708_v63 = vsub.f32 %v18644_v17, %v5726_v60  ;;  %v18711_v0 = vsub.f32 %v18649_v20, %v5726_v60 }
 0x883   : > { %v5731_v1 = vmul.f32 %v18702_v61, %v18702_v61  ;;  %v5732_v2 = vmul.f32 %v18705_v62, %v18705_v62  ;;  %v5733_v7 = vmul.f32 %v18708_v63, %v18708_v63  ;;  %v5734_v17 = vmul.f32 %v18711_v0, %v18711_v0 }
 0x885   : > { %v5735_v12 = vadd.f32 %v5732_v2, %v5731_v1  ;;  %v6047_v1 = vld [vmem:[%s17864_s0 + $0x940] sm:$0xff]  ;;  %v6040_v2 = vld [vmem:[%s17864_s0 + $0x908] sm:$0xff] }
 0x887   : > { %v5736_v3 = vadd.f32 %v5735_v12, %v5733_v7  ;;  %v6048_v7 = vld [vmem:[%s17864_s0 + $0x948] sm:$0xff] }
 0x888   : > { %v14411_v4 = vcombine.high %v6040_v2, %v6048_v7  ;;  %v14410_v14 = vcombine.low %v6040_v2, %v6048_v7  ;;  %v6152_v2 = vld [vmem:[%s17864_s0 + $0xc88] sm:$0xff] }
 0x889   : > { %v5737_v20 = vadd.f32 %v5736_v3, %v5734_v17  ;;  %v14392_v17 = vcombine.low %v6023_v51, %v6031_v54  ;;  %v14394_v3 = vcombine.low %v6024_v55, %v6032_v56  ;;  %v6160_v7 = vld [vmem:[%s17864_s0 + $0xcc8] sm:$0xff] }
 0x88b   : > { %5738 = vadd.xlane.f32.xlu1 %v5737_v20 }
 0x918   : > { %v5739_v44 = vpop.xlane.xlu1 %5738 }
 0x919   : > { %v5740_v45 = vmul.f32 0.001953125, %v5739_v44 }
 0x91b   : > { %v5741_v46 = vadd.f32 1e-05, %v5740_v45  ;;  %v6135_v45 = vld [vmem:[%s17864_s0 + $0xc00] sm:$0xff] }
 0x91d   : > { %17100 = vrsqrt.f32 %v5741_v46  ;;  %v6143_v46 = vld [vmem:[%s17864_s0 + $0xc40] sm:$0xff] }
 0x927   : > { %v18741_v47 = vpop.eup %17100 }
 0x928   : > { %v18745_v48 = vmul.f32 %v18741_v47, %v18705_v62  ;;  %v18749_v50 = vmul.f32 %v18741_v47, %v18702_v61  ;;  %v18754_v52 = vmul.f32 %v18741_v47, %v18711_v0  ;;  %v6039_v62 = vld [vmem:[%s17864_s0 + $0x900] sm:$0xff]  ;;  %v14393_v61 = vcombine.high %v6023_v51, %v6031_v54  ;;  %v6136_v51 = vld [vmem:[%s17864_s0 + $0xc08] sm:$0xff] }
 0x929   : > { %v14395_v0 = vcombine.high %v6024_v55, %v6032_v56  ;;  %v14409_v20 = vcombine.high %v6039_v62, %v6047_v1  ;;  %v14408_v11 = vcombine.low %v6039_v62, %v6047_v1  ;;  %v6144_v54 = vld [vmem:[%s17864_s0 + $0xc48] sm:$0xff]  ;;  %v14488_v55 = vcombine.low %v6119_v13, %v6127_v41  ;;  %v6159_v1 = vld [vmem:[%s17864_s0 + $0xcc0] sm:$0xff] }
 0x92a   : > { %v18761_v59 = vpack.c.bf16 %v18745_v48, %v18745_v48  ;;  %v18765_v60 = vpack.c.bf16 %v18749_v50, %v18749_v50  ;;  %v18777_v12 = vpack.c.bf16 %v18754_v52, %v18754_v52  ;;  %v14505_v62 = vcombine.high %v6135_v45, %v6143_v46  ;;  %v6231_v13 = vld [vmem:[%s17864_s0 + $0xf00] sm:$0xff] }
 0x92b   : > { %v6239_v41 = vld [vmem:[%s17864_s0 + $0xf40] sm:$0xff] }
 0x92c   : > { %8855 = vmatprep.mubr.bf16.mxu0 %v18761_v59  ;;  %8937 = vmatprep.mubr.bf16.mxu1 %v18761_v59 }
 0x92d   : > { %8856 = vmatmul.mubr.bf16.vlgmr.msra.gmra.mrb[32].mxu0 %v18765_v60  ;;  %8938 = vmatmul.mubr.bf16.vlgmr.msra.gmra.mrb[32].mxu1 %v18765_v60 }
 0x92e   : > { %8865 = vmatpush1.bf16.msra.mxu0 %v14376_v8  ;;  %8947 = vmatpush1.bf16.msra.mxu1 %v14378_v43  ;;  %v6120_v8 = vld [vmem:[%s17864_s0 + $0xb88] sm:$0xff]  ;;  %v14474_v43 = vcombine.low %v6104_v36, %v6112_v57 }
 0x92f   : > { %8896 = vmatprep.mubr.bf16.mxu0 %v18777_v12  ;;  %8978 = vmatprep.mubr.bf16.mxu1 %v18777_v12  ;;  %v14491_v44 = vcombine.high %v6120_v8, %v6128_v42  ;;  %v14490_v56 = vcombine.low %v6120_v8, %v6128_v42  ;;  %v6216_v36 = vld [vmem:[%s17864_s0 + $0xe88] sm:$0xff] }
 0x930   : > { %8866 = vmatprep.subr.bf16.mxu0 %v14393_v61  ;;  %8948 = vmatprep.subr.bf16.mxu1 %v14395_v0  ;;  %v14507_v61 = vcombine.high %v6136_v51, %v6144_v54  ;;  %v6151_v0 = vld [vmem:[%s17864_s0 + $0xc80] sm:$0xff]  ;;  %v6224_v57 = vld [vmem:[%s17864_s0 + $0xec8] sm:$0xff] }
 0x931   : > { %v6232_v8 = vld [vmem:[%s17864_s0 + $0xf08] sm:$0xff] }
 0x932   : > { %8867 = vmatpush1.bf16.msra.mxu0 %v14392_v17  ;;  %8949 = vmatpush1.bf16.msra.mxu1 %v14394_v3  ;;  %v14504_v17 = vcombine.low %v6135_v45, %v6143_v46  ;;  %v14506_v3 = vcombine.low %v6136_v51, %v6144_v54  ;;  %v6240_v42 = vld [vmem:[%s17864_s0 + $0xf48] sm:$0xff]  ;;  %v6247_v45 = vld [vmem:[%s17864_s0 + $0xf80] sm:$0xff] }
 0x933   : > { %8868 = vmatprep.subr.bf16.mxu0 %v14409_v20  ;;  %8950 = vmatprep.subr.bf16.mxu1 %v14411_v4  ;;  %v14521_v20 = vcombine.high %v6151_v0, %v6159_v1  ;;  %v14523_v4 = vcombine.high %v6152_v2, %v6160_v7  ;;  %v6255_v46 = vld [vmem:[%s17864_s0 + $0xfc0] sm:$0xff]  ;;  %v6248_v51 = vld [vmem:[%s17864_s0 + $0xf88] sm:$0xff] }
 0x934   : > { %v6256_v54 = vld [vmem:[%s17864_s0 + $0xfc8] sm:$0xff] }
 0x936   : > { %8869 = vmatpush1.bf16.msra.mxu0 %v14408_v11  ;;  %8951 = vmatpush1.bf16.msra.mxu1 %v14410_v14  ;;  %v14520_v11 = vcombine.low %v6151_v0, %v6159_v1  ;;  %v14522_v14 = vcombine.low %v6152_v2, %v6160_v7  ;;  %v5753_v0 = vld [vmem:[%s17864_s0 + $0x10] sm:$0xff]  ;;  %v5754_v2 = vld [vmem:[%s17864_s0 + $0x18] sm:$0xff] }
 0x937   : > { %8870 = vmatprep.subr.bf16.mxu0 %v14425_v15  ;;  %8952 = vmatprep.subr.bf16.mxu1 %v14427_v58  ;;  %v14537_v15 = vcombine.high %v6167_v5, %v6175_v6  ;;  %v14539_v58 = vcombine.high %v6168_v9, %v6176_v10  ;;  %v5761_v1 = vld [vmem:[%s17864_s0 + $0x50] sm:$0xff]  ;;  %v5762_v7 = vld [vmem:[%s17864_s0 + $0x58] sm:$0xff] }
 0x93a   : > { %8871 = vmatpush1.bf16.msra.mxu0 %v14424_v21  ;;  %8953 = vmatpush1.bf16.msra.mxu1 %v14426_v22  ;;  %v14536_v21 = vcombine.low %v6167_v5, %v6175_v6  ;;  %v14538_v22 = vcombine.low %v6168_v9, %v6176_v10  ;;  %v14127_v5 = vcombine.high %v5754_v2, %v5762_v7  ;;  %v5769_v6 = vld [vmem:[%s17864_s0 + $0x90] sm:$0xff]  ;;  %v5770_v10 = vld [vmem:[%s17864_s0 + $0x98] sm:$0xff] }
 0x93b   : > { %8872 = vmatprep.subr.bf16.mxu0 %v14441_v23  ;;  %8954 = vmatprep.subr.bf16.mxu1 %v14443_v24  ;;  %v14553_v23 = vcombine.high %v6183_v16, %v6191_v35  ;;  %v14555_v24 = vcombine.high %v6184_v18, %v6192_v19  ;;  %v5777_v9 = vld [vmem:[%s17864_s0 + $0xd0] sm:$0xff] }
 0x93e   : > { %8873 = vmatpush1.bf16.msra.mxu0 %v14440_v29  ;;  %8955 = vmatpush1.bf16.msra.mxu1 %v14442_v30  ;;  %v14552_v29 = vcombine.low %v6183_v16, %v6191_v35  ;;  %v14554_v30 = vcombine.low %v6184_v18, %v6192_v19  ;;  %v5785_v16 = vld [vmem:[%s17864_s0 + $0x110] sm:$0xff]  ;;  %v5786_v18 = vld [vmem:[%s17864_s0 + $0x118] sm:$0xff] }
 0x93f   : > { %8874 = vmatprep.subr.bf16.mxu0 %v14457_v31  ;;  %8956 = vmatprep.subr.bf16.mxu1 %v14459_v53  ;;  %v14569_v31 = vcombine.high %v6199_v25, %v6207_v26  ;;  %v14571_v53 = vcombine.high %v6200_v27, %v6208_v28  ;;  %v5793_v35 = vld [vmem:[%s17864_s0 + $0x150] sm:$0xff]  ;;  %v5794_v19 = vld [vmem:[%s17864_s0 + $0x158] sm:$0xff] }
 0x942   : > { %8875 = vmatpush1.bf16.msra.mxu0 %v14456_v37  ;;  %8957 = vmatpush1.bf16.msra.mxu1 %v14458_v38  ;;  %v14568_v37 = vcombine.low %v6199_v25, %v6207_v26  ;;  %v14570_v38 = vcombine.low %v6200_v27, %v6208_v28  ;;  %v5801_v25 = vld [vmem:[%s17864_s0 + $0x190] sm:$0xff]  ;;  %v5802_v27 = vld [vmem:[%s17864_s0 + $0x198] sm:$0xff] }
 0x943   : > { %8876 = vmatprep.subr.bf16.mxu0 %v14473_v39  ;;  %8958 = vmatprep.subr.bf16.mxu1 %v14475_v40  ;;  %v14585_v39 = vcombine.high %v6215_v32, %v6223_v34  ;;  %v14587_v40 = vcombine.high %v6216_v36, %v6224_v57  ;;  %v5809_v26 = vld [vmem:[%s17864_s0 + $0x1d0] sm:$0xff]  ;;  %v5810_v28 = vld [vmem:[%s17864_s0 + $0x1d8] sm:$0xff] }
 0x946   : > { %8877 = vmatpush1.bf16.msra.mxu0 %v14472_v49  ;;  %8959 = vmatpush1.bf16.msra.mxu1 %v14474_v43  ;;  %v14584_v49 = vcombine.low %v6215_v32, %v6223_v34  ;;  %v14586_v43 = vcombine.low %v6216_v36, %v6224_v57  ;;  %v5817_v32 = vld [vmem:[%s17864_s0 + $0x210] sm:$0xff]  ;;  %v5818_v36 = vld [vmem:[%s17864_s0 + $0x218] sm:$0xff] }
 0x947   : > { %8878 = vmatprep.subr.bf16.mxu0 %v14489_v33  ;;  %8960 = vmatprep.subr.bf16.mxu1 %v14491_v44  ;;  %v14601_v33 = vcombine.high %v6231_v13, %v6239_v41  ;;  %v14603_v44 = vcombine.high %v6232_v8, %v6240_v42  ;;  %v5825_v34 = vld [vmem:[%s17864_s0 + $0x250] sm:$0xff]  ;;  %v5826_v57 = vld [vmem:[%s17864_s0 + $0x258] sm:$0xff] }
 0x94a   : > { %8879 = vmatpush1.bf16.msra.mxu0 %v14488_v55  ;;  %8961 = vmatpush1.bf16.msra.mxu1 %v14490_v56  ;;  %v14600_v55 = vcombine.low %v6231_v13, %v6239_v41  ;;  %v14602_v56 = vcombine.low %v6232_v8, %v6240_v42  ;;  %v5833_v13 = vld [vmem:[%s17864_s0 + $0x290] sm:$0xff]  ;;  %v5834_v8 = vld [vmem:[%s17864_s0 + $0x298] sm:$0xff] }
 0x94b   : > { %8880 = vmatprep.subr.bf16.mxu0 %v14505_v62  ;;  %8962 = vmatprep.subr.bf16.mxu1 %v14507_v61  ;;  %v14617_v62 = vcombine.high %v6247_v45, %v6255_v46  ;;  %v14619_v61 = vcombine.high %v6248_v51, %v6256_v54  ;;  %v5841_v41 = vld [vmem:[%s17864_s0 + $0x2d0] sm:$0xff]  ;;  %v5842_v42 = vld [vmem:[%s17864_s0 + $0x2d8] sm:$0xff] }
 0x94e   : > { %8881 = vmatpush1.bf16.msra.mxu0 %v14504_v17  ;;  %8963 = vmatpush1.bf16.msra.mxu1 %v14506_v3  ;;  %v14616_v17 = vcombine.low %v6247_v45, %v6255_v46  ;;  %v14618_v3 = vcombine.low %v6248_v51, %v6256_v54  ;;  %v5849_v45 = vld [vmem:[%s17864_s0 + $0x310] sm:$0xff]  ;;  %v5850_v51 = vld [vmem:[%s17864_s0 + $0x318] sm:$0xff] }
 0x94f   : > { %8882 = vmatprep.subr.bf16.mxu0 %v14521_v20  ;;  %8964 = vmatprep.subr.bf16.mxu1 %v14523_v4  ;;  %v18839_v20 = vmul.f32 %v18741_v47, %v18708_v63  ;;  %v14125_v4 = vcombine.high %v5753_v0, %v5761_v1  ;;  %v14126_v63 = vcombine.low %v5754_v2, %v5762_v7  ;;  %v5857_v46 = vld [vmem:[%s17864_s0 + $0x350] sm:$0xff]  ;;  %v5858_v54 = vld [vmem:[%s17864_s0 + $0x358] sm:$0xff] }
 0x950   : > { %v14141_v47 = vcombine.high %v5769_v6, %v5777_v9  ;;  %v5866_v2 = vld [vmem:[%s17864_s0 + $0x398] sm:$0xff] }
 0x951   : > { %v5874_v7 = vld [vmem:[%s17864_s0 + $0x3d8] sm:$0xff] }
 0x952   : > { %8883 = vmatpush1.bf16.msra.mxu0 %v14520_v11  ;;  %8965 = vmatpush1.bf16.msra.mxu1 %v14522_v14  ;;  %v5778_v11 = vld [vmem:[%s17864_s0 + $0xd8] sm:$0xff]  ;;  %v14124_v14 = vcombine.low %v5753_v0, %v5761_v1  ;;  %v5865_v0 = vld [vmem:[%s17864_s0 + $0x390] sm:$0xff] }
 0x953   : > { %8884 = vmatprep.subr.bf16.mxu0 %v14537_v15  ;;  %8966 = vmatprep.subr.bf16.mxu1 %v14539_v58  ;;  %v18847_v15 = vpack.c.bf16 %v18839_v20, %v18839_v20  ;;  %v14143_v58 = vcombine.high %v5770_v10, %v5778_v11  ;;  %v5873_v1 = vld [vmem:[%s17864_s0 + $0x3d0] sm:$0xff] }
 0x956   : > { %8885 = vmatpush1.bf16.msra.mxu0 %v14536_v21  ;;  %8967 = vmatpush1.bf16.msra.mxu1 %v14538_v22  ;;  %v14140_v21 = vcombine.low %v5769_v6, %v5777_v9  ;;  %v14142_v22 = vcombine.low %v5770_v10, %v5778_v11  ;;  %v5881_v6 = vld [vmem:[%s17864_s0 + $0x410] sm:$0xff]  ;;  %v5882_v10 = vld [vmem:[%s17864_s0 + $0x418] sm:$0xff] }
 0x957   : > { %8886 = vmatprep.subr.bf16.mxu0 %v14553_v23  ;;  %8968 = vmatprep.subr.bf16.mxu1 %v14555_v24  ;;  %v14157_v23 = vcombine.high %v5785_v16, %v5793_v35  ;;  %v14159_v24 = vcombine.high %v5786_v18, %v5794_v19  ;;  %v5889_v9 = vld [vmem:[%s17864_s0 + $0x450] sm:$0xff]  ;;  %v5890_v11 = vld [vmem:[%s17864_s0 + $0x458] sm:$0xff] }
 0x95a   : > { %8887 = vmatpush1.bf16.msra.mxu0 %v14552_v29  ;;  %8969 = vmatpush1.bf16.msra.mxu1 %v14554_v30  ;;  %v14156_v29 = vcombine.low %v5785_v16, %v5793_v35  ;;  %v14158_v30 = vcombine.low %v5786_v18, %v5794_v19  ;;  %v5897_v16 = vld [vmem:[%s17864_s0 + $0x490] sm:$0xff]  ;;  %v5898_v18 = vld [vmem:[%s17864_s0 + $0x498] sm:$0xff] }
 0x95b   : > { %8888 = vmatprep.subr.bf16.mxu0 %v14569_v31  ;;  %8970 = vmatprep.subr.bf16.mxu1 %v14571_v53  ;;  %v14173_v31 = vcombine.high %v5801_v25, %v5809_v26  ;;  %v14175_v53 = vcombine.high %v5802_v27, %v5810_v28  ;;  %v5905_v35 = vld [vmem:[%s17864_s0 + $0x4d0] sm:$0xff]  ;;  %v5906_v19 = vld [vmem:[%s17864_s0 + $0x4d8] sm:$0xff] }
 0x95e   : > { %8889 = vmatpush1.bf16.msra.mxu0 %v14568_v37  ;;  %8971 = vmatpush1.bf16.msra.mxu1 %v14570_v38  ;;  %v14172_v37 = vcombine.low %v5801_v25, %v5809_v26  ;;  %v14174_v38 = vcombine.low %v5802_v27, %v5810_v28  ;;  %v5913_v25 = vld [vmem:[%s17864_s0 + $0x510] sm:$0xff]  ;;  %v5914_v27 = vld [vmem:[%s17864_s0 + $0x518] sm:$0xff] }
 0x95f   : > { %8890 = vmatprep.subr.bf16.mxu0 %v14585_v39  ;;  %8972 = vmatprep.subr.bf16.mxu1 %v14587_v40  ;;  %v14189_v39 = vcombine.high %v5817_v32, %v5825_v34  ;;  %v14191_v40 = vcombine.high %v5818_v36, %v5826_v57  ;;  %v5921_v26 = vld [vmem:[%s17864_s0 + $0x550] sm:$0xff]  ;;  %v5922_v28 = vld [vmem:[%s17864_s0 + $0x558] sm:$0xff] }
 0x962   : > { %8891 = vmatpush1.bf16.msra.mxu0 %v14584_v49  ;;  %8973 = vmatpush1.bf16.msra.mxu1 %v14586_v43  ;;  %v14188_v49 = vcombine.low %v5817_v32, %v5825_v34  ;;  %v14190_v43 = vcombine.low %v5818_v36, %v5826_v57  ;;  %v5929_v32 = vld [vmem:[%s17864_s0 + $0x590] sm:$0xff]  ;;  %v5930_v36 = vld [vmem:[%s17864_s0 + $0x598] sm:$0xff] }
 0x963   : > { %8892 = vmatprep.subr.bf16.mxu0 %v14601_v33  ;;  %8974 = vmatprep.subr.bf16.mxu1 %v14603_v44  ;;  %v14205_v33 = vcombine.high %v5833_v13, %v5841_v41  ;;  %v14207_v44 = vcombine.high %v5834_v8, %v5842_v42  ;;  %v5937_v34 = vld [vmem:[%s17864_s0 + $0x5d0] sm:$0xff]  ;;  %v5938_v57 = vld [vmem:[%s17864_s0 + $0x5d8] sm:$0xff] }
 0x966   : > { %8893 = vmatpush1.bf16.msra.mxu0 %v14600_v55  ;;  %8975 = vmatpush1.bf16.msra.mxu1 %v14602_v56  ;;  %v14204_v55 = vcombine.low %v5833_v13, %v5841_v41  ;;  %v14206_v56 = vcombine.low %v5834_v8, %v5842_v42  ;;  %v5945_v13 = vld [vmem:[%s17864_s0 + $0x610] sm:$0xff]  ;;  %v5946_v8 = vld [vmem:[%s17864_s0 + $0x618] sm:$0xff] }
 0x967   : > { %8894 = vmatprep.subr.bf16.mxu0 %v14617_v62  ;;  %8976 = vmatprep.subr.bf16.mxu1 %v14619_v61  ;;  %v14221_v62 = vcombine.high %v5849_v45, %v5857_v46  ;;  %v14223_v61 = vcombine.high %v5850_v51, %v5858_v54  ;;  %v5953_v41 = vld [vmem:[%s17864_s0 + $0x650] sm:$0xff]  ;;  %v5954_v42 = vld [vmem:[%s17864_s0 + $0x658] sm:$0xff] }
 0x96a   : > { %8895 = vmatpush1.bf16.msra.mxu0 %v14616_v17  ;;  %8977 = vmatpush1.bf16.msra.mxu1 %v14618_v3  ;;  %v14220_v17 = vcombine.low %v5849_v45, %v5857_v46  ;;  %v14222_v3 = vcombine.low %v5850_v51, %v5858_v54  ;;  %v5961_v45 = vld [vmem:[%s17864_s0 + $0x690] sm:$0xff]  ;;  %v5962_v51 = vld [vmem:[%s17864_s0 + $0x698] sm:$0xff] }
 0x96b   : > { %8987 = vmatprep.subr.bf16.mxu0 %v14125_v4  ;;  %9069 = vmatprep.subr.bf16.mxu1 %v14127_v5  ;;  %v14237_v4 = vcombine.high %v5865_v0, %v5873_v1  ;;  %v14239_v5 = vcombine.high %v5866_v2, %v5874_v7  ;;  %v5969_v46 = vld [vmem:[%s17864_s0 + $0x6d0] sm:$0xff]  ;;  %v5970_v54 = vld [vmem:[%s17864_s0 + $0x6d8] sm:$0xff] }
 0x96d   : > { %8897 = vmatmul.mubr.bf16.vlgmr.msra.gmra.mrb[32].mxu0 %v18847_v15  ;;  %8979 = vmatmul.mubr.bf16.vlgmr.msra.gmra.mrb[32].mxu1 %v18847_v15 }
 0x96e   : > { %8988 = vmatpush1.bf16.msra.mxu0 %v14124_v14  ;;  %9019 = vmatprep.mubr.bf16.mxu0 %v18761_v59  ;;  %v14236_v14 = vcombine.low %v5865_v0, %v5873_v1  ;;  %v5977_v0 = vld [vmem:[%s17864_s0 + $0x710] sm:$0xff] }
 0x96f   : > { %9070 = vmatpush1.bf16.msra.mxu1 %v14126_v63  ;;  %9101 = vmatprep.mubr.bf16.mxu1 %v18761_v59  ;;  %v14238_v63 = vcombine.low %v5866_v2, %v5874_v7  ;;  %v5985_v1 = vld [vmem:[%s17864_s0 + $0x750] sm:$0xff]  ;;  %v5978_v2 = vld [vmem:[%s17864_s0 + $0x718] sm:$0xff] }
 0x970   : > { %8989 = vmatprep.subr.bf16.mxu0 %v14141_v47  ;;  %9071 = vmatprep.subr.bf16.mxu1 %v14143_v58  ;;  %v14253_v47 = vcombine.high %v5881_v6, %v5889_v9  ;;  %v14255_v58 = vcombine.high %v5882_v10, %v5890_v11  ;;  %v5986_v7 = vld [vmem:[%s17864_s0 + $0x758] sm:$0xff] }
 0x972   : > { %8990 = vmatpush1.bf16.msra.mxu0 %v14140_v21  ;;  %v14252_v21 = vcombine.low %v5881_v6, %v5889_v9  ;;  %v5993_v6 = vld [vmem:[%s17864_s0 + $0x790] sm:$0xff] }
 0x973   : > { %9072 = vmatpush1.bf16.msra.mxu1 %v14142_v22  ;;  %8991 = vmatprep.subr.bf16.mxu0 %v14157_v23  ;;  %v14254_v22 = vcombine.low %v5882_v10, %v5890_v11  ;;  %v14269_v23 = vcombine.high %v5897_v16, %v5905_v35  ;;  %v6001_v9 = vld [vmem:[%s17864_s0 + $0x7d0] sm:$0xff]  ;;  %v5994_v10 = vld [vmem:[%s17864_s0 + $0x798] sm:$0xff] }
 0x974   : > { %9073 = vmatprep.subr.bf16.mxu1 %v14159_v24  ;;  %v14271_v24 = vcombine.high %v5898_v18, %v5906_v19  ;;  %v6002_v11 = vld [vmem:[%s17864_s0 + $0x7d8] sm:$0xff] }
 0x976   : > { %8992 = vmatpush1.bf16.msra.mxu0 %v14156_v29  ;;  %v14268_v29 = vcombine.low %v5897_v16, %v5905_v35  ;;  %v6009_v16 = vld [vmem:[%s17864_s0 + $0x810] sm:$0xff] }
 0x977   : > { %9074 = vmatpush1.bf16.msra.mxu1 %v14158_v30  ;;  %8993 = vmatprep.subr.bf16.mxu0 %v14173_v31  ;;  %v14270_v30 = vcombine.low %v5898_v18, %v5906_v19  ;;  %v14285_v31 = vcombine.high %v5913_v25, %v5921_v26  ;;  %v6017_v35 = vld [vmem:[%s17864_s0 + $0x850] sm:$0xff]  ;;  %v6010_v18 = vld [vmem:[%s17864_s0 + $0x818] sm:$0xff] }
 0x978   : > { %9075 = vmatprep.subr.bf16.mxu1 %v14175_v53  ;;  %v14287_v53 = vcombine.high %v5914_v27, %v5922_v28  ;;  %v6018_v19 = vld [vmem:[%s17864_s0 + $0x858] sm:$0xff] }
 0x97a   : > { %8994 = vmatpush1.bf16.msra.mxu0 %v14172_v37  ;;  %v14284_v37 = vcombine.low %v5913_v25, %v5921_v26  ;;  %v6025_v25 = vld [vmem:[%s17864_s0 + $0x890] sm:$0xff] }
 0x97b   : > { %9076 = vmatpush1.bf16.msra.mxu1 %v14174_v38  ;;  %8995 = vmatprep.subr.bf16.mxu0 %v14189_v39  ;;  %v14286_v38 = vcombine.low %v5914_v27, %v5922_v28  ;;  %v14301_v39 = vcombine.high %v5929_v32, %v5937_v34  ;;  %v6033_v26 = vld [vmem:[%s17864_s0 + $0x8d0] sm:$0xff]  ;;  %v14380_v27 = vcombine.low %v6009_v16, %v6017_v35  ;;  %v6026_v28 = vld [vmem:[%s17864_s0 + $0x898] sm:$0xff] }
 0x97c   : > { %9077 = vmatprep.subr.bf16.mxu1 %v14191_v40  ;;  %v14303_v40 = vcombine.high %v5930_v36, %v5938_v57 }
 0x97e   : > { %8996 = vmatpush1.bf16.msra.mxu0 %v14188_v49  ;;  %v14300_v49 = vcombine.low %v5929_v32, %v5937_v34  ;;  %v6049_v32 = vld [vmem:[%s17864_s0 + $0x950] sm:$0xff] }
 0x97f   : > { %9078 = vmatpush1.bf16.msra.mxu1 %v14190_v43  ;;  %8997 = vmatprep.subr.bf16.mxu0 %v14205_v33  ;;  %v14302_v43 = vcombine.low %v5930_v36, %v5938_v57  ;;  %v14317_v33 = vcombine.high %v5945_v13, %v5953_v41  ;;  %v6042_v36 = vld [vmem:[%s17864_s0 + $0x918] sm:$0xff] }
 0x980   : > { %9079 = vmatprep.subr.bf16.mxu1 %v14207_v44  ;;  %v14319_v44 = vcombine.high %v5946_v8, %v5954_v42  ;;  %v6050_v57 = vld [vmem:[%s17864_s0 + $0x958] sm:$0xff] }
 0x982   : > { %8998 = vmatpush1.bf16.msra.mxu0 %v14204_v55  ;;  %v14316_v55 = vcombine.low %v5945_v13, %v5953_v41  ;;  %v6057_v13 = vld [vmem:[%s17864_s0 + $0x990] sm:$0xff] }
 0x983   : > { %9080 = vmatpush1.bf16.msra.mxu1 %v14206_v56  ;;  %8999 = vmatprep.subr.bf16.mxu0 %v14221_v62  ;;  %v14318_v56 = vcombine.low %v5946_v8, %v5954_v42  ;;  %v14333_v62 = vcombine.high %v5961_v45, %v5969_v46  ;;  %v6065_v41 = vld [vmem:[%s17864_s0 + $0x9d0] sm:$0xff]  ;;  %v6058_v8 = vld [vmem:[%s17864_s0 + $0x998] sm:$0xff] }
 0x984   : > { %9081 = vmatprep.subr.bf16.mxu1 %v14223_v61  ;;  %v14335_v61 = vcombine.high %v5962_v51, %v5970_v54  ;;  %v6066_v42 = vld [vmem:[%s17864_s0 + $0x9d8] sm:$0xff] }
 0x986   : > { %9000 = vmatpush1.bf16.msra.mxu0 %v14220_v17  ;;  %v14332_v17 = vcombine.low %v5961_v45, %v5969_v46  ;;  %v6073_v45 = vld [vmem:[%s17864_s0 + $0xa10] sm:$0xff] }
 0x987   : > { %9082 = vmatpush1.bf16.msra.mxu1 %v14222_v3  ;;  %9001 = vmatprep.subr.bf16.mxu0 %v14237_v4  ;;  %v14334_v3 = vcombine.low %v5962_v51, %v5970_v54  ;;  %v14349_v4 = vcombine.high %v5977_v0, %v5985_v1  ;;  %v6081_v46 = vld [vmem:[%s17864_s0 + $0xa50] sm:$0xff]  ;;  %v6074_v51 = vld [vmem:[%s17864_s0 + $0xa18] sm:$0xff] }
 0x988   : > { %9083 = vmatprep.subr.bf16.mxu1 %v14239_v5  ;;  %v14351_v5 = vcombine.high %v5978_v2, %v5986_v7  ;;  %v6082_v54 = vld [vmem:[%s17864_s0 + $0xa58] sm:$0xff] }
 0x98a   : > { %9002 = vmatpush1.bf16.msra.mxu0 %v14236_v14  ;;  %v14348_v14 = vcombine.low %v5977_v0, %v5985_v1  ;;  %v6089_v0 = vld [vmem:[%s17864_s0 + $0xa90] sm:$0xff] }
 0x98b   : > { %9084 = vmatpush1.bf16.msra.mxu1 %v14238_v63  ;;  %9003 = vmatprep.subr.bf16.mxu0 %v14253_v47  ;;  %v14350_v63 = vcombine.low %v5978_v2, %v5986_v7  ;;  %v14365_v47 = vcombine.high %v5993_v6, %v6001_v9  ;;  %v6097_v1 = vld [vmem:[%s17864_s0 + $0xad0] sm:$0xff]  ;;  %v6090_v2 = vld [vmem:[%s17864_s0 + $0xa98] sm:$0xff] }
 0x98c   : > { %9085 = vmatprep.subr.bf16.mxu1 %v14255_v58  ;;  %v14367_v58 = vcombine.high %v5994_v10, %v6002_v11  ;;  %v6098_v7 = vld [vmem:[%s17864_s0 + $0xad8] sm:$0xff] }
 0x98e   : > { %9004 = vmatpush1.bf16.msra.mxu0 %v14252_v21  ;;  %v14364_v21 = vcombine.low %v5993_v6, %v6001_v9  ;;  %v6105_v6 = vld [vmem:[%s17864_s0 + $0xb10] sm:$0xff] }
 0x98f   : > { %9086 = vmatpush1.bf16.msra.mxu1 %v14254_v22  ;;  %9005 = vmatprep.subr.bf16.mxu0 %v14269_v23  ;;  %v14366_v22 = vcombine.low %v5994_v10, %v6002_v11  ;;  %v14381_v23 = vcombine.high %v6009_v16, %v6017_v35  ;;  %v6113_v9 = vld [vmem:[%s17864_s0 + $0xb50] sm:$0xff]  ;;  %v6106_v10 = vld [vmem:[%s17864_s0 + $0xb18] sm:$0xff] }
 0x990   : > { %9087 = vmatprep.subr.bf16.mxu1 %v14271_v24  ;;  %v14383_v24 = vcombine.high %v6010_v18, %v6018_v19  ;;  %v6114_v11 = vld [vmem:[%s17864_s0 + $0xb58] sm:$0xff]  ;;  %v6121_v16 = vld [vmem:[%s17864_s0 + $0xb90] sm:$0xff] }
 0x991   : > { %v6129_v35 = vld [vmem:[%s17864_s0 + $0xbd0] sm:$0xff] }
 0x992   : > { %9006 = vmatpush1.bf16.msra.mxu0 %v14268_v29  ;;  %v6034_v29 = vld [vmem:[%s17864_s0 + $0x8d8] sm:$0xff] }
 0x993   : > { %9088 = vmatpush1.bf16.msra.mxu1 %v14270_v30  ;;  %9007 = vmatprep.subr.bf16.mxu0 %v14285_v31  ;;  %v14382_v30 = vcombine.low %v6010_v18, %v6018_v19  ;;  %v14397_v31 = vcombine.high %v6025_v25, %v6033_v26  ;;  %v14399_v34 = vcombine.high %v6026_v28, %v6034_v29  ;;  %v6122_v18 = vld [vmem:[%s17864_s0 + $0xb98] sm:$0xff] }
 0x994   : > { %9089 = vmatprep.subr.bf16.mxu1 %v14287_v53  ;;  %v6041_v53 = vld [vmem:[%s17864_s0 + $0x910] sm:$0xff]  ;;  %v6130_v19 = vld [vmem:[%s17864_s0 + $0xbd8] sm:$0xff] }
 0x996   : > { %9008 = vmatpush1.bf16.msra.mxu0 %v14284_v37  ;;  %v14396_v37 = vcombine.low %v6025_v25, %v6033_v26  ;;  %v6137_v25 = vld [vmem:[%s17864_s0 + $0xc10] sm:$0xff] }
 0x997   : > { %9090 = vmatpush1.bf16.msra.mxu1 %v14286_v38  ;;  %9009 = vmatprep.subr.bf16.mxu0 %v14301_v39  ;;  %v14398_v38 = vcombine.low %v6026_v28, %v6034_v29  ;;  %v14413_v39 = vcombine.high %v6041_v53, %v6049_v32  ;;  %v6145_v26 = vld [vmem:[%s17864_s0 + $0xc50] sm:$0xff]  ;;  %v6146_v28 = vld [vmem:[%s17864_s0 + $0xc58] sm:$0xff]  ;;  %v14492_v29 = vcombine.low %v6121_v16, %v6129_v35 }
 0x998   : > { %9091 = vmatprep.subr.bf16.mxu1 %v14303_v40  ;;  %v14415_v40 = vcombine.high %v6042_v36, %v6050_v57 }
 0x99a   : > { %9010 = vmatpush1.bf16.msra.mxu0 %v14300_v49  ;;  %v14412_v49 = vcombine.low %v6041_v53, %v6049_v32  ;;  %v6153_v32 = vld [vmem:[%s17864_s0 + $0xc90] sm:$0xff] }
 0x99b   : > { %9092 = vmatpush1.bf16.msra.mxu1 %v14302_v43  ;;  %9011 = vmatprep.subr.bf16.mxu0 %v14317_v33  ;;  %v14414_v43 = vcombine.low %v6042_v36, %v6050_v57  ;;  %v14429_v33 = vcombine.high %v6057_v13, %v6065_v41  ;;  %v6154_v36 = vld [vmem:[%s17864_s0 + $0xc98] sm:$0xff] }
 0x99c   : > { %9093 = vmatprep.subr.bf16.mxu1 %v14319_v44  ;;  %v14431_v44 = vcombine.high %v6058_v8, %v6066_v42  ;;  %v6162_v57 = vld [vmem:[%s17864_s0 + $0xcd8] sm:$0xff] }
 0x99e   : > { %9012 = vmatpush1.bf16.msra.mxu0 %v14316_v55  ;;  %v14428_v55 = vcombine.low %v6057_v13, %v6065_v41  ;;  %v6169_v13 = vld [vmem:[%s17864_s0 + $0xd10] sm:$0xff] }
 0x99f   : > { %9094 = vmatpush1.bf16.msra.mxu1 %v14318_v56  ;;  %9013 = vmatprep.subr.bf16.mxu0 %v14333_v62  ;;  %v14430_v56 = vcombine.low %v6058_v8, %v6066_v42  ;;  %v14445_v62 = vcombine.high %v6073_v45, %v6081_v46  ;;  %v6177_v41 = vld [vmem:[%s17864_s0 + $0xd50] sm:$0xff]  ;;  %v6170_v8 = vld [vmem:[%s17864_s0 + $0xd18] sm:$0xff] }
 0x9a0   : > { %9095 = vmatprep.subr.bf16.mxu1 %v14335_v61  ;;  %v14447_v61 = vcombine.high %v6074_v51, %v6082_v54  ;;  %v6178_v42 = vld [vmem:[%s17864_s0 + $0xd58] sm:$0xff] }
 0x9a2   : > { %9014 = vmatpush1.bf16.msra.mxu0 %v14332_v17  ;;  %v14444_v17 = vcombine.low %v6073_v45, %v6081_v46  ;;  %v6185_v45 = vld [vmem:[%s17864_s0 + $0xd90] sm:$0xff] }
 0x9a3   : > { %9096 = vmatpush1.bf16.msra.mxu1 %v14334_v3  ;;  %9015 = vmatprep.subr.bf16.mxu0 %v14349_v4  ;;  %v14446_v3 = vcombine.low %v6074_v51, %v6082_v54  ;;  %v14461_v4 = vcombine.high %v6089_v0, %v6097_v1  ;;  %v6193_v46 = vld [vmem:[%s17864_s0 + $0xdd0] sm:$0xff]  ;;  %v6186_v51 = vld [vmem:[%s17864_s0 + $0xd98] sm:$0xff] }
 0x9a4   : > { %9097 = vmatprep.subr.bf16.mxu1 %v14351_v5  ;;  %v14463_v5 = vcombine.high %v6090_v2, %v6098_v7  ;;  %v6194_v54 = vld [vmem:[%s17864_s0 + $0xdd8] sm:$0xff] }
 0x9a6   : > { %9016 = vmatpush1.bf16.msra.mxu0 %v14348_v14  ;;  %v14460_v14 = vcombine.low %v6089_v0, %v6097_v1  ;;  %v6201_v0 = vld [vmem:[%s17864_s0 + $0xe10] sm:$0xff] }
 0x9a7   : > { %9098 = vmatpush1.bf16.msra.mxu1 %v14350_v63  ;;  %9017 = vmatprep.subr.bf16.mxu0 %v14365_v47  ;;  %v14462_v63 = vcombine.low %v6090_v2, %v6098_v7  ;;  %v14477_v47 = vcombine.high %v6105_v6, %v6113_v9  ;;  %v6209_v1 = vld [vmem:[%s17864_s0 + $0xe50] sm:$0xff]  ;;  %v6202_v2 = vld [vmem:[%s17864_s0 + $0xe18] sm:$0xff] }
 0x9a8   : > { %9099 = vmatprep.subr.bf16.mxu1 %v14367_v58  ;;  %v14479_v58 = vcombine.high %v6106_v10, %v6114_v11  ;;  %v6210_v7 = vld [vmem:[%s17864_s0 + $0xe58] sm:$0xff] }
 0x9aa   : > { %9018 = vmatpush1.bf16.msra.mxu0 %v14364_v21  ;;  %v14476_v21 = vcombine.low %v6105_v6, %v6113_v9  ;;  %v6217_v6 = vld [vmem:[%s17864_s0 + $0xe90] sm:$0xff] }
 0x9ab   : > { %9100 = vmatpush1.bf16.msra.mxu1 %v14366_v22  ;;  %9028 = vmatprep.subr.bf16.mxu0 %v14381_v23  ;;  %v14478_v22 = vcombine.low %v6106_v10, %v6114_v11  ;;  %v14493_v23 = vcombine.high %v6121_v16, %v6129_v35  ;;  %v6225_v9 = vld [vmem:[%s17864_s0 + $0xed0] sm:$0xff]  ;;  %v6218_v10 = vld [vmem:[%s17864_s0 + $0xe98] sm:$0xff] }
 0x9ac   : > { %9110 = vmatprep.subr.bf16.mxu1 %v14383_v24  ;;  %v14495_v24 = vcombine.high %v6122_v18, %v6130_v19  ;;  %v6226_v11 = vld [vmem:[%s17864_s0 + $0xed8] sm:$0xff]  ;;  %v6233_v16 = vld [vmem:[%s17864_s0 + $0xf10] sm:$0xff] }
 0x9ad   : > { %9020 = vmatmul.mubr.bf16.vlgmr.msra.gmra.mrb[36].mxu0 %v18765_v60  ;;  %v6241_v35 = vld [vmem:[%s17864_s0 + $0xf50] sm:$0xff] }
 0x9ae   : > { %9102 = vmatmul.mubr.bf16.vlgmr.msra.gmra.mrb[36].mxu1 %v18765_v60  ;;  %9029 = vmatpush1.bf16.msra.mxu0 %v14380_v27  ;;  %v6138_v27 = vld [vmem:[%s17864_s0 + $0xc18] sm:$0xff] }
 0x9af   : > { %9060 = vmatprep.mubr.bf16.mxu0 %v18777_v12  ;;  %9111 = vmatpush1.bf16.msra.mxu1 %v14382_v30  ;;  %v14494_v30 = vcombine.low %v6122_v18, %v6130_v19  ;;  %v14511_v53 = vcombine.high %v6138_v27, %v6146_v28  ;;  %v6234_v18 = vld [vmem:[%s17864_s0 + $0xf18] sm:$0xff] }
 0x9b0   : > { %9142 = vmatprep.mubr.bf16.mxu1 %v18777_v12  ;;  %9030 = vmatprep.subr.bf16.mxu0 %v14397_v31  ;;  %v14509_v31 = vcombine.high %v6137_v25, %v6145_v26  ;;  %v6242_v19 = vld [vmem:[%s17864_s0 + $0xf58] sm:$0xff] }
 0x9b1   : > { %9112 = vmatprep.subr.bf16.mxu1 %v14399_v34  ;;  %v6161_v34 = vld [vmem:[%s17864_s0 + $0xcd0] sm:$0xff] }
 0x9b2   : > { %9031 = vmatpush1.bf16.msra.mxu0 %v14396_v37  ;;  %v14508_v37 = vcombine.low %v6137_v25, %v6145_v26  ;;  %v6249_v25 = vld [vmem:[%s17864_s0 + $0xf90] sm:$0xff] }
 0x9b3   : > { %9113 = vmatpush1.bf16.msra.mxu1 %v14398_v38  ;;  %9032 = vmatprep.subr.bf16.mxu0 %v14413_v39  ;;  %v14510_v38 = vcombine.low %v6138_v27, %v6146_v28  ;;  %v14525_v39 = vcombine.high %v6153_v32, %v6161_v34  ;;  %v6257_v26 = vld [vmem:[%s17864_s0 + $0xfd0] sm:$0xff]  ;;  %v6250_v27 = vld [vmem:[%s17864_s0 + $0xf98] sm:$0xff] }
 0x9b4   : > { %9114 = vmatprep.subr.bf16.mxu1 %v14415_v40  ;;  %v14527_v40 = vcombine.high %v6154_v36, %v6162_v57  ;;  %v6258_v28 = vld [vmem:[%s17864_s0 + $0xfd8] sm:$0xff] }
 0x9b6   : > { %9033 = vmatpush1.bf16.msra.mxu0 %v14412_v49  ;;  %v14524_v49 = vcombine.low %v6153_v32, %v6161_v34  ;;  %v5755_v32 = vld [vmem:[%s17864_s0 + $0x20] sm:$0xff] }
 0x9b7   : > { %9115 = vmatpush1.bf16.msra.mxu1 %v14414_v43  ;;  %9034 = vmatprep.subr.bf16.mxu0 %v14429_v33  ;;  %v14526_v43 = vcombine.low %v6154_v36, %v6162_v57  ;;  %v14541_v33 = vcombine.high %v6169_v13, %v6177_v41  ;;  %v5763_v34 = vld [vmem:[%s17864_s0 + $0x60] sm:$0xff]  ;;  %v5756_v36 = vld [vmem:[%s17864_s0 + $0x28] sm:$0xff] }
 0x9b8   : > { %9116 = vmatprep.subr.bf16.mxu1 %v14431_v44  ;;  %v14543_v44 = vcombine.high %v6170_v8, %v6178_v42  ;;  %v5764_v57 = vld [vmem:[%s17864_s0 + $0x68] sm:$0xff] }
 0x9ba   : > { %9035 = vmatpush1.bf16.msra.mxu0 %v14428_v55  ;;  %v14540_v55 = vcombine.low %v6169_v13, %v6177_v41  ;;  %v5771_v13 = vld [vmem:[%s17864_s0 + $0xa0] sm:$0xff] }
 0x9bb   : > { %9117 = vmatpush1.bf16.msra.mxu1 %v14430_v56  ;;  %9036 = vmatprep.subr.bf16.mxu0 %v14445_v62  ;;  %v14542_v56 = vcombine.low %v6170_v8, %v6178_v42  ;;  %v14557_v62 = vcombine.high %v6185_v45, %v6193_v46  ;;  %v5779_v41 = vld [vmem:[%s17864_s0 + $0xe0] sm:$0xff]  ;;  %v14128_v8 = vcombine.low %v5755_v32, %v5763_v34  ;;  %v5772_v42 = vld [vmem:[%s17864_s0 + $0xa8] sm:$0xff] }
 0x9bc   : > { %9118 = vmatprep.subr.bf16.mxu1 %v14447_v61  ;;  %v14559_v61 = vcombine.high %v6186_v51, %v6194_v54 }
 0x9be   : > { %9037 = vmatpush1.bf16.msra.mxu0 %v14444_v17  ;;  %v14556_v17 = vcombine.low %v6185_v45, %v6193_v46  ;;  %v5795_v45 = vld [vmem:[%s17864_s0 + $0x160] sm:$0xff] }
 0x9bf   : > { %9119 = vmatpush1.bf16.msra.mxu1 %v14446_v3  ;;  %9038 = vmatprep.subr.bf16.mxu0 %v14461_v4  ;;  %v14558_v3 = vcombine.low %v6186_v51, %v6194_v54  ;;  %v14573_v4 = vcombine.high %v6201_v0, %v6209_v1  ;;  %v5788_v51 = vld [vmem:[%s17864_s0 + $0x128] sm:$0xff] }
 0x9c0   : > { %9120 = vmatprep.subr.bf16.mxu1 %v14463_v5  ;;  %v14575_v5 = vcombine.high %v6202_v2, %v6210_v7  ;;  %v5796_v54 = vld [vmem:[%s17864_s0 + $0x168] sm:$0xff] }
 0x9c2   : > { %9039 = vmatpush1.bf16.msra.mxu0 %v14460_v14  ;;  %v14572_v14 = vcombine.low %v6201_v0, %v6209_v1  ;;  %v5803_v0 = vld [vmem:[%s17864_s0 + $0x1a0] sm:$0xff] }
 0x9c3   : > { %9121 = vmatpush1.bf16.msra.mxu1 %v14462_v63  ;;  %9040 = vmatprep.subr.bf16.mxu0 %v14477_v47  ;;  %v14574_v63 = vcombine.low %v6202_v2, %v6210_v7  ;;  %v14589_v47 = vcombine.high %v6217_v6, %v6225_v9  ;;  %v5811_v1 = vld [vmem:[%s17864_s0 + $0x1e0] sm:$0xff]  ;;  %v5804_v2 = vld [vmem:[%s17864_s0 + $0x1a8] sm:$0xff] }
 0x9c4   : > { %9122 = vmatprep.subr.bf16.mxu1 %v14479_v58  ;;  %v14591_v58 = vcombine.high %v6218_v10, %v6226_v11  ;;  %v5812_v7 = vld [vmem:[%s17864_s0 + $0x1e8] sm:$0xff] }
 0x9c6   : > { %9041 = vmatpush1.bf16.msra.mxu0 %v14476_v21  ;;  %v14588_v21 = vcombine.low %v6217_v6, %v6225_v9  ;;  %v5819_v6 = vld [vmem:[%s17864_s0 + $0x220] sm:$0xff] }
 0x9c7   : > { %9123 = vmatpush1.bf16.msra.mxu1 %v14478_v22  ;;  %9042 = vmatprep.subr.bf16.mxu0 %v14493_v23  ;;  %v14590_v22 = vcombine.low %v6218_v10, %v6226_v11  ;;  %v14605_v23 = vcombine.high %v6233_v16, %v6241_v35  ;;  %v5827_v9 = vld [vmem:[%s17864_s0 + $0x260] sm:$0xff]  ;;  %v5820_v10 = vld [vmem:[%s17864_s0 + $0x228] sm:$0xff] }
 0x9c8   : > { %9124 = vmatprep.subr.bf16.mxu1 %v14495_v24  ;;  %v14607_v24 = vcombine.high %v6234_v18, %v6242_v19  ;;  %v5828_v11 = vld [vmem:[%s17864_s0 + $0x268] sm:$0xff] }
 0x9ca   : > { %9043 = vmatpush1.bf16.msra.mxu0 %v14492_v29  ;;  %v14604_v29 = vcombine.low %v6233_v16, %v6241_v35  ;;  %v5835_v16 = vld [vmem:[%s17864_s0 + $0x2a0] sm:$0xff] }
 0x9cb   : > { %9125 = vmatpush1.bf16.msra.mxu1 %v14494_v30  ;;  %9044 = vmatprep.subr.bf16.mxu0 %v14509_v31  ;;  %v14606_v30 = vcombine.low %v6234_v18, %v6242_v19  ;;  %v14621_v31 = vcombine.high %v6249_v25, %v6257_v26  ;;  %v5843_v35 = vld [vmem:[%s17864_s0 + $0x2e0] sm:$0xff]  ;;  %v5836_v18 = vld [vmem:[%s17864_s0 + $0x2a8] sm:$0xff] }
 0x9cc   : > { %9126 = vmatprep.subr.bf16.mxu1 %v14511_v53  ;;  %v14623_v53 = vcombine.high %v6250_v27, %v6258_v28  ;;  %v5844_v19 = vld [vmem:[%s17864_s0 + $0x2e8] sm:$0xff] }
 0x9ce   : > { %9045 = vmatpush1.bf16.msra.mxu0 %v14508_v37  ;;  %v14620_v37 = vcombine.low %v6249_v25, %v6257_v26  ;;  %v5851_v25 = vld [vmem:[%s17864_s0 + $0x320] sm:$0xff] }
 0x9cf   : > { %9127 = vmatpush1.bf16.msra.mxu1 %v14510_v38  ;;  %9046 = vmatprep.subr.bf16.mxu0 %v14525_v39  ;;  %v14622_v38 = vcombine.low %v6250_v27, %v6258_v28  ;;  %v14129_v39 = vcombine.high %v5755_v32, %v5763_v34  ;;  %v5859_v26 = vld [vmem:[%s17864_s0 + $0x360] sm:$0xff]  ;;  %v5852_v27 = vld [vmem:[%s17864_s0 + $0x328] sm:$0xff] }
 0x9d0   : > { %9128 = vmatprep.subr.bf16.mxu1 %v14527_v40  ;;  %v14131_v40 = vcombine.high %v5756_v36, %v5764_v57  ;;  %v5860_v28 = vld [vmem:[%s17864_s0 + $0x368] sm:$0xff]  ;;  %v5867_v32 = vld [vmem:[%s17864_s0 + $0x3a0] sm:$0xff] }
 0x9d1   : > { %v5875_v34 = vld [vmem:[%s17864_s0 + $0x3e0] sm:$0xff] }
 0x9d2   : > { %9047 = vmatpush1.bf16.msra.mxu0 %v14524_v49  ;;  %v5780_v49 = vld [vmem:[%s17864_s0 + $0xe8] sm:$0xff] }
 0x9d3   : > { %9129 = vmatpush1.bf16.msra.mxu1 %v14526_v43  ;;  %9048 = vmatprep.subr.bf16.mxu0 %v14541_v33  ;;  %v14130_v43 = vcombine.low %v5756_v36, %v5764_v57  ;;  %v14145_v33 = vcombine.high %v5771_v13, %v5779_v41  ;;  %v14147_v46 = vcombine.high %v5772_v42, %v5780_v49  ;;  %v5868_v36 = vld [vmem:[%s17864_s0 + $0x3a8] sm:$0xff] }
 0x9d4   : > { %9130 = vmatprep.subr.bf16.mxu1 %v14543_v44  ;;  %v5787_v44 = vld [vmem:[%s17864_s0 + $0x120] sm:$0xff]  ;;  %v5876_v57 = vld [vmem:[%s17864_s0 + $0x3e8] sm:$0xff] }
 0x9d6   : > { %9049 = vmatpush1.bf16.msra.mxu0 %v14540_v55  ;;  %v14144_v55 = vcombine.low %v5771_v13, %v5779_v41  ;;  %v5883_v13 = vld [vmem:[%s17864_s0 + $0x420] sm:$0xff] }
 0x9d7   : > { %9131 = vmatpush1.bf16.msra.mxu1 %v14542_v56  ;;  %9050 = vmatprep.subr.bf16.mxu0 %v14557_v62  ;;  %v14146_v56 = vcombine.low %v5772_v42, %v5780_v49  ;;  %v14161_v62 = vcombine.high %v5787_v44, %v5795_v45  ;;  %v5891_v41 = vld [vmem:[%s17864_s0 + $0x460] sm:$0xff]  ;;  %v5892_v42 = vld [vmem:[%s17864_s0 + $0x468] sm:$0xff]  ;;  %v14240_v49 = vcombine.low %v5867_v32, %v5875_v34 }
 0x9d8   : > { %9132 = vmatprep.subr.bf16.mxu1 %v14559_v61  ;;  %v14163_v61 = vcombine.high %v5788_v51, %v5796_v54 }
 0x9da   : > { %9051 = vmatpush1.bf16.msra.mxu0 %v14556_v17  ;;  %v14160_v17 = vcombine.low %v5787_v44, %v5795_v45  ;;  %v5899_v45 = vld [vmem:[%s17864_s0 + $0x4a0] sm:$0xff] }
 0x9db   : > { %9133 = vmatpush1.bf16.msra.mxu1 %v14558_v3  ;;  %9052 = vmatprep.subr.bf16.mxu0 %v14573_v4  ;;  %v14162_v3 = vcombine.low %v5788_v51, %v5796_v54  ;;  %v14177_v4 = vcombine.high %v5803_v0, %v5811_v1  ;;  %v5900_v51 = vld [vmem:[%s17864_s0 + $0x4a8] sm:$0xff] }
 0x9dc   : > { %9134 = vmatprep.subr.bf16.mxu1 %v14575_v5  ;;  %v14179_v5 = vcombine.high %v5804_v2, %v5812_v7  ;;  %v5908_v54 = vld [vmem:[%s17864_s0 + $0x4e8] sm:$0xff] }
 0x9de   : > { %9053 = vmatpush1.bf16.msra.mxu0 %v14572_v14  ;;  %v14176_v14 = vcombine.low %v5803_v0, %v5811_v1  ;;  %v5915_v0 = vld [vmem:[%s17864_s0 + $0x520] sm:$0xff] }
 0x9df   : > { %9135 = vmatpush1.bf16.msra.mxu1 %v14574_v63  ;;  %9054 = vmatprep.subr.bf16.mxu0 %v14589_v47  ;;  %v14178_v63 = vcombine.low %v5804_v2, %v5812_v7  ;;  %v14193_v47 = vcombine.high %v5819_v6, %v5827_v9  ;;  %v5923_v1 = vld [vmem:[%s17864_s0 + $0x560] sm:$0xff]  ;;  %v5916_v2 = vld [vmem:[%s17864_s0 + $0x528] sm:$0xff] }
 0x9e0   : > { %9136 = vmatprep.subr.bf16.mxu1 %v14591_v58  ;;  %v14195_v58 = vcombine.high %v5820_v10, %v5828_v11  ;;  %v5924_v7 = vld [vmem:[%s17864_s0 + $0x568] sm:$0xff] }
 0x9e2   : > { %9055 = vmatpush1.bf16.msra.mxu0 %v14588_v21  ;;  %v14192_v21 = vcombine.low %v5819_v6, %v5827_v9  ;;  %v5931_v6 = vld [vmem:[%s17864_s0 + $0x5a0] sm:$0xff] }
 0x9e3   : > { %9137 = vmatpush1.bf16.msra.mxu1 %v14590_v22  ;;  %9056 = vmatprep.subr.bf16.mxu0 %v14605_v23  ;;  %v14194_v22 = vcombine.low %v5820_v10, %v5828_v11  ;;  %v14209_v23 = vcombine.high %v5835_v16, %v5843_v35  ;;  %v5939_v9 = vld [vmem:[%s17864_s0 + $0x5e0] sm:$0xff]  ;;  %v5932_v10 = vld [vmem:[%s17864_s0 + $0x5a8] sm:$0xff] }
 0x9e4   : > { %9138 = vmatprep.subr.bf16.mxu1 %v14607_v24  ;;  %v14211_v24 = vcombine.high %v5836_v18, %v5844_v19  ;;  %v5940_v11 = vld [vmem:[%s17864_s0 + $0x5e8] sm:$0xff] }
 0x9e6   : > { %9057 = vmatpush1.bf16.msra.mxu0 %v14604_v29  ;;  %v14208_v29 = vcombine.low %v5835_v16, %v5843_v35  ;;  %v5947_v16 = vld [vmem:[%s17864_s0 + $0x620] sm:$0xff] }
 0x9e7   : > { %9139 = vmatpush1.bf16.msra.mxu1 %v14606_v30  ;;  %9058 = vmatprep.subr.bf16.mxu0 %v14621_v31  ;;  %v14210_v30 = vcombine.low %v5836_v18, %v5844_v19  ;;  %v14225_v31 = vcombine.high %v5851_v25, %v5859_v26  ;;  %v5955_v35 = vld [vmem:[%s17864_s0 + $0x660] sm:$0xff]  ;;  %v5948_v18 = vld [vmem:[%s17864_s0 + $0x628] sm:$0xff] }
 0x9e8   : > { %9140 = vmatprep.subr.bf16.mxu1 %v14623_v53  ;;  %v14227_v53 = vcombine.high %v5852_v27, %v5860_v28  ;;  %v5956_v19 = vld [vmem:[%s17864_s0 + $0x668] sm:$0xff] }
 0x9ea   : > { %9059 = vmatpush1.bf16.msra.mxu0 %v14620_v37  ;;  %v14224_v37 = vcombine.low %v5851_v25, %v5859_v26  ;;  %v5963_v25 = vld [vmem:[%s17864_s0 + $0x6a0] sm:$0xff] }
 0x9eb   : > { %9141 = vmatpush1.bf16.msra.mxu1 %v14622_v38  ;;  %9151 = vmatprep.subr.bf16.mxu0 %v14129_v39  ;;  %v14226_v38 = vcombine.low %v5852_v27, %v5860_v28  ;;  %v14241_v39 = vcombine.high %v5867_v32, %v5875_v34  ;;  %v5971_v26 = vld [vmem:[%s17864_s0 + $0x6e0] sm:$0xff]  ;;  %v5964_v27 = vld [vmem:[%s17864_s0 + $0x6a8] sm:$0xff] }
 0x9ec   : > { %9233 = vmatprep.subr.bf16.mxu1 %v14131_v40  ;;  %v14243_v40 = vcombine.high %v5868_v36, %v5876_v57  ;;  %v5972_v28 = vld [vmem:[%s17864_s0 + $0x6e8] sm:$0xff]  ;;  %v5979_v32 = vld [vmem:[%s17864_s0 + $0x720] sm:$0xff] }
 0x9ed   : > { %9061 = vmatmul.mubr.bf16.vlgmr.msra.gmra.mrb[36].mxu0 %v18847_v15  ;;  %v5987_v34 = vld [vmem:[%s17864_s0 + $0x760] sm:$0xff] }
 0x9ee   : > { %9143 = vmatmul.mubr.bf16.vlgmr.msra.gmra.mrb[36].mxu1 %v18847_v15  ;;  %9152 = vmatpush1.bf16.msra.mxu0 %v14128_v8  ;;  %v5884_v8 = vld [vmem:[%s17864_s0 + $0x428] sm:$0xff] }
 0x9ef   : > { %9183 = vmatprep.mubr.bf16.mxu0 %v18761_v59  ;;  %9234 = vmatpush1.bf16.msra.mxu1 %v14130_v43  ;;  %v14242_v43 = vcombine.low %v5868_v36, %v5876_v57  ;;  %v14259_v44 = vcombine.high %v5884_v8, %v5892_v42  ;;  %v5980_v36 = vld [vmem:[%s17864_s0 + $0x728] sm:$0xff] }
 0x9f0   : > { %9265 = vmatprep.mubr.bf16.mxu1 %v18761_v59  ;;  %9153 = vmatprep.subr.bf16.mxu0 %v14145_v33  ;;  %v14257_v33 = vcombine.high %v5883_v13, %v5891_v41  ;;  %v5988_v57 = vld [vmem:[%s17864_s0 + $0x768] sm:$0xff] }
 0x9f1   : > { %9235 = vmatprep.subr.bf16.mxu1 %v14147_v46  ;;  %v5907_v46 = vld [vmem:[%s17864_s0 + $0x4e0] sm:$0xff] }
 0x9f2   : > { %9154 = vmatpush1.bf16.msra.mxu0 %v14144_v55  ;;  %v14256_v55 = vcombine.low %v5883_v13, %v5891_v41  ;;  %v5995_v13 = vld [vmem:[%s17864_s0 + $0x7a0] sm:$0xff] }
 0x9f3   : > { %9236 = vmatpush1.bf16.msra.mxu1 %v14146_v56  ;;  %9155 = vmatprep.subr.bf16.mxu0 %v14161_v62  ;;  %v14258_v56 = vcombine.low %v5884_v8, %v5892_v42  ;;  %v14273_v62 = vcombine.high %v5899_v45, %v5907_v46  ;;  %v6003_v41 = vld [vmem:[%s17864_s0 + $0x7e0] sm:$0xff]  ;;  %v5996_v8 = vld [vmem:[%s17864_s0 + $0x7a8] sm:$0xff] }
 0x9f4   : > { %9237 = vmatprep.subr.bf16.mxu1 %v14163_v61  ;;  %v14275_v61 = vcombine.high %v5900_v51, %v5908_v54  ;;  %v6004_v42 = vld [vmem:[%s17864_s0 + $0x7e8] sm:$0xff] }
 0x9f6   : > { %9156 = vmatpush1.bf16.msra.mxu0 %v14160_v17  ;;  %v14272_v17 = vcombine.low %v5899_v45, %v5907_v46  ;;  %v6011_v45 = vld [vmem:[%s17864_s0 + $0x820] sm:$0xff] }
 0x9f7   : > { %9238 = vmatpush1.bf16.msra.mxu1 %v14162_v3  ;;  %9157 = vmatprep.subr.bf16.mxu0 %v14177_v4  ;;  %v14274_v3 = vcombine.low %v5900_v51, %v5908_v54  ;;  %v14289_v4 = vcombine.high %v5915_v0, %v5923_v1  ;;  %v6019_v46 = vld [vmem:[%s17864_s0 + $0x860] sm:$0xff]  ;;  %v6012_v51 = vld [vmem:[%s17864_s0 + $0x828] sm:$0xff] }
 0x9f8   : > { %9239 = vmatprep.subr.bf16.mxu1 %v14179_v5  ;;  %v14291_v5 = vcombine.high %v5916_v2, %v5924_v7  ;;  %v6020_v54 = vld [vmem:[%s17864_s0 + $0x868] sm:$0xff] }
 0x9fa   : > { %9158 = vmatpush1.bf16.msra.mxu0 %v14176_v14  ;;  %v14288_v14 = vcombine.low %v5915_v0, %v5923_v1  ;;  %v6027_v0 = vld [vmem:[%s17864_s0 + $0x8a0] sm:$0xff] }
 0x9fb   : > { %9240 = vmatpush1.bf16.msra.mxu1 %v14178_v63  ;;  %9159 = vmatprep.subr.bf16.mxu0 %v14193_v47  ;;  %v14290_v63 = vcombine.low %v5916_v2, %v5924_v7  ;;  %v14305_v47 = vcombine.high %v5931_v6, %v5939_v9  ;;  %v6035_v1 = vld [vmem:[%s17864_s0 + $0x8e0] sm:$0xff]  ;;  %v14384_v2 = vcombine.low %v6011_v45, %v6019_v46  ;;  %v6028_v7 = vld [vmem:[%s17864_s0 + $0x8a8] sm:$0xff] }
 0x9fc   : > { %9241 = vmatprep.subr.bf16.mxu1 %v14195_v58  ;;  %v14307_v58 = vcombine.high %v5932_v10, %v5940_v11 }
 0x9fe   : > { %9160 = vmatpush1.bf16.msra.mxu0 %v14192_v21  ;;  %v14304_v21 = vcombine.low %v5931_v6, %v5939_v9  ;;  %v6051_v6 = vld [vmem:[%s17864_s0 + $0x960] sm:$0xff] }
 0x9ff   : > { %9242 = vmatpush1.bf16.msra.mxu1 %v14194_v22  ;;  %9161 = vmatprep.subr.bf16.mxu0 %v14209_v23  ;;  %v14306_v22 = vcombine.low %v5932_v10, %v5940_v11  ;;  %v14321_v23 = vcombine.high %v5947_v16, %v5955_v35  ;;  %v6044_v10 = vld [vmem:[%s17864_s0 + $0x928] sm:$0xff] }
 0xa00   : > { %9243 = vmatprep.subr.bf16.mxu1 %v14211_v24  ;;  %v14323_v24 = vcombine.high %v5948_v18, %v5956_v19  ;;  %v6052_v11 = vld [vmem:[%s17864_s0 + $0x968] sm:$0xff] }
 0xa02   : > { %9162 = vmatpush1.bf16.msra.mxu0 %v14208_v29  ;;  %v14320_v29 = vcombine.low %v5947_v16, %v5955_v35  ;;  %v6059_v16 = vld [vmem:[%s17864_s0 + $0x9a0] sm:$0xff] }
 0xa03   : > { %9244 = vmatpush1.bf16.msra.mxu1 %v14210_v30  ;;  %9163 = vmatprep.subr.bf16.mxu0 %v14225_v31  ;;  %v14322_v30 = vcombine.low %v5948_v18, %v5956_v19  ;;  %v14337_v31 = vcombine.high %v5963_v25, %v5971_v26  ;;  %v6067_v35 = vld [vmem:[%s17864_s0 + $0x9e0] sm:$0xff]  ;;  %v6060_v18 = vld [vmem:[%s17864_s0 + $0x9a8] sm:$0xff] }
 0xa04   : > { %9245 = vmatprep.subr.bf16.mxu1 %v14227_v53  ;;  %v14339_v53 = vcombine.high %v5964_v27, %v5972_v28  ;;  %v6068_v19 = vld [vmem:[%s17864_s0 + $0x9e8] sm:$0xff] }
 0xa06   : > { %9164 = vmatpush1.bf16.msra.mxu0 %v14224_v37  ;;  %v14336_v37 = vcombine.low %v5963_v25, %v5971_v26  ;;  %v6075_v25 = vld [vmem:[%s17864_s0 + $0xa20] sm:$0xff] }
 0xa07   : > { %9246 = vmatpush1.bf16.msra.mxu1 %v14226_v38  ;;  %9165 = vmatprep.subr.bf16.mxu0 %v14241_v39  ;;  %v14338_v38 = vcombine.low %v5964_v27, %v5972_v28  ;;  %v14353_v39 = vcombine.high %v5979_v32, %v5987_v34  ;;  %v6083_v26 = vld [vmem:[%s17864_s0 + $0xa60] sm:$0xff]  ;;  %v6076_v27 = vld [vmem:[%s17864_s0 + $0xa28] sm:$0xff] }
 0xa08   : > { %9247 = vmatprep.subr.bf16.mxu1 %v14243_v40  ;;  %v14355_v40 = vcombine.high %v5980_v36, %v5988_v57  ;;  %v6084_v28 = vld [vmem:[%s17864_s0 + $0xa68] sm:$0xff] }
 0xa0a   : > { %9166 = vmatpush1.bf16.msra.mxu0 %v14240_v49  ;;  %v14352_v49 = vcombine.low %v5979_v32, %v5987_v34  ;;  %v6091_v32 = vld [vmem:[%s17864_s0 + $0xaa0] sm:$0xff] }
 0xa0b   : > { %9248 = vmatpush1.bf16.msra.mxu1 %v14242_v43  ;;  %9167 = vmatprep.subr.bf16.mxu0 %v14257_v33  ;;  %v14354_v43 = vcombine.low %v5980_v36, %v5988_v57  ;;  %v14369_v33 = vcombine.high %v5995_v13, %v6003_v41  ;;  %v6099_v34 = vld [vmem:[%s17864_s0 + $0xae0] sm:$0xff]  ;;  %v6092_v36 = vld [vmem:[%s17864_s0 + $0xaa8] sm:$0xff] }
 0xa0c   : > { %9249 = vmatprep.subr.bf16.mxu1 %v14259_v44  ;;  %v14371_v44 = vcombine.high %v5996_v8, %v6004_v42  ;;  %v6100_v57 = vld [vmem:[%s17864_s0 + $0xae8] sm:$0xff] }
 0xa0e   : > { %9168 = vmatpush1.bf16.msra.mxu0 %v14256_v55  ;;  %v14368_v55 = vcombine.low %v5995_v13, %v6003_v41  ;;  %v6107_v13 = vld [vmem:[%s17864_s0 + $0xb20] sm:$0xff] }
 0xa0f   : > { %9250 = vmatpush1.bf16.msra.mxu1 %v14258_v56  ;;  %9169 = vmatprep.subr.bf16.mxu0 %v14273_v62  ;;  %v14370_v56 = vcombine.low %v5996_v8, %v6004_v42  ;;  %v14385_v62 = vcombine.high %v6011_v45, %v6019_v46  ;;  %v6115_v41 = vld [vmem:[%s17864_s0 + $0xb60] sm:$0xff]  ;;  %v6108_v8 = vld [vmem:[%s17864_s0 + $0xb28] sm:$0xff] }
 0xa10   : > { %9251 = vmatprep.subr.bf16.mxu1 %v14275_v61  ;;  %v14387_v61 = vcombine.high %v6012_v51, %v6020_v54  ;;  %v6116_v42 = vld [vmem:[%s17864_s0 + $0xb68] sm:$0xff] }
 0xa11   : > { %v14483_v46 = vcombine.high %v6108_v8, %v6116_v42 }
 0xa12   : > { %9170 = vmatpush1.bf16.msra.mxu0 %v14272_v17  ;;  %v6036_v17 = vld [vmem:[%s17864_s0 + $0x8e8] sm:$0xff] }
 0xa13   : > { %9252 = vmatpush1.bf16.msra.mxu1 %v14274_v3  ;;  %9171 = vmatprep.subr.bf16.mxu0 %v14289_v4  ;;  %v14386_v3 = vcombine.low %v6012_v51, %v6020_v54  ;;  %v14401_v4 = vcombine.high %v6027_v0, %v6035_v1  ;;  %v14403_v9 = vcombine.high %v6028_v7, %v6036_v17  ;;  %v6123_v51 = vld [vmem:[%s17864_s0 + $0xba0] sm:$0xff] }
 0xa14   : > { %9253 = vmatprep.subr.bf16.mxu1 %v14291_v5  ;;  %v6043_v5 = vld [vmem:[%s17864_s0 + $0x920] sm:$0xff] }
 0xa15   : > { %v6131_v54 = vld [vmem:[%s17864_s0 + $0xbe0] sm:$0xff] }
 0xa16   : > { %9172 = vmatpush1.bf16.msra.mxu0 %v14288_v14  ;;  %v14400_v14 = vcombine.low %v6027_v0, %v6035_v1 }
 0xa17   : > { %9254 = vmatpush1.bf16.msra.mxu1 %v14290_v63  ;;  %9173 = vmatprep.subr.bf16.mxu0 %v14305_v47  ;;  %v14402_v63 = vcombine.low %v6028_v7, %v6036_v17  ;;  %v14417_v47 = vcombine.high %v6043_v5, %v6051_v6 }
 0xa18   : > { %9255 = vmatprep.subr.bf16.mxu1 %v14307_v58  ;;  %v14419_v58 = vcombine.high %v6044_v10, %v6052_v11 }
 0xa1a   : > { %9174 = vmatpush1.bf16.msra.mxu0 %v14304_v21  ;;  %v14416_v21 = vcombine.low %v6043_v5, %v6051_v6  ;;  %v6139_v6 = vld [vmem:[%s17864_s0 + $0xc20] sm:$0xff] }
 0xa1b   : > { %9256 = vmatpush1.bf16.msra.mxu1 %v14306_v22  ;;  %9175 = vmatprep.subr.bf16.mxu0 %v14321_v23  ;;  %v14418_v22 = vcombine.low %v6044_v10, %v6052_v11  ;;  %v14433_v23 = vcombine.high %v6059_v16, %v6067_v35  ;;  %v6140_v10 = vld [vmem:[%s17864_s0 + $0xc28] sm:$0xff] }
 0xa1c   : > { %9257 = vmatprep.subr.bf16.mxu1 %v14323_v24  ;;  %v14435_v24 = vcombine.high %v6060_v18, %v6068_v19  ;;  %v6148_v11 = vld [vmem:[%s17864_s0 + $0xc68] sm:$0xff] }
 0xa1e   : > { %9176 = vmatpush1.bf16.msra.mxu0 %v14320_v29  ;;  %v14432_v29 = vcombine.low %v6059_v16, %v6067_v35  ;;  %v6155_v16 = vld [vmem:[%s17864_s0 + $0xca0] sm:$0xff] }
 0xa1f   : > { %9258 = vmatpush1.bf16.msra.mxu1 %v14322_v30  ;;  %9177 = vmatprep.subr.bf16.mxu0 %v14337_v31  ;;  %v14434_v30 = vcombine.low %v6060_v18, %v6068_v19  ;;  %v14449_v31 = vcombine.high %v6075_v25, %v6083_v26  ;;  %v6163_v35 = vld [vmem:[%s17864_s0 + $0xce0] sm:$0xff]  ;;  %v6156_v18 = vld [vmem:[%s17864_s0 + $0xca8] sm:$0xff] }
 0xa20   : > { %9259 = vmatprep.subr.bf16.mxu1 %v14339_v53  ;;  %v14451_v53 = vcombine.high %v6076_v27, %v6084_v28  ;;  %v6164_v19 = vld [vmem:[%s17864_s0 + $0xce8] sm:$0xff] }
 0xa22   : > { %9178 = vmatpush1.bf16.msra.mxu0 %v14336_v37  ;;  %v14448_v37 = vcombine.low %v6075_v25, %v6083_v26  ;;  %v6171_v25 = vld [vmem:[%s17864_s0 + $0xd20] sm:$0xff] }
 0xa23   : > { %9260 = vmatpush1.bf16.msra.mxu1 %v14338_v38  ;;  %9179 = vmatprep.subr.bf16.mxu0 %v14353_v39  ;;  %v14450_v38 = vcombine.low %v6076_v27, %v6084_v28  ;;  %v14465_v39 = vcombine.high %v6091_v32, %v6099_v34  ;;  %v6179_v26 = vld [vmem:[%s17864_s0 + $0xd60] sm:$0xff]  ;;  %v6172_v27 = vld [vmem:[%s17864_s0 + $0xd28] sm:$0xff] }
 0xa24   : > { %9261 = vmatprep.subr.bf16.mxu1 %v14355_v40  ;;  %v14467_v40 = vcombine.high %v6092_v36, %v6100_v57  ;;  %v6180_v28 = vld [vmem:[%s17864_s0 + $0xd68] sm:$0xff] }
 0xa26   : > { %9180 = vmatpush1.bf16.msra.mxu0 %v14352_v49  ;;  %v14464_v49 = vcombine.low %v6091_v32, %v6099_v34  ;;  %v6187_v32 = vld [vmem:[%s17864_s0 + $0xda0] sm:$0xff] }
 0xa27   : > { %9262 = vmatpush1.bf16.msra.mxu1 %v14354_v43  ;;  %9181 = vmatprep.subr.bf16.mxu0 %v14369_v33  ;;  %v14466_v43 = vcombine.low %v6092_v36, %v6100_v57  ;;  %v14481_v33 = vcombine.high %v6107_v13, %v6115_v41  ;;  %v6195_v34 = vld [vmem:[%s17864_s0 + $0xde0] sm:$0xff]  ;;  %v6188_v36 = vld [vmem:[%s17864_s0 + $0xda8] sm:$0xff] }
 0xa28   : > { %9263 = vmatprep.subr.bf16.mxu1 %v14371_v44  ;;  %v6196_v57 = vld [vmem:[%s17864_s0 + $0xde8] sm:$0xff] }
 0xa2a   : > { %9182 = vmatpush1.bf16.msra.mxu0 %v14368_v55 }
 0xa2b   : > { %9264 = vmatpush1.bf16.msra.mxu1 %v14370_v56  ;;  %9192 = vmatprep.subr.bf16.mxu0 %v14385_v62  ;;  %v6124_v62 = vld [vmem:[%s17864_s0 + $0xba8] sm:$0xff] }
 0xa2c   : > { %9274 = vmatprep.subr.bf16.mxu1 %v14387_v61  ;;  %v6132_v61 = vld [vmem:[%s17864_s0 + $0xbe8] sm:$0xff] }
 0xa2d   : > { %9184 = vmatmul.mubr.bf16.vlgmr.msra.gmra.mrb[40].mxu0 %v18765_v60  ;;  %v14499_v5 = vcombine.high %v6124_v62, %v6132_v61 }
 0xa2e   : > { %9266 = vmatmul.mubr.bf16.vlgmr.msra.gmra.mrb[40].mxu1 %v18765_v60  ;;  %9193 = vmatpush1.bf16.msra.mxu0 %v14384_v2  ;;  %v14480_v2 = vcombine.low %v6107_v13, %v6115_v41  ;;  %v6203_v13 = vld [vmem:[%s17864_s0 + $0xe20] sm:$0xff] }
 0xa2f   : > { %9224 = vmatprep.mubr.bf16.mxu0 %v18777_v12  ;;  %9275 = vmatpush1.bf16.msra.mxu1 %v14386_v3  ;;  %v14482_v3 = vcombine.low %v6108_v8, %v6116_v42  ;;  %v6211_v41 = vld [vmem:[%s17864_s0 + $0xe60] sm:$0xff]  ;;  %v6204_v8 = vld [vmem:[%s17864_s0 + $0xe28] sm:$0xff] }
 0xa30   : > { %9306 = vmatprep.mubr.bf16.mxu1 %v18777_v12  ;;  %9194 = vmatprep.subr.bf16.mxu0 %v14401_v4  ;;  %v14497_v4 = vcombine.high %v6123_v51, %v6131_v54  ;;  %v6212_v42 = vld [vmem:[%s17864_s0 + $0xe68] sm:$0xff] }
 0xa31   : > { %9276 = vmatprep.subr.bf16.mxu1 %v14403_v9  ;;  %v6147_v9 = vld [vmem:[%s17864_s0 + $0xc60] sm:$0xff] }
 0xa32   : > { %9195 = vmatpush1.bf16.msra.mxu0 %v14400_v14  ;;  %v14496_v14 = vcombine.low %v6123_v51, %v6131_v54  ;;  %v6219_v51 = vld [vmem:[%s17864_s0 + $0xea0] sm:$0xff] }
 0xa33   : > { %9277 = vmatpush1.bf16.msra.mxu1 %v14402_v63  ;;  %9196 = vmatprep.subr.bf16.mxu0 %v14417_v47  ;;  %v14498_v63 = vcombine.low %v6124_v62, %v6132_v61  ;;  %v14513_v47 = vcombine.high %v6139_v6, %v6147_v9  ;;  %v6227_v54 = vld [vmem:[%s17864_s0 + $0xee0] sm:$0xff]  ;;  %v6220_v62 = vld [vmem:[%s17864_s0 + $0xea8] sm:$0xff] }
 0xa34   : > { %9278 = vmatprep.subr.bf16.mxu1 %v14419_v58  ;;  %v14515_v58 = vcombine.high %v6140_v10, %v6148_v11  ;;  %v6228_v61 = vld [vmem:[%s17864_s0 + $0xee8] sm:$0xff] }
 0xa36   : > { %9197 = vmatpush1.bf16.msra.mxu0 %v14416_v21  ;;  %v14512_v21 = vcombine.low %v6139_v6, %v6147_v9  ;;  %v14592_v6 = vcombine.low %v6219_v51, %v6227_v54  ;;  %v14594_v9 = vcombine.low %v6220_v62, %v6228_v61 }
 0xa37   : > { %9279 = vmatpush1.bf16.msra.mxu1 %v14418_v22  ;;  %9198 = vmatprep.subr.bf16.mxu0 %v14433_v23  ;;  %v14514_v22 = vcombine.low %v6140_v10, %v6148_v11  ;;  %v14529_v23 = vcombine.high %v6155_v16, %v6163_v35 }
 0xa38   : > { %9280 = vmatprep.subr.bf16.mxu1 %v14435_v24  ;;  %v14531_v24 = vcombine.high %v6156_v18, %v6164_v19 }
 0xa3a   : > { %9199 = vmatpush1.bf16.msra.mxu0 %v14432_v29  ;;  %v14528_v29 = vcombine.low %v6155_v16, %v6163_v35 }
 0xa3b   : > { %9281 = vmatpush1.bf16.msra.mxu1 %v14434_v30  ;;  %9200 = vmatprep.subr.bf16.mxu0 %v14449_v31  ;;  %v14530_v30 = vcombine.low %v6156_v18, %v6164_v19  ;;  %v14545_v31 = vcombine.high %v6171_v25, %v6179_v26 }
 0xa3c   : > { %9282 = vmatprep.subr.bf16.mxu1 %v14451_v53  ;;  %v14547_v53 = vcombine.high %v6172_v27, %v6180_v28 }
 0xa3e   : > { %9201 = vmatpush1.bf16.msra.mxu0 %v14448_v37  ;;  %v14544_v37 = vcombine.low %v6171_v25, %v6179_v26 }
 0xa3f   : > { %9283 = vmatpush1.bf16.msra.mxu1 %v14450_v38  ;;  %9202 = vmatprep.subr.bf16.mxu0 %v14465_v39  ;;  %v14546_v38 = vcombine.low %v6172_v27, %v6180_v28  ;;  %v14561_v39 = vcombine.high %v6187_v32, %v6195_v34 }
 0xa40   : > { %v19077_v44 = vpop.f32.mrb[32].mxu0  ;;  %v19079_v45 = vpop.f32.mrb[32].mxu1  ;;  %9284 = vmatprep.subr.bf16.mxu1 %v14467_v40  ;;  %v14563_v40 = vcombine.high %v6188_v36, %v6196_v57 }
 0xa41   : > { %v19083_v55 = vpop.f32.mrb[33].mxu0  ;;  %v19085_v56 = vpop.f32.mrb[33].mxu1 }
 0xa42   : > { %v8902_v0 = vpop.f32.mrb[34].mxu0  ;;  %v8984_v1 = vpop.f32.mrb[34].mxu1  ;;  %9203 = vmatpush1.bf16.msra.mxu0 %v14464_v49  ;;  %v14560_v49 = vcombine.low %v6187_v32, %v6195_v34  ;;  %v5782_v32 = vld [vmem:[%s17864_s0 + $0xf8] sm:$0xff] }
 0xa43   : > { %9285 = vmatpush1.bf16.msra.mxu1 %v14466_v43  ;;  %v8903_v7 = vpop.f32.mrb[35].mxu0  ;;  %v8985_v17 = vpop.f32.mrb[35].mxu1  ;;  %9204 = vmatprep.subr.bf16.mxu0 %v14481_v33  ;;  %v14562_v43 = vcombine.low %v6188_v36, %v6196_v57  ;;  %v14577_v33 = vcombine.high %v6203_v13, %v6211_v41  ;;  %v14576_v0 = vcombine.low %v6203_v13, %v6211_v41  ;;  %v5789_v57 = vld [vmem:[%s17864_s0 + $0x130] sm:$0xff] }
 0xa44   : > { %9286 = vmatprep.subr.bf16.mxu1 %v14483_v46  ;;  %v14579_v46 = vcombine.high %v6204_v8, %v6212_v42  ;;  %v14578_v1 = vcombine.low %v6204_v8, %v6212_v42  ;;  %v14595_v7 = vcombine.high %v6220_v62, %v6228_v61  ;;  %v6235_v17 = vld [vmem:[%s17864_s0 + $0xf20] sm:$0xff]  ;;  %v5821_v61 = vld [vmem:[%s17864_s0 + $0x230] sm:$0xff] }
 0xa46   : > { %9205 = vmatpush1.bf16.msra.mxu0 %v14480_v2  ;;  %v14593_v2 = vcombine.high %v6219_v51, %v6227_v54 }
 0xa47   : > { %9287 = vmatpush1.bf16.msra.mxu1 %v14482_v3  ;;  %9206 = vmatprep.subr.bf16.mxu0 %v14497_v4  ;;  %v6243_v3 = vld [vmem:[%s17864_s0 + $0xf60] sm:$0xff]  ;;  %v6236_v4 = vld [vmem:[%s17864_s0 + $0xf28] sm:$0xff] }
 0xa48   : > { %9288 = vmatprep.subr.bf16.mxu1 %v14499_v5  ;;  %v6244_v5 = vld [vmem:[%s17864_s0 + $0xf68] sm:$0xff]  ;;  %v14609_v10 = vcombine.high %v6235_v17, %v6243_v3  ;;  %v14608_v16 = vcombine.low %v6235_v17, %v6243_v3 }
 0xa49   : > { %v14611_v11 = vcombine.high %v6236_v4, %v6244_v5  ;;  %v14610_v35 = vcombine.low %v6236_v4, %v6244_v5  ;;  %v5837_v5 = vld [vmem:[%s17864_s0 + $0x2b0] sm:$0xff] }
 0xa4a   : > { %9207 = vmatpush1.bf16.msra.mxu0 %v14496_v14  ;;  %v6251_v14 = vld [vmem:[%s17864_s0 + $0xfa0] sm:$0xff] }
 0xa4b   : > { %9289 = vmatpush1.bf16.msra.mxu1 %v14498_v63  ;;  %9208 = vmatprep.subr.bf16.mxu0 %v14513_v47  ;;  %v6259_v63 = vld [vmem:[%s17864_s0 + $0xfe0] sm:$0xff]  ;;  %v6252_v47 = vld [vmem:[%s17864_s0 + $0xfa8] sm:$0xff] }
 0xa4c   : > { %9290 = vmatprep.subr.bf16.mxu1 %v14515_v58  ;;  %v6260_v58 = vld [vmem:[%s17864_s0 + $0xfe8] sm:$0xff]  ;;  %v14625_v18 = vcombine.high %v6251_v14, %v6259_v63  ;;  %v14624_v25 = vcombine.low %v6251_v14, %v6259_v63 }
 0xa4d   : > { %v14627_v19 = vcombine.high %v6252_v47, %v6260_v58  ;;  %v14626_v26 = vcombine.low %v6252_v47, %v6260_v58  ;;  %v5853_v58 = vld [vmem:[%s17864_s0 + $0x330] sm:$0xff] }
 0xa4e   : > { %9209 = vmatpush1.bf16.msra.mxu0 %v14512_v21  ;;  %v5757_v21 = vld [vmem:[%s17864_s0 + $0x30] sm:$0xff] }
 0xa4f   : > { %9291 = vmatpush1.bf16.msra.mxu1 %v14514_v22  ;;  %9210 = vmatprep.subr.bf16.mxu0 %v14529_v23  ;;  %v5765_v22 = vld [vmem:[%s17864_s0 + $0x70] sm:$0xff]  ;;  %v5758_v23 = vld [vmem:[%s17864_s0 + $0x38] sm:$0xff] }
 0xa50   : > { %9292 = vmatprep.subr.bf16.mxu1 %v14531_v24  ;;  %v5766_v24 = vld [vmem:[%s17864_s0 + $0x78] sm:$0xff]  ;;  %v14133_v27 = vcombine.high %v5757_v21, %v5765_v22 }
 0xa51   : > { %v14135_v28 = vcombine.high %v5758_v23, %v5766_v24  ;;  %v14134_v34 = vcombine.low %v5758_v23, %v5766_v24  ;;  %v5869_v24 = vld [vmem:[%s17864_s0 + $0x3b0] sm:$0xff] }
 0xa52   : > { %9211 = vmatpush1.bf16.msra.mxu0 %v14528_v29  ;;  %v5773_v29 = vld [vmem:[%s17864_s0 + $0xb0] sm:$0xff] }
 0xa53   : > { %9293 = vmatpush1.bf16.msra.mxu1 %v14530_v30  ;;  %9212 = vmatprep.subr.bf16.mxu0 %v14545_v31  ;;  %v5781_v30 = vld [vmem:[%s17864_s0 + $0xf0] sm:$0xff]  ;;  %v14132_v31 = vcombine.low %v5757_v21, %v5765_v22 }
 0xa54   : > { %9294 = vmatprep.subr.bf16.mxu1 %v14547_v53  ;;  %v5774_v53 = vld [vmem:[%s17864_s0 + $0xb8] sm:$0xff]  ;;  %v14149_v36 = vcombine.high %v5773_v29, %v5781_v30  ;;  %v14148_v13 = vcombine.low %v5773_v29, %v5781_v30 }
 0xa55   : > { %v14150_v41 = vcombine.low %v5774_v53, %v5782_v32 }
 0xa56   : > { %9213 = vmatpush1.bf16.msra.mxu0 %v14544_v37  ;;  %v5797_v37 = vld [vmem:[%s17864_s0 + $0x170] sm:$0xff] }
 0xa57   : > { %9295 = vmatpush1.bf16.msra.mxu1 %v14546_v38  ;;  %9214 = vmatprep.subr.bf16.mxu0 %v14561_v39  ;;  %v14151_v38 = vcombine.high %v5774_v53, %v5782_v32  ;;  %v5790_v39 = vld [vmem:[%s17864_s0 + $0x138] sm:$0xff]  ;;  %v14165_v8 = vcombine.high %v5789_v57, %v5797_v37  ;;  %v14164_v51 = vcombine.low %v5789_v57, %v5797_v37  ;;  %v5885_v53 = vld [vmem:[%s17864_s0 + $0x430] sm:$0xff] }
 0xa58   : > { %9296 = vmatprep.subr.bf16.mxu1 %v14563_v40  ;;  %v5798_v40 = vld [vmem:[%s17864_s0 + $0x178] sm:$0xff]  ;;  %v5893_v32 = vld [vmem:[%s17864_s0 + $0x470] sm:$0xff] }
 0xa59   : > { %v14167_v42 = vcombine.high %v5790_v39, %v5798_v40  ;;  %v14166_v54 = vcombine.low %v5790_v39, %v5798_v40  ;;  %v5901_v40 = vld [vmem:[%s17864_s0 + $0x4b0] sm:$0xff] }
 0xa5a   : > { %9215 = vmatpush1.bf16.msra.mxu0 %v14560_v49  ;;  %v5805_v49 = vld [vmem:[%s17864_s0 + $0x1b0] sm:$0xff] }
 0xa5b   : > { %9297 = vmatpush1.bf16.msra.mxu1 %v14562_v43  ;;  %9216 = vmatprep.subr.bf16.mxu0 %v14577_v33  ;;  %v5813_v43 = vld [vmem:[%s17864_s0 + $0x1f0] sm:$0xff]  ;;  %v5806_v33 = vld [vmem:[%s17864_s0 + $0x1b8] sm:$0xff] }
 0xa5c   : > { %9298 = vmatprep.subr.bf16.mxu1 %v14579_v46  ;;  %v5814_v46 = vld [vmem:[%s17864_s0 + $0x1f8] sm:$0xff]  ;;  %v14181_v62 = vcombine.high %v5805_v49, %v5813_v43 }
 0xa5d   : > { %v14182_v17 = vcombine.low %v5806_v33, %v5814_v46 }
 0xa5e   : > { %9217 = vmatpush1.bf16.msra.mxu0 %v14576_v0  ;;  %v5829_v0 = vld [vmem:[%s17864_s0 + $0x270] sm:$0xff] }
 0xa5f   : > { %9299 = vmatpush1.bf16.msra.mxu1 %v14578_v1  ;;  %9218 = vmatprep.subr.bf16.mxu0 %v14593_v2  ;;  %v5822_v1 = vld [vmem:[%s17864_s0 + $0x238] sm:$0xff]  ;;  %v14197_v3 = vcombine.high %v5821_v61, %v5829_v0 }
 0xa60   : > { %9300 = vmatprep.subr.bf16.mxu1 %v14595_v7  ;;  %v5830_v2 = vld [vmem:[%s17864_s0 + $0x278] sm:$0xff]  ;;  %v14180_v7 = vcombine.low %v5805_v49, %v5813_v43 }
 0xa61   : > { %v14199_v4 = vcombine.high %v5822_v1, %v5830_v2  ;;  %v14198_v14 = vcombine.low %v5822_v1, %v5830_v2  ;;  %v5933_v2 = vld [vmem:[%s17864_s0 + $0x5b0] sm:$0xff] }
 0xa62   : > { %9219 = vmatpush1.bf16.msra.mxu0 %v14592_v6  ;;  %v5845_v6 = vld [vmem:[%s17864_s0 + $0x2f0] sm:$0xff] }
 0xa63   : > { %9301 = vmatpush1.bf16.msra.mxu1 %v14594_v9  ;;  %9220 = vmatprep.subr.bf16.mxu0 %v14609_v10  ;;  %v5838_v9 = vld [vmem:[%s17864_s0 + $0x2b8] sm:$0xff]  ;;  %v14213_v63 = vcombine.high %v5837_v5, %v5845_v6 }
 0xa64   : > { %9302 = vmatprep.subr.bf16.mxu1 %v14611_v11  ;;  %v5846_v10 = vld [vmem:[%s17864_s0 + $0x2f8] sm:$0xff]  ;;  %v14196_v11 = vcombine.low %v5821_v61, %v5829_v0 }
 0xa65   : > { %v14215_v47 = vcombine.high %v5838_v9, %v5846_v10  ;;  %v14214_v21 = vcombine.low %v5838_v9, %v5846_v10  ;;  %v5949_v10 = vld [vmem:[%s17864_s0 + $0x630] sm:$0xff] }
 0xa66   : > { %9221 = vmatpush1.bf16.msra.mxu0 %v14608_v16  ;;  %v5861_v16 = vld [vmem:[%s17864_s0 + $0x370] sm:$0xff] }
 0xa67   : > { %9303 = vmatpush1.bf16.msra.mxu1 %v14610_v35  ;;  %9222 = vmatprep.subr.bf16.mxu0 %v14625_v18  ;;  %v5854_v35 = vld [vmem:[%s17864_s0 + $0x338] sm:$0xff]  ;;  %v14229_v22 = vcombine.high %v5853_v58, %v5861_v16 }
 0xa68   : > { %9304 = vmatprep.subr.bf16.mxu1 %v14627_v19  ;;  %v5862_v18 = vld [vmem:[%s17864_s0 + $0x378] sm:$0xff]  ;;  %v14212_v19 = vcombine.low %v5837_v5, %v5845_v6 }
 0xa69   : > { %v14231_v23 = vcombine.high %v5854_v35, %v5862_v18  ;;  %v14230_v29 = vcombine.low %v5854_v35, %v5862_v18  ;;  %v5965_v18 = vld [vmem:[%s17864_s0 + $0x6b0] sm:$0xff] }
 0xa6a   : > { %9223 = vmatpush1.bf16.msra.mxu0 %v14624_v25  ;;  %v5877_v25 = vld [vmem:[%s17864_s0 + $0x3f0] sm:$0xff] }
 0xa6b   : > { %9305 = vmatpush1.bf16.msra.mxu1 %v14626_v26  ;;  %9315 = vmatprep.subr.bf16.mxu0 %v14133_v27  ;;  %v5870_v26 = vld [vmem:[%s17864_s0 + $0x3b8] sm:$0xff]  ;;  %v14245_v30 = vcombine.high %v5869_v24, %v5877_v25  ;;  %v14244_v57 = vcombine.low %v5869_v24, %v5877_v25 }
 0xa6c   : > { %9397 = vmatprep.subr.bf16.mxu1 %v14135_v28  ;;  %v5878_v27 = vld [vmem:[%s17864_s0 + $0x3f8] sm:$0xff]  ;;  %v14228_v28 = vcombine.low %v5853_v58, %v5861_v16 }
 0xa6d   : > { %9225 = vmatmul.mubr.bf16.vlgmr.msra.gmra.mrb[40].mxu0 %v18847_v15  ;;  %v14246_v37 = vcombine.low %v5870_v26, %v5878_v27 }
 0xa6e   : > { %9307 = vmatmul.mubr.bf16.vlgmr.msra.gmra.mrb[40].mxu1 %v18847_v15  ;;  %9316 = vmatpush1.bf16.msra.mxu0 %v14132_v31  ;;  %v14247_v31 = vcombine.high %v5870_v26, %v5878_v27  ;;  %v5981_v27 = vld [vmem:[%s17864_s0 + $0x730] sm:$0xff] }
 0xa6f   : > { %9347 = vmatprep.mubr.bf16.mxu0 %v18761_v59  ;;  %9398 = vmatpush1.bf16.msra.mxu1 %v14134_v34  ;;  %v5886_v34 = vld [vmem:[%s17864_s0 + $0x438] sm:$0xff] }
 0xa70   : > { %9429 = vmatprep.mubr.bf16.mxu1 %v18761_v59  ;;  %9317 = vmatprep.subr.bf16.mxu0 %v14149_v36  ;;  %v14183_v59 = vcombine.high %v5806_v33, %v5814_v46  ;;  %v5894_v36 = vld [vmem:[%s17864_s0 + $0x478] sm:$0xff]  ;;  %v5917_v46 = vld [vmem:[%s17864_s0 + $0x530] sm:$0xff] }
 0xa71   : > { %9399 = vmatprep.subr.bf16.mxu1 %v14151_v38  ;;  %v14261_v38 = vcombine.high %v5885_v53, %v5893_v32  ;;  %v14263_v39 = vcombine.high %v5886_v34, %v5894_v36  ;;  %v14262_v49 = vcombine.low %v5886_v34, %v5894_v36  ;;  %v5997_v36 = vld [vmem:[%s17864_s0 + $0x7b0] sm:$0xff] }
 0xa72   : > { %9318 = vmatpush1.bf16.msra.mxu0 %v14148_v13  ;;  %v5909_v13 = vld [vmem:[%s17864_s0 + $0x4f0] sm:$0xff] }
 0xa73   : > { %9400 = vmatpush1.bf16.msra.mxu1 %v14150_v41  ;;  %9319 = vmatprep.subr.bf16.mxu0 %v14165_v8  ;;  %v5902_v41 = vld [vmem:[%s17864_s0 + $0x4b8] sm:$0xff]  ;;  %v14277_v43 = vcombine.high %v5901_v40, %v5909_v13 }
 0xa74   : > { %9401 = vmatprep.subr.bf16.mxu1 %v14167_v42  ;;  %v5910_v8 = vld [vmem:[%s17864_s0 + $0x4f8] sm:$0xff]  ;;  %v14260_v42 = vcombine.low %v5885_v53, %v5893_v32 }
 0xa75   : > { %v14279_v33 = vcombine.high %v5902_v41, %v5910_v8  ;;  %v14278_v61 = vcombine.low %v5902_v41, %v5910_v8  ;;  %v6013_v8 = vld [vmem:[%s17864_s0 + $0x830] sm:$0xff] }
 0xa76   : > { %9320 = vmatpush1.bf16.msra.mxu0 %v14164_v51  ;;  %v5925_v51 = vld [vmem:[%s17864_s0 + $0x570] sm:$0xff] }
 0xa77   : > { %9402 = vmatpush1.bf16.msra.mxu1 %v14166_v54  ;;  %9321 = vmatprep.subr.bf16.mxu0 %v14181_v62  ;;  %v5918_v54 = vld [vmem:[%s17864_s0 + $0x538] sm:$0xff]  ;;  %v14293_v0 = vcombine.high %v5917_v46, %v5925_v51 }
 0xa78   : > { %9403 = vmatprep.subr.bf16.mxu1 %v14183_v59  ;;  %v5926_v62 = vld [vmem:[%s17864_s0 + $0x578] sm:$0xff]  ;;  %v14276_v59 = vcombine.low %v5901_v40, %v5909_v13 }
 0xa79   : > { %v14295_v1 = vcombine.high %v5918_v54, %v5926_v62  ;;  %v14294_v5 = vcombine.low %v5918_v54, %v5926_v62  ;;  %v6029_v62 = vld [vmem:[%s17864_s0 + $0x8b0] sm:$0xff] }
 0xa7a   : > { %9322 = vmatpush1.bf16.msra.mxu0 %v14180_v7  ;;  %v5941_v7 = vld [vmem:[%s17864_s0 + $0x5f0] sm:$0xff] }
 0xa7b   : > { %9404 = vmatpush1.bf16.msra.mxu1 %v14182_v17  ;;  %9323 = vmatprep.subr.bf16.mxu0 %v14197_v3  ;;  %v5934_v17 = vld [vmem:[%s17864_s0 + $0x5b8] sm:$0xff]  ;;  %v14309_v6 = vcombine.high %v5933_v2, %v5941_v7 }
 0xa7c   : > { %9405 = vmatprep.subr.bf16.mxu1 %v14199_v4  ;;  %v5942_v3 = vld [vmem:[%s17864_s0 + $0x5f8] sm:$0xff]  ;;  %v14292_v4 = vcombine.low %v5917_v46, %v5925_v51 }
 0xa7d   : > { %v14311_v9 = vcombine.high %v5934_v17, %v5942_v3  ;;  %v14310_v58 = vcombine.low %v5934_v17, %v5942_v3  ;;  %v6045_v17 = vld [vmem:[%s17864_s0 + $0x930] sm:$0xff] }
 0xa7e   : > { %9324 = vmatpush1.bf16.msra.mxu0 %v14196_v11  ;;  %v5957_v11 = vld [vmem:[%s17864_s0 + $0x670] sm:$0xff] }
 0xa7f   : > { %9406 = vmatpush1.bf16.msra.mxu1 %v14198_v14  ;;  %9325 = vmatprep.subr.bf16.mxu0 %v14213_v63  ;;  %v5950_v14 = vld [vmem:[%s17864_s0 + $0x638] sm:$0xff]  ;;  %v14325_v16 = vcombine.high %v5949_v10, %v5957_v11  ;;  %v6053_v3 = vld [vmem:[%s17864_s0 + $0x970] sm:$0xff] }
 0xa80   : > { %9407 = vmatprep.subr.bf16.mxu1 %v14215_v47  ;;  %v5958_v63 = vld [vmem:[%s17864_s0 + $0x678] sm:$0xff]  ;;  %v14308_v47 = vcombine.low %v5933_v2, %v5941_v7 }
 0xa81   : > { %v14327_v35 = vcombine.high %v5950_v14, %v5958_v63  ;;  %v14326_v24 = vcombine.low %v5950_v14, %v5958_v63  ;;  %v6061_v63 = vld [vmem:[%s17864_s0 + $0x9b0] sm:$0xff] }
 0xa82   : > { %9326 = vmatpush1.bf16.msra.mxu0 %v14212_v19  ;;  %v5973_v19 = vld [vmem:[%s17864_s0 + $0x6f0] sm:$0xff] }
 0xa83   : > { %9408 = vmatpush1.bf16.msra.mxu1 %v14214_v21  ;;  %9327 = vmatprep.subr.bf16.mxu0 %v14229_v22  ;;  %v5966_v21 = vld [vmem:[%s17864_s0 + $0x6b8] sm:$0xff]  ;;  %v14341_v25 = vcombine.high %v5965_v18, %v5973_v19 }
 0xa84   : > { %9409 = vmatprep.subr.bf16.mxu1 %v14231_v23  ;;  %v5974_v22 = vld [vmem:[%s17864_s0 + $0x6f8] sm:$0xff]  ;;  %v14324_v23 = vcombine.low %v5949_v10, %v5957_v11  ;;  %v14421_v11 = vcombine.high %v6045_v17, %v6053_v3 }
 0xa85   : > { %v14343_v26 = vcombine.high %v5966_v21, %v5974_v22  ;;  %v14342_v53 = vcombine.low %v5966_v21, %v5974_v22  ;;  %v6085_v21 = vld [vmem:[%s17864_s0 + $0xa70] sm:$0xff]  ;;  %v6078_v22 = vld [vmem:[%s17864_s0 + $0xa38] sm:$0xff] }
 0xa86   : > { %9328 = vmatpush1.bf16.msra.mxu0 %v14228_v28  ;;  %v5989_v28 = vld [vmem:[%s17864_s0 + $0x770] sm:$0xff] }
 0xa87   : > { %9410 = vmatpush1.bf16.msra.mxu1 %v14230_v29  ;;  %9329 = vmatprep.subr.bf16.mxu0 %v14245_v30  ;;  %v5982_v29 = vld [vmem:[%s17864_s0 + $0x738] sm:$0xff]  ;;  %v14357_v32 = vcombine.high %v5981_v27, %v5989_v28 }
 0xa88   : > { %9411 = vmatprep.subr.bf16.mxu1 %v14247_v31  ;;  %v5990_v30 = vld [vmem:[%s17864_s0 + $0x778] sm:$0xff]  ;;  %v14340_v31 = vcombine.low %v5965_v18, %v5973_v19  ;;  %v6077_v19 = vld [vmem:[%s17864_s0 + $0xa30] sm:$0xff] }
 0xa89   : > { %v14359_v34 = vcombine.high %v5982_v29, %v5990_v30  ;;  %v14358_v40 = vcombine.low %v5982_v29, %v5990_v30  ;;  %v6101_v29 = vld [vmem:[%s17864_s0 + $0xaf0] sm:$0xff]  ;;  %v6094_v30 = vld [vmem:[%s17864_s0 + $0xab8] sm:$0xff] }
 0xa8a   : > { %9330 = vmatpush1.bf16.msra.mxu0 %v14244_v57  ;;  %v6005_v57 = vld [vmem:[%s17864_s0 + $0x7f0] sm:$0xff] }
 0xa8b   : > { %9412 = vmatpush1.bf16.msra.mxu1 %v14246_v37  ;;  %9331 = vmatprep.subr.bf16.mxu0 %v14261_v38  ;;  %v5998_v37 = vld [vmem:[%s17864_s0 + $0x7b8] sm:$0xff]  ;;  %v14373_v13 = vcombine.high %v5997_v36, %v6005_v57 }
 0xa8c   : > { %9413 = vmatprep.subr.bf16.mxu1 %v14263_v39  ;;  %v6006_v38 = vld [vmem:[%s17864_s0 + $0x7f8] sm:$0xff]  ;;  %v14356_v39 = vcombine.low %v5981_v27, %v5989_v28  ;;  %v6093_v28 = vld [vmem:[%s17864_s0 + $0xab0] sm:$0xff] }
 0xa8d   : > { %v14375_v41 = vcombine.high %v5998_v37, %v6006_v38  ;;  %v14374_v46 = vcombine.low %v5998_v37, %v6006_v38  ;;  %v6117_v37 = vld [vmem:[%s17864_s0 + $0xb70] sm:$0xff]  ;;  %v6110_v38 = vld [vmem:[%s17864_s0 + $0xb38] sm:$0xff] }
 0xa8e   : > { %9332 = vmatpush1.bf16.msra.mxu0 %v14260_v42  ;;  %v6021_v42 = vld [vmem:[%s17864_s0 + $0x870] sm:$0xff] }
 0xa8f   : > { %9414 = vmatpush1.bf16.msra.mxu1 %v14262_v49  ;;  %9333 = vmatprep.subr.bf16.mxu0 %v14277_v43  ;;  %v6014_v49 = vld [vmem:[%s17864_s0 + $0x838] sm:$0xff]  ;;  %v14389_v51 = vcombine.high %v6013_v8, %v6021_v42 }
 0xa90   : > { %9415 = vmatprep.subr.bf16.mxu1 %v14279_v33  ;;  %v6022_v43 = vld [vmem:[%s17864_s0 + $0x878] sm:$0xff]  ;;  %v14372_v33 = vcombine.low %v5997_v36, %v6005_v57  ;;  %v6109_v57 = vld [vmem:[%s17864_s0 + $0xb30] sm:$0xff] }
 0xa91   : > { %v14391_v54 = vcombine.high %v6014_v49, %v6022_v43  ;;  %v14390_v2 = vcombine.low %v6014_v49, %v6022_v43  ;;  %v6125_v49 = vld [vmem:[%s17864_s0 + $0xbb0] sm:$0xff] }
 0xa92   : > { %9334 = vmatpush1.bf16.msra.mxu0 %v14276_v59  ;;  %v6037_v59 = vld [vmem:[%s17864_s0 + $0x8f0] sm:$0xff] }
 0xa93   : > { %9416 = vmatpush1.bf16.msra.mxu1 %v14278_v61  ;;  %9335 = vmatprep.subr.bf16.mxu0 %v14293_v0  ;;  %v14388_v61 = vcombine.low %v6013_v8, %v6021_v42  ;;  %v6030_v0 = vld [vmem:[%s17864_s0 + $0x8b8] sm:$0xff]  ;;  %v14405_v7 = vcombine.high %v6029_v62, %v6037_v59  ;;  %v6133_v43 = vld [vmem:[%s17864_s0 + $0xbf0] sm:$0xff] }
 0xa94   : > { %9417 = vmatprep.subr.bf16.mxu1 %v14295_v1  ;;  %v6038_v1 = vld [vmem:[%s17864_s0 + $0x8f8] sm:$0xff] }
 0xa95   : > { %v14406_v10 = vcombine.low %v6030_v0, %v6038_v1 }
 0xa96   : > { %9336 = vmatpush1.bf16.msra.mxu0 %v14292_v4  ;;  %v14407_v4 = vcombine.high %v6030_v0, %v6038_v1 }
 0xa97   : > { %9418 = vmatpush1.bf16.msra.mxu1 %v14294_v5  ;;  %9337 = vmatprep.subr.bf16.mxu0 %v14309_v6  ;;  %v6046_v5 = vld [vmem:[%s17864_s0 + $0x938] sm:$0xff] }
 0xa98   : > { %9419 = vmatprep.subr.bf16.mxu1 %v14311_v9  ;;  %v6054_v6 = vld [vmem:[%s17864_s0 + $0x978] sm:$0xff]  ;;  %v14404_v9 = vcombine.low %v6029_v62, %v6037_v59 }
 0xa99   : > { %v14423_v14 = vcombine.high %v6046_v5, %v6054_v6 }
 0xa9a   : > { %9338 = vmatpush1.bf16.msra.mxu0 %v14308_v47  ;;  %v6069_v47 = vld [vmem:[%s17864_s0 + $0x9f0] sm:$0xff] }
 0xa9b   : > { %9420 = vmatpush1.bf16.msra.mxu1 %v14310_v58  ;;  %9339 = vmatprep.subr.bf16.mxu0 %v14325_v16  ;;  %v6062_v58 = vld [vmem:[%s17864_s0 + $0x9b8] sm:$0xff]  ;;  %v14420_v16 = vcombine.low %v6045_v17, %v6053_v3  ;;  %v14437_v18 = vcombine.high %v6061_v63, %v6069_v47 }
 0xa9c   : > { %9421 = vmatprep.subr.bf16.mxu1 %v14327_v35  ;;  %v14422_v35 = vcombine.low %v6046_v5, %v6054_v6  ;;  %v6149_v5 = vld [vmem:[%s17864_s0 + $0xc70] sm:$0xff]  ;;  %v6142_v6 = vld [vmem:[%s17864_s0 + $0xc38] sm:$0xff] }
 0xa9e   : > { %9340 = vmatpush1.bf16.msra.mxu0 %v14324_v23  ;;  %v6086_v23 = vld [vmem:[%s17864_s0 + $0xa78] sm:$0xff] }
 0xa9f   : > { %9422 = vmatpush1.bf16.msra.mxu1 %v14326_v24  ;;  %9341 = vmatprep.subr.bf16.mxu0 %v14341_v25  ;;  %v14436_v24 = vcombine.low %v6061_v63, %v6069_v47  ;;  %v14455_v27 = vcombine.high %v6078_v22, %v6086_v23  ;;  %v6157_v47 = vld [vmem:[%s17864_s0 + $0xcb0] sm:$0xff] }
 0xaa0   : > { %9423 = vmatprep.subr.bf16.mxu1 %v14343_v26  ;;  %v14453_v26 = vcombine.high %v6077_v19, %v6085_v21 }
 0xaa2   : > { %9342 = vmatpush1.bf16.msra.mxu0 %v14340_v31  ;;  %v6102_v31 = vld [vmem:[%s17864_s0 + $0xaf8] sm:$0xff] }
 0xaa3   : > { %9424 = vmatpush1.bf16.msra.mxu1 %v14342_v53  ;;  %9343 = vmatprep.subr.bf16.mxu0 %v14357_v32  ;;  %v14452_v53 = vcombine.low %v6077_v19, %v6085_v21  ;;  %v14454_v32 = vcombine.low %v6078_v22, %v6086_v23  ;;  %v14471_v36 = vcombine.high %v6094_v30, %v6102_v31  ;;  %v6173_v21 = vld [vmem:[%s17864_s0 + $0xd30] sm:$0xff]  ;;  %v6174_v23 = vld [vmem:[%s17864_s0 + $0xd38] sm:$0xff] }
 0xaa4   : > { %9425 = vmatprep.subr.bf16.mxu1 %v14359_v34  ;;  %v14469_v34 = vcombine.high %v6093_v28, %v6101_v29  ;;  %v6181_v22 = vld [vmem:[%s17864_s0 + $0xd70] sm:$0xff] }
 0xaa6   : > { %9344 = vmatpush1.bf16.msra.mxu0 %v14356_v39  ;;  %v6118_v39 = vld [vmem:[%s17864_s0 + $0xb78] sm:$0xff] }
 0xaa7   : > { %9426 = vmatpush1.bf16.msra.mxu1 %v14358_v40  ;;  %9345 = vmatprep.subr.bf16.mxu0 %v14373_v13  ;;  %v14468_v40 = vcombine.low %v6093_v28, %v6101_v29  ;;  %v14470_v13 = vcombine.low %v6094_v30, %v6102_v31  ;;  %v14487_v42 = vcombine.high %v6110_v38, %v6118_v39  ;;  %v6189_v29 = vld [vmem:[%s17864_s0 + $0xdb0] sm:$0xff]  ;;  %v6190_v31 = vld [vmem:[%s17864_s0 + $0xdb8] sm:$0xff] }
 0xaa8   : > { %9427 = vmatprep.subr.bf16.mxu1 %v14375_v41  ;;  %v14485_v41 = vcombine.high %v6109_v57, %v6117_v37  ;;  %v6197_v30 = vld [vmem:[%s17864_s0 + $0xdf0] sm:$0xff] }
 0xaaa   : > { %9346 = vmatpush1.bf16.msra.mxu0 %v14372_v33 }
 0xaab   : > { %9428 = vmatpush1.bf16.msra.mxu1 %v14374_v46  ;;  %9356 = vmatprep.subr.bf16.mxu0 %v14389_v51  ;;  %v6126_v51 = vld [vmem:[%s17864_s0 + $0xbb8] sm:$0xff] }
 0xaac   : > { %9438 = vmatprep.subr.bf16.mxu1 %v14391_v54  ;;  %v6134_v54 = vld [vmem:[%s17864_s0 + $0xbf8] sm:$0xff] }
 0xaad   : > { %9348 = vmatmul.mubr.bf16.vlgmr.msra.gmra.mrb[44].mxu0 %v18765_v60  ;;  %v14503_v3 = vcombine.high %v6126_v51, %v6134_v54 }
 0xaae   : > { %9430 = vmatmul.mubr.bf16.vlgmr.msra.gmra.mrb[44].mxu1 %v18765_v60  ;;  %9357 = vmatpush1.bf16.msra.mxu0 %v14388_v61  ;;  %v6070_v60 = vld [vmem:[%s17864_s0 + $0x9f8] sm:$0xff]  ;;  %v14484_v61 = vcombine.low %v6109_v57, %v6117_v37  ;;  %v6205_v37 = vld [vmem:[%s17864_s0 + $0xe30] sm:$0xff] }
 0xaaf   : > { %9388 = vmatprep.mubr.bf16.mxu0 %v18777_v12  ;;  %9439 = vmatpush1.bf16.msra.mxu1 %v14390_v2  ;;  %v14438_v25 = vcombine.low %v6062_v58, %v6070_v60  ;;  %v14486_v2 = vcombine.low %v6110_v38, %v6118_v39  ;;  %v6213_v38 = vld [vmem:[%s17864_s0 + $0xe70] sm:$0xff]  ;;  %v6206_v39 = vld [vmem:[%s17864_s0 + $0xe38] sm:$0xff] }
 0xab0   : > { %9470 = vmatprep.mubr.bf16.mxu1 %v18777_v12  ;;  %9358 = vmatprep.subr.bf16.mxu0 %v14405_v7  ;;  %v14439_v12 = vcombine.high %v6062_v58, %v6070_v60  ;;  %v14501_v7 = vcombine.high %v6125_v49, %v6133_v43  ;;  %v6165_v58 = vld [vmem:[%s17864_s0 + $0xcf0] sm:$0xff]  ;;  %v6158_v60 = vld [vmem:[%s17864_s0 + $0xcb8] sm:$0xff] }
 0xab1   : > { %9440 = vmatprep.subr.bf16.mxu1 %v14407_v4  ;;  %v6141_v4 = vld [vmem:[%s17864_s0 + $0xc30] sm:$0xff] }
 0xab2   : > { %9359 = vmatpush1.bf16.msra.mxu0 %v14404_v9  ;;  %v6150_v9 = vld [vmem:[%s17864_s0 + $0xc78] sm:$0xff] }
 0xab3   : > { %9441 = vmatpush1.bf16.msra.mxu1 %v14406_v10  ;;  %9360 = vmatprep.subr.bf16.mxu0 %v14421_v11  ;;  %v14500_v10 = vcombine.low %v6125_v49, %v6133_v43  ;;  %v14502_v11 = vcombine.low %v6126_v51, %v6134_v54  ;;  %v14519_v63 = vcombine.high %v6142_v6, %v6150_v9  ;;  %v6221_v43 = vld [vmem:[%s17864_s0 + $0xeb0] sm:$0xff]  ;;  %v6222_v54 = vld [vmem:[%s17864_s0 + $0xeb8] sm:$0xff] }
 0xab4   : > { %9442 = vmatprep.subr.bf16.mxu1 %v14423_v14  ;;  %v14517_v14 = vcombine.high %v6141_v4, %v6149_v5  ;;  %v6229_v51 = vld [vmem:[%s17864_s0 + $0xef0] sm:$0xff] }
 0xab6   : > { %9361 = vmatpush1.bf16.msra.mxu0 %v14420_v16  ;;  %v6166_v16 = vld [vmem:[%s17864_s0 + $0xcf8] sm:$0xff] }
 0xab7   : > { %9443 = vmatpush1.bf16.msra.mxu1 %v14422_v35  ;;  %9362 = vmatprep.subr.bf16.mxu0 %v14437_v18  ;;  %v14516_v35 = vcombine.low %v6141_v4, %v6149_v5  ;;  %v14518_v18 = vcombine.low %v6142_v6, %v6150_v9  ;;  %v14535_v19 = vcombine.high %v6158_v60, %v6166_v16  ;;  %v6246_v4 = vld [vmem:[%s17864_s0 + $0xf78] sm:$0xff] }
 0xab8   : > { %9444 = vmatprep.subr.bf16.mxu1 %v14439_v12  ;;  %v14533_v12 = vcombine.high %v6157_v47, %v6165_v58  ;;  %v14596_v5 = vcombine.low %v6221_v43, %v6229_v51 }
 0xaba   : > { %9363 = vmatpush1.bf16.msra.mxu0 %v14436_v24  ;;  %v6182_v24 = vld [vmem:[%s17864_s0 + $0xd78] sm:$0xff] }
 0xabb   : > { %9445 = vmatpush1.bf16.msra.mxu1 %v14438_v25  ;;  %9364 = vmatprep.subr.bf16.mxu0 %v14453_v26  ;;  %v14532_v25 = vcombine.low %v6157_v47, %v6165_v58  ;;  %v14534_v26 = vcombine.low %v6158_v60, %v6166_v16  ;;  %v14551_v28 = vcombine.high %v6174_v23, %v6182_v24  ;;  %v6262_v47 = vld [vmem:[%s17864_s0 + $0xff8] sm:$0xff] }
 0xabc   : > { %9446 = vmatprep.subr.bf16.mxu1 %v14455_v27  ;;  %v14549_v27 = vcombine.high %v6173_v21, %v6181_v22 }
 0xabe   : > { %9365 = vmatpush1.bf16.msra.mxu0 %v14452_v53  ;;  %v6198_v53 = vld [vmem:[%s17864_s0 + $0xdf8] sm:$0xff] }
 0xabf   : > { %9447 = vmatpush1.bf16.msra.mxu1 %v14454_v32  ;;  %9366 = vmatprep.subr.bf16.mxu0 %v14469_v34  ;;  %v14548_v32 = vcombine.low %v6173_v21, %v6181_v22  ;;  %v14550_v34 = vcombine.low %v6174_v23, %v6182_v24  ;;  %v14567_v57 = vcombine.high %v6190_v31, %v6198_v53  ;;  %v16305_v21 = vld [vmem:[%s17866_s15 + $0xc] ss:$16 sps:$4 sm:$0xff]   ;;  %v9480_v22 = vmax.f32 %v19083_v55, 0.0  ;;  %v16300_v23 = vld [vmem:[%s17866_s15] ss:$16 sps:$4 sm:$0xff]  }
 0xac0   : > { %v19221_v8 = vpop.f32.mrb[36].mxu0  ;;  %9448 = vmatprep.subr.bf16.mxu1 %v14471_v36  ;;  %v14565_v36 = vcombine.high %v6189_v29, %v6197_v30  ;;  %v16303_v24 = vld [vmem:[%s17866_s15 + $0x8] ss:$16 sps:$4 sm:$0xff]   ;;  %v16306_v55 = vld [vmem:[%s17866_s15 + $0x20] ss:$16 sps:$4 sm:$0xff]  }
 0xac1   : > { %v19225_v33 = vpop.f32.mrb[36].mxu1  ;;  %v19227_v46 = vpop.f32.mrb[37].mxu0 }
 0xac2   : > { %v19231_v62 = vpop.f32.mrb[37].mxu1  ;;  %v9066_v59 = vpop.f32.mrb[38].mxu0  ;;  %9367 = vmatpush1.bf16.msra.mxu0 %v14468_v40  ;;  %v6214_v40 = vld [vmem:[%s17864_s0 + $0xe78] sm:$0xff] }
 0xac3   : > { %v9148_v0 = vpop.f32.mrb[38].mxu1  ;;  %9449 = vmatpush1.bf16.msra.mxu1 %v14470_v13  ;;  %v9067_v1 = vpop.f32.mrb[39].mxu0  ;;  %9368 = vmatprep.subr.bf16.mxu0 %v14485_v41  ;;  %v14564_v13 = vcombine.low %v6189_v29, %v6197_v30  ;;  %v14566_v41 = vcombine.low %v6190_v31, %v6198_v53  ;;  %v14583_v49 = vcombine.high %v6206_v39, %v6214_v40  ;;  %v6230_v59 = vld [vmem:[%s17864_s0 + $0xef8] sm:$0xff]  ;;  %v16314_v29 = vld [vmem:[%s17866_s15 + $0x44] ss:$16 sps:$4 sm:$0xff]  }
 0xac4   : > { %v9149_v17 = vpop.f32.mrb[39].mxu1  ;;  %9450 = vmatprep.subr.bf16.mxu1 %v14487_v42  ;;  %v14581_v42 = vcombine.high %v6205_v37, %v6213_v38  ;;  %v14582_v0 = vcombine.low %v6206_v39, %v6214_v40  ;;  %v14597_v1 = vcombine.high %v6221_v43, %v6229_v51  ;;  %v14598_v6 = vcombine.low %v6222_v54, %v6230_v59  ;;  %v16317_v30 = vld [vmem:[%s17866_s15 + $0x4c] ss:$16 sps:$4 sm:$0xff]   ;;  %v16312_v31 = vld [vmem:[%s17866_s15 + $0x40] ss:$16 sps:$4 sm:$0xff]  }
 0xac5   : > { %v6245_v17 = vld [vmem:[%s17864_s0 + $0xf70] sm:$0xff]  ;;  %v16327_v39 = vld [vmem:[%s17866_s15 + $0x88] ss:$16 sps:$4 sm:$0xff]   ;;  %v16341_v43 = vld [vmem:[%s17866_s15 + $0xcc] ss:$16 sps:$4 sm:$0xff]  }
 0xac6   : > { %9369 = vmatpush1.bf16.msra.mxu0 %v14484_v61  ;;  %v14580_v61 = vcombine.low %v6205_v37, %v6213_v38  ;;  %v16320_v53 = vld [vmem:[%s17866_s15 + $0x64] ss:$16 sps:$4 sm:$0xff]   ;;  %v16329_v37 = vld [vmem:[%s17866_s15 + $0x8c] ss:$16 sps:$4 sm:$0xff]   ;;  %v16324_v38 = vld [vmem:[%s17866_s15 + $0x80] ss:$16 sps:$4 sm:$0xff]  }
 0xac7   : > { %9451 = vmatpush1.bf16.msra.mxu1 %v14486_v2  ;;  %9370 = vmatprep.subr.bf16.mxu0 %v14501_v7  ;;  %v14599_v2 = vcombine.high %v6222_v54, %v6230_v59  ;;  %v6237_v7 = vld [vmem:[%s17864_s0 + $0xf30] sm:$0xff]  ;;  %v16339_v54 = vld [vmem:[%s17866_s15 + $0xc8] ss:$16 sps:$4 sm:$0xff]  }
 0xac8   : > { %9452 = vmatprep.subr.bf16.mxu1 %v14503_v3  ;;  %v6238_v3 = vld [vmem:[%s17864_s0 + $0xf38] sm:$0xff]  ;;  %v14613_v9 = vcombine.high %v6237_v7, %v6245_v17  ;;  %v14612_v58 = vcombine.low %v6237_v7, %v6245_v17  ;;  %v16332_v40 = vld [vmem:[%s17866_s15 + $0xa4] ss:$16 sps:$4 sm:$0xff]   ;;  %v16336_v51 = vld [vmem:[%s17866_s15 + $0xc0] ss:$16 sps:$4 sm:$0xff]  }
 0xac9   : > { %v14614_v60 = vcombine.low %v6238_v3, %v6246_v4  ;;  %v16344_v59 = vld [vmem:[%s17866_s15 + $0xe4] ss:$16 sps:$4 sm:$0xff]   ;;  %v16353_v7 = vld [vmem:[%s17866_s15 + $0x10c] ss:$16 sps:$4 sm:$0xff]   ;;  %v16348_v17 = vld [vmem:[%s17866_s15 + $0x100] ss:$16 sps:$4 sm:$0xff]  }
 0xaca   : > { %9371 = vmatpush1.bf16.msra.mxu0 %v14500_v10  ;;  %v14615_v10 = vcombine.high %v6238_v3, %v6246_v4  ;;  %v16351_v3 = vld [vmem:[%s17866_s15 + $0x108] ss:$16 sps:$4 sm:$0xff]   ;;  %v16356_v4 = vld [vmem:[%s17866_s15 + $0x124] ss:$16 sps:$4 sm:$0xff]  }
 0xacb   : > { %9453 = vmatpush1.bf16.msra.mxu1 %v14502_v11  ;;  %9372 = vmatprep.subr.bf16.mxu0 %v14517_v14  ;;  %v6253_v11 = vld [vmem:[%s17864_s0 + $0xfb0] sm:$0xff] }
 0xacc   : > { %9454 = vmatprep.subr.bf16.mxu1 %v14519_v63  ;;  %v6261_v14 = vld [vmem:[%s17864_s0 + $0xff0] sm:$0xff]  ;;  %v6254_v63 = vld [vmem:[%s17864_s0 + $0xfb8] sm:$0xff]  ;;  %s15156_s0 = sshll.u32 %s19970_s4, 9 }
 0xacd   : > { %v14629_v16 = vcombine.high %v6253_v11, %v6261_v14  ;;  %s19820_s9 = scalar_lea.hbm %s19973_s5, %s15156_s0 }
 0xace   : > { %9373 = vmatpush1.bf16.msra.mxu0 %v14516_v35  ;;  %v14631_v35 = vcombine.high %v6254_v63, %v6262_v47 }
 0xacf   : > { %9455 = vmatpush1.bf16.msra.mxu1 %v14518_v18  ;;  %9374 = vmatprep.subr.bf16.mxu0 %v14533_v12  ;;  %v14628_v18 = vcombine.low %v6253_v11, %v6261_v14  ;;  %v14630_v12 = vcombine.low %v6254_v63, %v6262_v47  ;;  %v16365_v11 = vld [vmem:[%s17866_s15 + $0x14c] ss:$16 sps:$4 sm:$0xff]   ;;  %v16360_v14 = vld [vmem:[%s17866_s15 + $0x140] ss:$16 sps:$4 sm:$0xff]   ;;  %v16363_v63 = vld [vmem:[%s17866_s15 + $0x148] ss:$16 sps:$4 sm:$0xff]  }
 0xad0   : > { %9456 = vmatprep.subr.bf16.mxu1 %v14535_v19  ;;  %v16302_v19 = vld [vmem:[%s17866_s15 + $0x4] ss:$16 sps:$4 sm:$0xff]  }
 0xad1   : > { %v16368_v47 = vld [vmem:[%s17866_s15 + $0x164] ss:$16 sps:$4 sm:$0xff]  }
 0xad2   : > { %9375 = vmatpush1.bf16.msra.mxu0 %v14532_v25  ;;  %v16308_v25 = vld [vmem:[%s17866_s15 + $0x24] ss:$16 sps:$4 sm:$0xff]  }
 0xad3   : > { %9457 = vmatpush1.bf16.msra.mxu1 %v14534_v26  ;;  %9376 = vmatprep.subr.bf16.mxu0 %v14549_v27  ;;  %v9496_v26 = vpack.c.bf16 %v9480_v22, %v9480_v22  ;;  %v16311_v27 = vld [vmem:[%s17866_s15 + $0x2c] ss:$16 sps:$4 sm:$0xff]  }
 0xad4   : > { %9458 = vmatprep.subr.bf16.mxu1 %v14551_v28  ;;  %v16309_v28 = vld [vmem:[%s17866_s15 + $0x28] ss:$16 sps:$4 sm:$0xff]   ;;  %v16383_v22 = vld [vmem:[%s17866_s15 + $0x1ac] ss:$16 sps:$4 sm:$0xff]  }
 0xad6   : > { %9377 = vmatpush1.bf16.msra.mxu0 %v14548_v32  ;;  %v16323_v32 = vld [vmem:[%s17866_s15 + $0x6c] ss:$16 sps:$4 sm:$0xff]  }
 0xad7   : > { %9459 = vmatpush1.bf16.msra.mxu1 %v14550_v34  ;;  %9378 = vmatprep.subr.bf16.mxu0 %v14565_v36  ;;  %v16318_v34 = vld [vmem:[%s17866_s15 + $0x60] ss:$16 sps:$4 sm:$0xff]   ;;  %v16321_v36 = vld [vmem:[%s17866_s15 + $0x68] ss:$16 sps:$4 sm:$0xff]  }
 0xad8   : > { %9460 = vmatprep.subr.bf16.mxu1 %v14567_v57  ;;  %v16326_v57 = vld [vmem:[%s17866_s15 + $0x84] ss:$16 sps:$4 sm:$0xff]  }
 0xada   : > { %9379 = vmatpush1.bf16.msra.mxu0 %v14564_v13  ;;  %v16335_v13 = vld [vmem:[%s17866_s15 + $0xac] ss:$16 sps:$4 sm:$0xff]  }
 0xadb   : > { %9461 = vmatpush1.bf16.msra.mxu1 %v14566_v41  ;;  %9380 = vmatprep.subr.bf16.mxu0 %v14581_v42  ;;  %v16330_v41 = vld [vmem:[%s17866_s15 + $0xa0] ss:$16 sps:$4 sm:$0xff]   ;;  %v16333_v42 = vld [vmem:[%s17866_s15 + $0xa8] ss:$16 sps:$4 sm:$0xff]  }
 0xadc   : > { %9462 = vmatprep.subr.bf16.mxu1 %v14583_v49  ;;  %v16338_v49 = vld [vmem:[%s17866_s15 + $0xc4] ss:$16 sps:$4 sm:$0xff]  }
 0xade   : > { %9381 = vmatpush1.bf16.msra.mxu0 %v14580_v61  ;;  %v16347_v61 = vld [vmem:[%s17866_s15 + $0xec] ss:$16 sps:$4 sm:$0xff]  }
 0xadf   : > { %9463 = vmatpush1.bf16.msra.mxu1 %v14582_v0  ;;  %9382 = vmatprep.subr.bf16.mxu0 %v14597_v1  ;;  %v16342_v0 = vld [vmem:[%s17866_s15 + $0xe0] ss:$16 sps:$4 sm:$0xff]   ;;  %v16345_v1 = vld [vmem:[%s17866_s15 + $0xe8] ss:$16 sps:$4 sm:$0xff]  }
 0xae0   : > { %9464 = vmatprep.subr.bf16.mxu1 %v14599_v2  ;;  %v16350_v2 = vld [vmem:[%s17866_s15 + $0x104] ss:$16 sps:$4 sm:$0xff]  }
 0xae2   : > { %9383 = vmatpush1.bf16.msra.mxu0 %v14596_v5  ;;  %v16359_v5 = vld [vmem:[%s17866_s15 + $0x12c] ss:$16 sps:$4 sm:$0xff]  }
 0xae3   : > { %9465 = vmatpush1.bf16.msra.mxu1 %v14598_v6  ;;  %9384 = vmatprep.subr.bf16.mxu0 %v14613_v9  ;;  %v16354_v6 = vld [vmem:[%s17866_s15 + $0x120] ss:$16 sps:$4 sm:$0xff]   ;;  %v16357_v9 = vld [vmem:[%s17866_s15 + $0x128] ss:$16 sps:$4 sm:$0xff]  }
 0xae4   : > { %9466 = vmatprep.subr.bf16.mxu1 %v14615_v10  ;;  %v16362_v10 = vld [vmem:[%s17866_s15 + $0x144] ss:$16 sps:$4 sm:$0xff]  }
 0xae6   : > { %9385 = vmatpush1.bf16.msra.mxu0 %v14612_v58  ;;  %v16371_v58 = vld [vmem:[%s17866_s15 + $0x16c] ss:$16 sps:$4 sm:$0xff]  }
 0xae7   : > { %9467 = vmatpush1.bf16.msra.mxu1 %v14614_v60  ;;  %9386 = vmatprep.subr.bf16.mxu0 %v14629_v16  ;;  %v16366_v60 = vld [vmem:[%s17866_s15 + $0x160] ss:$16 sps:$4 sm:$0xff]   ;;  %v16369_v16 = vld [vmem:[%s17866_s15 + $0x168] ss:$16 sps:$4 sm:$0xff]  }
 0xae8   : > { %9468 = vmatprep.subr.bf16.mxu1 %v14631_v35  ;;  %v16374_v35 = vld [vmem:[%s17866_s15 + $0x184] ss:$16 sps:$4 sm:$0xff]  }
 0xaea   : > { %9387 = vmatpush1.bf16.msra.mxu0 %v14628_v18  ;;  %v16377_v18 = vld [vmem:[%s17866_s15 + $0x18c] ss:$16 sps:$4 sm:$0xff]  }
 0xaeb   : > { %9469 = vmatpush1.bf16.msra.mxu1 %v14630_v12  ;;  %12583 = vmatprep.subr.bf16.mxu0 %v16302_v19  ;;  %v16372_v12 = vld [vmem:[%s17866_s15 + $0x180] ss:$16 sps:$4 sm:$0xff]   ;;  %v16375_v19 = vld [vmem:[%s17866_s15 + $0x188] ss:$16 sps:$4 sm:$0xff]  }
 0xaec   : > { %12911 = vmatprep.subr.bf16.mxu1 %v16305_v21  ;;  %v16380_v21 = vld [vmem:[%s17866_s15 + $0x1a4] ss:$16 sps:$4 sm:$0xff]  }
 0xaed   : > { %9389 = vmatmul.mubr.bf16.vlgmr.msra.gmra.mrb[44].mxu0 %v18847_v15 }
 0xaee   : > { %9471 = vmatmul.mubr.bf16.vlgmr.msra.gmra.mrb[44].mxu1 %v18847_v15  ;;  %12584 = vmatpush1.bf16.msra.mxu0 %v16300_v23  ;;  %v16315_v15 = vld [vmem:[%s17866_s15 + $0x48] ss:$16 sps:$4 sm:$0xff]   ;;  %v16378_v23 = vld [vmem:[%s17866_s15 + $0x1a0] ss:$16 sps:$4 sm:$0xff]  }
 0xaef   : > { %12615 = vmatprep.mubr.bf16.mxu0 %v9496_v26  ;;  %12912 = vmatpush1.bf16.msra.mxu1 %v16303_v24  ;;  %v16381_v24 = vld [vmem:[%s17866_s15 + $0x1a8] ss:$16 sps:$4 sm:$0xff]  }
 0xaf0   : > { %12943 = vmatprep.mubr.bf16.mxu1 %v9496_v26  ;;  %12585 = vmatprep.subr.bf16.mxu0 %v16308_v25  ;;  %v16386_v25 = vld [vmem:[%s17866_s15 + $0x1c4] ss:$16 sps:$4 sm:$0xff]   ;;  %v16389_v26 = vld [vmem:[%s17866_s15 + $0x1cc] ss:$16 sps:$4 sm:$0xff]  }
 0xaf1   : > { %12913 = vmatprep.subr.bf16.mxu1 %v16311_v27  ;;  %v16384_v27 = vld [vmem:[%s17866_s15 + $0x1c0] ss:$16 sps:$4 sm:$0xff]  }
 0xaf2   : > { %12586 = vmatpush1.bf16.msra.mxu0 %v16306_v55  ;;  %v16387_v55 = vld [vmem:[%s17866_s15 + $0x1c8] ss:$16 sps:$4 sm:$0xff]  }
 0xaf3   : > { %12914 = vmatpush1.bf16.msra.mxu1 %v16309_v28  ;;  %12587 = vmatprep.subr.bf16.mxu0 %v16314_v29  ;;  %v16392_v28 = vld [vmem:[%s17866_s15 + $0x1e4] ss:$16 sps:$4 sm:$0xff]   ;;  %v16395_v29 = vld [vmem:[%s17866_s15 + $0x1ec] ss:$16 sps:$4 sm:$0xff]  }
 0xaf4   : > { %12915 = vmatprep.subr.bf16.mxu1 %v16317_v30  ;;  %v16390_v30 = vld [vmem:[%s17866_s15 + $0x1e0] ss:$16 sps:$4 sm:$0xff]  }
 0xaf6   : > { %12588 = vmatpush1.bf16.msra.mxu0 %v16312_v31  ;;  %v9479_v31 = vmax.f32 %v19077_v44, 0.0  ;;  %v16404_v44 = vld [vmem:[%s17866_s15 + $0x224] ss:$16 sps:$4 sm:$0xff]  }
 0xaf7   : > { %12916 = vmatpush1.bf16.msra.mxu1 %v16315_v15  ;;  %12589 = vmatprep.subr.bf16.mxu0 %v16320_v53  ;;  %v16393_v15 = vld [vmem:[%s17866_s15 + $0x1e8] ss:$16 sps:$4 sm:$0xff]   ;;  %v16398_v53 = vld [vmem:[%s17866_s15 + $0x204] ss:$16 sps:$4 sm:$0xff]  }
 0xaf8   : > { %12917 = vmatprep.subr.bf16.mxu1 %v16323_v32  ;;  %v16401_v32 = vld [vmem:[%s17866_s15 + $0x20c] ss:$16 sps:$4 sm:$0xff]  }
 0xafa   : > { %12590 = vmatpush1.bf16.msra.mxu0 %v16318_v34  ;;  %v9482_v34 = vmax.f32 %v19085_v56, 0.0  ;;  %v16402_v56 = vld [vmem:[%s17866_s15 + $0x220] ss:$16 sps:$4 sm:$0xff]  }
 0xafb   : > { %12918 = vmatpush1.bf16.msra.mxu1 %v16321_v36  ;;  %12591 = vmatprep.subr.bf16.mxu0 %v16326_v57  ;;  %v16396_v36 = vld [vmem:[%s17866_s15 + $0x200] ss:$16 sps:$4 sm:$0xff]   ;;  %v9495_v57 = vpack.c.bf16 %v9479_v31, %v9479_v31 }
 0xafc   : > { %12919 = vmatprep.subr.bf16.mxu1 %v16329_v37  ;;  %v16399_v37 = vld [vmem:[%s17866_s15 + $0x208] ss:$16 sps:$4 sm:$0xff]   ;;  %v16456_v31 = vld [vmem:[%s17866_s15 + $0x340] ss:$16 sps:$4 sm:$0xff]  }
 0xafe   : > { %12592 = vmatpush1.bf16.msra.mxu0 %v16324_v38  ;;  %v9498_v38 = vpack.c.bf16 %v9482_v34, %v9482_v34  ;;  %v16462_v34 = vld [vmem:[%s17866_s15 + $0x360] ss:$16 sps:$4 sm:$0xff]  }
 0xaff   : > { %12920 = vmatpush1.bf16.msra.mxu1 %v16327_v39  ;;  %12593 = vmatprep.subr.bf16.mxu0 %v16332_v40  ;;  %v16407_v39 = vld [vmem:[%s17866_s15 + $0x22c] ss:$16 sps:$4 sm:$0xff]   ;;  %v16405_v40 = vld [vmem:[%s17866_s15 + $0x228] ss:$16 sps:$4 sm:$0xff]  }
 0xb00   : > { %12921 = vmatprep.subr.bf16.mxu1 %v16335_v13  ;;  %v16410_v13 = vld [vmem:[%s17866_s15 + $0x244] ss:$16 sps:$4 sm:$0xff]  }
 0xb02   : > { %12594 = vmatpush1.bf16.msra.mxu0 %v16330_v41  ;;  %v16413_v41 = vld [vmem:[%s17866_s15 + $0x24c] ss:$16 sps:$4 sm:$0xff]  }
 0xb03   : > { %12922 = vmatpush1.bf16.msra.mxu1 %v16333_v42  ;;  %12595 = vmatprep.subr.bf16.mxu0 %v16338_v49  ;;  %v16408_v42 = vld [vmem:[%s17866_s15 + $0x240] ss:$16 sps:$4 sm:$0xff]   ;;  %v16411_v49 = vld [vmem:[%s17866_s15 + $0x248] ss:$16 sps:$4 sm:$0xff]  }
 0xb04   : > { %12923 = vmatprep.subr.bf16.mxu1 %v16341_v43  ;;  %v16416_v43 = vld [vmem:[%s17866_s15 + $0x264] ss:$16 sps:$4 sm:$0xff]  }
 0xb06   : > { %12596 = vmatpush1.bf16.msra.mxu0 %v16336_v51  ;;  %v16419_v51 = vld [vmem:[%s17866_s15 + $0x26c] ss:$16 sps:$4 sm:$0xff]  }
 0xb07   : > { %12924 = vmatpush1.bf16.msra.mxu1 %v16339_v54  ;;  %12597 = vmatprep.subr.bf16.mxu0 %v16344_v59  ;;  %v16414_v54 = vld [vmem:[%s17866_s15 + $0x260] ss:$16 sps:$4 sm:$0xff]   ;;  %v16417_v59 = vld [vmem:[%s17866_s15 + $0x268] ss:$16 sps:$4 sm:$0xff]  }
 0xb08   : > { %12925 = vmatprep.subr.bf16.mxu1 %v16347_v61  ;;  %v16422_v61 = vld [vmem:[%s17866_s15 + $0x284] ss:$16 sps:$4 sm:$0xff]  }
 0xb0a   : > { %12598 = vmatpush1.bf16.msra.mxu0 %v16342_v0  ;;  %v16425_v0 = vld [vmem:[%s17866_s15 + $0x28c] ss:$16 sps:$4 sm:$0xff]  }
 0xb0b   : > { %12926 = vmatpush1.bf16.msra.mxu1 %v16345_v1  ;;  %12599 = vmatprep.subr.bf16.mxu0 %v16350_v2  ;;  %v16420_v1 = vld [vmem:[%s17866_s15 + $0x280] ss:$16 sps:$4 sm:$0xff]   ;;  %v16423_v2 = vld [vmem:[%s17866_s15 + $0x288] ss:$16 sps:$4 sm:$0xff]  }
 0xb0c   : > { %12927 = vmatprep.subr.bf16.mxu1 %v16353_v7  ;;  %v16428_v7 = vld [vmem:[%s17866_s15 + $0x2a4] ss:$16 sps:$4 sm:$0xff]  }
 0xb0e   : > { %12600 = vmatpush1.bf16.msra.mxu0 %v16348_v17  ;;  %v16431_v17 = vld [vmem:[%s17866_s15 + $0x2ac] ss:$16 sps:$4 sm:$0xff]  }
 0xb0f   : > { %12928 = vmatpush1.bf16.msra.mxu1 %v16351_v3  ;;  %12601 = vmatprep.subr.bf16.mxu0 %v16356_v4  ;;  %v16426_v3 = vld [vmem:[%s17866_s15 + $0x2a0] ss:$16 sps:$4 sm:$0xff]   ;;  %v16429_v4 = vld [vmem:[%s17866_s15 + $0x2a8] ss:$16 sps:$4 sm:$0xff]  }
 0xb10   : > { %12929 = vmatprep.subr.bf16.mxu1 %v16359_v5  ;;  %v16434_v5 = vld [vmem:[%s17866_s15 + $0x2c4] ss:$16 sps:$4 sm:$0xff]  }
 0xb12   : > { %12602 = vmatpush1.bf16.msra.mxu0 %v16354_v6 }
 0xb13   : > { %12930 = vmatpush1.bf16.msra.mxu1 %v16357_v9  ;;  %12603 = vmatprep.subr.bf16.mxu0 %v16362_v10  ;;  %v16437_v9 = vld [vmem:[%s17866_s15 + $0x2cc] ss:$16 sps:$4 sm:$0xff]  }
 0xb14   : > { %12931 = vmatprep.subr.bf16.mxu1 %v16365_v11 }
 0xb16   : > { %12604 = vmatpush1.bf16.msra.mxu0 %v16360_v14 }
 0xb17   : > { %12932 = vmatpush1.bf16.msra.mxu1 %v16363_v63  ;;  %12605 = vmatprep.subr.bf16.mxu0 %v16368_v47  ;;  %v16432_v47 = vld [vmem:[%s17866_s15 + $0x2c0] ss:$16 sps:$4 sm:$0xff]  }
 0xb18   : > { %12933 = vmatprep.subr.bf16.mxu1 %v16371_v58 }
 0xb1a   : > { %12606 = vmatpush1.bf16.msra.mxu0 %v16366_v60 }
 0xb1b   : > { %12934 = vmatpush1.bf16.msra.mxu1 %v16369_v16  ;;  %12607 = vmatprep.subr.bf16.mxu0 %v16374_v35  ;;  %v16435_v16 = vld [vmem:[%s17866_s15 + $0x2c8] ss:$16 sps:$4 sm:$0xff]   ;;  %v16440_v35 = vld [vmem:[%s17866_s15 + $0x2e4] ss:$16 sps:$4 sm:$0xff]  }
 0xb1c   : > { %12935 = vmatprep.subr.bf16.mxu1 %v16377_v18 }
 0xb1e   : > { %12608 = vmatpush1.bf16.msra.mxu0 %v16372_v12  ;;  %v16443_v12 = vld [vmem:[%s17866_s15 + $0x2ec] ss:$16 sps:$4 sm:$0xff]  }
 0xb1f   : > { %12936 = vmatpush1.bf16.msra.mxu1 %v16375_v19  ;;  %12609 = vmatprep.subr.bf16.mxu0 %v16380_v21  ;;  %v16438_v19 = vld [vmem:[%s17866_s15 + $0x2e0] ss:$16 sps:$4 sm:$0xff]   ;;  %v16441_v21 = vld [vmem:[%s17866_s15 + $0x2e8] ss:$16 sps:$4 sm:$0xff]  }
 0xb20   : > { %12937 = vmatprep.subr.bf16.mxu1 %v16383_v22  ;;  %v16446_v22 = vld [vmem:[%s17866_s15 + $0x304] ss:$16 sps:$4 sm:$0xff]  }
 0xb22   : > { %12610 = vmatpush1.bf16.msra.mxu0 %v16378_v23  ;;  %v16449_v23 = vld [vmem:[%s17866_s15 + $0x30c] ss:$16 sps:$4 sm:$0xff]  }
 0xb23   : > { %12938 = vmatpush1.bf16.msra.mxu1 %v16381_v24  ;;  %12611 = vmatprep.subr.bf16.mxu0 %v16386_v25  ;;  %v16444_v24 = vld [vmem:[%s17866_s15 + $0x300] ss:$16 sps:$4 sm:$0xff]   ;;  %v16447_v25 = vld [vmem:[%s17866_s15 + $0x308] ss:$16 sps:$4 sm:$0xff]  }
 0xb24   : > { %12939 = vmatprep.subr.bf16.mxu1 %v16389_v26  ;;  %v16452_v26 = vld [vmem:[%s17866_s15 + $0x324] ss:$16 sps:$4 sm:$0xff]  }
 0xb26   : > { %12612 = vmatpush1.bf16.msra.mxu0 %v16384_v27  ;;  %v16455_v27 = vld [vmem:[%s17866_s15 + $0x32c] ss:$16 sps:$4 sm:$0xff]  }
 0xb27   : > { %12940 = vmatpush1.bf16.msra.mxu1 %v16387_v55  ;;  %12613 = vmatprep.subr.bf16.mxu0 %v16392_v28  ;;  %v16450_v55 = vld [vmem:[%s17866_s15 + $0x320] ss:$16 sps:$4 sm:$0xff]   ;;  %v16453_v28 = vld [vmem:[%s17866_s15 + $0x328] ss:$16 sps:$4 sm:$0xff]  }
 0xb28   : > { %12941 = vmatprep.subr.bf16.mxu1 %v16395_v29  ;;  %v16458_v29 = vld [vmem:[%s17866_s15 + $0x344] ss:$16 sps:$4 sm:$0xff]  }
 0xb2a   : > { %12614 = vmatpush1.bf16.msra.mxu0 %v16390_v30  ;;  %v16461_v30 = vld [vmem:[%s17866_s15 + $0x34c] ss:$16 sps:$4 sm:$0xff]  }
 0xb2b   : > { %12942 = vmatpush1.bf16.msra.mxu1 %v16393_v15  ;;  %12624 = vmatprep.subr.bf16.mxu0 %v16398_v53  ;;  %v16459_v15 = vld [vmem:[%s17866_s15 + $0x348] ss:$16 sps:$4 sm:$0xff]   ;;  %v16464_v53 = vld [vmem:[%s17866_s15 + $0x364] ss:$16 sps:$4 sm:$0xff]  }
 0xb2c   : > { %12952 = vmatprep.subr.bf16.mxu1 %v16401_v32  ;;  %v16467_v32 = vld [vmem:[%s17866_s15 + $0x36c] ss:$16 sps:$4 sm:$0xff]  }
 0xb2d   : > { %12616 = vmatmul.mubr.bf16.vlgmr.msra.gmra.mrb[48].mxu0 %v9495_v57 }
 0xb2e   : > { %12944 = vmatmul.mubr.bf16.vlgmr.msra.gmra.mrb[48].mxu1 %v9495_v57  ;;  %12625 = vmatpush1.bf16.msra.mxu0 %v16396_v36  ;;  %v16465_v36 = vld [vmem:[%s17866_s15 + $0x368] ss:$16 sps:$4 sm:$0xff]   ;;  %v16470_v57 = vld [vmem:[%s17866_s15 + $0x384] ss:$16 sps:$4 sm:$0xff]  }
 0xb2f   : > { %12656 = vmatprep.mubr.bf16.mxu0 %v9498_v38  ;;  %12953 = vmatpush1.bf16.msra.mxu1 %v16399_v37  ;;  %v16473_v37 = vld [vmem:[%s17866_s15 + $0x38c] ss:$16 sps:$4 sm:$0xff]  }
 0xb30   : > { %12984 = vmatprep.mubr.bf16.mxu1 %v9498_v38  ;;  %12626 = vmatprep.subr.bf16.mxu0 %v16404_v44  ;;  %v16468_v44 = vld [vmem:[%s17866_s15 + $0x380] ss:$16 sps:$4 sm:$0xff]   ;;  %v16471_v38 = vld [vmem:[%s17866_s15 + $0x388] ss:$16 sps:$4 sm:$0xff]  }
 0xb31   : > { %12954 = vmatprep.subr.bf16.mxu1 %v16407_v39  ;;  %v16476_v39 = vld [vmem:[%s17866_s15 + $0x3a4] ss:$16 sps:$4 sm:$0xff]  }
 0xb32   : > { %12627 = vmatpush1.bf16.msra.mxu0 %v16402_v56  ;;  %v16479_v56 = vld [vmem:[%s17866_s15 + $0x3ac] ss:$16 sps:$4 sm:$0xff]  }
 0xb33   : > { %12955 = vmatpush1.bf16.msra.mxu1 %v16405_v40  ;;  %12628 = vmatprep.subr.bf16.mxu0 %v16410_v13  ;;  %v16474_v40 = vld [vmem:[%s17866_s15 + $0x3a0] ss:$16 sps:$4 sm:$0xff]   ;;  %v16477_v13 = vld [vmem:[%s17866_s15 + $0x3a8] ss:$16 sps:$4 sm:$0xff]  }
 0xb34   : > { %12956 = vmatprep.subr.bf16.mxu1 %v16413_v41  ;;  %v16482_v41 = vld [vmem:[%s17866_s15 + $0x3c4] ss:$16 sps:$4 sm:$0xff]  }
 0xb36   : > { %12629 = vmatpush1.bf16.msra.mxu0 %v16408_v42  ;;  %v16485_v42 = vld [vmem:[%s17866_s15 + $0x3cc] ss:$16 sps:$4 sm:$0xff]  }
 0xb37   : > { %12957 = vmatpush1.bf16.msra.mxu1 %v16411_v49  ;;  %12630 = vmatprep.subr.bf16.mxu0 %v16416_v43  ;;  %v16480_v49 = vld [vmem:[%s17866_s15 + $0x3c0] ss:$16 sps:$4 sm:$0xff]   ;;  %v16483_v43 = vld [vmem:[%s17866_s15 + $0x3c8] ss:$16 sps:$4 sm:$0xff]  }
 0xb38   : > { %12958 = vmatprep.subr.bf16.mxu1 %v16419_v51  ;;  %v16488_v51 = vld [vmem:[%s17866_s15 + $0x3e4] ss:$16 sps:$4 sm:$0xff]  }
 0xb3a   : > { %12631 = vmatpush1.bf16.msra.mxu0 %v16414_v54  ;;  %v16491_v54 = vld [vmem:[%s17866_s15 + $0x3ec] ss:$16 sps:$4 sm:$0xff]  }
 0xb3b   : > { %12959 = vmatpush1.bf16.msra.mxu1 %v16417_v59  ;;  %12632 = vmatprep.subr.bf16.mxu0 %v16422_v61  ;;  %v16486_v59 = vld [vmem:[%s17866_s15 + $0x3e0] ss:$16 sps:$4 sm:$0xff]   ;;  %v9481_v61 = vmax.f32 %v19079_v45, 0.0  ;;  %v16500_v45 = vld [vmem:[%s17866_s15 + $0x424] ss:$16 sps:$4 sm:$0xff]  }
 0xb3c   : > { %12960 = vmatprep.subr.bf16.mxu1 %v16425_v0  ;;  %v16489_v0 = vld [vmem:[%s17866_s15 + $0x3e8] ss:$16 sps:$4 sm:$0xff]  }
 0xb3e   : > { %12633 = vmatpush1.bf16.msra.mxu0 %v16420_v1  ;;  %v16494_v1 = vld [vmem:[%s17866_s15 + $0x404] ss:$16 sps:$4 sm:$0xff]  }
 0xb3f   : > { %12961 = vmatpush1.bf16.msra.mxu1 %v16423_v2  ;;  %12634 = vmatprep.subr.bf16.mxu0 %v16428_v7  ;;  %v16497_v2 = vld [vmem:[%s17866_s15 + $0x40c] ss:$16 sps:$4 sm:$0xff]   ;;  %v9484_v7 = vmax.f32 %v19227_v46, 0.0  ;;  %v16498_v46 = vld [vmem:[%s17866_s15 + $0x420] ss:$16 sps:$4 sm:$0xff]  }
 0xb40   : > { %v19359_v6 = vpop.f32.mrb[40].mxu0  ;;  %12962 = vmatprep.subr.bf16.mxu1 %v16431_v17  ;;  %v16492_v17 = vld [vmem:[%s17866_s15 + $0x400] ss:$16 sps:$4 sm:$0xff]  }
 0xb41   : > { %v19362_v10 = vpop.f32.mrb[40].mxu1  ;;  %v19364_v11 = vpop.f32.mrb[41].mxu0 }
 0xb42   : > { %v19366_v14 = vpop.f32.mrb[41].mxu1  ;;  %v9230_v63 = vpop.f32.mrb[42].mxu0  ;;  %12635 = vmatpush1.bf16.msra.mxu0 %v16426_v3  ;;  %v9497_v3 = vpack.c.bf16 %v9481_v61, %v9481_v61  ;;  %v16566_v61 = vld [vmem:[%s17866_s15 + $0x584] ss:$16 sps:$4 sm:$0xff]  }
 0xb43   : > { %v9312_v58 = vpop.f32.mrb[42].mxu1  ;;  %12963 = vmatpush1.bf16.msra.mxu1 %v16429_v4  ;;  %v9231_v60 = vpop.f32.mrb[43].mxu0  ;;  %12636 = vmatprep.subr.bf16.mxu0 %v16434_v5  ;;  %v16495_v4 = vld [vmem:[%s17866_s15 + $0x408] ss:$16 sps:$4 sm:$0xff]   ;;  %v9500_v5 = vpack.c.bf16 %v9484_v7, %v9484_v7  ;;  %v16572_v7 = vld [vmem:[%s17866_s15 + $0x5a4] ss:$16 sps:$4 sm:$0xff]  }
 0xb44   : > { %v9313_v18 = vpop.f32.mrb[43].mxu1  ;;  %12964 = vmatprep.subr.bf16.mxu1 %v16437_v9  ;;  %v16503_v9 = vld [vmem:[%s17866_s15 + $0x42c] ss:$16 sps:$4 sm:$0xff]   ;;  %v16501_v63 = vld [vmem:[%s17866_s15 + $0x428] ss:$16 sps:$4 sm:$0xff]  }
 0xb45   : > { %v16509_v58 = vld [vmem:[%s17866_s15 + $0x44c] ss:$16 sps:$4 sm:$0xff]   ;;  %v16504_v60 = vld [vmem:[%s17866_s15 + $0x440] ss:$16 sps:$4 sm:$0xff]  }
 0xb46   : > { %12637 = vmatpush1.bf16.msra.mxu0 %v16432_v47  ;;  %v16506_v47 = vld [vmem:[%s17866_s15 + $0x444] ss:$16 sps:$4 sm:$0xff]   ;;  %v16515_v18 = vld [vmem:[%s17866_s15 + $0x46c] ss:$16 sps:$4 sm:$0xff]  }
 0xb47   : > { %12965 = vmatpush1.bf16.msra.mxu1 %v16435_v16  ;;  %12638 = vmatprep.subr.bf16.mxu0 %v16440_v35  ;;  %v16507_v16 = vld [vmem:[%s17866_s15 + $0x448] ss:$16 sps:$4 sm:$0xff]   ;;  %v16512_v35 = vld [vmem:[%s17866_s15 + $0x464] ss:$16 sps:$4 sm:$0xff]  }
 0xb48   : > { %12966 = vmatprep.subr.bf16.mxu1 %v16443_v12  ;;  %v16510_v12 = vld [vmem:[%s17866_s15 + $0x460] ss:$16 sps:$4 sm:$0xff]  }
 0xb4a   : > { %12639 = vmatpush1.bf16.msra.mxu0 %v16438_v19  ;;  %v16513_v19 = vld [vmem:[%s17866_s15 + $0x468] ss:$16 sps:$4 sm:$0xff]  }
 0xb4b   : > { %12967 = vmatpush1.bf16.msra.mxu1 %v16441_v21  ;;  %12640 = vmatprep.subr.bf16.mxu0 %v16446_v22  ;;  %v16518_v21 = vld [vmem:[%s17866_s15 + $0x484] ss:$16 sps:$4 sm:$0xff]   ;;  %v16521_v22 = vld [vmem:[%s17866_s15 + $0x48c] ss:$16 sps:$4 sm:$0xff]  }
 0xb4c   : > { %12968 = vmatprep.subr.bf16.mxu1 %v16449_v23  ;;  %v16516_v23 = vld [vmem:[%s17866_s15 + $0x480] ss:$16 sps:$4 sm:$0xff]  }
 0xb4e   : > { %12641 = vmatpush1.bf16.msra.mxu0 %v16444_v24  ;;  %v16519_v24 = vld [vmem:[%s17866_s15 + $0x488] ss:$16 sps:$4 sm:$0xff]  }
 0xb4f   : > { %12969 = vmatpush1.bf16.msra.mxu1 %v16447_v25  ;;  %12642 = vmatprep.subr.bf16.mxu0 %v16452_v26  ;;  %v16524_v25 = vld [vmem:[%s17866_s15 + $0x4a4] ss:$16 sps:$4 sm:$0xff]   ;;  %v16527_v26 = vld [vmem:[%s17866_s15 + $0x4ac] ss:$16 sps:$4 sm:$0xff]  }
 0xb50   : > { %12970 = vmatprep.subr.bf16.mxu1 %v16455_v27  ;;  %v16522_v27 = vld [vmem:[%s17866_s15 + $0x4a0] ss:$16 sps:$4 sm:$0xff]  }
 0xb52   : > { %12643 = vmatpush1.bf16.msra.mxu0 %v16450_v55  ;;  %v16525_v55 = vld [vmem:[%s17866_s15 + $0x4a8] ss:$16 sps:$4 sm:$0xff]  }
 0xb53   : > { %12971 = vmatpush1.bf16.msra.mxu1 %v16453_v28  ;;  %12644 = vmatprep.subr.bf16.mxu0 %v16458_v29  ;;  %v16530_v28 = vld [vmem:[%s17866_s15 + $0x4c4] ss:$16 sps:$4 sm:$0xff]   ;;  %v16533_v29 = vld [vmem:[%s17866_s15 + $0x4cc] ss:$16 sps:$4 sm:$0xff]  }
 0xb54   : > { %12972 = vmatprep.subr.bf16.mxu1 %v16461_v30  ;;  %v16528_v30 = vld [vmem:[%s17866_s15 + $0x4c0] ss:$16 sps:$4 sm:$0xff]  }
 0xb56   : > { %12645 = vmatpush1.bf16.msra.mxu0 %v16456_v31  ;;  %v16531_v31 = vld [vmem:[%s17866_s15 + $0x4c8] ss:$16 sps:$4 sm:$0xff]  }
 0xb57   : > { %12973 = vmatpush1.bf16.msra.mxu1 %v16459_v15  ;;  %12646 = vmatprep.subr.bf16.mxu0 %v16464_v53  ;;  %v16536_v15 = vld [vmem:[%s17866_s15 + $0x4e4] ss:$16 sps:$4 sm:$0xff]   ;;  %v16539_v53 = vld [vmem:[%s17866_s15 + $0x4ec] ss:$16 sps:$4 sm:$0xff]  }
 0xb58   : > { %12974 = vmatprep.subr.bf16.mxu1 %v16467_v32  ;;  %v16534_v32 = vld [vmem:[%s17866_s15 + $0x4e0] ss:$16 sps:$4 sm:$0xff]  }
 0xb5a   : > { %12647 = vmatpush1.bf16.msra.mxu0 %v16462_v34  ;;  %v16537_v34 = vld [vmem:[%s17866_s15 + $0x4e8] ss:$16 sps:$4 sm:$0xff]  }
 0xb5b   : > { %12975 = vmatpush1.bf16.msra.mxu1 %v16465_v36  ;;  %12648 = vmatprep.subr.bf16.mxu0 %v16470_v57  ;;  %v16542_v36 = vld [vmem:[%s17866_s15 + $0x504] ss:$16 sps:$4 sm:$0xff]   ;;  %v16545_v57 = vld [vmem:[%s17866_s15 + $0x50c] ss:$16 sps:$4 sm:$0xff]  }
 0xb5c   : > { %12976 = vmatprep.subr.bf16.mxu1 %v16473_v37  ;;  %v16540_v37 = vld [vmem:[%s17866_s15 + $0x500] ss:$16 sps:$4 sm:$0xff]  }
 0xb5e   : > { %12649 = vmatpush1.bf16.msra.mxu0 %v16468_v44  ;;  %v16543_v44 = vld [vmem:[%s17866_s15 + $0x508] ss:$16 sps:$4 sm:$0xff]  }
 0xb5f   : > { %12977 = vmatpush1.bf16.msra.mxu1 %v16471_v38  ;;  %12650 = vmatprep.subr.bf16.mxu0 %v16476_v39  ;;  %v16548_v38 = vld [vmem:[%s17866_s15 + $0x524] ss:$16 sps:$4 sm:$0xff]   ;;  %v16551_v39 = vld [vmem:[%s17866_s15 + $0x52c] ss:$16 sps:$4 sm:$0xff]  }
 0xb60   : > { %12978 = vmatprep.subr.bf16.mxu1 %v16479_v56  ;;  %v16546_v56 = vld [vmem:[%s17866_s15 + $0x520] ss:$16 sps:$4 sm:$0xff]  }
 0xb62   : > { %12651 = vmatpush1.bf16.msra.mxu0 %v16474_v40  ;;  %v16549_v40 = vld [vmem:[%s17866_s15 + $0x528] ss:$16 sps:$4 sm:$0xff]  }
 0xb63   : > { %12979 = vmatpush1.bf16.msra.mxu1 %v16477_v13  ;;  %12652 = vmatprep.subr.bf16.mxu0 %v16482_v41  ;;  %v16554_v13 = vld [vmem:[%s17866_s15 + $0x544] ss:$16 sps:$4 sm:$0xff]   ;;  %v16557_v41 = vld [vmem:[%s17866_s15 + $0x54c] ss:$16 sps:$4 sm:$0xff]  }
 0xb64   : > { %12980 = vmatprep.subr.bf16.mxu1 %v16485_v42  ;;  %v16552_v42 = vld [vmem:[%s17866_s15 + $0x540] ss:$16 sps:$4 sm:$0xff]  }
 0xb66   : > { %12653 = vmatpush1.bf16.msra.mxu0 %v16480_v49  ;;  %v16555_v49 = vld [vmem:[%s17866_s15 + $0x548] ss:$16 sps:$4 sm:$0xff]  }
 0xb67   : > { %12981 = vmatpush1.bf16.msra.mxu1 %v16483_v43  ;;  %12654 = vmatprep.subr.bf16.mxu0 %v16488_v51  ;;  %v16560_v43 = vld [vmem:[%s17866_s15 + $0x564] ss:$16 sps:$4 sm:$0xff]   ;;  %v16563_v51 = vld [vmem:[%s17866_s15 + $0x56c] ss:$16 sps:$4 sm:$0xff]  }
 0xb68   : > { %12982 = vmatprep.subr.bf16.mxu1 %v16491_v54  ;;  %v16558_v54 = vld [vmem:[%s17866_s15 + $0x560] ss:$16 sps:$4 sm:$0xff]  }
 0xb6a   : > { %12655 = vmatpush1.bf16.msra.mxu0 %v16486_v59  ;;  %v16561_v59 = vld [vmem:[%s17866_s15 + $0x568] ss:$16 sps:$4 sm:$0xff]  }
 0xb6b   : > { %12983 = vmatpush1.bf16.msra.mxu1 %v16489_v0  ;;  %12665 = vmatprep.subr.bf16.mxu0 %v16494_v1  ;;  %v16569_v0 = vld [vmem:[%s17866_s15 + $0x58c] ss:$16 sps:$4 sm:$0xff]   ;;  %v16564_v1 = vld [vmem:[%s17866_s15 + $0x580] ss:$16 sps:$4 sm:$0xff]  }
 0xb6c   : > { %12993 = vmatprep.subr.bf16.mxu1 %v16497_v2  ;;  %v16567_v2 = vld [vmem:[%s17866_s15 + $0x588] ss:$16 sps:$4 sm:$0xff]  }
 0xb6d   : > { %12657 = vmatmul.mubr.bf16.vlgmr.msra.gmra.mrb[48].mxu0 %v9497_v3 }
 0xb6e   : > { %12985 = vmatmul.mubr.bf16.vlgmr.msra.gmra.mrb[48].mxu1 %v9497_v3  ;;  %12666 = vmatpush1.bf16.msra.mxu0 %v16492_v17  ;;  %v16575_v17 = vld [vmem:[%s17866_s15 + $0x5ac] ss:$16 sps:$4 sm:$0xff]   ;;  %v16570_v3 = vld [vmem:[%s17866_s15 + $0x5a0] ss:$16 sps:$4 sm:$0xff]  }
 0xb6f   : > { %12697 = vmatprep.mubr.bf16.mxu0 %v9500_v5  ;;  %12994 = vmatpush1.bf16.msra.mxu1 %v16495_v4  ;;  %v16573_v4 = vld [vmem:[%s17866_s15 + $0x5a8] ss:$16 sps:$4 sm:$0xff]  }
 0xb70   : > { %13025 = vmatprep.mubr.bf16.mxu1 %v9500_v5  ;;  %12667 = vmatprep.subr.bf16.mxu0 %v16500_v45  ;;  %v16578_v45 = vld [vmem:[%s17866_s15 + $0x5c4] ss:$16 sps:$4 sm:$0xff]   ;;  %v16581_v5 = vld [vmem:[%s17866_s15 + $0x5cc] ss:$16 sps:$4 sm:$0xff]  }
 0xb71   : > { %12995 = vmatprep.subr.bf16.mxu1 %v16503_v9  ;;  %v16576_v9 = vld [vmem:[%s17866_s15 + $0x5c0] ss:$16 sps:$4 sm:$0xff]  }
 0xb72   : > { %12668 = vmatpush1.bf16.msra.mxu0 %v16498_v46  ;;  %v16579_v46 = vld [vmem:[%s17866_s15 + $0x5c8] ss:$16 sps:$4 sm:$0xff]  }
 0xb73   : > { %12996 = vmatpush1.bf16.msra.mxu1 %v16501_v63  ;;  %12669 = vmatprep.subr.bf16.mxu0 %v16506_v47  ;;  %v16584_v63 = vld [vmem:[%s17866_s15 + $0x5e4] ss:$16 sps:$4 sm:$0xff]   ;;  %v16587_v47 = vld [vmem:[%s17866_s15 + $0x5ec] ss:$16 sps:$4 sm:$0xff]  }
 0xb74   : > { %12997 = vmatprep.subr.bf16.mxu1 %v16509_v58  ;;  %v16582_v58 = vld [vmem:[%s17866_s15 + $0x5e0] ss:$16 sps:$4 sm:$0xff]  }
 0xb76   : > { %12670 = vmatpush1.bf16.msra.mxu0 %v16504_v60  ;;  %v9483_v60 = vmax.f32 %v19221_v8, 0.0  ;;  %v16596_v8 = vld [vmem:[%s17866_s15 + $0x624] ss:$16 sps:$4 sm:$0xff]  }
 0xb77   : > { %12998 = vmatpush1.bf16.msra.mxu1 %v16507_v16  ;;  %12671 = vmatprep.subr.bf16.mxu0 %v16512_v35  ;;  %v16585_v16 = vld [vmem:[%s17866_s15 + $0x5e8] ss:$16 sps:$4 sm:$0xff]   ;;  %v16590_v35 = vld [vmem:[%s17866_s15 + $0x604] ss:$16 sps:$4 sm:$0xff]  }
 0xb78   : > { %12999 = vmatprep.subr.bf16.mxu1 %v16515_v18  ;;  %v16593_v18 = vld [vmem:[%s17866_s15 + $0x60c] ss:$16 sps:$4 sm:$0xff]  }
 0xb7a   : > { %12672 = vmatpush1.bf16.msra.mxu0 %v16510_v12  ;;  %v9486_v12 = vmax.f32 %v19231_v62, 0.0  ;;  %v16594_v62 = vld [vmem:[%s17866_s15 + $0x620] ss:$16 sps:$4 sm:$0xff]  }
 0xb7b   : > { %13000 = vmatpush1.bf16.msra.mxu1 %v16513_v19  ;;  %12673 = vmatprep.subr.bf16.mxu0 %v16518_v21  ;;  %v16588_v19 = vld [vmem:[%s17866_s15 + $0x600] ss:$16 sps:$4 sm:$0xff]   ;;  %v9499_v21 = vpack.c.bf16 %v9483_v60, %v9483_v60 }
 0xb7c   : > { %13001 = vmatprep.subr.bf16.mxu1 %v16521_v22  ;;  %v16591_v22 = vld [vmem:[%s17866_s15 + $0x608] ss:$16 sps:$4 sm:$0xff]   ;;  %v16648_v60 = vld [vmem:[%s17866_s15 + $0x740] ss:$16 sps:$4 sm:$0xff]  }
 0xb7e   : > { %12674 = vmatpush1.bf16.msra.mxu0 %v16516_v23  ;;  %v9502_v23 = vpack.c.bf16 %v9486_v12, %v9486_v12  ;;  %v16654_v12 = vld [vmem:[%s17866_s15 + $0x760] ss:$16 sps:$4 sm:$0xff]  }
 0xb7f   : > { %13002 = vmatpush1.bf16.msra.mxu1 %v16519_v24  ;;  %12675 = vmatprep.subr.bf16.mxu0 %v16524_v25  ;;  %v16599_v24 = vld [vmem:[%s17866_s15 + $0x62c] ss:$16 sps:$4 sm:$0xff]   ;;  %v16597_v25 = vld [vmem:[%s17866_s15 + $0x628] ss:$16 sps:$4 sm:$0xff]  }
 0xb80   : > { %13003 = vmatprep.subr.bf16.mxu1 %v16527_v26  ;;  %v16602_v26 = vld [vmem:[%s17866_s15 + $0x644] ss:$16 sps:$4 sm:$0xff]  }
 0xb82   : > { %12676 = vmatpush1.bf16.msra.mxu0 %v16522_v27  ;;  %v16605_v27 = vld [vmem:[%s17866_s15 + $0x64c] ss:$16 sps:$4 sm:$0xff]  }
 0xb83   : > { %13004 = vmatpush1.bf16.msra.mxu1 %v16525_v55  ;;  %12677 = vmatprep.subr.bf16.mxu0 %v16530_v28  ;;  %v16600_v55 = vld [vmem:[%s17866_s15 + $0x640] ss:$16 sps:$4 sm:$0xff]   ;;  %v16603_v28 = vld [vmem:[%s17866_s15 + $0x648] ss:$16 sps:$4 sm:$0xff]  }
 0xb84   : > { %13005 = vmatprep.subr.bf16.mxu1 %v16533_v29  ;;  %v16608_v29 = vld [vmem:[%s17866_s15 + $0x664] ss:$16 sps:$4 sm:$0xff]  }
 0xb86   : > { %12678 = vmatpush1.bf16.msra.mxu0 %v16528_v30  ;;  %v16611_v30 = vld [vmem:[%s17866_s15 + $0x66c] ss:$16 sps:$4 sm:$0xff]  }
 0xb87   : > { %13006 = vmatpush1.bf16.msra.mxu1 %v16531_v31  ;;  %12679 = vmatprep.subr.bf16.mxu0 %v16536_v15  ;;  %v16606_v31 = vld [vmem:[%s17866_s15 + $0x660] ss:$16 sps:$4 sm:$0xff]   ;;  %v16609_v15 = vld [vmem:[%s17866_s15 + $0x668] ss:$16 sps:$4 sm:$0xff]  }
 0xb88   : > { %13007 = vmatprep.subr.bf16.mxu1 %v16539_v53  ;;  %v16614_v53 = vld [vmem:[%s17866_s15 + $0x684] ss:$16 sps:$4 sm:$0xff]  }
 0xb8a   : > { %12680 = vmatpush1.bf16.msra.mxu0 %v16534_v32  ;;  %v16617_v32 = vld [vmem:[%s17866_s15 + $0x68c] ss:$16 sps:$4 sm:$0xff]  }
 0xb8b   : > { %13008 = vmatpush1.bf16.msra.mxu1 %v16537_v34  ;;  %12681 = vmatprep.subr.bf16.mxu0 %v16542_v36  ;;  %v16612_v34 = vld [vmem:[%s17866_s15 + $0x680] ss:$16 sps:$4 sm:$0xff]   ;;  %v16615_v36 = vld [vmem:[%s17866_s15 + $0x688] ss:$16 sps:$4 sm:$0xff]  }
 0xb8c   : > { %13009 = vmatprep.subr.bf16.mxu1 %v16545_v57  ;;  %v16620_v57 = vld [vmem:[%s17866_s15 + $0x6a4] ss:$16 sps:$4 sm:$0xff]  }
 0xb8e   : > { %12682 = vmatpush1.bf16.msra.mxu0 %v16540_v37  ;;  %v16623_v37 = vld [vmem:[%s17866_s15 + $0x6ac] ss:$16 sps:$4 sm:$0xff]  }
 0xb8f   : > { %13010 = vmatpush1.bf16.msra.mxu1 %v16543_v44  ;;  %12683 = vmatprep.subr.bf16.mxu0 %v16548_v38  ;;  %v16618_v44 = vld [vmem:[%s17866_s15 + $0x6a0] ss:$16 sps:$4 sm:$0xff]   ;;  %v16621_v38 = vld [vmem:[%s17866_s15 + $0x6a8] ss:$16 sps:$4 sm:$0xff]  }
 0xb90   : > { %13011 = vmatprep.subr.bf16.mxu1 %v16551_v39  ;;  %v16626_v39 = vld [vmem:[%s17866_s15 + $0x6c4] ss:$16 sps:$4 sm:$0xff]  }
 0xb92   : > { %12684 = vmatpush1.bf16.msra.mxu0 %v16546_v56 }
 0xb93   : > { %13012 = vmatpush1.bf16.msra.mxu1 %v16549_v40  ;;  %12685 = vmatprep.subr.bf16.mxu0 %v16554_v13  ;;  %v16629_v40 = vld [vmem:[%s17866_s15 + $0x6cc] ss:$16 sps:$4 sm:$0xff]  }
 0xb94   : > { %13013 = vmatprep.subr.bf16.mxu1 %v16557_v41 }
 0xb96   : > { %12686 = vmatpush1.bf16.msra.mxu0 %v16552_v42 }
 0xb97   : > { %13014 = vmatpush1.bf16.msra.mxu1 %v16555_v49  ;;  %12687 = vmatprep.subr.bf16.mxu0 %v16560_v43  ;;  %v16624_v43 = vld [vmem:[%s17866_s15 + $0x6c0] ss:$16 sps:$4 sm:$0xff]  }
 0xb98   : > { %13015 = vmatprep.subr.bf16.mxu1 %v16563_v51 }
 0xb9a   : > { %12688 = vmatpush1.bf16.msra.mxu0 %v16558_v54 }
 0xb9b   : > { %13016 = vmatpush1.bf16.msra.mxu1 %v16561_v59  ;;  %12689 = vmatprep.subr.bf16.mxu0 %v16566_v61  ;;  %v16627_v59 = vld [vmem:[%s17866_s15 + $0x6c8] ss:$16 sps:$4 sm:$0xff]   ;;  %v16632_v61 = vld [vmem:[%s17866_s15 + $0x6e4] ss:$16 sps:$4 sm:$0xff]  }
 0xb9c   : > { %13017 = vmatprep.subr.bf16.mxu1 %v16569_v0 }
 0xb9e   : > { %12690 = vmatpush1.bf16.msra.mxu0 %v16564_v1  ;;  %v16635_v1 = vld [vmem:[%s17866_s15 + $0x6ec] ss:$16 sps:$4 sm:$0xff]  }
 0xb9f   : > { %13018 = vmatpush1.bf16.msra.mxu1 %v16567_v2  ;;  %12691 = vmatprep.subr.bf16.mxu0 %v16572_v7  ;;  %v16630_v2 = vld [vmem:[%s17866_s15 + $0x6e0] ss:$16 sps:$4 sm:$0xff]   ;;  %v16633_v7 = vld [vmem:[%s17866_s15 + $0x6e8] ss:$16 sps:$4 sm:$0xff]  }
 0xba0   : > { %13019 = vmatprep.subr.bf16.mxu1 %v16575_v17  ;;  %v16638_v17 = vld [vmem:[%s17866_s15 + $0x704] ss:$16 sps:$4 sm:$0xff]  }
 0xba2   : > { %12692 = vmatpush1.bf16.msra.mxu0 %v16570_v3  ;;  %v16641_v3 = vld [vmem:[%s17866_s15 + $0x70c] ss:$16 sps:$4 sm:$0xff]  }
 0xba3   : > { %13020 = vmatpush1.bf16.msra.mxu1 %v16573_v4  ;;  %12693 = vmatprep.subr.bf16.mxu0 %v16578_v45  ;;  %v16636_v4 = vld [vmem:[%s17866_s15 + $0x700] ss:$16 sps:$4 sm:$0xff]   ;;  %v16639_v45 = vld [vmem:[%s17866_s15 + $0x708] ss:$16 sps:$4 sm:$0xff]  }
 0xba4   : > { %13021 = vmatprep.subr.bf16.mxu1 %v16581_v5  ;;  %v16644_v5 = vld [vmem:[%s17866_s15 + $0x724] ss:$16 sps:$4 sm:$0xff]  }
 0xba6   : > { %12694 = vmatpush1.bf16.msra.mxu0 %v16576_v9  ;;  %v16647_v9 = vld [vmem:[%s17866_s15 + $0x72c] ss:$16 sps:$4 sm:$0xff]  }
 0xba7   : > { %13022 = vmatpush1.bf16.msra.mxu1 %v16579_v46  ;;  %12695 = vmatprep.subr.bf16.mxu0 %v16584_v63  ;;  %v16642_v46 = vld [vmem:[%s17866_s15 + $0x720] ss:$16 sps:$4 sm:$0xff]   ;;  %v16645_v63 = vld [vmem:[%s17866_s15 + $0x728] ss:$16 sps:$4 sm:$0xff]  }
 0xba8   : > { %13023 = vmatprep.subr.bf16.mxu1 %v16587_v47  ;;  %v16650_v47 = vld [vmem:[%s17866_s15 + $0x744] ss:$16 sps:$4 sm:$0xff]  }
 0xbaa   : > { %12696 = vmatpush1.bf16.msra.mxu0 %v16582_v58  ;;  %v16653_v58 = vld [vmem:[%s17866_s15 + $0x74c] ss:$16 sps:$4 sm:$0xff]  }
 0xbab   : > { %13024 = vmatpush1.bf16.msra.mxu1 %v16585_v16  ;;  %12706 = vmatprep.subr.bf16.mxu0 %v16590_v35  ;;  %v16651_v16 = vld [vmem:[%s17866_s15 + $0x748] ss:$16 sps:$4 sm:$0xff]   ;;  %v16656_v35 = vld [vmem:[%s17866_s15 + $0x764] ss:$16 sps:$4 sm:$0xff]  }
 0xbac   : > { %13034 = vmatprep.subr.bf16.mxu1 %v16593_v18  ;;  %v16659_v18 = vld [vmem:[%s17866_s15 + $0x76c] ss:$16 sps:$4 sm:$0xff]  }
 0xbad   : > { %12698 = vmatmul.mubr.bf16.vlgmr.msra.gmra.mrb[48].mxu0 %v9499_v21 }
 0xbae   : > { %13026 = vmatmul.mubr.bf16.vlgmr.msra.gmra.mrb[48].mxu1 %v9499_v21  ;;  %12707 = vmatpush1.bf16.msra.mxu0 %v16588_v19  ;;  %v16657_v19 = vld [vmem:[%s17866_s15 + $0x768] ss:$16 sps:$4 sm:$0xff]   ;;  %v16662_v21 = vld [vmem:[%s17866_s15 + $0x784] ss:$16 sps:$4 sm:$0xff]  }
 0xbaf   : > { %12738 = vmatprep.mubr.bf16.mxu0 %v9502_v23  ;;  %13035 = vmatpush1.bf16.msra.mxu1 %v16591_v22  ;;  %v16665_v22 = vld [vmem:[%s17866_s15 + $0x78c] ss:$16 sps:$4 sm:$0xff]  }
 0xbb0   : > { %13066 = vmatprep.mubr.bf16.mxu1 %v9502_v23  ;;  %12708 = vmatprep.subr.bf16.mxu0 %v16596_v8  ;;  %v16660_v8 = vld [vmem:[%s17866_s15 + $0x780] ss:$16 sps:$4 sm:$0xff]   ;;  %v16663_v23 = vld [vmem:[%s17866_s15 + $0x788] ss:$16 sps:$4 sm:$0xff]  }
 0xbb1   : > { %13036 = vmatprep.subr.bf16.mxu1 %v16599_v24  ;;  %v16668_v24 = vld [vmem:[%s17866_s15 + $0x7a4] ss:$16 sps:$4 sm:$0xff]  }
 0xbb2   : > { %12709 = vmatpush1.bf16.msra.mxu0 %v16594_v62  ;;  %v16671_v62 = vld [vmem:[%s17866_s15 + $0x7ac] ss:$16 sps:$4 sm:$0xff]  }
 0xbb3   : > { %13037 = vmatpush1.bf16.msra.mxu1 %v16597_v25  ;;  %12710 = vmatprep.subr.bf16.mxu0 %v16602_v26  ;;  %v16666_v25 = vld [vmem:[%s17866_s15 + $0x7a0] ss:$16 sps:$4 sm:$0xff]   ;;  %v16669_v26 = vld [vmem:[%s17866_s15 + $0x7a8] ss:$16 sps:$4 sm:$0xff]  }
 0xbb4   : > { %13038 = vmatprep.subr.bf16.mxu1 %v16605_v27  ;;  %v16674_v27 = vld [vmem:[%s17866_s15 + $0x7c4] ss:$16 sps:$4 sm:$0xff]  }
 0xbb6   : > { %12711 = vmatpush1.bf16.msra.mxu0 %v16600_v55  ;;  %v16677_v55 = vld [vmem:[%s17866_s15 + $0x7cc] ss:$16 sps:$4 sm:$0xff]  }
 0xbb7   : > { %13039 = vmatpush1.bf16.msra.mxu1 %v16603_v28  ;;  %12712 = vmatprep.subr.bf16.mxu0 %v16608_v29  ;;  %v16672_v28 = vld [vmem:[%s17866_s15 + $0x7c0] ss:$16 sps:$4 sm:$0xff]   ;;  %v16675_v29 = vld [vmem:[%s17866_s15 + $0x7c8] ss:$16 sps:$4 sm:$0xff]  }
 0xbb8   : > { %13040 = vmatprep.subr.bf16.mxu1 %v16611_v30  ;;  %v16680_v30 = vld [vmem:[%s17866_s15 + $0x7e4] ss:$16 sps:$4 sm:$0xff]  }
 0xbba   : > { %12713 = vmatpush1.bf16.msra.mxu0 %v16606_v31  ;;  %v16683_v31 = vld [vmem:[%s17866_s15 + $0x7ec] ss:$16 sps:$4 sm:$0xff]  }
 0xbbb   : > { %13041 = vmatpush1.bf16.msra.mxu1 %v16609_v15  ;;  %12714 = vmatprep.subr.bf16.mxu0 %v16614_v53  ;;  %v16678_v15 = vld [vmem:[%s17866_s15 + $0x7e0] ss:$16 sps:$4 sm:$0xff]   ;;  %v9485_v53 = vmax.f32 %v19225_v33, 0.0  ;;  %v16692_v33 = vld [vmem:[%s17866_s15 + $0x824] ss:$16 sps:$4 sm:$0xff]  }
 0xbbc   : > { %13042 = vmatprep.subr.bf16.mxu1 %v16617_v32  ;;  %v16681_v32 = vld [vmem:[%s17866_s15 + $0x7e8] ss:$16 sps:$4 sm:$0xff]  }
 0xbbe   : > { %12715 = vmatpush1.bf16.msra.mxu0 %v16612_v34  ;;  %v16686_v34 = vld [vmem:[%s17866_s15 + $0x804] ss:$16 sps:$4 sm:$0xff]  }
 0xbbf   : > { %13043 = vmatpush1.bf16.msra.mxu1 %v16615_v36  ;;  %12716 = vmatprep.subr.bf16.mxu0 %v16620_v57  ;;  %v16689_v36 = vld [vmem:[%s17866_s15 + $0x80c] ss:$16 sps:$4 sm:$0xff]   ;;  %v9488_v57 = vmax.f32 %v19364_v11, 0.0  ;;  %v16690_v11 = vld [vmem:[%s17866_s15 + $0x820] ss:$16 sps:$4 sm:$0xff]  }
 0xbc0   : > { %v19499_v56 = vpop.f32.mrb[44].mxu0  ;;  %13044 = vmatprep.subr.bf16.mxu1 %v16623_v37  ;;  %v16684_v37 = vld [vmem:[%s17866_s15 + $0x800] ss:$16 sps:$4 sm:$0xff]  }
 0xbc1   : > { %v19502_v13 = vpop.f32.mrb[44].mxu1  ;;  %v19504_v41 = vpop.f32.mrb[45].mxu0 }
 0xbc2   : > { %v19506_v42 = vpop.f32.mrb[45].mxu1  ;;  %v9394_v49 = vpop.f32.mrb[46].mxu0  ;;  %12717 = vmatpush1.bf16.msra.mxu0 %v16618_v44  ;;  %v9501_v44 = vpack.c.bf16 %v9485_v53, %v9485_v53  ;;  %v16758_v53 = vld [vmem:[%s17866_s15 + $0x984] ss:$16 sps:$4 sm:$0xff]  }
 0xbc3   : > { %v9476_v51 = vpop.f32.mrb[46].mxu1  ;;  %13045 = vmatpush1.bf16.msra.mxu1 %v16621_v38  ;;  %v9395_v54 = vpop.f32.mrb[47].mxu0  ;;  %12718 = vmatprep.subr.bf16.mxu0 %v16626_v39  ;;  %v16687_v38 = vld [vmem:[%s17866_s15 + $0x808] ss:$16 sps:$4 sm:$0xff]   ;;  %v9504_v39 = vpack.c.bf16 %v9488_v57, %v9488_v57  ;;  %v16764_v57 = vld [vmem:[%s17866_s15 + $0x9a4] ss:$16 sps:$4 sm:$0xff]  }
 0xbc4   : > { %v9477_v0 = vpop.f32.mrb[47].mxu1  ;;  %13046 = vmatprep.subr.bf16.mxu1 %v16629_v40  ;;  %v16695_v40 = vld [vmem:[%s17866_s15 + $0x82c] ss:$16 sps:$4 sm:$0xff]   ;;  %v16693_v49 = vld [vmem:[%s17866_s15 + $0x828] ss:$16 sps:$4 sm:$0xff]  }
 0xbc5   : > { %v16701_v51 = vld [vmem:[%s17866_s15 + $0x84c] ss:$16 sps:$4 sm:$0xff]   ;;  %v16696_v54 = vld [vmem:[%s17866_s15 + $0x840] ss:$16 sps:$4 sm:$0xff]  }
 0xbc6   : > { %12719 = vmatpush1.bf16.msra.mxu0 %v16624_v43  ;;  %v16698_v43 = vld [vmem:[%s17866_s15 + $0x844] ss:$16 sps:$4 sm:$0xff]   ;;  %v16707_v0 = vld [vmem:[%s17866_s15 + $0x86c] ss:$16 sps:$4 sm:$0xff]  }
 0xbc7   : > { %13047 = vmatpush1.bf16.msra.mxu1 %v16627_v59  ;;  %12720 = vmatprep.subr.bf16.mxu0 %v16632_v61  ;;  %v16699_v59 = vld [vmem:[%s17866_s15 + $0x848] ss:$16 sps:$4 sm:$0xff]   ;;  %v16704_v61 = vld [vmem:[%s17866_s15 + $0x864] ss:$16 sps:$4 sm:$0xff]  }
 0xbc8   : > { %13048 = vmatprep.subr.bf16.mxu1 %v16635_v1  ;;  %v16702_v1 = vld [vmem:[%s17866_s15 + $0x860] ss:$16 sps:$4 sm:$0xff]  }
 0xbca   : > { %12721 = vmatpush1.bf16.msra.mxu0 %v16630_v2  ;;  %v16705_v2 = vld [vmem:[%s17866_s15 + $0x868] ss:$16 sps:$4 sm:$0xff]  }
 0xbcb   : > { %13049 = vmatpush1.bf16.msra.mxu1 %v16633_v7  ;;  %12722 = vmatprep.subr.bf16.mxu0 %v16638_v17  ;;  %v16710_v7 = vld [vmem:[%s17866_s15 + $0x884] ss:$16 sps:$4 sm:$0xff]   ;;  %v16713_v17 = vld [vmem:[%s17866_s15 + $0x88c] ss:$16 sps:$4 sm:$0xff]  }
 0xbcc   : > { %13050 = vmatprep.subr.bf16.mxu1 %v16641_v3  ;;  %v16708_v3 = vld [vmem:[%s17866_s15 + $0x880] ss:$16 sps:$4 sm:$0xff]  }
 0xbce   : > { %12723 = vmatpush1.bf16.msra.mxu0 %v16636_v4  ;;  %v16711_v4 = vld [vmem:[%s17866_s15 + $0x888] ss:$16 sps:$4 sm:$0xff]  }
 0xbcf   : > { %13051 = vmatpush1.bf16.msra.mxu1 %v16639_v45  ;;  %12724 = vmatprep.subr.bf16.mxu0 %v16644_v5  ;;  %v16716_v45 = vld [vmem:[%s17866_s15 + $0x8a4] ss:$16 sps:$4 sm:$0xff]   ;;  %v16719_v5 = vld [vmem:[%s17866_s15 + $0x8ac] ss:$16 sps:$4 sm:$0xff]  }
 0xbd0   : > { %13052 = vmatprep.subr.bf16.mxu1 %v16647_v9  ;;  %v16714_v9 = vld [vmem:[%s17866_s15 + $0x8a0] ss:$16 sps:$4 sm:$0xff]  }
 0xbd2   : > { %12725 = vmatpush1.bf16.msra.mxu0 %v16642_v46  ;;  %v16717_v46 = vld [vmem:[%s17866_s15 + $0x8a8] ss:$16 sps:$4 sm:$0xff]  }
 0xbd3   : > { %13053 = vmatpush1.bf16.msra.mxu1 %v16645_v63  ;;  %12726 = vmatprep.subr.bf16.mxu0 %v16650_v47  ;;  %v16722_v63 = vld [vmem:[%s17866_s15 + $0x8c4] ss:$16 sps:$4 sm:$0xff]   ;;  %v16725_v47 = vld [vmem:[%s17866_s15 + $0x8cc] ss:$16 sps:$4 sm:$0xff]  }
 0xbd4   : > { %13054 = vmatprep.subr.bf16.mxu1 %v16653_v58  ;;  %v16720_v58 = vld [vmem:[%s17866_s15 + $0x8c0] ss:$16 sps:$4 sm:$0xff]  }
 0xbd6   : > { %12727 = vmatpush1.bf16.msra.mxu0 %v16648_v60  ;;  %v16723_v60 = vld [vmem:[%s17866_s15 + $0x8c8] ss:$16 sps:$4 sm:$0xff]  }
 0xbd7   : > { %13055 = vmatpush1.bf16.msra.mxu1 %v16651_v16  ;;  %12728 = vmatprep.subr.bf16.mxu0 %v16656_v35  ;;  %v16728_v16 = vld [vmem:[%s17866_s15 + $0x8e4] ss:$16 sps:$4 sm:$0xff]   ;;  %v16731_v35 = vld [vmem:[%s17866_s15 + $0x8ec] ss:$16 sps:$4 sm:$0xff]  }
 0xbd8   : > { %13056 = vmatprep.subr.bf16.mxu1 %v16659_v18  ;;  %v16726_v18 = vld [vmem:[%s17866_s15 + $0x8e0] ss:$16 sps:$4 sm:$0xff]  }
 0xbda   : > { %12729 = vmatpush1.bf16.msra.mxu0 %v16654_v12  ;;  %v16729_v12 = vld [vmem:[%s17866_s15 + $0x8e8] ss:$16 sps:$4 sm:$0xff]  }
 0xbdb   : > { %13057 = vmatpush1.bf16.msra.mxu1 %v16657_v19  ;;  %12730 = vmatprep.subr.bf16.mxu0 %v16662_v21  ;;  %v16734_v19 = vld [vmem:[%s17866_s15 + $0x904] ss:$16 sps:$4 sm:$0xff]   ;;  %v16737_v21 = vld [vmem:[%s17866_s15 + $0x90c] ss:$16 sps:$4 sm:$0xff]  }
 0xbdc   : > { %13058 = vmatprep.subr.bf16.mxu1 %v16665_v22  ;;  %v16732_v22 = vld [vmem:[%s17866_s15 + $0x900] ss:$16 sps:$4 sm:$0xff]  }
 0xbde   : > { %12731 = vmatpush1.bf16.msra.mxu0 %v16660_v8  ;;  %v16735_v8 = vld [vmem:[%s17866_s15 + $0x908] ss:$16 sps:$4 sm:$0xff]  }
 0xbdf   : > { %13059 = vmatpush1.bf16.msra.mxu1 %v16663_v23  ;;  %12732 = vmatprep.subr.bf16.mxu0 %v16668_v24  ;;  %v16740_v23 = vld [vmem:[%s17866_s15 + $0x924] ss:$16 sps:$4 sm:$0xff]   ;;  %v16743_v24 = vld [vmem:[%s17866_s15 + $0x92c] ss:$16 sps:$4 sm:$0xff]  }
 0xbe0   : > { %13060 = vmatprep.subr.bf16.mxu1 %v16671_v62  ;;  %v16738_v62 = vld [vmem:[%s17866_s15 + $0x920] ss:$16 sps:$4 sm:$0xff]  }
 0xbe2   : > { %12733 = vmatpush1.bf16.msra.mxu0 %v16666_v25  ;;  %v16741_v25 = vld [vmem:[%s17866_s15 + $0x928] ss:$16 sps:$4 sm:$0xff]  }
 0xbe3   : > { %13061 = vmatpush1.bf16.msra.mxu1 %v16669_v26  ;;  %12734 = vmatprep.subr.bf16.mxu0 %v16674_v27  ;;  %v16746_v26 = vld [vmem:[%s17866_s15 + $0x944] ss:$16 sps:$4 sm:$0xff]   ;;  %v16749_v27 = vld [vmem:[%s17866_s15 + $0x94c] ss:$16 sps:$4 sm:$0xff]  }
 0xbe4   : > { %13062 = vmatprep.subr.bf16.mxu1 %v16677_v55  ;;  %v16744_v55 = vld [vmem:[%s17866_s15 + $0x940] ss:$16 sps:$4 sm:$0xff]  }
 0xbe6   : > { %12735 = vmatpush1.bf16.msra.mxu0 %v16672_v28  ;;  %v16747_v28 = vld [vmem:[%s17866_s15 + $0x948] ss:$16 sps:$4 sm:$0xff]  }
 0xbe7   : > { %13063 = vmatpush1.bf16.msra.mxu1 %v16675_v29  ;;  %12736 = vmatprep.subr.bf16.mxu0 %v16680_v30  ;;  %v16752_v29 = vld [vmem:[%s17866_s15 + $0x964] ss:$16 sps:$4 sm:$0xff]   ;;  %v16755_v30 = vld [vmem:[%s17866_s15 + $0x96c] ss:$16 sps:$4 sm:$0xff]  }
 0xbe8   : > { %13064 = vmatprep.subr.bf16.mxu1 %v16683_v31  ;;  %v16750_v31 = vld [vmem:[%s17866_s15 + $0x960] ss:$16 sps:$4 sm:$0xff]  }
 0xbea   : > { %12737 = vmatpush1.bf16.msra.mxu0 %v16678_v15  ;;  %v16753_v15 = vld [vmem:[%s17866_s15 + $0x968] ss:$16 sps:$4 sm:$0xff]  }
 0xbeb   : > { %13065 = vmatpush1.bf16.msra.mxu1 %v16681_v32  ;;  %12747 = vmatprep.subr.bf16.mxu0 %v16686_v34  ;;  %v16761_v32 = vld [vmem:[%s17866_s15 + $0x98c] ss:$16 sps:$4 sm:$0xff]   ;;  %v16756_v34 = vld [vmem:[%s17866_s15 + $0x980] ss:$16 sps:$4 sm:$0xff]  }
 0xbec   : > { %13075 = vmatprep.subr.bf16.mxu1 %v16689_v36  ;;  %v16759_v36 = vld [vmem:[%s17866_s15 + $0x988] ss:$16 sps:$4 sm:$0xff]  }
 0xbed   : > { %12739 = vmatmul.mubr.bf16.vlgmr.msra.gmra.mrb[48].mxu0 %v9501_v44 }
 0xbee   : > { %13067 = vmatmul.mubr.bf16.vlgmr.msra.gmra.mrb[48].mxu1 %v9501_v44  ;;  %12748 = vmatpush1.bf16.msra.mxu0 %v16684_v37  ;;  %v16767_v37 = vld [vmem:[%s17866_s15 + $0x9ac] ss:$16 sps:$4 sm:$0xff]   ;;  %v16762_v44 = vld [vmem:[%s17866_s15 + $0x9a0] ss:$16 sps:$4 sm:$0xff]  }
 0xbef   : > { %12779 = vmatprep.mubr.bf16.mxu0 %v9504_v39  ;;  %13076 = vmatpush1.bf16.msra.mxu1 %v16687_v38  ;;  %v16765_v38 = vld [vmem:[%s17866_s15 + $0x9a8] ss:$16 sps:$4 sm:$0xff]  }
 0xbf0   : > { %13107 = vmatprep.mubr.bf16.mxu1 %v9504_v39  ;;  %12749 = vmatprep.subr.bf16.mxu0 %v16692_v33  ;;  %v16770_v33 = vld [vmem:[%s17866_s15 + $0x9c4] ss:$16 sps:$4 sm:$0xff]   ;;  %v16773_v39 = vld [vmem:[%s17866_s15 + $0x9cc] ss:$16 sps:$4 sm:$0xff]  }
 0xbf1   : > { %13077 = vmatprep.subr.bf16.mxu1 %v16695_v40  ;;  %v16768_v40 = vld [vmem:[%s17866_s15 + $0x9c0] ss:$16 sps:$4 sm:$0xff]  }
 0xbf2   : > { %12750 = vmatpush1.bf16.msra.mxu0 %v16690_v11  ;;  %v16771_v11 = vld [vmem:[%s17866_s15 + $0x9c8] ss:$16 sps:$4 sm:$0xff]  }
 0xbf3   : > { %13078 = vmatpush1.bf16.msra.mxu1 %v16693_v49  ;;  %12751 = vmatprep.subr.bf16.mxu0 %v16698_v43  ;;  %v16776_v49 = vld [vmem:[%s17866_s15 + $0x9e4] ss:$16 sps:$4 sm:$0xff]   ;;  %v16779_v43 = vld [vmem:[%s17866_s15 + $0x9ec] ss:$16 sps:$4 sm:$0xff]  }
 0xbf4   : > { %13079 = vmatprep.subr.bf16.mxu1 %v16701_v51  ;;  %v16774_v51 = vld [vmem:[%s17866_s15 + $0x9e0] ss:$16 sps:$4 sm:$0xff]  }
 0xbf6   : > { %12752 = vmatpush1.bf16.msra.mxu0 %v16696_v54  ;;  %v9487_v54 = vmax.f32 %v19359_v6, 0.0  ;;  %v16788_v6 = vld [vmem:[%s17866_s15 + $0xa24] ss:$16 sps:$4 sm:$0xff]  }
 0xbf7   : > { %13080 = vmatpush1.bf16.msra.mxu1 %v16699_v59  ;;  %12753 = vmatprep.subr.bf16.mxu0 %v16704_v61  ;;  %v16777_v59 = vld [vmem:[%s17866_s15 + $0x9e8] ss:$16 sps:$4 sm:$0xff]   ;;  %v16782_v61 = vld [vmem:[%s17866_s15 + $0xa04] ss:$16 sps:$4 sm:$0xff]  }
 0xbf8   : > { %13081 = vmatprep.subr.bf16.mxu1 %v16707_v0  ;;  %v16785_v0 = vld [vmem:[%s17866_s15 + $0xa0c] ss:$16 sps:$4 sm:$0xff]  }
 0xbfa   : > { %12754 = vmatpush1.bf16.msra.mxu0 %v16702_v1  ;;  %v9490_v1 = vmax.f32 %v19366_v14, 0.0  ;;  %v16786_v14 = vld [vmem:[%s17866_s15 + $0xa20] ss:$16 sps:$4 sm:$0xff]  }
 0xbfb   : > { %13082 = vmatpush1.bf16.msra.mxu1 %v16705_v2  ;;  %12755 = vmatprep.subr.bf16.mxu0 %v16710_v7  ;;  %v16780_v2 = vld [vmem:[%s17866_s15 + $0xa00] ss:$16 sps:$4 sm:$0xff]   ;;  %v9503_v7 = vpack.c.bf16 %v9487_v54, %v9487_v54 }
 0xbfc   : > { %13083 = vmatprep.subr.bf16.mxu1 %v16713_v17  ;;  %v16783_v17 = vld [vmem:[%s17866_s15 + $0xa08] ss:$16 sps:$4 sm:$0xff]   ;;  %v16852_v54 = vld [vmem:[%s17866_s15 + $0xb80] ss:$16 sps:$4 sm:$0xff]  }
 0xbfe   : > { %12756 = vmatpush1.bf16.msra.mxu0 %v16708_v3  ;;  %v9506_v3 = vpack.c.bf16 %v9490_v1, %v9490_v1  ;;  %v16858_v1 = vld [vmem:[%s17866_s15 + $0xba0] ss:$16 sps:$4 sm:$0xff]  }
 0xbff   : > { %13084 = vmatpush1.bf16.msra.mxu1 %v16711_v4  ;;  %12757 = vmatprep.subr.bf16.mxu0 %v16716_v45  ;;  %v16791_v4 = vld [vmem:[%s17866_s15 + $0xa2c] ss:$16 sps:$4 sm:$0xff]   ;;  %v16789_v45 = vld [vmem:[%s17866_s15 + $0xa28] ss:$16 sps:$4 sm:$0xff]  }
 0xc00   : > { %13085 = vmatprep.subr.bf16.mxu1 %v16719_v5  ;;  %v16794_v5 = vld [vmem:[%s17866_s15 + $0xa44] ss:$16 sps:$4 sm:$0xff]  }
 0xc02   : > { %12758 = vmatpush1.bf16.msra.mxu0 %v16714_v9  ;;  %v16797_v9 = vld [vmem:[%s17866_s15 + $0xa4c] ss:$16 sps:$4 sm:$0xff]  }
 0xc03   : > { %13086 = vmatpush1.bf16.msra.mxu1 %v16717_v46  ;;  %12759 = vmatprep.subr.bf16.mxu0 %v16722_v63  ;;  %v16792_v46 = vld [vmem:[%s17866_s15 + $0xa40] ss:$16 sps:$4 sm:$0xff]   ;;  %v16795_v63 = vld [vmem:[%s17866_s15 + $0xa48] ss:$16 sps:$4 sm:$0xff]  }
 0xc04   : > { %13087 = vmatprep.subr.bf16.mxu1 %v16725_v47  ;;  %v16800_v47 = vld [vmem:[%s17866_s15 + $0xa64] ss:$16 sps:$4 sm:$0xff]  }
 0xc06   : > { %12760 = vmatpush1.bf16.msra.mxu0 %v16720_v58  ;;  %v16803_v58 = vld [vmem:[%s17866_s15 + $0xa6c] ss:$16 sps:$4 sm:$0xff]  }
 0xc07   : > { %13088 = vmatpush1.bf16.msra.mxu1 %v16723_v60  ;;  %12761 = vmatprep.subr.bf16.mxu0 %v16728_v16  ;;  %v16798_v60 = vld [vmem:[%s17866_s15 + $0xa60] ss:$16 sps:$4 sm:$0xff]   ;;  %v16801_v16 = vld [vmem:[%s17866_s15 + $0xa68] ss:$16 sps:$4 sm:$0xff]  }
 0xc08   : > { %13089 = vmatprep.subr.bf16.mxu1 %v16731_v35  ;;  %v16806_v35 = vld [vmem:[%s17866_s15 + $0xa84] ss:$16 sps:$4 sm:$0xff]  }
 0xc0a   : > { %12762 = vmatpush1.bf16.msra.mxu0 %v16726_v18  ;;  %v16809_v18 = vld [vmem:[%s17866_s15 + $0xa8c] ss:$16 sps:$4 sm:$0xff]  }
 0xc0b   : > { %13090 = vmatpush1.bf16.msra.mxu1 %v16729_v12  ;;  %12763 = vmatprep.subr.bf16.mxu0 %v16734_v19  ;;  %v16804_v12 = vld [vmem:[%s17866_s15 + $0xa80] ss:$16 sps:$4 sm:$0xff]   ;;  %v16807_v19 = vld [vmem:[%s17866_s15 + $0xa88] ss:$16 sps:$4 sm:$0xff]  }
 0xc0c   : > { %13091 = vmatprep.subr.bf16.mxu1 %v16737_v21  ;;  %v16812_v21 = vld [vmem:[%s17866_s15 + $0xaa4] ss:$16 sps:$4 sm:$0xff]  }
 0xc0e   : > { %12764 = vmatpush1.bf16.msra.mxu0 %v16732_v22  ;;  %v16815_v22 = vld [vmem:[%s17866_s15 + $0xaac] ss:$16 sps:$4 sm:$0xff]  }
 0xc0f   : > { %13092 = vmatpush1.bf16.msra.mxu1 %v16735_v8  ;;  %12765 = vmatprep.subr.bf16.mxu0 %v16740_v23  ;;  %v16810_v8 = vld [vmem:[%s17866_s15 + $0xaa0] ss:$16 sps:$4 sm:$0xff]   ;;  %v16813_v23 = vld [vmem:[%s17866_s15 + $0xaa8] ss:$16 sps:$4 sm:$0xff]  }
 0xc10   : > { %13093 = vmatprep.subr.bf16.mxu1 %v16743_v24  ;;  %v16818_v24 = vld [vmem:[%s17866_s15 + $0xac4] ss:$16 sps:$4 sm:$0xff]  }
 0xc12   : > { %12766 = vmatpush1.bf16.msra.mxu0 %v16738_v62  ;;  %v16821_v62 = vld [vmem:[%s17866_s15 + $0xacc] ss:$16 sps:$4 sm:$0xff]  }
 0xc13   : > { %13094 = vmatpush1.bf16.msra.mxu1 %v16741_v25  ;;  %12767 = vmatprep.subr.bf16.mxu0 %v16746_v26  ;;  %v16816_v25 = vld [vmem:[%s17866_s15 + $0xac0] ss:$16 sps:$4 sm:$0xff]   ;;  %v16819_v26 = vld [vmem:[%s17866_s15 + $0xac8] ss:$16 sps:$4 sm:$0xff]  }
 0xc14   : > { %13095 = vmatprep.subr.bf16.mxu1 %v16749_v27  ;;  %v16824_v27 = vld [vmem:[%s17866_s15 + $0xae4] ss:$16 sps:$4 sm:$0xff]  }
 0xc16   : > { %12768 = vmatpush1.bf16.msra.mxu0 %v16744_v55  ;;  %v16827_v55 = vld [vmem:[%s17866_s15 + $0xaec] ss:$16 sps:$4 sm:$0xff]  }
 0xc17   : > { %13096 = vmatpush1.bf16.msra.mxu1 %v16747_v28  ;;  %12769 = vmatprep.subr.bf16.mxu0 %v16752_v29  ;;  %v16822_v28 = vld [vmem:[%s17866_s15 + $0xae0] ss:$16 sps:$4 sm:$0xff]   ;;  %v16825_v29 = vld [vmem:[%s17866_s15 + $0xae8] ss:$16 sps:$4 sm:$0xff]  }
 0xc18   : > { %13097 = vmatprep.subr.bf16.mxu1 %v16755_v30  ;;  %v16830_v30 = vld [vmem:[%s17866_s15 + $0xb04] ss:$16 sps:$4 sm:$0xff]  }
 0xc1a   : > { %12770 = vmatpush1.bf16.msra.mxu0 %v16750_v31  ;;  %v16833_v31 = vld [vmem:[%s17866_s15 + $0xb0c] ss:$16 sps:$4 sm:$0xff]  }
 0xc1b   : > { %13098 = vmatpush1.bf16.msra.mxu1 %v16753_v15  ;;  %12771 = vmatprep.subr.bf16.mxu0 %v16758_v53  ;;  %v16828_v15 = vld [vmem:[%s17866_s15 + $0xb00] ss:$16 sps:$4 sm:$0xff]   ;;  %v16831_v53 = vld [vmem:[%s17866_s15 + $0xb08] ss:$16 sps:$4 sm:$0xff]  }
 0xc1c   : > { %13099 = vmatprep.subr.bf16.mxu1 %v16761_v32  ;;  %v16836_v32 = vld [vmem:[%s17866_s15 + $0xb24] ss:$16 sps:$4 sm:$0xff]  }
 0xc1e   : > { %12772 = vmatpush1.bf16.msra.mxu0 %v16756_v34  ;;  %v16839_v34 = vld [vmem:[%s17866_s15 + $0xb2c] ss:$16 sps:$4 sm:$0xff]  }
 0xc1f   : > { %13100 = vmatpush1.bf16.msra.mxu1 %v16759_v36  ;;  %12773 = vmatprep.subr.bf16.mxu0 %v16764_v57  ;;  %v16834_v36 = vld [vmem:[%s17866_s15 + $0xb20] ss:$16 sps:$4 sm:$0xff]   ;;  %v16837_v57 = vld [vmem:[%s17866_s15 + $0xb28] ss:$16 sps:$4 sm:$0xff]  }
 0xc20   : > { %13101 = vmatprep.subr.bf16.mxu1 %v16767_v37  ;;  %v16842_v37 = vld [vmem:[%s17866_s15 + $0xb44] ss:$16 sps:$4 sm:$0xff]  }
 0xc22   : > { %12774 = vmatpush1.bf16.msra.mxu0 %v16762_v44  ;;  %v16845_v44 = vld [vmem:[%s17866_s15 + $0xb4c] ss:$16 sps:$4 sm:$0xff]  }
 0xc23   : > { %13102 = vmatpush1.bf16.msra.mxu1 %v16765_v38  ;;  %12775 = vmatprep.subr.bf16.mxu0 %v16770_v33  ;;  %v16840_v38 = vld [vmem:[%s17866_s15 + $0xb40] ss:$16 sps:$4 sm:$0xff]   ;;  %v16843_v33 = vld [vmem:[%s17866_s15 + $0xb48] ss:$16 sps:$4 sm:$0xff]  }
 0xc24   : > { %13103 = vmatprep.subr.bf16.mxu1 %v16773_v39  ;;  %v16848_v39 = vld [vmem:[%s17866_s15 + $0xb64] ss:$16 sps:$4 sm:$0xff]  }
 0xc26   : > { %12776 = vmatpush1.bf16.msra.mxu0 %v16768_v40  ;;  %v16851_v40 = vld [vmem:[%s17866_s15 + $0xb6c] ss:$16 sps:$4 sm:$0xff]  }
 0xc27   : > { %13104 = vmatpush1.bf16.msra.mxu1 %v16771_v11  ;;  %12777 = vmatprep.subr.bf16.mxu0 %v16776_v49  ;;  %v16846_v11 = vld [vmem:[%s17866_s15 + $0xb60] ss:$16 sps:$4 sm:$0xff]   ;;  %v16849_v49 = vld [vmem:[%s17866_s15 + $0xb68] ss:$16 sps:$4 sm:$0xff]  }
 0xc28   : > { %13105 = vmatprep.subr.bf16.mxu1 %v16779_v43  ;;  %v16854_v43 = vld [vmem:[%s17866_s15 + $0xb84] ss:$16 sps:$4 sm:$0xff]  }
 0xc2a   : > { %12778 = vmatpush1.bf16.msra.mxu0 %v16774_v51  ;;  %v16857_v51 = vld [vmem:[%s17866_s15 + $0xb8c] ss:$16 sps:$4 sm:$0xff]  }
 0xc2b   : > { %13106 = vmatpush1.bf16.msra.mxu1 %v16777_v59  ;;  %12788 = vmatprep.subr.bf16.mxu0 %v16782_v61  ;;  %v16855_v59 = vld [vmem:[%s17866_s15 + $0xb88] ss:$16 sps:$4 sm:$0xff]   ;;  %v16860_v61 = vld [vmem:[%s17866_s15 + $0xba4] ss:$16 sps:$4 sm:$0xff]  }
 0xc2c   : > { %13116 = vmatprep.subr.bf16.mxu1 %v16785_v0  ;;  %v16863_v0 = vld [vmem:[%s17866_s15 + $0xbac] ss:$16 sps:$4 sm:$0xff]  }
 0xc2d   : > { %12780 = vmatmul.mubr.bf16.vlgmr.msra.gmra.mrb[48].mxu0 %v9503_v7 }
 0xc2e   : > { %13108 = vmatmul.mubr.bf16.vlgmr.msra.gmra.mrb[48].mxu1 %v9503_v7  ;;  %12789 = vmatpush1.bf16.msra.mxu0 %v16780_v2  ;;  %v16861_v2 = vld [vmem:[%s17866_s15 + $0xba8] ss:$16 sps:$4 sm:$0xff]   ;;  %v16866_v7 = vld [vmem:[%s17866_s15 + $0xbc4] ss:$16 sps:$4 sm:$0xff]  }
 0xc2f   : > { %12820 = vmatprep.mubr.bf16.mxu0 %v9506_v3  ;;  %13117 = vmatpush1.bf16.msra.mxu1 %v16783_v17  ;;  %v16869_v17 = vld [vmem:[%s17866_s15 + $0xbcc] ss:$16 sps:$4 sm:$0xff]  }
 0xc30   : > { %13148 = vmatprep.mubr.bf16.mxu1 %v9506_v3  ;;  %12790 = vmatprep.subr.bf16.mxu0 %v16788_v6  ;;  %v16864_v6 = vld [vmem:[%s17866_s15 + $0xbc0] ss:$16 sps:$4 sm:$0xff]   ;;  %v16867_v3 = vld [vmem:[%s17866_s15 + $0xbc8] ss:$16 sps:$4 sm:$0xff]  }
 0xc31   : > { %13118 = vmatprep.subr.bf16.mxu1 %v16791_v4  ;;  %v16872_v4 = vld [vmem:[%s17866_s15 + $0xbe4] ss:$16 sps:$4 sm:$0xff]  }
 0xc32   : > { %12791 = vmatpush1.bf16.msra.mxu0 %v16786_v14  ;;  %v16875_v14 = vld [vmem:[%s17866_s15 + $0xbec] ss:$16 sps:$4 sm:$0xff]  }
 0xc33   : > { %13119 = vmatpush1.bf16.msra.mxu1 %v16789_v45  ;;  %12792 = vmatprep.subr.bf16.mxu0 %v16794_v5  ;;  %v16870_v45 = vld [vmem:[%s17866_s15 + $0xbe0] ss:$16 sps:$4 sm:$0xff]   ;;  %v9489_v5 = vmax.f32 %v19362_v10, 0.0  ;;  %v16884_v10 = vld [vmem:[%s17866_s15 + $0xc24] ss:$16 sps:$4 sm:$0xff]  }
 0xc34   : > { %13120 = vmatprep.subr.bf16.mxu1 %v16797_v9  ;;  %v16873_v9 = vld [vmem:[%s17866_s15 + $0xbe8] ss:$16 sps:$4 sm:$0xff]  }
 0xc36   : > { %12793 = vmatpush1.bf16.msra.mxu0 %v16792_v46  ;;  %v16878_v46 = vld [vmem:[%s17866_s15 + $0xc04] ss:$16 sps:$4 sm:$0xff]  }
 0xc37   : > { %13121 = vmatpush1.bf16.msra.mxu1 %v16795_v63  ;;  %12794 = vmatprep.subr.bf16.mxu0 %v16800_v47  ;;  %v16881_v63 = vld [vmem:[%s17866_s15 + $0xc0c] ss:$16 sps:$4 sm:$0xff]   ;;  %v9492_v47 = vmax.f32 %v19504_v41, 0.0  ;;  %v16882_v41 = vld [vmem:[%s17866_s15 + $0xc20] ss:$16 sps:$4 sm:$0xff]  }
 0xc38   : > { %13122 = vmatprep.subr.bf16.mxu1 %v16803_v58  ;;  %v16876_v58 = vld [vmem:[%s17866_s15 + $0xc00] ss:$16 sps:$4 sm:$0xff]  }
 0xc3a   : > { %12795 = vmatpush1.bf16.msra.mxu0 %v16798_v60  ;;  %v9505_v60 = vpack.c.bf16 %v9489_v5, %v9489_v5  ;;  %v16956_v5 = vld [vmem:[%s17866_s15 + $0xda4] ss:$16 sps:$4 sm:$0xff]  }
 0xc3b   : > { %13123 = vmatpush1.bf16.msra.mxu1 %v16801_v16  ;;  %12796 = vmatprep.subr.bf16.mxu0 %v16806_v35  ;;  %v16879_v16 = vld [vmem:[%s17866_s15 + $0xc08] ss:$16 sps:$4 sm:$0xff]   ;;  %v9508_v35 = vpack.c.bf16 %v9492_v47, %v9492_v47  ;;  %v16962_v47 = vld [vmem:[%s17866_s15 + $0xdc4] ss:$16 sps:$4 sm:$0xff]  }
 0xc3c   : > { %13124 = vmatprep.subr.bf16.mxu1 %v16809_v18  ;;  %v16887_v18 = vld [vmem:[%s17866_s15 + $0xc2c] ss:$16 sps:$4 sm:$0xff]  }
 0xc3e   : > { %12797 = vmatpush1.bf16.msra.mxu0 %v16804_v12  ;;  %v16885_v12 = vld [vmem:[%s17866_s15 + $0xc28] ss:$16 sps:$4 sm:$0xff]  }
 0xc3f   : > { %13125 = vmatpush1.bf16.msra.mxu1 %v16807_v19  ;;  %12798 = vmatprep.subr.bf16.mxu0 %v16812_v21  ;;  %v16890_v19 = vld [vmem:[%s17866_s15 + $0xc44] ss:$16 sps:$4 sm:$0xff]   ;;  %v16893_v21 = vld [vmem:[%s17866_s15 + $0xc4c] ss:$16 sps:$4 sm:$0xff]  }
 0xc40   : > { %13126 = vmatprep.subr.bf16.mxu1 %v16815_v22  ;;  %v16888_v22 = vld [vmem:[%s17866_s15 + $0xc40] ss:$16 sps:$4 sm:$0xff]  }
 0xc42   : > { %12799 = vmatpush1.bf16.msra.mxu0 %v16810_v8  ;;  %v16891_v8 = vld [vmem:[%s17866_s15 + $0xc48] ss:$16 sps:$4 sm:$0xff]  }
 0xc43   : > { %13127 = vmatpush1.bf16.msra.mxu1 %v16813_v23  ;;  %12800 = vmatprep.subr.bf16.mxu0 %v16818_v24  ;;  %v16896_v23 = vld [vmem:[%s17866_s15 + $0xc64] ss:$16 sps:$4 sm:$0xff]   ;;  %v16899_v24 = vld [vmem:[%s17866_s15 + $0xc6c] ss:$16 sps:$4 sm:$0xff]  }
 0xc44   : > { %13128 = vmatprep.subr.bf16.mxu1 %v16821_v62  ;;  %v16894_v62 = vld [vmem:[%s17866_s15 + $0xc60] ss:$16 sps:$4 sm:$0xff]  }
 0xc46   : > { %12801 = vmatpush1.bf16.msra.mxu0 %v16816_v25  ;;  %v16897_v25 = vld [vmem:[%s17866_s15 + $0xc68] ss:$16 sps:$4 sm:$0xff]  }
 0xc47   : > { %13129 = vmatpush1.bf16.msra.mxu1 %v16819_v26  ;;  %12802 = vmatprep.subr.bf16.mxu0 %v16824_v27  ;;  %v16902_v26 = vld [vmem:[%s17866_s15 + $0xc84] ss:$16 sps:$4 sm:$0xff]   ;;  %v16905_v27 = vld [vmem:[%s17866_s15 + $0xc8c] ss:$16 sps:$4 sm:$0xff]  }
 0xc48   : > { %13130 = vmatprep.subr.bf16.mxu1 %v16827_v55  ;;  %v16900_v55 = vld [vmem:[%s17866_s15 + $0xc80] ss:$16 sps:$4 sm:$0xff]  }
 0xc4a   : > { %12803 = vmatpush1.bf16.msra.mxu0 %v16822_v28  ;;  %v16903_v28 = vld [vmem:[%s17866_s15 + $0xc88] ss:$16 sps:$4 sm:$0xff]  }
 0xc4b   : > { %13131 = vmatpush1.bf16.msra.mxu1 %v16825_v29  ;;  %12804 = vmatprep.subr.bf16.mxu0 %v16830_v30  ;;  %v16908_v29 = vld [vmem:[%s17866_s15 + $0xca4] ss:$16 sps:$4 sm:$0xff]   ;;  %v16911_v30 = vld [vmem:[%s17866_s15 + $0xcac] ss:$16 sps:$4 sm:$0xff]  }
 0xc4c   : > { %13132 = vmatprep.subr.bf16.mxu1 %v16833_v31  ;;  %v16906_v31 = vld [vmem:[%s17866_s15 + $0xca0] ss:$16 sps:$4 sm:$0xff]  }
 0xc4e   : > { %12805 = vmatpush1.bf16.msra.mxu0 %v16828_v15  ;;  %v16909_v15 = vld [vmem:[%s17866_s15 + $0xca8] ss:$16 sps:$4 sm:$0xff]  }
 0xc4f   : > { %13133 = vmatpush1.bf16.msra.mxu1 %v16831_v53  ;;  %12806 = vmatprep.subr.bf16.mxu0 %v16836_v32  ;;  %v16914_v53 = vld [vmem:[%s17866_s15 + $0xcc4] ss:$16 sps:$4 sm:$0xff]   ;;  %v16917_v32 = vld [vmem:[%s17866_s15 + $0xccc] ss:$16 sps:$4 sm:$0xff]  }
 0xc50   : > { %13134 = vmatprep.subr.bf16.mxu1 %v16839_v34  ;;  %v16912_v34 = vld [vmem:[%s17866_s15 + $0xcc0] ss:$16 sps:$4 sm:$0xff]  }
 0xc52   : > { %12807 = vmatpush1.bf16.msra.mxu0 %v16834_v36  ;;  %v16915_v36 = vld [vmem:[%s17866_s15 + $0xcc8] ss:$16 sps:$4 sm:$0xff]  }
 0xc53   : > { %13135 = vmatpush1.bf16.msra.mxu1 %v16837_v57  ;;  %12808 = vmatprep.subr.bf16.mxu0 %v16842_v37  ;;  %v16920_v57 = vld [vmem:[%s17866_s15 + $0xce4] ss:$16 sps:$4 sm:$0xff]   ;;  %v16923_v37 = vld [vmem:[%s17866_s15 + $0xcec] ss:$16 sps:$4 sm:$0xff]  }
 0xc54   : > { %13136 = vmatprep.subr.bf16.mxu1 %v16845_v44  ;;  %v16918_v44 = vld [vmem:[%s17866_s15 + $0xce0] ss:$16 sps:$4 sm:$0xff]  }
 0xc56   : > { %12809 = vmatpush1.bf16.msra.mxu0 %v16840_v38  ;;  %v16921_v38 = vld [vmem:[%s17866_s15 + $0xce8] ss:$16 sps:$4 sm:$0xff]  }
 0xc57   : > { %13137 = vmatpush1.bf16.msra.mxu1 %v16843_v33  ;;  %12810 = vmatprep.subr.bf16.mxu0 %v16848_v39  ;;  %v16926_v33 = vld [vmem:[%s17866_s15 + $0xd04] ss:$16 sps:$4 sm:$0xff]   ;;  %v16929_v39 = vld [vmem:[%s17866_s15 + $0xd0c] ss:$16 sps:$4 sm:$0xff]  }
 0xc58   : > { %13138 = vmatprep.subr.bf16.mxu1 %v16851_v40  ;;  %v16924_v40 = vld [vmem:[%s17866_s15 + $0xd00] ss:$16 sps:$4 sm:$0xff]  }
 0xc5a   : > { %12811 = vmatpush1.bf16.msra.mxu0 %v16846_v11  ;;  %v16927_v11 = vld [vmem:[%s17866_s15 + $0xd08] ss:$16 sps:$4 sm:$0xff]  }
 0xc5b   : > { %13139 = vmatpush1.bf16.msra.mxu1 %v16849_v49  ;;  %12812 = vmatprep.subr.bf16.mxu0 %v16854_v43  ;;  %v16932_v49 = vld [vmem:[%s17866_s15 + $0xd24] ss:$16 sps:$4 sm:$0xff]   ;;  %v16935_v43 = vld [vmem:[%s17866_s15 + $0xd2c] ss:$16 sps:$4 sm:$0xff]  }
 0xc5c   : > { %13140 = vmatprep.subr.bf16.mxu1 %v16857_v51  ;;  %v16930_v51 = vld [vmem:[%s17866_s15 + $0xd20] ss:$16 sps:$4 sm:$0xff]  }
 0xc5e   : > { %12813 = vmatpush1.bf16.msra.mxu0 %v16852_v54  ;;  %v16933_v54 = vld [vmem:[%s17866_s15 + $0xd28] ss:$16 sps:$4 sm:$0xff]  }
 0xc5f   : > { %13141 = vmatpush1.bf16.msra.mxu1 %v16855_v59  ;;  %12814 = vmatprep.subr.bf16.mxu0 %v16860_v61  ;;  %v16938_v59 = vld [vmem:[%s17866_s15 + $0xd44] ss:$16 sps:$4 sm:$0xff]   ;;  %v16941_v61 = vld [vmem:[%s17866_s15 + $0xd4c] ss:$16 sps:$4 sm:$0xff]  }
 0xc60   : > { %13142 = vmatprep.subr.bf16.mxu1 %v16863_v0  ;;  %v16936_v0 = vld [vmem:[%s17866_s15 + $0xd40] ss:$16 sps:$4 sm:$0xff]  }
 0xc62   : > { %12815 = vmatpush1.bf16.msra.mxu0 %v16858_v1  ;;  %v16939_v1 = vld [vmem:[%s17866_s15 + $0xd48] ss:$16 sps:$4 sm:$0xff]  }
 0xc63   : > { %13143 = vmatpush1.bf16.msra.mxu1 %v16861_v2  ;;  %12816 = vmatprep.subr.bf16.mxu0 %v16866_v7  ;;  %v16944_v2 = vld [vmem:[%s17866_s15 + $0xd64] ss:$16 sps:$4 sm:$0xff]   ;;  %v16947_v7 = vld [vmem:[%s17866_s15 + $0xd6c] ss:$16 sps:$4 sm:$0xff]  }
 0xc64   : > { %13144 = vmatprep.subr.bf16.mxu1 %v16869_v17  ;;  %v16942_v17 = vld [vmem:[%s17866_s15 + $0xd60] ss:$16 sps:$4 sm:$0xff]  }
 0xc66   : > { %12817 = vmatpush1.bf16.msra.mxu0 %v16864_v6  ;;  %v16945_v6 = vld [vmem:[%s17866_s15 + $0xd68] ss:$16 sps:$4 sm:$0xff]  }
 0xc67   : > { %13145 = vmatpush1.bf16.msra.mxu1 %v16867_v3  ;;  %12818 = vmatprep.subr.bf16.mxu0 %v16872_v4  ;;  %v16950_v3 = vld [vmem:[%s17866_s15 + $0xd84] ss:$16 sps:$4 sm:$0xff]   ;;  %v16953_v4 = vld [vmem:[%s17866_s15 + $0xd8c] ss:$16 sps:$4 sm:$0xff]  }
 0xc68   : > { %13146 = vmatprep.subr.bf16.mxu1 %v16875_v14  ;;  %v16948_v14 = vld [vmem:[%s17866_s15 + $0xd80] ss:$16 sps:$4 sm:$0xff]  }
 0xc6a   : > { %12819 = vmatpush1.bf16.msra.mxu0 %v16870_v45  ;;  %v16951_v45 = vld [vmem:[%s17866_s15 + $0xd88] ss:$16 sps:$4 sm:$0xff]  }
 0xc6b   : > { %13147 = vmatpush1.bf16.msra.mxu1 %v16873_v9  ;;  %12829 = vmatprep.subr.bf16.mxu0 %v16878_v46  ;;  %v16959_v9 = vld [vmem:[%s17866_s15 + $0xdac] ss:$16 sps:$4 sm:$0xff]   ;;  %v16954_v46 = vld [vmem:[%s17866_s15 + $0xda0] ss:$16 sps:$4 sm:$0xff]  }
 0xc6c   : > { %13157 = vmatprep.subr.bf16.mxu1 %v16881_v63  ;;  %v16957_v63 = vld [vmem:[%s17866_s15 + $0xda8] ss:$16 sps:$4 sm:$0xff]  }
 0xc6d   : > { %12821 = vmatmul.mubr.bf16.vlgmr.msra.gmra.mrb[48].mxu0 %v9505_v60 }
 0xc6e   : > { %13149 = vmatmul.mubr.bf16.vlgmr.msra.gmra.mrb[48].mxu1 %v9505_v60  ;;  %12830 = vmatpush1.bf16.msra.mxu0 %v16876_v58  ;;  %v16965_v58 = vld [vmem:[%s17866_s15 + $0xdcc] ss:$16 sps:$4 sm:$0xff]   ;;  %v16960_v60 = vld [vmem:[%s17866_s15 + $0xdc0] ss:$16 sps:$4 sm:$0xff]  }
 0xc6f   : > { %12861 = vmatprep.mubr.bf16.mxu0 %v9508_v35  ;;  %13158 = vmatpush1.bf16.msra.mxu1 %v16879_v16  ;;  %v16963_v16 = vld [vmem:[%s17866_s15 + $0xdc8] ss:$16 sps:$4 sm:$0xff]  }
 0xc70   : > { %13189 = vmatprep.mubr.bf16.mxu1 %v9508_v35  ;;  %12831 = vmatprep.subr.bf16.mxu0 %v16884_v10  ;;  %v16968_v10 = vld [vmem:[%s17866_s15 + $0xde4] ss:$16 sps:$4 sm:$0xff]   ;;  %v16971_v35 = vld [vmem:[%s17866_s15 + $0xdec] ss:$16 sps:$4 sm:$0xff]  }
 0xc71   : > { %13159 = vmatprep.subr.bf16.mxu1 %v16887_v18  ;;  %v16966_v18 = vld [vmem:[%s17866_s15 + $0xde0] ss:$16 sps:$4 sm:$0xff]  }
 0xc72   : > { %12832 = vmatpush1.bf16.msra.mxu0 %v16882_v41  ;;  %v9491_v41 = vmax.f32 %v19499_v56, 0.0  ;;  %v16980_v56 = vld [vmem:[%s17866_s15 + $0xe24] ss:$16 sps:$4 sm:$0xff]  }
 0xc73   : > { %13160 = vmatpush1.bf16.msra.mxu1 %v16885_v12  ;;  %12833 = vmatprep.subr.bf16.mxu0 %v16890_v19  ;;  %v16969_v12 = vld [vmem:[%s17866_s15 + $0xde8] ss:$16 sps:$4 sm:$0xff]   ;;  %v16974_v19 = vld [vmem:[%s17866_s15 + $0xe04] ss:$16 sps:$4 sm:$0xff]  }
 0xc74   : > { %13161 = vmatprep.subr.bf16.mxu1 %v16893_v21  ;;  %v16977_v21 = vld [vmem:[%s17866_s15 + $0xe0c] ss:$16 sps:$4 sm:$0xff]  }
 0xc76   : > { %12834 = vmatpush1.bf16.msra.mxu0 %v16888_v22  ;;  %v9494_v22 = vmax.f32 %v19506_v42, 0.0  ;;  %v16978_v42 = vld [vmem:[%s17866_s15 + $0xe20] ss:$16 sps:$4 sm:$0xff]  }
 0xc77   : > { %13162 = vmatpush1.bf16.msra.mxu1 %v16891_v8  ;;  %12835 = vmatprep.subr.bf16.mxu0 %v16896_v23  ;;  %v16972_v8 = vld [vmem:[%s17866_s15 + $0xe00] ss:$16 sps:$4 sm:$0xff]   ;;  %v9507_v23 = vpack.c.bf16 %v9491_v41, %v9491_v41 }
 0xc78   : > { %13163 = vmatprep.subr.bf16.mxu1 %v16899_v24  ;;  %v16975_v24 = vld [vmem:[%s17866_s15 + $0xe08] ss:$16 sps:$4 sm:$0xff]   ;;  %v17050_v41 = vld [vmem:[%s17866_s15 + $0xfa0] ss:$16 sps:$4 sm:$0xff]  }
 0xc7a   : > { %12836 = vmatpush1.bf16.msra.mxu0 %v16894_v62  ;;  %v9510_v62 = vpack.c.bf16 %v9494_v22, %v9494_v22  ;;  %v17056_v22 = vld [vmem:[%s17866_s15 + $0xfc0] ss:$16 sps:$4 sm:$0xff]  }
 0xc7b   : > { %13164 = vmatpush1.bf16.msra.mxu1 %v16897_v25  ;;  %12837 = vmatprep.subr.bf16.mxu0 %v16902_v26  ;;  %v16983_v25 = vld [vmem:[%s17866_s15 + $0xe2c] ss:$16 sps:$4 sm:$0xff]   ;;  %v16981_v26 = vld [vmem:[%s17866_s15 + $0xe28] ss:$16 sps:$4 sm:$0xff]  }
 0xc7c   : > { %13165 = vmatprep.subr.bf16.mxu1 %v16905_v27  ;;  %v16986_v27 = vld [vmem:[%s17866_s15 + $0xe44] ss:$16 sps:$4 sm:$0xff]  }
 0xc7e   : > { %12838 = vmatpush1.bf16.msra.mxu0 %v16900_v55  ;;  %v16989_v55 = vld [vmem:[%s17866_s15 + $0xe4c] ss:$16 sps:$4 sm:$0xff]  }
 0xc7f   : > { %13166 = vmatpush1.bf16.msra.mxu1 %v16903_v28  ;;  %12839 = vmatprep.subr.bf16.mxu0 %v16908_v29  ;;  %v16984_v28 = vld [vmem:[%s17866_s15 + $0xe40] ss:$16 sps:$4 sm:$0xff]   ;;  %v16987_v29 = vld [vmem:[%s17866_s15 + $0xe48] ss:$16 sps:$4 sm:$0xff]  }
 0xc80   : > { %13167 = vmatprep.subr.bf16.mxu1 %v16911_v30  ;;  %v16992_v30 = vld [vmem:[%s17866_s15 + $0xe64] ss:$16 sps:$4 sm:$0xff]  }
 0xc82   : > { %12840 = vmatpush1.bf16.msra.mxu0 %v16906_v31  ;;  %v16995_v31 = vld [vmem:[%s17866_s15 + $0xe6c] ss:$16 sps:$4 sm:$0xff]  }
 0xc83   : > { %13168 = vmatpush1.bf16.msra.mxu1 %v16909_v15  ;;  %12841 = vmatprep.subr.bf16.mxu0 %v16914_v53  ;;  %v16990_v15 = vld [vmem:[%s17866_s15 + $0xe60] ss:$16 sps:$4 sm:$0xff]   ;;  %v16993_v53 = vld [vmem:[%s17866_s15 + $0xe68] ss:$16 sps:$4 sm:$0xff]  }
 0xc84   : > { %13169 = vmatprep.subr.bf16.mxu1 %v16917_v32  ;;  %v16998_v32 = vld [vmem:[%s17866_s15 + $0xe84] ss:$16 sps:$4 sm:$0xff]  }
 0xc86   : > { %12842 = vmatpush1.bf16.msra.mxu0 %v16912_v34  ;;  %v17001_v34 = vld [vmem:[%s17866_s15 + $0xe8c] ss:$16 sps:$4 sm:$0xff]  }
 0xc87   : > { %13170 = vmatpush1.bf16.msra.mxu1 %v16915_v36  ;;  %12843 = vmatprep.subr.bf16.mxu0 %v16920_v57  ;;  %v16996_v36 = vld [vmem:[%s17866_s15 + $0xe80] ss:$16 sps:$4 sm:$0xff]   ;;  %v16999_v57 = vld [vmem:[%s17866_s15 + $0xe88] ss:$16 sps:$4 sm:$0xff]  }
 0xc88   : > { %13171 = vmatprep.subr.bf16.mxu1 %v16923_v37  ;;  %v17004_v37 = vld [vmem:[%s17866_s15 + $0xea4] ss:$16 sps:$4 sm:$0xff]  }
 0xc8a   : > { %12844 = vmatpush1.bf16.msra.mxu0 %v16918_v44  ;;  %v17007_v44 = vld [vmem:[%s17866_s15 + $0xeac] ss:$16 sps:$4 sm:$0xff]  }
 0xc8b   : > { %13172 = vmatpush1.bf16.msra.mxu1 %v16921_v38  ;;  %12845 = vmatprep.subr.bf16.mxu0 %v16926_v33  ;;  %v17002_v38 = vld [vmem:[%s17866_s15 + $0xea0] ss:$16 sps:$4 sm:$0xff]   ;;  %v17005_v33 = vld [vmem:[%s17866_s15 + $0xea8] ss:$16 sps:$4 sm:$0xff]  }
 0xc8c   : > { %13173 = vmatprep.subr.bf16.mxu1 %v16929_v39  ;;  %v17010_v39 = vld [vmem:[%s17866_s15 + $0xec4] ss:$16 sps:$4 sm:$0xff]  }
 0xc8e   : > { %12846 = vmatpush1.bf16.msra.mxu0 %v16924_v40  ;;  %v17013_v40 = vld [vmem:[%s17866_s15 + $0xecc] ss:$16 sps:$4 sm:$0xff]  }
 0xc8f   : > { %13174 = vmatpush1.bf16.msra.mxu1 %v16927_v11  ;;  %12847 = vmatprep.subr.bf16.mxu0 %v16932_v49  ;;  %v17008_v11 = vld [vmem:[%s17866_s15 + $0xec0] ss:$16 sps:$4 sm:$0xff]   ;;  %v17011_v49 = vld [vmem:[%s17866_s15 + $0xec8] ss:$16 sps:$4 sm:$0xff]  }
 0xc90   : > { %13175 = vmatprep.subr.bf16.mxu1 %v16935_v43  ;;  %v17016_v43 = vld [vmem:[%s17866_s15 + $0xee4] ss:$16 sps:$4 sm:$0xff]  }
 0xc92   : > { %12848 = vmatpush1.bf16.msra.mxu0 %v16930_v51  ;;  %v17019_v51 = vld [vmem:[%s17866_s15 + $0xeec] ss:$16 sps:$4 sm:$0xff]  }
 0xc93   : > { %13176 = vmatpush1.bf16.msra.mxu1 %v16933_v54  ;;  %12849 = vmatprep.subr.bf16.mxu0 %v16938_v59  ;;  %v17014_v54 = vld [vmem:[%s17866_s15 + $0xee0] ss:$16 sps:$4 sm:$0xff]   ;;  %v17017_v59 = vld [vmem:[%s17866_s15 + $0xee8] ss:$16 sps:$4 sm:$0xff]  }
 0xc94   : > { %13177 = vmatprep.subr.bf16.mxu1 %v16941_v61  ;;  %v17022_v61 = vld [vmem:[%s17866_s15 + $0xf04] ss:$16 sps:$4 sm:$0xff]  }
 0xc96   : > { %12850 = vmatpush1.bf16.msra.mxu0 %v16936_v0  ;;  %v17025_v0 = vld [vmem:[%s17866_s15 + $0xf0c] ss:$16 sps:$4 sm:$0xff]  }
 0xc97   : > { %13178 = vmatpush1.bf16.msra.mxu1 %v16939_v1  ;;  %12851 = vmatprep.subr.bf16.mxu0 %v16944_v2  ;;  %v17020_v1 = vld [vmem:[%s17866_s15 + $0xf00] ss:$16 sps:$4 sm:$0xff]   ;;  %v17023_v2 = vld [vmem:[%s17866_s15 + $0xf08] ss:$16 sps:$4 sm:$0xff]  }
 0xc98   : > { %13179 = vmatprep.subr.bf16.mxu1 %v16947_v7  ;;  %v17028_v7 = vld [vmem:[%s17866_s15 + $0xf24] ss:$16 sps:$4 sm:$0xff]  }
 0xc9a   : > { %12852 = vmatpush1.bf16.msra.mxu0 %v16942_v17  ;;  %v17031_v17 = vld [vmem:[%s17866_s15 + $0xf2c] ss:$16 sps:$4 sm:$0xff]  }
 0xc9b   : > { %13180 = vmatpush1.bf16.msra.mxu1 %v16945_v6  ;;  %12853 = vmatprep.subr.bf16.mxu0 %v16950_v3  ;;  %v17026_v6 = vld [vmem:[%s17866_s15 + $0xf20] ss:$16 sps:$4 sm:$0xff]   ;;  %v17029_v3 = vld [vmem:[%s17866_s15 + $0xf28] ss:$16 sps:$4 sm:$0xff]  }
 0xc9c   : > { %13181 = vmatprep.subr.bf16.mxu1 %v16953_v4  ;;  %v17034_v4 = vld [vmem:[%s17866_s15 + $0xf44] ss:$16 sps:$4 sm:$0xff]  }
 0xc9e   : > { %12854 = vmatpush1.bf16.msra.mxu0 %v16948_v14  ;;  %v17037_v14 = vld [vmem:[%s17866_s15 + $0xf4c] ss:$16 sps:$4 sm:$0xff]  }
 0xc9f   : > { %13182 = vmatpush1.bf16.msra.mxu1 %v16951_v45  ;;  %12855 = vmatprep.subr.bf16.mxu0 %v16956_v5  ;;  %v17032_v45 = vld [vmem:[%s17866_s15 + $0xf40] ss:$16 sps:$4 sm:$0xff]   ;;  %v17035_v5 = vld [vmem:[%s17866_s15 + $0xf48] ss:$16 sps:$4 sm:$0xff]  }
 0xca0   : > { %13183 = vmatprep.subr.bf16.mxu1 %v16959_v9  ;;  %v17040_v9 = vld [vmem:[%s17866_s15 + $0xf64] ss:$16 sps:$4 sm:$0xff]  }
 0xca2   : > { %12856 = vmatpush1.bf16.msra.mxu0 %v16954_v46  ;;  %v17043_v46 = vld [vmem:[%s17866_s15 + $0xf6c] ss:$16 sps:$4 sm:$0xff]  }
 0xca3   : > { %13184 = vmatpush1.bf16.msra.mxu1 %v16957_v63  ;;  %12857 = vmatprep.subr.bf16.mxu0 %v16962_v47  ;;  %v17038_v63 = vld [vmem:[%s17866_s15 + $0xf60] ss:$16 sps:$4 sm:$0xff]   ;;  %v17041_v47 = vld [vmem:[%s17866_s15 + $0xf68] ss:$16 sps:$4 sm:$0xff]  }
 0xca4   : > { %13185 = vmatprep.subr.bf16.mxu1 %v16965_v58  ;;  %v17046_v58 = vld [vmem:[%s17866_s15 + $0xf84] ss:$16 sps:$4 sm:$0xff]  }
 0xca6   : > { %12858 = vmatpush1.bf16.msra.mxu0 %v16960_v60  ;;  %v17049_v60 = vld [vmem:[%s17866_s15 + $0xf8c] ss:$16 sps:$4 sm:$0xff]  }
 0xca7   : > { %13186 = vmatpush1.bf16.msra.mxu1 %v16963_v16  ;;  %12859 = vmatprep.subr.bf16.mxu0 %v16968_v10  ;;  %v17044_v16 = vld [vmem:[%s17866_s15 + $0xf80] ss:$16 sps:$4 sm:$0xff]   ;;  %v17047_v10 = vld [vmem:[%s17866_s15 + $0xf88] ss:$16 sps:$4 sm:$0xff]  }
 0xca8   : > { %13187 = vmatprep.subr.bf16.mxu1 %v16971_v35  ;;  %v17052_v35 = vld [vmem:[%s17866_s15 + $0xfa4] ss:$16 sps:$4 sm:$0xff]  }
 0xcaa   : > { %12860 = vmatpush1.bf16.msra.mxu0 %v16966_v18  ;;  %v17055_v18 = vld [vmem:[%s17866_s15 + $0xfac] ss:$16 sps:$4 sm:$0xff]  }
 0xcab   : > { %13188 = vmatpush1.bf16.msra.mxu1 %v16969_v12  ;;  %12870 = vmatprep.subr.bf16.mxu0 %v16974_v19  ;;  %v17053_v12 = vld [vmem:[%s17866_s15 + $0xfa8] ss:$16 sps:$4 sm:$0xff]   ;;  %v17058_v19 = vld [vmem:[%s17866_s15 + $0xfc4] ss:$16 sps:$4 sm:$0xff]  }
 0xcac   : > { %13198 = vmatprep.subr.bf16.mxu1 %v16977_v21  ;;  %v17061_v21 = vld [vmem:[%s17866_s15 + $0xfcc] ss:$16 sps:$4 sm:$0xff]  }
 0xcad   : > { %12862 = vmatmul.mubr.bf16.vlgmr.msra.gmra.mrb[48].mxu0 %v9507_v23 }
 0xcae   : > { %13190 = vmatmul.mubr.bf16.vlgmr.msra.gmra.mrb[48].mxu1 %v9507_v23  ;;  %12871 = vmatpush1.bf16.msra.mxu0 %v16972_v8  ;;  %v17059_v8 = vld [vmem:[%s17866_s15 + $0xfc8] ss:$16 sps:$4 sm:$0xff]   ;;  %v17064_v23 = vld [vmem:[%s17866_s15 + $0xfe4] ss:$16 sps:$4 sm:$0xff]  }
 0xcaf   : > { %12902 = vmatprep.mubr.bf16.mxu0 %v9510_v62  ;;  %13199 = vmatpush1.bf16.msra.mxu1 %v16975_v24  ;;  %v17067_v24 = vld [vmem:[%s17866_s15 + $0xfec] ss:$16 sps:$4 sm:$0xff]  }
 0xcb0   : > { %13230 = vmatprep.mubr.bf16.mxu1 %v9510_v62  ;;  %12872 = vmatprep.subr.bf16.mxu0 %v16980_v56  ;;  %v17062_v56 = vld [vmem:[%s17866_s15 + $0xfe0] ss:$16 sps:$4 sm:$0xff]   ;;  %v9493_v62 = vmax.f32 %v19502_v13, 0.0 }
 0xcb1   : > { %13200 = vmatprep.subr.bf16.mxu1 %v16983_v25  ;;  %v17065_v25 = vld [vmem:[%s17866_s15 + $0xfe8] ss:$16 sps:$4 sm:$0xff]   ;;  %s19972_s15 = sld [smem:[#allocation32_spill]] }
 0xcb2   : > { %12873 = vmatpush1.bf16.msra.mxu0 %v16978_v42  ;;  %v9509_v42 = vpack.c.bf16 %v9493_v62, %v9493_v62 }
 0xcb3   : > { %13201 = vmatpush1.bf16.msra.mxu1 %v16981_v26  ;;  %12874 = vmatprep.subr.bf16.mxu0 %v16986_v27 }
 0xcb4   : > { %13202 = vmatprep.subr.bf16.mxu1 %v16989_v55 }
 0xcb6   : > { %12875 = vmatpush1.bf16.msra.mxu0 %v16984_v28 }
 0xcb7   : > { %13203 = vmatpush1.bf16.msra.mxu1 %v16987_v29  ;;  %12876 = vmatprep.subr.bf16.mxu0 %v16992_v30  ;;  %p19975_p8 = scmp.ne.s32.totalorder %s19972_s15, 0 }
 0xcb8   : > { %13204 = vmatprep.subr.bf16.mxu1 %v16995_v31 }
 0xcb9   : > { %p17290_p9 = pnand %p17289_p5, %p19975_p8 }
 0xcba   : > { %12877 = vmatpush1.bf16.msra.mxu0 %v16990_v15 }
 0xcbb   : > { %13205 = vmatpush1.bf16.msra.mxu1 %v16993_v53  ;;  %12878 = vmatprep.subr.bf16.mxu0 %v16998_v32  ;;  %p17291_p1 = pneg %p17290_p9 }
 0xcbc   : > { %13206 = vmatprep.subr.bf16.mxu1 %v17001_v34 }
 0xcbd   : > { %p17298_p10 = pnand %p17297_p13, %p17291_p1 }
 0xcbe   : > { %12879 = vmatpush1.bf16.msra.mxu0 %v16996_v36 }
 0xcbf   : > { %13207 = vmatpush1.bf16.msra.mxu1 %v16999_v57  ;;  %12880 = vmatprep.subr.bf16.mxu0 %v17004_v37 }
 0xcc0   : > { %13208 = vmatprep.subr.bf16.mxu1 %v17007_v44 }
 0xcc2   : > { %12881 = vmatpush1.bf16.msra.mxu0 %v17002_v38 }
 0xcc3   : > { %13209 = vmatpush1.bf16.msra.mxu1 %v17005_v33  ;;  %12882 = vmatprep.subr.bf16.mxu0 %v17010_v39 }
 0xcc4   : > { %13210 = vmatprep.subr.bf16.mxu1 %v17013_v40 }
 0xcc6   : > { %12883 = vmatpush1.bf16.msra.mxu0 %v17008_v11 }
 0xcc7   : > { %13211 = vmatpush1.bf16.msra.mxu1 %v17011_v49  ;;  %12884 = vmatprep.subr.bf16.mxu0 %v17016_v43 }
 0xcc8   : > { %13212 = vmatprep.subr.bf16.mxu1 %v17019_v51 }
 0xcca   : > { %12885 = vmatpush1.bf16.msra.mxu0 %v17014_v54 }
 0xccb   : > { %13213 = vmatpush1.bf16.msra.mxu1 %v17017_v59  ;;  %12886 = vmatprep.subr.bf16.mxu0 %v17022_v61 }
 0xccc   : > { %13214 = vmatprep.subr.bf16.mxu1 %v17025_v0 }
 0xcce   : > { %12887 = vmatpush1.bf16.msra.mxu0 %v17020_v1 }
 0xccf   : > { %13215 = vmatpush1.bf16.msra.mxu1 %v17023_v2  ;;  %12888 = vmatprep.subr.bf16.mxu0 %v17028_v7 }
 0xcd0   : > { %13216 = vmatprep.subr.bf16.mxu1 %v17031_v17 }
 0xcd2   : > { %12889 = vmatpush1.bf16.msra.mxu0 %v17026_v6 }
 0xcd3   : > { %13217 = vmatpush1.bf16.msra.mxu1 %v17029_v3  ;;  %12890 = vmatprep.subr.bf16.mxu0 %v17034_v4 }
 0xcd4   : > { %13218 = vmatprep.subr.bf16.mxu1 %v17037_v14 }
 0xcd6   : > { %12891 = vmatpush1.bf16.msra.mxu0 %v17032_v45 }
 0xcd7   : > { %13219 = vmatpush1.bf16.msra.mxu1 %v17035_v5  ;;  %12892 = vmatprep.subr.bf16.mxu0 %v17040_v9 }
 0xcd8   : > { %13220 = vmatprep.subr.bf16.mxu1 %v17043_v46 }
 0xcda   : > { %12893 = vmatpush1.bf16.msra.mxu0 %v17038_v63 }
 0xcdb   : > { %13221 = vmatpush1.bf16.msra.mxu1 %v17041_v47  ;;  %12894 = vmatprep.subr.bf16.mxu0 %v17046_v58 }
 0xcdc   : > { %13222 = vmatprep.subr.bf16.mxu1 %v17049_v60 }
 0xcde   : > { %12895 = vmatpush1.bf16.msra.mxu0 %v17044_v16 }
 0xcdf   : > { %13223 = vmatpush1.bf16.msra.mxu1 %v17047_v10  ;;  %12896 = vmatprep.subr.bf16.mxu0 %v17052_v35 }
 0xce0   : > { %13224 = vmatprep.subr.bf16.mxu1 %v17055_v18 }
 0xce2   : > { %12897 = vmatpush1.bf16.msra.mxu0 %v17050_v41 }
 0xce3   : > { %13225 = vmatpush1.bf16.msra.mxu1 %v17053_v12  ;;  %12898 = vmatprep.subr.bf16.mxu0 %v17058_v19 }
 0xce4   : > { %13226 = vmatprep.subr.bf16.mxu1 %v17061_v21 }
 0xce6   : > { %12899 = vmatpush1.bf16.msra.mxu0 %v17056_v22 }
 0xce7   : > { %13227 = vmatpush1.bf16.msra.mxu1 %v17059_v8  ;;  %12900 = vmatprep.subr.bf16.mxu0 %v17064_v23 }
 0xce8   : > { %13228 = vmatprep.subr.bf16.mxu1 %v17067_v24 }
 0xcea   : > { %12901 = vmatpush1.bf16.msra.mxu0 %v17062_v56 }
 0xceb   : > { %13229 = vmatpush1.bf16.msra.mxu1 %v17065_v25 }
 0xced   : > { %12903 = vmatmul.mubr.bf16.vlgmr.msra.gmra.mrb[48].mxu0 %v9509_v42 }
 0xcee   : > { %13231 = vmatmul.mubr.bf16.vlgmr.msra.gmra.mrb[48].mxu1 %v9509_v42 }
 0xdc0   : > { %v12904_v26 = vpop.f32.mrb[48].mxu0 }
 0xdc1   : > { %v15273_v27 = vadd.f32 %v12904_v26, %v18749_v50  ;;  %v13232_v55 = vpop.f32.mrb[48].mxu1  ;;  %v12906_v28 = vpop.f32.mrb[49].mxu0 }
 0xdc2   : > { %v15274_v29 = vadd.f32 %v12906_v28, %v18745_v48  ;;  %v13234_v30 = vpop.f32.mrb[49].mxu1  ;;  %v12908_v31 = vpop.f32.mrb[50].mxu0  ;;  %v15275_v53 = vadd.f32 %v13232_v55, %v18839_v20 }
 0xdc3   : > { %v13236_v15 = vpop.f32.mrb[50].mxu1  ;;  %v12909_v13 = vpop.f32.mrb[51].mxu0  ;;  %v15276_v36 = vadd.f32 %v13234_v30, %v18754_v52 }
 0xdc4   : > { %v13239_v32 = vadd.f32 %v15274_v29, %v15273_v27  ;;  %v13237_v34 = vpop.f32.mrb[51].mxu1 }
 0xdc6   : > { %v13240_v57 = vadd.f32 %v15275_v53, %v13239_v32 }
 0xdc8   : > { %v13241_v37 = vadd.f32 %v15276_v36, %v13240_v57 }
 0xdca   : > { %13242 = vadd.xlane.f32.xlu0 %v13241_v37 }
 0xe57   : > { %v13243_v44 = vpop.xlane.xlu0 %13242 }
 0xe58   : > { %v13244_v38 = vmul.f32 0.001953125, %v13243_v44 }
 0xe5a   : > { %v13245_v50 = vsub.f32 %v15273_v27, %v13244_v38  ;;  %v13246_v33 = vsub.f32 %v15274_v29, %v13244_v38  ;;  %v13247_v48 = vsub.f32 %v15275_v53, %v13244_v38  ;;  %v13248_v39 = vsub.f32 %v15276_v36, %v13244_v38 }
 0xe5c   : > { %v13249_v40 = vmul.f32 %v13245_v50, %v13245_v50  ;;  %v13250_v11 = vmul.f32 %v13246_v33, %v13246_v33  ;;  %v13251_v49 = vmul.f32 %v13247_v48, %v13247_v48  ;;  %v13252_v20 = vmul.f32 %v13248_v39, %v13248_v39 }
 0xe5e   : > { %v13253_v43 = vadd.f32 %v13250_v11, %v13249_v40 }
 0xe60   : > { %v13254_v51 = vadd.f32 %v13253_v43, %v13251_v49 }
 0xe62   : > { %v13255_v54 = vadd.f32 %v13254_v51, %v13252_v20 }
 0xe64   : > { %13256 = vadd.xlane.f32.xlu0 %v13255_v54 }
 0xef1   : > { %v13257_v52 = vpop.xlane.xlu0 %13256 }
 0xef2   : > { %v13258_v59 = vmul.f32 0.001953125, %v13257_v52 }
 0xef4   : > { %v13259_v61 = vadd.f32 1e-05, %v13258_v59 }
 0xef6   : > { %17102 = vrsqrt.f32 %v13259_v61 }
 0xf00   : > { %v17103_v0 = vpop.eup %17102 }
 0xf01   : > { %v13261_v1 = vmul.f32 %v17103_v0, %v13245_v50  ;;  %v13262_v2 = vmul.f32 %v17103_v0, %v13246_v33  ;;  %v13263_v7 = vmul.f32 %v17103_v0, %v13247_v48  ;;  %v13264_v17 = vmul.f32 %v17103_v0, %v13248_v39 }
 0xf03   : > { %13265 = vst [vmem:[%s17895_s6] sm:$0xff] %v13261_v1  ;;  %13266 = vst [vmem:[%s17895_s6 + $0x8] sm:$0xff] %v13262_v2 }
 0xf04   : > { %13267 = vst [vmem:[%s17895_s6 + $0x10] sm:$0xff] %v13263_v7  ;;  %13268 = vst [vmem:[%s17895_s6 + $0x18] sm:$0xff] %v13264_v17 }
 0xf05   : > { %17301 = shalt.err (!%p17298_p10)
}
 0xf06   : > { %s17302_s6 = scalar_lea.hbm %s19820_s9, 512  ;;  %s17306_s18 = scalar_lea.hbm %s19973_s5, 1024 }
 0xf07   : > { %p17303_p3 = scmp.ne.s32.totalorder %s19820_s9, %s17302_s6  ;;  %p17307_p4 = scmp.lt.u32.totalorder %s19820_s9, %s19973_s5 }
 0xf08   : > { %p17308_p11 = scmp.lt.u32.totalorder %s17306_s18, %s17302_s6  ;;  %p17310_p5 = scmp.lt.u32.totalorder %s17302_s6, %s19820_s9 }
 0xf09   : > { %p17304_p6 = pnand %p17303_p3, %p19975_p8 }
 0xf0a   : > { %p17309_p12 = por %p17308_p11, %p17307_p4 }
 0xf0b   : > { %p17305_p7 = pneg %p17304_p6 }
 0xf0c   : > { %p17311_p9 = por %p17310_p5, %p17309_p12 }
 0xf0e   : > { %p17312_p1 = pnand %p17311_p9, %p17305_p7 }
 0xf10   : > { %17315 = shalt.err (!%p17312_p1)
}
 0xf11   : > { %15410 = dma.vmem_to_hbm [thread:$0]  (%p19975_p8), %s19822_s12, 512, %s19820_s9, %s13270_s28  }
 0xf12 PF: > { %s19976_s20 = sld [smem:[#allocation27_spill]]  ;;  %s19977_s23 = sld [smem:[#allocation20_spill]] }
 0xf13   : > { %s19978_s29 = sld [smem:[#allocation33_spill]] }
 0xf18   : > { %p15436_p2 = scmp.ge.s32.totalorder %s19976_s20, 2  ;;  %s13308_s2 = sand.u32 1, %s19977_s23  }
 0xf19   : > { %p19979_p0 = scmp.ne.s32.totalorder %s19978_s29, 0  ;;  %s13309_s19 = scalar_lea.sflag [#allocation5], %s13308_s2 }
 0xf1b   : > { %p15432_p13 = pnand %p15436_p2, %p19979_p0 }
 0xf1d   : > { %17377 = dma.done.wait (!%p15432_p13), %s13309_s19, 512  }
 0xf1e   : > { %17379 = vsyncadd (!%p15432_p13), %s13309_s19, 4294966784  ;;  %s35_s19 = sadd.s32 1, %s19976_s20   ;;  %s19980_s30 = sld [smem:[#allocation21_spill]] }
 0xf1f   : > { %p32_p10 = scmp.ge.s32.totalorder %s35_s19, 14   ;;  %s19981_s10 = sld [smem:[#allocation22_spill]] }
 0xf20   : > { %s19982_s11 = sld [smem:[#allocation31_spill]]  ;;  %s19983_s1 = sld [smem:[#allocation23_spill]] }
 0xf21   : > { %s19984_s14 = sld [smem:[#allocation30_spill]]  ;;  %s19985_s16 = sld [smem:[#allocation26_spill]] }
 0xf22   : > { %s19986_s27 = sld [smem:[#allocation28_spill]]  ;;  %s19987_s18 = sld [smem:[#allocation29_spill]] }
 0xf23   : > { %s19988_s12 = smov %s17398_s13  ;;  %s19990_s15 = smov %s17414_s17 }
 0xf24   :  { %34 = sbr.rel (!%p32_p10) target bundleno = 25 (0x19), region = 180 }
 0xf26   : > { %s19989_s13 = smov %s19983_s1 }
 0xf28   : > { %s19991_s17 = smov %s19986_s27 }
 0xf2b   :  { %13326 = vsyncpa [#allocation4], 1 }
 0xf2c   :  { %13328 = vsyncpa [#allocation4 + $0x1], 1 }
 0xf2d   :  { %13329 = vsyncpa [#allocation7], 1 }
 0xf2e   :  { %13331 = vsyncpa [#allocation7 + $0x1], 1 }
 0xf2f   :  { %13332 = vsyncpa [#allocation10], 1 }
 0xf30   :  { %13334 = vsyncpa [#allocation10 + $0x1], 1 }
 0xf31   :  { %13335 = vsyncpa [#allocation13], 1 }
 0xf32   :  { %13337 = vsyncpa [#allocation13 + $0x1], 1 }
 0xf33   :  { %13338 = vsyncpa [#allocation5], 1 }
 0xf34   :  { %13340 = vsyncpa [#allocation5 + $0x1], 1 }

</bundles_post_ra>
